<compile_context>
chip_gen: v6e
topology: v6e:2x2x1
jax: 0.10.0
libtpu: 0.0.40
codegen_flags: <defaults>
</compile_context>

<pallas_src>
import jax
import jax.numpy as jnp
from jax.experimental import pallas as pl
from jax.experimental.pallas import tpu as pltpu

# Geometry fixed by the nn.Module (16x16 single-channel input).
_H, _W = 16, 16
_C1, _C2, _C3 = 32, 64, 128
_H2, _W2 = _H // 2, _W // 2            # 8, 8   feature map after pool 1
_H3, _W3 = _H2 // 2, _W2 // 2          # 4, 4   feature map after pool 2
# Padded flat planes for the stage-2/3 convs.  Widths padded to 16 / 8 so the
# per-image plane size and all dy tap shifts are sublane(8)-aligned.  The
# interior occupies columns [0, W) and rows [1, H+1); the trailing zero columns
# double as the left/right conv zero-padding (column -1 wraps to the previous
# row's trailing zeros).
_HP2, _WP2 = _H2 + 2, 16               # 10 x 16 -> 160 rows / image
_HP3, _WP3 = _H3 + 2, 8                # 6 x 8   ->  48 rows / image
_PL2 = _HP2 * _WP2
_PL3 = _HP3 * _WP3
_G2, _G3 = 24, 16                      # 8-aligned guard rows >= plane width + 1


def _make_kernel(TB):
    N1 = TB * _H * _W                  # conv-1 output rows (flat pixels)
    N1h = N1 // 2                      # after x-direction max
    N2 = TB * _PL2                     # stage-2 padded-plane rows
    N2h = N2 // 2
    N3 = TB * _PL3                     # stage-3 padded-plane rows

    taps = [(dy, dx) for dy in range(3) for dx in range(3)]

    def kernel(xcols_ref, w1_ref, b1_ref, w2_ref, b2_ref, w3_ref, b3_ref,
               out_ref,
               c1_ref, xm1_ref, ym1_ref, p2_ref, im2_ref, c2_ref,
               xm2_ref, ym2_ref, p3_ref, im3_ref, c3_ref):
        # Zero the padded planes every grid step (scratches persist across
        # steps); untouched borders / trailing columns provide the conv padding.
        p2_ref[...] = jnp.zeros(p2_ref.shape, p2_ref.dtype)
        p3_ref[...] = jnp.zeros(p3_ref.shape, p3_ref.dtype)

        # ------- Stage 1: conv(1->32) + ReLU as one im2col matmul (M=N1) -------
        h1 = jnp.dot(xcols_ref[...], w1_ref[...],
                     preferred_element_type=jnp.float32)              # (N1, 32)
        c1_ref[...] = jnp.maximum(h1 + b1_ref[...], 0.0)

        # ------- Stage-1 2x2 maxpool, vectorized -------
        # x-direction: two whole-plane stride-2 loads (x parity == row parity).
        xm1_ref[pl.ds(0, N1h), :] = jnp.maximum(
            c1_ref[pl.ds(0, N1h, stride=2), :],
            c1_ref[pl.ds(1, N1h, stride=2), :])
        # y-direction: whole-plane max against the plane shifted by one y row;
        # odd-y rows of the result are junk and never read.
        ym1_ref[...] = jnp.maximum(xm1_ref[pl.ds(0, N1h), :],
                                   xm1_ref[pl.ds(_W2, N1h), :])
        # Scatter even-y row blocks into the interior of the padded plane.
        @pl.loop(0, TB)
        def _(b):
            for yo in range(_H2):
                src = pl.multiple_of(b * (_H * _W2) + yo * (2 * _W2), 8)
                dst = pl.multiple_of(_G2 + b * _PL2 + (yo + 1) * _WP2, 8)
                p2_ref[pl.ds(dst, _W2), :] = ym1_ref[pl.ds(src, _W2), :]

        # ------- Stage 2: conv(32->64) + ReLU as ONE K=288 matmul -------
        # Each 3x3 tap is a constant row shift on the flat padded plane; nine
        # whole-plane shifted loads build the im2col operand in VMEM.
        for k, (dy, dx) in enumerate(taps):
            off = (dy - 1) * _WP2 + (dx - 1)
            im2_ref[:, k * _C1:(k + 1) * _C1] = p2_ref[pl.ds(_G2 + off, N2), :]
        h2 = jnp.dot(im2_ref[...], w2_ref[...],
                     preferred_element_type=jnp.float32)              # (N2, 64)
        c2_ref[...] = jnp.maximum(h2 + b2_ref[...], 0.0)

        # ------- Stage-2 2x2 maxpool, vectorized -------
        xm2_ref[pl.ds(0, N2h), :] = jnp.maximum(
            c2_ref[pl.ds(0, N2h, stride=2), :],
            c2_ref[pl.ds(1, N2h, stride=2), :])
        ym2_ref[...] = jnp.maximum(xm2_ref[pl.ds(0, N2h), :],
                                   xm2_ref[pl.ds(_WP2 // 2, N2h), :])
        @pl.loop(0, TB)
        def _(b):
            for yo in range(_H3):
                src = pl.multiple_of(
                    b * (_PL2 // 2) + (2 * yo + 1) * (_WP2 // 2), 8)
                dst = pl.multiple_of(_G3 + b * _PL3 + (yo + 1) * _WP3, 8)
                p3_ref[pl.ds(dst, _W3), :] = ym2_ref[pl.ds(src, _W3), :]

        # ------- Stage 3: conv(64->128) + ReLU as ONE K=576 matmul -------
        for k, (dy, dx) in enumerate(taps):
            off = (dy - 1) * _WP3 + (dx - 1)
            im3_ref[:, k * _C2:(k + 1) * _C2] = p3_ref[pl.ds(_G3 + off, N3), :]
        h3 = jnp.dot(im3_ref[...], w3_ref[...],
                     preferred_element_type=jnp.float32)              # (N3, 128)
        c3_ref[...] = jnp.maximum(h3 + b3_ref[...], 0.0)

        # ------- AdaptiveAvgPool2d(1) + flatten -------
        # 16 lane-dense (TB, 128) strided loads over the interior positions.
        acc = jnp.zeros((TB, _C3), jnp.float32)
        for yp in range(1, _H3 + 1):
            for xq in range(_W3):
                acc = acc + c3_ref[pl.ds(yp * _WP3 + xq, TB, stride=_PL3), :]
        out_ref[...] = acc * (1.0 / (_H3 * _W3))

    return kernel


def _im2col_3x3(x_bhw):
    """(B, 16, 16) -> (B*256, 9) 'SAME' 3x3 patches (layout plumbing only)."""
    B = x_bhw.shape[0]
    xpad = jnp.pad(x_bhw, ((0, 0), (1, 1), (1, 1)))
    cols = [xpad[:, dy:dy + _H, dx:dx + _W] for dy in range(3) for dx in range(3)]
    return jnp.stack(cols, axis=-1).reshape(B * _H * _W, 9)


@jax.jit
def visual_encoder(x_nchw, w1, b1, w2, b2, w3, b3):
    """x_nchw: (B, 1, 16, 16) float32 -> (B, 128) float32."""
    B = x_nchw.shape[0]
    TB = min(8, B)                       # batch tile per grid step
    Bp = ((B + TB - 1) // TB) * TB       # pad batch to a tile multiple
    x = x_nchw[:, 0]
    if Bp != B:
        x = jnp.pad(x, ((0, Bp - B), (0, 0), (0, 0)))

    xcols = _im2col_3x3(x)                               # (Bp*256, 9)
    w1r = w1.reshape(9, _C1)                             # HWIO -> (9, 32)
    w2r = w2.reshape(9 * _C1, _C2)                       # HWIO -> (288, 64)
    w3r = w3.reshape(9 * _C2, _C3)                       # HWIO -> (576, 128)

    N1, N2, N3 = TB * _H * _W, TB * _PL2, TB * _PL3
    out = pl.pallas_call(
        _make_kernel(TB),
        out_shape=jax.ShapeDtypeStruct((Bp, _C3), jnp.float32),
        grid_spec=pltpu.PrefetchScalarGridSpec(
            num_scalar_prefetch=0,
            grid=(Bp // TB,),
            in_specs=[
                pl.BlockSpec((N1, 9), lambda i: (i, 0)),
                pl.BlockSpec((9, _C1), lambda i: (0, 0)),
                pl.BlockSpec((1, _C1), lambda i: (0, 0)),
                pl.BlockSpec((9 * _C1, _C2), lambda i: (0, 0)),
                pl.BlockSpec((1, _C2), lambda i: (0, 0)),
                pl.BlockSpec((9 * _C2, _C3), lambda i: (0, 0)),
                pl.BlockSpec((1, _C3), lambda i: (0, 0)),
            ],
            out_specs=pl.BlockSpec((TB, _C3), lambda i: (i, 0)),
            scratch_shapes=[
                pltpu.VMEM((N1, _C1), jnp.float32),              # conv-1 out
                pltpu.VMEM((N1 // 2 + _W2, _C1), jnp.float32),   # x-max (+guard)
                pltpu.VMEM((N1 // 2, _C1), jnp.float32),         # y-max
                pltpu.VMEM((2 * _G2 + N2, _C1), jnp.float32),    # padded plane 2
                pltpu.VMEM((N2, 9 * _C1), jnp.float32),          # stage-2 im2col
                pltpu.VMEM((N2, _C2), jnp.float32),              # conv-2 out
                pltpu.VMEM((N2 // 2 + _WP2 // 2, _C2), jnp.float32),
                pltpu.VMEM((N2 // 2, _C2), jnp.float32),
                pltpu.VMEM((2 * _G3 + N3, _C2), jnp.float32),    # padded plane 3
                pltpu.VMEM((N3, 9 * _C2), jnp.float32),          # stage-3 im2col
                pltpu.VMEM((N3, _C3), jnp.float32),              # conv-3 out
            ],
        ),
        compiler_params=pltpu.CompilerParams(
            dimension_semantics=("parallel",),
            vmem_limit_bytes=32 * 1024 * 1024),
    )(xcols, w1r, b1.reshape(1, _C1), w2r, b2.reshape(1, _C2),
      w3r, b3.reshape(1, _C3))
    return out[:B]


def _reference(x_nchw, w1, b1, w2, b2, w3, b3):
    """Pure-JAX reference matching the PyTorch forward pass."""
    def conv_relu(x, w, b):
        y = jax.lax.conv_general_dilated(
            x, w, window_strides=(1, 1), padding="SAME",
            dimension_numbers=("NCHW", "HWIO", "NCHW"))
        return jax.nn.relu(y + b.reshape(1, -1, 1, 1))

    def maxpool2(x):
        return jax.lax.reduce_window(
            x, -jnp.inf, jax.lax.max, (1, 1, 2, 2), (1, 1, 2, 2), "VALID")

    y = maxpool2(conv_relu(x_nchw, w1, b1))
    y = maxpool2(conv_relu(y, w2, b2))
    y = conv_relu(y, w3, b3)
    return jnp.mean(y, axis=(2, 3))                                    # (B, 128)


if __name__ == "__main__":
    _B = 2
    key = jax.random.PRNGKey(0)
    ks = jax.random.split(key, 7)
    x = jax.random.normal(ks[0], (_B, 1, _H, _W), jnp.float32)
    # Deterministic synthetic parameters (shapes from the nn.Module __init__, HWIO).
    w1 = jax.random.normal(ks[1], (3, 3, 1, _C1), jnp.float32) * (1.0 / 9.0) ** 0.5
    b1 = jax.random.normal(ks[2], (_C1,), jnp.float32) * 0.1
    w2 = jax.random.normal(ks[3], (3, 3, _C1, _C2), jnp.float32) * (1.0 / (9 * _C1)) ** 0.5
    b2 = jax.random.normal(ks[4], (_C2,), jnp.float32) * 0.1
    w3 = jax.random.normal(ks[5], (3, 3, _C2, _C3), jnp.float32) * (1.0 / (9 * _C2)) ** 0.5
    b3 = jax.random.normal(ks[6], (_C3,), jnp.float32) * 0.1

    out = jax.block_until_ready(visual_encoder(x, w1, b1, w2, b2, w3, b3))
    assert out.shape == (_B, _C3), out.shape

    ref = _reference(x, w1, b1, w2, b2, w3, b3)
    if not jnp.allclose(out, ref, rtol=2e-2, atol=2e-2):
        max_err = float(jnp.max(jnp.abs(out - ref)))
        raise RuntimeError(f"Pallas kernel mismatch vs reference, max abs err = {max_err}")

    print("KERNEL_OK")
</pallas_src>

<mosaic_0001>
module attributes {stable_mosaic.version = 11 : i64} {
  func.func @kernel(%arg0: i32, %arg1: memref<512x9xf32, #tpu.memory_space<vmem>>, %arg2: memref<9x32xf32, #tpu.memory_space<vmem>>, %arg3: memref<1x32xf32, #tpu.memory_space<vmem>>, %arg4: memref<288x64xf32, #tpu.memory_space<vmem>>, %arg5: memref<1x64xf32, #tpu.memory_space<vmem>>, %arg6: memref<576x128xf32, #tpu.memory_space<vmem>>, %arg7: memref<1x128xf32, #tpu.memory_space<vmem>>, %arg8: memref<2x128xf32, #tpu.memory_space<vmem>>, %arg9: memref<512x32xf32, #tpu.memory_space<vmem>>, %arg10: memref<264x32xf32, #tpu.memory_space<vmem>>, %arg11: memref<256x32xf32, #tpu.memory_space<vmem>>, %arg12: memref<368x32xf32, #tpu.memory_space<vmem>>, %arg13: memref<320x288xf32, #tpu.memory_space<vmem>>, %arg14: memref<320x64xf32, #tpu.memory_space<vmem>>, %arg15: memref<168x64xf32, #tpu.memory_space<vmem>>, %arg16: memref<160x64xf32, #tpu.memory_space<vmem>>, %arg17: memref<128x64xf32, #tpu.memory_space<vmem>>, %arg18: memref<96x576xf32, #tpu.memory_space<vmem>>, %arg19: memref<96x128xf32, #tpu.memory_space<vmem>>) attributes {dimension_semantics = [#tpu.dimension_semantics<parallel>], iteration_bounds = array<i64: 1>, scalar_prefetch = 0 : i64, scratch_operands = 11 : i64, tpu.core_type = #tpu.core_type<tc>, window_params = [{transform_indices = @transform_0, window_bounds = array<i64: 512, 9>}, {pipeline_mode = #tpu.pipeline_mode<synchronous>, transform_indices = @transform_1, window_bounds = array<i64: 9, 32>}, {pipeline_mode = #tpu.pipeline_mode<synchronous>, transform_indices = @transform_2, window_bounds = array<i64: 1, 32>}, {pipeline_mode = #tpu.pipeline_mode<synchronous>, transform_indices = @transform_3, window_bounds = array<i64: 288, 64>}, {pipeline_mode = #tpu.pipeline_mode<synchronous>, transform_indices = @transform_4, window_bounds = array<i64: 1, 64>}, {pipeline_mode = #tpu.pipeline_mode<synchronous>, transform_indices = @transform_5, window_bounds = array<i64: 576, 128>}, {pipeline_mode = #tpu.pipeline_mode<synchronous>, transform_indices = @transform_6, window_bounds = array<i64: 1, 128>}, {transform_indices = @transform_7, window_bounds = array<i64: 2, 128>}]} {
    %cst = arith.constant 0.000000e+00 : f32
    %0 = vector.broadcast %cst : f32 to vector<368x32xf32>
    %c0 = arith.constant 0 : index
    %c0_0 = arith.constant 0 : index
    %1 = vector.load %arg12[%c0, %c0_0] : memref<368x32xf32, #tpu.memory_space<vmem>>, vector<368x32xf32>
    tpu.vector_store %arg12[%c0, %c0_0], %0 {strides = array<i32>} : memref<368x32xf32, #tpu.memory_space<vmem>>, vector<368x32xf32>,
    %cst_1 = arith.constant 0.000000e+00 : f32
    %2 = vector.broadcast %cst_1 : f32 to vector<128x64xf32>
    %c0_2 = arith.constant 0 : index
    %c0_3 = arith.constant 0 : index
    %3 = vector.load %arg17[%c0_2, %c0_3] : memref<128x64xf32, #tpu.memory_space<vmem>>, vector<128x64xf32>
    tpu.vector_store %arg17[%c0_2, %c0_3], %2 {strides = array<i32>} : memref<128x64xf32, #tpu.memory_space<vmem>>, vector<128x64xf32>,
    %c0_4 = arith.constant 0 : index
    %c0_5 = arith.constant 0 : index
    %4 = vector.load %arg1[%c0_4, %c0_5] : memref<512x9xf32, #tpu.memory_space<vmem>>, vector<512x9xf32>
    %c0_6 = arith.constant 0 : index
    %c0_7 = arith.constant 0 : index
    %5 = vector.load %arg2[%c0_6, %c0_7] : memref<9x32xf32, #tpu.memory_space<vmem>>, vector<9x32xf32>
    %cst_8 = arith.constant dense<0.000000e+00> : vector<512x32xf32>
    %6 = tpu.matmul %4, %5, %cst_8 {dimension_numbers = #tpu.dot_dimension_numbers<[1], [0], [0], [1], [0, 0, 1, 1], [], []>} : vector<512x9xf32>, vector<9x32xf32>, vector<512x32xf32> -> vector<512x32xf32>
    %c0_9 = arith.constant 0 : index
    %c0_10 = arith.constant 0 : index
    %7 = vector.load %arg3[%c0_9, %c0_10] : memref<1x32xf32, #tpu.memory_space<vmem>>, vector<1x32xf32>
    %8 = vector.broadcast %7 : vector<1x32xf32> to vector<512x32xf32>
    %9 = arith.addf %6, %8 : vector<512x32xf32>
    %cst_11 = arith.constant 0.000000e+00 : f32
    %10 = vector.broadcast %cst_11 : f32 to vector<512x32xf32>
    %11 = arith.maximumf %9, %10 : vector<512x32xf32>
    %c0_12 = arith.constant 0 : index
    %c0_13 = arith.constant 0 : index
    %12 = vector.load %arg9[%c0_12, %c0_13] : memref<512x32xf32, #tpu.memory_space<vmem>>, vector<512x32xf32>
    tpu.vector_store %arg9[%c0_12, %c0_13], %11 {strides = array<i32>} : memref<512x32xf32, #tpu.memory_space<vmem>>, vector<512x32xf32>,
    %c0_14 = arith.constant 0 : index
    %c0_15 = arith.constant 0 : index
    %13 = tpu.strided_load %arg9[%c0_14, %c0_15] {strides = array<i32: 2, 1>} : memref<512x32xf32, #tpu.memory_space<vmem>>, vector<256x32xf32>
    %c1 = arith.constant 1 : index
    %c0_16 = arith.constant 0 : index
    %14 = tpu.strided_load %arg9[%c1, %c0_16] {strides = array<i32: 2, 1>} : memref<512x32xf32, #tpu.memory_space<vmem>>, vector<256x32xf32>
    %15 = arith.maximumf %13, %14 : vector<256x32xf32>
    %c0_17 = arith.constant 0 : index
    %c0_18 = arith.constant 0 : index
    %16 = vector.load %arg10[%c0_17, %c0_18] : memref<264x32xf32, #tpu.memory_space<vmem>>, vector<256x32xf32>
    tpu.vector_store %arg10[%c0_17, %c0_18], %15 {strides = array<i32>} : memref<264x32xf32, #tpu.memory_space<vmem>>, vector<256x32xf32>,
    %c0_19 = arith.constant 0 : index
    %c0_20 = arith.constant 0 : index
    %17 = vector.load %arg10[%c0_19, %c0_20] : memref<264x32xf32, #tpu.memory_space<vmem>>, vector<256x32xf32>
    %c8 = arith.constant 8 : index
    %c0_21 = arith.constant 0 : index
    %18 = vector.load %arg10[%c8, %c0_21] : memref<264x32xf32, #tpu.memory_space<vmem>>, vector<256x32xf32>
    %19 = arith.maximumf %17, %18 : vector<256x32xf32>
    %c0_22 = arith.constant 0 : index
    %c0_23 = arith.constant 0 : index
    %20 = vector.load %arg11[%c0_22, %c0_23] : memref<256x32xf32, #tpu.memory_space<vmem>>, vector<256x32xf32>
    tpu.vector_store %arg11[%c0_22, %c0_23], %19 {strides = array<i32>} : memref<256x32xf32, #tpu.memory_space<vmem>>, vector<256x32xf32>,
    %c0_i32 = arith.constant 0 : i32
    %c2_i32 = arith.constant 2 : i32
    %21 = arith.addi %c0_i32, %c2_i32 : i32
    %c1_i32 = arith.constant 1 : i32
    scf.for %arg20 = %c0_i32 to %21 step %c1_i32  : i32 {
      %c1_i32_137 = arith.constant 1 : i32
      %121 = arith.muli %arg20, %c1_i32_137 : i32
      %c0_i32_138 = arith.constant 0 : i32
      %122 = arith.addi %c0_i32_138, %121 : i32
      %c128_i32 = arith.constant 128 : i32
      %123 = arith.muli %122, %c128_i32 : i32
      %c0_i32_139 = arith.constant 0 : i32
      %124 = arith.addi %123, %c0_i32_139 : i32
      %125 = tpu.assume_multiple %124, 8 : i32
      %c160_i32 = arith.constant 160 : i32
      %126 = arith.muli %122, %c160_i32 : i32
      %c24_i32 = arith.constant 24 : i32
      %127 = arith.addi %c24_i32, %126 : i32
      %c16_i32 = arith.constant 16 : i32
      %128 = arith.addi %127, %c16_i32 : i32
      %129 = tpu.assume_multiple %128, 8 : i32
      %130 = arith.index_cast %125 : i32 to index
      %c0_140 = arith.constant 0 : index
      %131 = vector.load %arg11[%130, %c0_140] : memref<256x32xf32, #tpu.memory_space<vmem>>, vector<8x32xf32>
      %132 = arith.index_cast %129 : i32 to index
      %c0_141 = arith.constant 0 : index
      %133 = vector.load %arg12[%132, %c0_141] : memref<368x32xf32, #tpu.memory_space<vmem>>, vector<8x32xf32>
      tpu.vector_store %arg12[%132, %c0_141], %131 {strides = array<i32>} : memref<368x32xf32, #tpu.memory_space<vmem>>, vector<8x32xf32>,
      %c128_i32_142 = arith.constant 128 : i32
      %134 = arith.muli %122, %c128_i32_142 : i32
      %c16_i32_143 = arith.constant 16 : i32
      %135 = arith.addi %134, %c16_i32_143 : i32
      %136 = tpu.assume_multiple %135, 8 : i32
      %c160_i32_144 = arith.constant 160 : i32
      %137 = arith.muli %122, %c160_i32_144 : i32
      %c24_i32_145 = arith.constant 24 : i32
      %138 = arith.addi %c24_i32_145, %137 : i32
      %c32_i32 = arith.constant 32 : i32
      %139 = arith.addi %138, %c32_i32 : i32
      %140 = tpu.assume_multiple %139, 8 : i32
      %141 = arith.index_cast %136 : i32 to index
      %c0_146 = arith.constant 0 : index
      %142 = vector.load %arg11[%141, %c0_146] : memref<256x32xf32, #tpu.memory_space<vmem>>, vector<8x32xf32>
      %143 = arith.index_cast %140 : i32 to index
      %c0_147 = arith.constant 0 : index
      %144 = vector.load %arg12[%143, %c0_147] : memref<368x32xf32, #tpu.memory_space<vmem>>, vector<8x32xf32>
      tpu.vector_store %arg12[%143, %c0_147], %142 {strides = array<i32>} : memref<368x32xf32, #tpu.memory_space<vmem>>, vector<8x32xf32>,
      %c128_i32_148 = arith.constant 128 : i32
      %145 = arith.muli %122, %c128_i32_148 : i32
      %c32_i32_149 = arith.constant 32 : i32
      %146 = arith.addi %145, %c32_i32_149 : i32
      %147 = tpu.assume_multiple %146, 8 : i32
      %c160_i32_150 = arith.constant 160 : i32
      %148 = arith.muli %122, %c160_i32_150 : i32
      %c24_i32_151 = arith.constant 24 : i32
      %149 = arith.addi %c24_i32_151, %148 : i32
      %c48_i32 = arith.constant 48 : i32
      %150 = arith.addi %149, %c48_i32 : i32
      %151 = tpu.assume_multiple %150, 8 : i32
      %152 = arith.index_cast %147 : i32 to index
      %c0_152 = arith.constant 0 : index
      %153 = vector.load %arg11[%152, %c0_152] : memref<256x32xf32, #tpu.memory_space<vmem>>, vector<8x32xf32>
      %154 = arith.index_cast %151 : i32 to index
      %c0_153 = arith.constant 0 : index
      %155 = vector.load %arg12[%154, %c0_153] : memref<368x32xf32, #tpu.memory_space<vmem>>, vector<8x32xf32>
      tpu.vector_store %arg12[%154, %c0_153], %153 {strides = array<i32>} : memref<368x32xf32, #tpu.memory_space<vmem>>, vector<8x32xf32>,
      %c128_i32_154 = arith.constant 128 : i32
      %156 = arith.muli %122, %c128_i32_154 : i32
      %c48_i32_155 = arith.constant 48 : i32
      %157 = arith.addi %156, %c48_i32_155 : i32
      %158 = tpu.assume_multiple %157, 8 : i32
      %c160_i32_156 = arith.constant 160 : i32
      %159 = arith.muli %122, %c160_i32_156 : i32
      %c24_i32_157 = arith.constant 24 : i32
      %160 = arith.addi %c24_i32_157, %159 : i32
      %c64_i32 = arith.constant 64 : i32
      %161 = arith.addi %160, %c64_i32 : i32
      %162 = tpu.assume_multiple %161, 8 : i32
      %163 = arith.index_cast %158 : i32 to index
      %c0_158 = arith.constant 0 : index
      %164 = vector.load %arg11[%163, %c0_158] : memref<256x32xf32, #tpu.memory_space<vmem>>, vector<8x32xf32>
      %165 = arith.index_cast %162 : i32 to index
      %c0_159 = arith.constant 0 : index
      %166 = vector.load %arg12[%165, %c0_159] : memref<368x32xf32, #tpu.memory_space<vmem>>, vector<8x32xf32>
      tpu.vector_store %arg12[%165, %c0_159], %164 {strides = array<i32>} : memref<368x32xf32, #tpu.memory_space<vmem>>, vector<8x32xf32>,
      %c128_i32_160 = arith.constant 128 : i32
      %167 = arith.muli %122, %c128_i32_160 : i32
      %c64_i32_161 = arith.constant 64 : i32
      %168 = arith.addi %167, %c64_i32_161 : i32
      %169 = tpu.assume_multiple %168, 8 : i32
      %c160_i32_162 = arith.constant 160 : i32
      %170 = arith.muli %122, %c160_i32_162 : i32
      %c24_i32_163 = arith.constant 24 : i32
      %171 = arith.addi %c24_i32_163, %170 : i32
      %c80_i32 = arith.constant 80 : i32
      %172 = arith.addi %171, %c80_i32 : i32
      %173 = tpu.assume_multiple %172, 8 : i32
      %174 = arith.index_cast %169 : i32 to index
      %c0_164 = arith.constant 0 : index
      %175 = vector.load %arg11[%174, %c0_164] : memref<256x32xf32, #tpu.memory_space<vmem>>, vector<8x32xf32>
      %176 = arith.index_cast %173 : i32 to index
      %c0_165 = arith.constant 0 : index
      %177 = vector.load %arg12[%176, %c0_165] : memref<368x32xf32, #tpu.memory_space<vmem>>, vector<8x32xf32>
      tpu.vector_store %arg12[%176, %c0_165], %175 {strides = array<i32>} : memref<368x32xf32, #tpu.memory_space<vmem>>, vector<8x32xf32>,
      %c128_i32_166 = arith.constant 128 : i32
      %178 = arith.muli %122, %c128_i32_166 : i32
      %c80_i32_167 = arith.constant 80 : i32
      %179 = arith.addi %178, %c80_i32_167 : i32
      %180 = tpu.assume_multiple %179, 8 : i32
      %c160_i32_168 = arith.constant 160 : i32
      %181 = arith.muli %122, %c160_i32_168 : i32
      %c24_i32_169 = arith.constant 24 : i32
      %182 = arith.addi %c24_i32_169, %181 : i32
      %c96_i32 = arith.constant 96 : i32
      %183 = arith.addi %182, %c96_i32 : i32
      %184 = tpu.assume_multiple %183, 8 : i32
      %185 = arith.index_cast %180 : i32 to index
      %c0_170 = arith.constant 0 : index
      %186 = vector.load %arg11[%185, %c0_170] : memref<256x32xf32, #tpu.memory_space<vmem>>, vector<8x32xf32>
      %187 = arith.index_cast %184 : i32 to index
      %c0_171 = arith.constant 0 : index
      %188 = vector.load %arg12[%187, %c0_171] : memref<368x32xf32, #tpu.memory_space<vmem>>, vector<8x32xf32>
      tpu.vector_store %arg12[%187, %c0_171], %186 {strides = array<i32>} : memref<368x32xf32, #tpu.memory_space<vmem>>, vector<8x32xf32>,
      %c128_i32_172 = arith.constant 128 : i32
      %189 = arith.muli %122, %c128_i32_172 : i32
      %c96_i32_173 = arith.constant 96 : i32
      %190 = arith.addi %189, %c96_i32_173 : i32
      %191 = tpu.assume_multiple %190, 8 : i32
      %c160_i32_174 = arith.constant 160 : i32
      %192 = arith.muli %122, %c160_i32_174 : i32
      %c24_i32_175 = arith.constant 24 : i32
      %193 = arith.addi %c24_i32_175, %192 : i32
      %c112_i32 = arith.constant 112 : i32
      %194 = arith.addi %193, %c112_i32 : i32
      %195 = tpu.assume_multiple %194, 8 : i32
      %196 = arith.index_cast %191 : i32 to index
      %c0_176 = arith.constant 0 : index
      %197 = vector.load %arg11[%196, %c0_176] : memref<256x32xf32, #tpu.memory_space<vmem>>, vector<8x32xf32>
      %198 = arith.index_cast %195 : i32 to index
      %c0_177 = arith.constant 0 : index
      %199 = vector.load %arg12[%198, %c0_177] : memref<368x32xf32, #tpu.memory_space<vmem>>, vector<8x32xf32>
      tpu.vector_store %arg12[%198, %c0_177], %197 {strides = array<i32>} : memref<368x32xf32, #tpu.memory_space<vmem>>, vector<8x32xf32>,
      %c128_i32_178 = arith.constant 128 : i32
      %200 = arith.muli %122, %c128_i32_178 : i32
      %c112_i32_179 = arith.constant 112 : i32
      %201 = arith.addi %200, %c112_i32_179 : i32
      %202 = tpu.assume_multiple %201, 8 : i32
      %c160_i32_180 = arith.constant 160 : i32
      %203 = arith.muli %122, %c160_i32_180 : i32
      %c24_i32_181 = arith.constant 24 : i32
      %204 = arith.addi %c24_i32_181, %203 : i32
      %c128_i32_182 = arith.constant 128 : i32
      %205 = arith.addi %204, %c128_i32_182 : i32
      %206 = tpu.assume_multiple %205, 8 : i32
      %207 = arith.index_cast %202 : i32 to index
      %c0_183 = arith.constant 0 : index
      %208 = vector.load %arg11[%207, %c0_183] : memref<256x32xf32, #tpu.memory_space<vmem>>, vector<8x32xf32>
      %209 = arith.index_cast %206 : i32 to index
      %c0_184 = arith.constant 0 : index
      %210 = vector.load %arg12[%209, %c0_184] : memref<368x32xf32, #tpu.memory_space<vmem>>, vector<8x32xf32>
      tpu.vector_store %arg12[%209, %c0_184], %208 {strides = array<i32>} : memref<368x32xf32, #tpu.memory_space<vmem>>, vector<8x32xf32>,
    }
    %c2_i32_24 = arith.constant 2 : i32
    %c7 = arith.constant 7 : index
    %c0_25 = arith.constant 0 : index
    %22 = vector.load %arg12[%c7, %c0_25] : memref<368x32xf32, #tpu.memory_space<vmem>>, vector<320x32xf32>
    %c0_26 = arith.constant 0 : index
    %c0_27 = arith.constant 0 : index
    %23 = vector.load %arg13[%c0_26, %c0_27] : memref<320x288xf32, #tpu.memory_space<vmem>>, vector<320x32xf32>
    tpu.vector_store %arg13[%c0_26, %c0_27], %22 {strides = array<i32>} : memref<320x288xf32, #tpu.memory_space<vmem>>, vector<320x32xf32>,
    %c8_28 = arith.constant 8 : index
    %c0_29 = arith.constant 0 : index
    %24 = vector.load %arg12[%c8_28, %c0_29] : memref<368x32xf32, #tpu.memory_space<vmem>>, vector<320x32xf32>
    %c0_30 = arith.constant 0 : index
    %c32 = arith.constant 32 : index
    %25 = vector.load %arg13[%c0_30, %c32] : memref<320x288xf32, #tpu.memory_space<vmem>>, vector<320x32xf32>
    tpu.vector_store %arg13[%c0_30, %c32], %24 {strides = array<i32>} : memref<320x288xf32, #tpu.memory_space<vmem>>, vector<320x32xf32>,
    %c9 = arith.constant 9 : index
    %c0_31 = arith.constant 0 : index
    %26 = vector.load %arg12[%c9, %c0_31] : memref<368x32xf32, #tpu.memory_space<vmem>>, vector<320x32xf32>
    %c0_32 = arith.constant 0 : index
    %c64 = arith.constant 64 : index
    %27 = vector.load %arg13[%c0_32, %c64] : memref<320x288xf32, #tpu.memory_space<vmem>>, vector<320x32xf32>
    tpu.vector_store %arg13[%c0_32, %c64], %26 {strides = array<i32>} : memref<320x288xf32, #tpu.memory_space<vmem>>, vector<320x32xf32>,
    %c23 = arith.constant 23 : index
    %c0_33 = arith.constant 0 : index
    %28 = vector.load %arg12[%c23, %c0_33] : memref<368x32xf32, #tpu.memory_space<vmem>>, vector<320x32xf32>
    %c0_34 = arith.constant 0 : index
    %c96 = arith.constant 96 : index
    %29 = vector.load %arg13[%c0_34, %c96] : memref<320x288xf32, #tpu.memory_space<vmem>>, vector<320x32xf32>
    tpu.vector_store %arg13[%c0_34, %c96], %28 {strides = array<i32>} : memref<320x288xf32, #tpu.memory_space<vmem>>, vector<320x32xf32>,
    %c24 = arith.constant 24 : index
    %c0_35 = arith.constant 0 : index
    %30 = vector.load %arg12[%c24, %c0_35] : memref<368x32xf32, #tpu.memory_space<vmem>>, vector<320x32xf32>
    %c0_36 = arith.constant 0 : index
    %c128 = arith.constant 128 : index
    %31 = vector.load %arg13[%c0_36, %c128] : memref<320x288xf32, #tpu.memory_space<vmem>>, vector<320x32xf32>
    tpu.vector_store %arg13[%c0_36, %c128], %30 {strides = array<i32>} : memref<320x288xf32, #tpu.memory_space<vmem>>, vector<320x32xf32>,
    %c25 = arith.constant 25 : index
    %c0_37 = arith.constant 0 : index
    %32 = vector.load %arg12[%c25, %c0_37] : memref<368x32xf32, #tpu.memory_space<vmem>>, vector<320x32xf32>
    %c0_38 = arith.constant 0 : index
    %c160 = arith.constant 160 : index
    %33 = vector.load %arg13[%c0_38, %c160] : memref<320x288xf32, #tpu.memory_space<vmem>>, vector<320x32xf32>
    tpu.vector_store %arg13[%c0_38, %c160], %32 {strides = array<i32>} : memref<320x288xf32, #tpu.memory_space<vmem>>, vector<320x32xf32>,
    %c39 = arith.constant 39 : index
    %c0_39 = arith.constant 0 : index
    %34 = vector.load %arg12[%c39, %c0_39] : memref<368x32xf32, #tpu.memory_space<vmem>>, vector<320x32xf32>
    %c0_40 = arith.constant 0 : index
    %c192 = arith.constant 192 : index
    %35 = vector.load %arg13[%c0_40, %c192] : memref<320x288xf32, #tpu.memory_space<vmem>>, vector<320x32xf32>
    tpu.vector_store %arg13[%c0_40, %c192], %34 {strides = array<i32>} : memref<320x288xf32, #tpu.memory_space<vmem>>, vector<320x32xf32>,
    %c40 = arith.constant 40 : index
    %c0_41 = arith.constant 0 : index
    %36 = vector.load %arg12[%c40, %c0_41] : memref<368x32xf32, #tpu.memory_space<vmem>>, vector<320x32xf32>
    %c0_42 = arith.constant 0 : index
    %c224 = arith.constant 224 : index
    %37 = vector.load %arg13[%c0_42, %c224] : memref<320x288xf32, #tpu.memory_space<vmem>>, vector<320x32xf32>
    tpu.vector_store %arg13[%c0_42, %c224], %36 {strides = array<i32>} : memref<320x288xf32, #tpu.memory_space<vmem>>, vector<320x32xf32>,
    %c41 = arith.constant 41 : index
    %c0_43 = arith.constant 0 : index
    %38 = vector.load %arg12[%c41, %c0_43] : memref<368x32xf32, #tpu.memory_space<vmem>>, vector<320x32xf32>
    %c0_44 = arith.constant 0 : index
    %c256 = arith.constant 256 : index
    %39 = vector.load %arg13[%c0_44, %c256] : memref<320x288xf32, #tpu.memory_space<vmem>>, vector<320x32xf32>
    tpu.vector_store %arg13[%c0_44, %c256], %38 {strides = array<i32>} : memref<320x288xf32, #tpu.memory_space<vmem>>, vector<320x32xf32>,
    %c0_45 = arith.constant 0 : index
    %c0_46 = arith.constant 0 : index
    %40 = vector.load %arg13[%c0_45, %c0_46] : memref<320x288xf32, #tpu.memory_space<vmem>>, vector<320x288xf32>
    %c0_47 = arith.constant 0 : index
    %c0_48 = arith.constant 0 : index
    %41 = vector.load %arg4[%c0_47, %c0_48] : memref<288x64xf32, #tpu.memory_space<vmem>>, vector<288x64xf32>
    %cst_49 = arith.constant dense<0.000000e+00> : vector<320x64xf32>
    %42 = tpu.matmul %40, %41, %cst_49 {dimension_numbers = #tpu.dot_dimension_numbers<[1], [0], [0], [1], [0, 0, 1, 1], [], []>} : vector<320x288xf32>, vector<288x64xf32>, vector<320x64xf32> -> vector<320x64xf32>
    %c0_50 = arith.constant 0 : index
    %c0_51 = arith.constant 0 : index
    %43 = vector.load %arg5[%c0_50, %c0_51] : memref<1x64xf32, #tpu.memory_space<vmem>>, vector<1x64xf32>
    %44 = vector.broadcast %43 : vector<1x64xf32> to vector<320x64xf32>
    %45 = arith.addf %42, %44 : vector<320x64xf32>
    %cst_52 = arith.constant 0.000000e+00 : f32
    %46 = vector.broadcast %cst_52 : f32 to vector<320x64xf32>
    %47 = arith.maximumf %45, %46 : vector<320x64xf32>
    %c0_53 = arith.constant 0 : index
    %c0_54 = arith.constant 0 : index
    %48 = vector.load %arg14[%c0_53, %c0_54] : memref<320x64xf32, #tpu.memory_space<vmem>>, vector<320x64xf32>
    tpu.vector_store %arg14[%c0_53, %c0_54], %47 {strides = array<i32>} : memref<320x64xf32, #tpu.memory_space<vmem>>, vector<320x64xf32>,
    %c0_55 = arith.constant 0 : index
    %c0_56 = arith.constant 0 : index
    %49 = tpu.strided_load %arg14[%c0_55, %c0_56] {strides = array<i32: 2, 1>} : memref<320x64xf32, #tpu.memory_space<vmem>>, vector<160x64xf32>
    %c1_57 = arith.constant 1 : index
    %c0_58 = arith.constant 0 : index
    %50 = tpu.strided_load %arg14[%c1_57, %c0_58] {strides = array<i32: 2, 1>} : memref<320x64xf32, #tpu.memory_space<vmem>>, vector<160x64xf32>
    %51 = arith.maximumf %49, %50 : vector<160x64xf32>
    %c0_59 = arith.constant 0 : index
    %c0_60 = arith.constant 0 : index
    %52 = vector.load %arg15[%c0_59, %c0_60] : memref<168x64xf32, #tpu.memory_space<vmem>>, vector<160x64xf32>
    tpu.vector_store %arg15[%c0_59, %c0_60], %51 {strides = array<i32>} : memref<168x64xf32, #tpu.memory_space<vmem>>, vector<160x64xf32>,
    %c0_61 = arith.constant 0 : index
    %c0_62 = arith.constant 0 : index
    %53 = vector.load %arg15[%c0_61, %c0_62] : memref<168x64xf32, #tpu.memory_space<vmem>>, vector<160x64xf32>
    %c8_63 = arith.constant 8 : index
    %c0_64 = arith.constant 0 : index
    %54 = vector.load %arg15[%c8_63, %c0_64] : memref<168x64xf32, #tpu.memory_space<vmem>>, vector<160x64xf32>
    %55 = arith.maximumf %53, %54 : vector<160x64xf32>
    %c0_65 = arith.constant 0 : index
    %c0_66 = arith.constant 0 : index
    %56 = vector.load %arg16[%c0_65, %c0_66] : memref<160x64xf32, #tpu.memory_space<vmem>>, vector<160x64xf32>
    tpu.vector_store %arg16[%c0_65, %c0_66], %55 {strides = array<i32>} : memref<160x64xf32, #tpu.memory_space<vmem>>, vector<160x64xf32>,
    %c0_i32_67 = arith.constant 0 : i32
    %c2_i32_68 = arith.constant 2 : i32
    %57 = arith.addi %c0_i32_67, %c2_i32_68 : i32
    %c1_i32_69 = arith.constant 1 : i32
    scf.for %arg20 = %c0_i32_67 to %57 step %c1_i32_69  : i32 {
      %c1_i32_137 = arith.constant 1 : i32
      %121 = arith.muli %arg20, %c1_i32_137 : i32
      %c0_i32_138 = arith.constant 0 : i32
      %122 = arith.addi %c0_i32_138, %121 : i32
      %c80_i32 = arith.constant 80 : i32
      %123 = arith.muli %122, %c80_i32 : i32
      %c8_i32 = arith.constant 8 : i32
      %124 = arith.addi %123, %c8_i32 : i32
      %125 = tpu.assume_multiple %124, 8 : i32
      %c48_i32 = arith.constant 48 : i32
      %126 = arith.muli %122, %c48_i32 : i32
      %c16_i32 = arith.constant 16 : i32
      %127 = arith.addi %c16_i32, %126 : i32
      %c8_i32_139 = arith.constant 8 : i32
      %128 = arith.addi %127, %c8_i32_139 : i32
      %129 = tpu.assume_multiple %128, 8 : i32
      %130 = arith.index_cast %125 : i32 to index
      %c0_140 = arith.constant 0 : index
      %131 = vector.load %arg16[%130, %c0_140] : memref<160x64xf32, #tpu.memory_space<vmem>>, vector<4x64xf32>
      %132 = arith.index_cast %129 : i32 to index
      %c0_141 = arith.constant 0 : index
      %133 = vector.load %arg17[%132, %c0_141] : memref<128x64xf32, #tpu.memory_space<vmem>>, vector<4x64xf32>
      tpu.vector_store %arg17[%132, %c0_141], %131 {strides = array<i32>} : memref<128x64xf32, #tpu.memory_space<vmem>>, vector<4x64xf32>,
      %c80_i32_142 = arith.constant 80 : i32
      %134 = arith.muli %122, %c80_i32_142 : i32
      %c24_i32 = arith.constant 24 : i32
      %135 = arith.addi %134, %c24_i32 : i32
      %136 = tpu.assume_multiple %135, 8 : i32
      %c48_i32_143 = arith.constant 48 : i32
      %137 = arith.muli %122, %c48_i32_143 : i32
      %c16_i32_144 = arith.constant 16 : i32
      %138 = arith.addi %c16_i32_144, %137 : i32
      %c16_i32_145 = arith.constant 16 : i32
      %139 = arith.addi %138, %c16_i32_145 : i32
      %140 = tpu.assume_multiple %139, 8 : i32
      %141 = arith.index_cast %136 : i32 to index
      %c0_146 = arith.constant 0 : index
      %142 = vector.load %arg16[%141, %c0_146] : memref<160x64xf32, #tpu.memory_space<vmem>>, vector<4x64xf32>
      %143 = arith.index_cast %140 : i32 to index
      %c0_147 = arith.constant 0 : index
      %144 = vector.load %arg17[%143, %c0_147] : memref<128x64xf32, #tpu.memory_space<vmem>>, vector<4x64xf32>
      tpu.vector_store %arg17[%143, %c0_147], %142 {strides = array<i32>} : memref<128x64xf32, #tpu.memory_space<vmem>>, vector<4x64xf32>,
      %c80_i32_148 = arith.constant 80 : i32
      %145 = arith.muli %122, %c80_i32_148 : i32
      %c40_i32 = arith.constant 40 : i32
      %146 = arith.addi %145, %c40_i32 : i32
      %147 = tpu.assume_multiple %146, 8 : i32
      %c48_i32_149 = arith.constant 48 : i32
      %148 = arith.muli %122, %c48_i32_149 : i32
      %c16_i32_150 = arith.constant 16 : i32
      %149 = arith.addi %c16_i32_150, %148 : i32
      %c24_i32_151 = arith.constant 24 : i32
      %150 = arith.addi %149, %c24_i32_151 : i32
      %151 = tpu.assume_multiple %150, 8 : i32
      %152 = arith.index_cast %147 : i32 to index
      %c0_152 = arith.constant 0 : index
      %153 = vector.load %arg16[%152, %c0_152] : memref<160x64xf32, #tpu.memory_space<vmem>>, vector<4x64xf32>
      %154 = arith.index_cast %151 : i32 to index
      %c0_153 = arith.constant 0 : index
      %155 = vector.load %arg17[%154, %c0_153] : memref<128x64xf32, #tpu.memory_space<vmem>>, vector<4x64xf32>
      tpu.vector_store %arg17[%154, %c0_153], %153 {strides = array<i32>} : memref<128x64xf32, #tpu.memory_space<vmem>>, vector<4x64xf32>,
      %c80_i32_154 = arith.constant 80 : i32
      %156 = arith.muli %122, %c80_i32_154 : i32
      %c56_i32 = arith.constant 56 : i32
      %157 = arith.addi %156, %c56_i32 : i32
      %158 = tpu.assume_multiple %157, 8 : i32
      %c48_i32_155 = arith.constant 48 : i32
      %159 = arith.muli %122, %c48_i32_155 : i32
      %c16_i32_156 = arith.constant 16 : i32
      %160 = arith.addi %c16_i32_156, %159 : i32
      %c32_i32 = arith.constant 32 : i32
      %161 = arith.addi %160, %c32_i32 : i32
      %162 = tpu.assume_multiple %161, 8 : i32
      %163 = arith.index_cast %158 : i32 to index
      %c0_157 = arith.constant 0 : index
      %164 = vector.load %arg16[%163, %c0_157] : memref<160x64xf32, #tpu.memory_space<vmem>>, vector<4x64xf32>
      %165 = arith.index_cast %162 : i32 to index
      %c0_158 = arith.constant 0 : index
      %166 = vector.load %arg17[%165, %c0_158] : memref<128x64xf32, #tpu.memory_space<vmem>>, vector<4x64xf32>
      tpu.vector_store %arg17[%165, %c0_158], %164 {strides = array<i32>} : memref<128x64xf32, #tpu.memory_space<vmem>>, vector<4x64xf32>,
    }
    %c2_i32_70 = arith.constant 2 : i32
    %c7_71 = arith.constant 7 : index
    %c0_72 = arith.constant 0 : index
    %58 = vector.load %arg17[%c7_71, %c0_72] : memref<128x64xf32, #tpu.memory_space<vmem>>, vector<96x64xf32>
    %c0_73 = arith.constant 0 : index
    %c0_74 = arith.constant 0 : index
    %59 = vector.load %arg18[%c0_73, %c0_74] : memref<96x576xf32, #tpu.memory_space<vmem>>, vector<96x64xf32>
    tpu.vector_store %arg18[%c0_73, %c0_74], %58 {strides = array<i32>} : memref<96x576xf32, #tpu.memory_space<vmem>>, vector<96x64xf32>,
    %c8_75 = arith.constant 8 : index
    %c0_76 = arith.constant 0 : index
    %60 = vector.load %arg17[%c8_75, %c0_76] : memref<128x64xf32, #tpu.memory_space<vmem>>, vector<96x64xf32>
    %c0_77 = arith.constant 0 : index
    %c64_78 = arith.constant 64 : index
    %61 = vector.load %arg18[%c0_77, %c64_78] : memref<96x576xf32, #tpu.memory_space<vmem>>, vector<96x64xf32>
    tpu.vector_store %arg18[%c0_77, %c64_78], %60 {strides = array<i32>} : memref<96x576xf32, #tpu.memory_space<vmem>>, vector<96x64xf32>,
    %c9_79 = arith.constant 9 : index
    %c0_80 = arith.constant 0 : index
    %62 = vector.load %arg17[%c9_79, %c0_80] : memref<128x64xf32, #tpu.memory_space<vmem>>, vector<96x64xf32>
    %c0_81 = arith.constant 0 : index
    %c128_82 = arith.constant 128 : index
    %63 = vector.load %arg18[%c0_81, %c128_82] : memref<96x576xf32, #tpu.memory_space<vmem>>, vector<96x64xf32>
    tpu.vector_store %arg18[%c0_81, %c128_82], %62 {strides = array<i32>} : memref<96x576xf32, #tpu.memory_space<vmem>>, vector<96x64xf32>,
    %c15 = arith.constant 15 : index
    %c0_83 = arith.constant 0 : index
    %64 = vector.load %arg17[%c15, %c0_83] : memref<128x64xf32, #tpu.memory_space<vmem>>, vector<96x64xf32>
    %c0_84 = arith.constant 0 : index
    %c192_85 = arith.constant 192 : index
    %65 = vector.load %arg18[%c0_84, %c192_85] : memref<96x576xf32, #tpu.memory_space<vmem>>, vector<96x64xf32>
    tpu.vector_store %arg18[%c0_84, %c192_85], %64 {strides = array<i32>} : memref<96x576xf32, #tpu.memory_space<vmem>>, vector<96x64xf32>,
    %c16 = arith.constant 16 : index
    %c0_86 = arith.constant 0 : index
    %66 = vector.load %arg17[%c16, %c0_86] : memref<128x64xf32, #tpu.memory_space<vmem>>, vector<96x64xf32>
    %c0_87 = arith.constant 0 : index
    %c256_88 = arith.constant 256 : index
    %67 = vector.load %arg18[%c0_87, %c256_88] : memref<96x576xf32, #tpu.memory_space<vmem>>, vector<96x64xf32>
    tpu.vector_store %arg18[%c0_87, %c256_88], %66 {strides = array<i32>} : memref<96x576xf32, #tpu.memory_space<vmem>>, vector<96x64xf32>,
    %c17 = arith.constant 17 : index
    %c0_89 = arith.constant 0 : index
    %68 = vector.load %arg17[%c17, %c0_89] : memref<128x64xf32, #tpu.memory_space<vmem>>, vector<96x64xf32>
    %c0_90 = arith.constant 0 : index
    %c320 = arith.constant 320 : index
    %69 = vector.load %arg18[%c0_90, %c320] : memref<96x576xf32, #tpu.memory_space<vmem>>, vector<96x64xf32>
    tpu.vector_store %arg18[%c0_90, %c320], %68 {strides = array<i32>} : memref<96x576xf32, #tpu.memory_space<vmem>>, vector<96x64xf32>,
    %c23_91 = arith.constant 23 : index
    %c0_92 = arith.constant 0 : index
    %70 = vector.load %arg17[%c23_91, %c0_92] : memref<128x64xf32, #tpu.memory_space<vmem>>, vector<96x64xf32>
    %c0_93 = arith.constant 0 : index
    %c384 = arith.constant 384 : index
    %71 = vector.load %arg18[%c0_93, %c384] : memref<96x576xf32, #tpu.memory_space<vmem>>, vector<96x64xf32>
    tpu.vector_store %arg18[%c0_93, %c384], %70 {strides = array<i32>} : memref<96x576xf32, #tpu.memory_space<vmem>>, vector<96x64xf32>,
    %c24_94 = arith.constant 24 : index
    %c0_95 = arith.constant 0 : index
    %72 = vector.load %arg17[%c24_94, %c0_95] : memref<128x64xf32, #tpu.memory_space<vmem>>, vector<96x64xf32>
    %c0_96 = arith.constant 0 : index
    %c448 = arith.constant 448 : index
    %73 = vector.load %arg18[%c0_96, %c448] : memref<96x576xf32, #tpu.memory_space<vmem>>, vector<96x64xf32>
    tpu.vector_store %arg18[%c0_96, %c448], %72 {strides = array<i32>} : memref<96x576xf32, #tpu.memory_space<vmem>>, vector<96x64xf32>,
    %c25_97 = arith.constant 25 : index
    %c0_98 = arith.constant 0 : index
    %74 = vector.load %arg17[%c25_97, %c0_98] : memref<128x64xf32, #tpu.memory_space<vmem>>, vector<96x64xf32>
    %c0_99 = arith.constant 0 : index
    %c512 = arith.constant 512 : index
    %75 = vector.load %arg18[%c0_99, %c512] : memref<96x576xf32, #tpu.memory_space<vmem>>, vector<96x64xf32>
    tpu.vector_store %arg18[%c0_99, %c512], %74 {strides = array<i32>} : memref<96x576xf32, #tpu.memory_space<vmem>>, vector<96x64xf32>,
    %c0_100 = arith.constant 0 : index
    %c0_101 = arith.constant 0 : index
    %76 = vector.load %arg18[%c0_100, %c0_101] : memref<96x576xf32, #tpu.memory_space<vmem>>, vector<96x576xf32>
    %c0_102 = arith.constant 0 : index
    %c0_103 = arith.constant 0 : index
    %77 = vector.load %arg6[%c0_102, %c0_103] : memref<576x128xf32, #tpu.memory_space<vmem>>, vector<576x128xf32>
    %cst_104 = arith.constant dense<0.000000e+00> : vector<96x128xf32>
    %78 = tpu.matmul %76, %77, %cst_104 {dimension_numbers = #tpu.dot_dimension_numbers<[1], [0], [0], [1], [0, 0, 1, 1], [], []>} : vector<96x576xf32>, vector<576x128xf32>, vector<96x128xf32> -> vector<96x128xf32>
    %c0_105 = arith.constant 0 : index
    %c0_106 = arith.constant 0 : index
    %79 = vector.load %arg7[%c0_105, %c0_106] : memref<1x128xf32, #tpu.memory_space<vmem>>, vector<1x128xf32>
    %80 = vector.broadcast %79 : vector<1x128xf32> to vector<96x128xf32>
    %81 = arith.addf %78, %80 : vector<96x128xf32>
    %cst_107 = arith.constant 0.000000e+00 : f32
    %82 = vector.broadcast %cst_107 : f32 to vector<96x128xf32>
    %83 = arith.maximumf %81, %82 : vector<96x128xf32>
    %c0_108 = arith.constant 0 : index
    %c0_109 = arith.constant 0 : index
    %84 = vector.load %arg19[%c0_108, %c0_109] : memref<96x128xf32, #tpu.memory_space<vmem>>, vector<96x128xf32>
    tpu.vector_store %arg19[%c0_108, %c0_109], %83 {strides = array<i32>} : memref<96x128xf32, #tpu.memory_space<vmem>>, vector<96x128xf32>,
    %cst_110 = arith.constant 0.000000e+00 : f32
    %85 = vector.broadcast %cst_110 : f32 to vector<2x128xf32>
    %c8_111 = arith.constant 8 : index
    %c0_112 = arith.constant 0 : index
    %86 = tpu.strided_load %arg19[%c8_111, %c0_112] {strides = array<i32: 48, 1>} : memref<96x128xf32, #tpu.memory_space<vmem>>, vector<2x128xf32>
    %87 = arith.addf %85, %86 : vector<2x128xf32>
    %c9_113 = arith.constant 9 : index
    %c0_114 = arith.constant 0 : index
    %88 = tpu.strided_load %arg19[%c9_113, %c0_114] {strides = array<i32: 48, 1>} : memref<96x128xf32, #tpu.memory_space<vmem>>, vector<2x128xf32>
    %89 = arith.addf %87, %88 : vector<2x128xf32>
    %c10 = arith.constant 10 : index
    %c0_115 = arith.constant 0 : index
    %90 = tpu.strided_load %arg19[%c10, %c0_115] {strides = array<i32: 48, 1>} : memref<96x128xf32, #tpu.memory_space<vmem>>, vector<2x128xf32>
    %91 = arith.addf %89, %90 : vector<2x128xf32>
    %c11 = arith.constant 11 : index
    %c0_116 = arith.constant 0 : index
    %92 = tpu.strided_load %arg19[%c11, %c0_116] {strides = array<i32: 48, 1>} : memref<96x128xf32, #tpu.memory_space<vmem>>, vector<2x128xf32>
    %93 = arith.addf %91, %92 : vector<2x128xf32>
    %c16_117 = arith.constant 16 : index
    %c0_118 = arith.constant 0 : index
    %94 = tpu.strided_load %arg19[%c16_117, %c0_118] {strides = array<i32: 48, 1>} : memref<96x128xf32, #tpu.memory_space<vmem>>, vector<2x128xf32>
    %95 = arith.addf %93, %94 : vector<2x128xf32>
    %c17_119 = arith.constant 17 : index
    %c0_120 = arith.constant 0 : index
    %96 = tpu.strided_load %arg19[%c17_119, %c0_120] {strides = array<i32: 48, 1>} : memref<96x128xf32, #tpu.memory_space<vmem>>, vector<2x128xf32>
    %97 = arith.addf %95, %96 : vector<2x128xf32>
    %c18 = arith.constant 18 : index
    %c0_121 = arith.constant 0 : index
    %98 = tpu.strided_load %arg19[%c18, %c0_121] {strides = array<i32: 48, 1>} : memref<96x128xf32, #tpu.memory_space<vmem>>, vector<2x128xf32>
    %99 = arith.addf %97, %98 : vector<2x128xf32>
    %c19 = arith.constant 19 : index
    %c0_122 = arith.constant 0 : index
    %100 = tpu.strided_load %arg19[%c19, %c0_122] {strides = array<i32: 48, 1>} : memref<96x128xf32, #tpu.memory_space<vmem>>, vector<2x128xf32>
    %101 = arith.addf %99, %100 : vector<2x128xf32>
    %c24_123 = arith.constant 24 : index
    %c0_124 = arith.constant 0 : index
    %102 = tpu.strided_load %arg19[%c24_123, %c0_124] {strides = array<i32: 48, 1>} : memref<96x128xf32, #tpu.memory_space<vmem>>, vector<2x128xf32>
    %103 = arith.addf %101, %102 : vector<2x128xf32>
    %c25_125 = arith.constant 25 : index
    %c0_126 = arith.constant 0 : index
    %104 = tpu.strided_load %arg19[%c25_125, %c0_126] {strides = array<i32: 48, 1>} : memref<96x128xf32, #tpu.memory_space<vmem>>, vector<2x128xf32>
    %105 = arith.addf %103, %104 : vector<2x128xf32>
    %c26 = arith.constant 26 : index
    %c0_127 = arith.constant 0 : index
    %106 = tpu.strided_load %arg19[%c26, %c0_127] {strides = array<i32: 48, 1>} : memref<96x128xf32, #tpu.memory_space<vmem>>, vector<2x128xf32>
    %107 = arith.addf %105, %106 : vector<2x128xf32>
    %c27 = arith.constant 27 : index
    %c0_128 = arith.constant 0 : index
    %108 = tpu.strided_load %arg19[%c27, %c0_128] {strides = array<i32: 48, 1>} : memref<96x128xf32, #tpu.memory_space<vmem>>, vector<2x128xf32>
    %109 = arith.addf %107, %108 : vector<2x128xf32>
    %c32_129 = arith.constant 32 : index
    %c0_130 = arith.constant 0 : index
    %110 = tpu.strided_load %arg19[%c32_129, %c0_130] {strides = array<i32: 48, 1>} : memref<96x128xf32, #tpu.memory_space<vmem>>, vector<2x128xf32>
    %111 = arith.addf %109, %110 : vector<2x128xf32>
    %c33 = arith.constant 33 : index
    %c0_131 = arith.constant 0 : index
    %112 = tpu.strided_load %arg19[%c33, %c0_131] {strides = array<i32: 48, 1>} : memref<96x128xf32, #tpu.memory_space<vmem>>, vector<2x128xf32>
    %113 = arith.addf %111, %112 : vector<2x128xf32>
    %c34 = arith.constant 34 : index
    %c0_132 = arith.constant 0 : index
    %114 = tpu.strided_load %arg19[%c34, %c0_132] {strides = array<i32: 48, 1>} : memref<96x128xf32, #tpu.memory_space<vmem>>, vector<2x128xf32>
    %115 = arith.addf %113, %114 : vector<2x128xf32>
    %c35 = arith.constant 35 : index
    %c0_133 = arith.constant 0 : index
    %116 = tpu.strided_load %arg19[%c35, %c0_133] {strides = array<i32: 48, 1>} : memref<96x128xf32, #tpu.memory_space<vmem>>, vector<2x128xf32>
    %117 = arith.addf %115, %116 : vector<2x128xf32>
    %cst_134 = arith.constant 6.250000e-02 : f32
    %118 = vector.broadcast %cst_134 : f32 to vector<2x128xf32>
    %119 = arith.mulf %117, %118 : vector<2x128xf32>
    %c0_135 = arith.constant 0 : index
    %c0_136 = arith.constant 0 : index
    %120 = vector.load %arg8[%c0_135, %c0_136] : memref<2x128xf32, #tpu.memory_space<vmem>>, vector<2x128xf32>
    tpu.vector_store %arg8[%c0_135, %c0_136], %119 {strides = array<i32>} : memref<2x128xf32, #tpu.memory_space<vmem>>, vector<2x128xf32>,
    return
  }
  func.func @transform_0(%arg0: i32) -> (i32, i32) {
    %c0_i32 = arith.constant 0 : i32
    %c0_i32_0 = arith.constant 0 : i32
    return %arg0, %c0_i32 : i32, i32
  }
  func.func @transform_1(%arg0: i32) -> (i32, i32) {
    %c0_i32 = arith.constant 0 : i32
    %c0_i32_0 = arith.constant 0 : i32
    %c0_i32_1 = arith.constant 0 : i32
    return %c0_i32, %c0_i32_0 : i32, i32
  }
  func.func @transform_2(%arg0: i32) -> (i32, i32) {
    %c0_i32 = arith.constant 0 : i32
    %c0_i32_0 = arith.constant 0 : i32
    %c0_i32_1 = arith.constant 0 : i32
    return %c0_i32, %c0_i32_0 : i32, i32
  }
  func.func @transform_3(%arg0: i32) -> (i32, i32) {
    %c0_i32 = arith.constant 0 : i32
    %c0_i32_0 = arith.constant 0 : i32
    %c0_i32_1 = arith.constant 0 : i32
    return %c0_i32, %c0_i32_0 : i32, i32
  }
  func.func @transform_4(%arg0: i32) -> (i32, i32) {
    %c0_i32 = arith.constant 0 : i32
    %c0_i32_0 = arith.constant 0 : i32
    %c0_i32_1 = arith.constant 0 : i32
    return %c0_i32, %c0_i32_0 : i32, i32
  }
  func.func @transform_5(%arg0: i32) -> (i32, i32) {
    %c0_i32 = arith.constant 0 : i32
    %c0_i32_0 = arith.constant 0 : i32
    %c0_i32_1 = arith.constant 0 : i32
    return %c0_i32, %c0_i32_0 : i32, i32
  }
  func.func @transform_6(%arg0: i32) -> (i32, i32) {
    %c0_i32 = arith.constant 0 : i32
    %c0_i32_0 = arith.constant 0 : i32
    %c0_i32_1 = arith.constant 0 : i32
    return %c0_i32, %c0_i32_0 : i32, i32
  }
  func.func @transform_7(%arg0: i32) -> (i32, i32) {
    %c0_i32 = arith.constant 0 : i32
    %c0_i32_0 = arith.constant 0 : i32
    return %arg0, %c0_i32 : i32, i32
  }
}

</mosaic_0001>

<bundles_post_ra>
// kernel: visual_encoder.1
= control target key start
LH: loop header
LB: loop body
LE: loop exit
PB: predicated region body
PF: predicated region fallthrough
CT: control target
= control target key end

     0   :  { %12 = vsyncpa [#allocation14], 0  ;;  %vm74_vm0 = vcmask 523264   ;;  %v5829_v1 = vmov 0.0   ;;  %vm357_vm1 = vcmask 1040384   ;;  %vm164_vm2 = vcmask 72704   ;;  %s8550_s0 = inlined_call_operand.vmem [shape: f32[512,9], index: 0, kind: input, shape index: {}]   ;;  %s8551_s1 = inlined_call_operand.vmem [shape: f32[9,32], index: 1, kind: input, shape index: {}]   ;;  %s8552_s2 = inlined_call_operand.vmem [shape: f32[1,32], index: 2, kind: input, shape index: {}]   ;;  %s8553_s3 = inlined_call_operand.vmem [shape: f32[288,64], index: 3, kind: input, shape index: {}]   ;;  %s8554_s4 = inlined_call_operand.vmem [shape: f32[1,64], index: 4, kind: input, shape index: {}]   ;;  %s8555_s5 = inlined_call_operand.vmem [shape: f32[576,128], index: 5, kind: input, shape index: {}]   ;;  %s8556_s6 = inlined_call_operand.vmem [shape: f32[1,128], index: 6, kind: input, shape index: {}]   ;;  %s8557_s7 = inlined_call_operand.hbm [shape: f32[2,128], index: 7, kind: output, shape index: {}]  }
   0x1   :  { %v156_v0 = vld [vmem:[%s8551_s1 + $0x8] sm:$0x1]  ;;  %75 = vst.msk [vmem:[#allocation10] sm:$0xff] %vm74_vm0, %v5829_v1  ;;  %76 = vst.msk [vmem:[#allocation10 + $0x8] sm:$0xff] %vm74_vm0, %v5829_v1  ;;  %v155_v2 = vld [vmem:[%s8551_s1] sm:$0xff]  ;;  %vm27_vm3 = vcmask 261120  }
   0x2   :  { %77 = vst.msk [vmem:[#allocation10 + $0x10] sm:$0xff] %vm74_vm0, %v5829_v1  ;;  %78 = vst.msk [vmem:[#allocation10 + $0x18] sm:$0xff] %vm74_vm0, %v5829_v1  ;;  %v91_v3 = vld [vmem:[%s8550_s0] sm:$0xff]  ;;  %5551 = vmatprep.subr.msk.mxu0 %vm357_vm1, %v156_v0  ;;  %v92_v4 = vld [vmem:[%s8550_s0 + $0x8] sm:$0xff] }
   0x3   :  { %79 = vst.msk [vmem:[#allocation10 + $0x20] sm:$0xff] %vm74_vm0, %v5829_v1  ;;  %80 = vst.msk [vmem:[#allocation10 + $0x28] sm:$0xff] %vm74_vm0, %v5829_v1  ;;  %5555 = vmatprep.mubr.msk.f32.mxu0 %vm164_vm2, %v91_v3  ;;  %5552 = vmatpush3.msk.msra.mxu0 %vm357_vm1, %v156_v0  ;;  %v93_v5 = vld [vmem:[%s8550_s0 + $0x10] sm:$0xff]  ;;  %v94_v6 = vld [vmem:[%s8550_s0 + $0x18] sm:$0xff] }
   0x4   :  { %81 = vst.msk [vmem:[#allocation10 + $0x30] sm:$0xff] %vm74_vm0, %v5829_v1  ;;  %82 = vst.msk [vmem:[#allocation10 + $0x38] sm:$0xff] %vm74_vm0, %v5829_v1  ;;  %5553 = vmatprep.subr.mxu0 %v155_v2  ;;  %v95_v7 = vld [vmem:[%s8550_s0 + $0x20] sm:$0xff]  ;;  %v96_v8 = vld [vmem:[%s8550_s0 + $0x28] sm:$0xff] }
   0x5   :  { %83 = vst.msk [vmem:[#allocation10 + $0x40] sm:$0xff] %vm74_vm0, %v5829_v1  ;;  %84 = vst.msk [vmem:[#allocation10 + $0x48] sm:$0xff] %vm74_vm0, %v5829_v1  ;;  %5554 = vmatpush3.msra.mxu0 %v155_v2  ;;  %v97_v9 = vld [vmem:[%s8550_s0 + $0x30] sm:$0xff]  ;;  %v98_v10 = vld [vmem:[%s8550_s0 + $0x38] sm:$0xff] }
   0x6   :  { %85 = vst.msk [vmem:[#allocation10 + $0x50] sm:$0xff] %vm74_vm0, %v5829_v1  ;;  %86 = vst.msk [vmem:[#allocation10 + $0x58] sm:$0xff] %vm74_vm0, %v5829_v1  ;;  %5556 = vmatmul.mubr.msk.f32.vlgmr.msra.gmra.mxu0 %vm164_vm2, %v92_v4  ;;  %v99_v11 = vld [vmem:[%s8550_s0 + $0x40] sm:$0xff]  ;;  %v100_v12 = vld [vmem:[%s8550_s0 + $0x48] sm:$0xff] }
   0x7   :  { %87 = vst.msk [vmem:[#allocation10 + $0x60] sm:$0xff] %vm74_vm0, %v5829_v1  ;;  %88 = vst.msk [vmem:[#allocation10 + $0x68] sm:$0xff] %vm74_vm0, %v5829_v1  ;;  %5558 = vmatprep.mubr.msk.f32.mxu0 %vm164_vm2, %v93_v5  ;;  %v101_v13 = vld [vmem:[%s8550_s0 + $0x50] sm:$0xff]  ;;  %v102_v14 = vld [vmem:[%s8550_s0 + $0x58] sm:$0xff] }
   0x8   :  { %89 = vst.msk [vmem:[#allocation10 + $0x70] sm:$0xff] %vm74_vm0, %v5829_v1  ;;  %90 = vst.msk [vmem:[#allocation10 + $0x78] sm:$0xff] %vm74_vm0, %v5829_v1  ;;  %v103_v15 = vld [vmem:[%s8550_s0 + $0x60] sm:$0xff]  ;;  %v104_v16 = vld [vmem:[%s8550_s0 + $0x68] sm:$0xff] }
   0x9   :  { %28 = vst.msk [vmem:[#allocation5] sm:$0xff] %vm27_vm3, %v5829_v1  ;;  %29 = vst.msk [vmem:[#allocation5 + $0x8] sm:$0xff] %vm27_vm3, %v5829_v1  ;;  %v105_v17 = vld [vmem:[%s8550_s0 + $0x70] sm:$0xff]  ;;  %v106_v18 = vld [vmem:[%s8550_s0 + $0x78] sm:$0xff] }
   0xa   :  { %30 = vst.msk [vmem:[#allocation5 + $0x10] sm:$0xff] %vm27_vm3, %v5829_v1  ;;  %31 = vst.msk [vmem:[#allocation5 + $0x18] sm:$0xff] %vm27_vm3, %v5829_v1  ;;  %5559 = vmatmul.mubr.msk.f32.gmra.mxu0 %vm164_vm2, %v94_v6  ;;  %v107_v19 = vld [vmem:[%s8550_s0 + $0x80] sm:$0xff]  ;;  %v108_v20 = vld [vmem:[%s8550_s0 + $0x88] sm:$0xff] }
   0xb   :  { %32 = vst.msk [vmem:[#allocation5 + $0x20] sm:$0xff] %vm27_vm3, %v5829_v1  ;;  %33 = vst.msk [vmem:[#allocation5 + $0x28] sm:$0xff] %vm27_vm3, %v5829_v1  ;;  %5561 = vmatprep.mubr.msk.f32.mxu0 %vm164_vm2, %v95_v7  ;;  %v109_v21 = vld [vmem:[%s8550_s0 + $0x90] sm:$0xff]  ;;  %v110_v22 = vld [vmem:[%s8550_s0 + $0x98] sm:$0xff] }
   0xc   :  { %34 = vst.msk [vmem:[#allocation5 + $0x30] sm:$0xff] %vm27_vm3, %v5829_v1  ;;  %35 = vst.msk [vmem:[#allocation5 + $0x38] sm:$0xff] %vm27_vm3, %v5829_v1  ;;  %v111_v23 = vld [vmem:[%s8550_s0 + $0xa0] sm:$0xff]  ;;  %v112_v24 = vld [vmem:[%s8550_s0 + $0xa8] sm:$0xff] }
   0xd   :  { %36 = vst.msk [vmem:[#allocation5 + $0x40] sm:$0xff] %vm27_vm3, %v5829_v1  ;;  %37 = vst.msk [vmem:[#allocation5 + $0x48] sm:$0xff] %vm27_vm3, %v5829_v1  ;;  %v113_v25 = vld [vmem:[%s8550_s0 + $0xb0] sm:$0xff]  ;;  %v114_v26 = vld [vmem:[%s8550_s0 + $0xb8] sm:$0xff] }
   0xe   :  { %38 = vst.msk [vmem:[#allocation5 + $0x50] sm:$0xff] %vm27_vm3, %v5829_v1  ;;  %39 = vst.msk [vmem:[#allocation5 + $0x58] sm:$0xff] %vm27_vm3, %v5829_v1  ;;  %5562 = vmatmul.mubr.msk.f32.gmra.mxu0 %vm164_vm2, %v96_v8  ;;  %v115_v27 = vld [vmem:[%s8550_s0 + $0xc0] sm:$0xff]  ;;  %v116_v28 = vld [vmem:[%s8550_s0 + $0xc8] sm:$0xff] }
   0xf   :  { %40 = vst.msk [vmem:[#allocation5 + $0x60] sm:$0xff] %vm27_vm3, %v5829_v1  ;;  %41 = vst.msk [vmem:[#allocation5 + $0x68] sm:$0xff] %vm27_vm3, %v5829_v1  ;;  %5564 = vmatprep.mubr.msk.f32.mxu0 %vm164_vm2, %v97_v9  ;;  %v117_v29 = vld [vmem:[%s8550_s0 + $0xd0] sm:$0xff]  ;;  %v118_v30 = vld [vmem:[%s8550_s0 + $0xd8] sm:$0xff] }
  0x10   :  { %42 = vst.msk [vmem:[#allocation5 + $0x70] sm:$0xff] %vm27_vm3, %v5829_v1  ;;  %43 = vst.msk [vmem:[#allocation5 + $0x78] sm:$0xff] %vm27_vm3, %v5829_v1  ;;  %v119_v31 = vld [vmem:[%s8550_s0 + $0xe0] sm:$0xff]  ;;  %v120_v32 = vld [vmem:[%s8550_s0 + $0xe8] sm:$0xff] }
  0x11   :  { %44 = vst.msk [vmem:[#allocation5 + $0x80] sm:$0xff] %vm27_vm3, %v5829_v1  ;;  %45 = vst.msk [vmem:[#allocation5 + $0x88] sm:$0xff] %vm27_vm3, %v5829_v1  ;;  %v121_v33 = vld [vmem:[%s8550_s0 + $0xf0] sm:$0xff]  ;;  %v122_v34 = vld [vmem:[%s8550_s0 + $0xf8] sm:$0xff] }
  0x12   :  { %46 = vst.msk [vmem:[#allocation5 + $0x90] sm:$0xff] %vm27_vm3, %v5829_v1  ;;  %47 = vst.msk [vmem:[#allocation5 + $0x98] sm:$0xff] %vm27_vm3, %v5829_v1  ;;  %5565 = vmatmul.mubr.msk.f32.gmra.mxu0 %vm164_vm2, %v98_v10  ;;  %v123_v35 = vld [vmem:[%s8550_s0 + $0x100] sm:$0xff]  ;;  %v124_v36 = vld [vmem:[%s8550_s0 + $0x108] sm:$0xff] }
  0x13   :  { %48 = vst.msk [vmem:[#allocation5 + $0xa0] sm:$0xff] %vm27_vm3, %v5829_v1  ;;  %49 = vst.msk [vmem:[#allocation5 + $0xa8] sm:$0xff] %vm27_vm3, %v5829_v1  ;;  %5567 = vmatprep.mubr.msk.f32.mxu0 %vm164_vm2, %v99_v11  ;;  %v125_v37 = vld [vmem:[%s8550_s0 + $0x110] sm:$0xff]  ;;  %v126_v38 = vld [vmem:[%s8550_s0 + $0x118] sm:$0xff] }
  0x14   :  { %50 = vst.msk [vmem:[#allocation5 + $0xb0] sm:$0xff] %vm27_vm3, %v5829_v1  ;;  %51 = vst.msk [vmem:[#allocation5 + $0xb8] sm:$0xff] %vm27_vm3, %v5829_v1  ;;  %v127_v39 = vld [vmem:[%s8550_s0 + $0x120] sm:$0xff]  ;;  %v128_v40 = vld [vmem:[%s8550_s0 + $0x128] sm:$0xff] }
  0x15   :  { %52 = vst.msk [vmem:[#allocation5 + $0xc0] sm:$0xff] %vm27_vm3, %v5829_v1  ;;  %53 = vst.msk [vmem:[#allocation5 + $0xc8] sm:$0xff] %vm27_vm3, %v5829_v1  ;;  %v129_v41 = vld [vmem:[%s8550_s0 + $0x130] sm:$0xff]  ;;  %v130_v42 = vld [vmem:[%s8550_s0 + $0x138] sm:$0xff] }
  0x16   :  { %54 = vst.msk [vmem:[#allocation5 + $0xd0] sm:$0xff] %vm27_vm3, %v5829_v1  ;;  %55 = vst.msk [vmem:[#allocation5 + $0xd8] sm:$0xff] %vm27_vm3, %v5829_v1  ;;  %5568 = vmatmul.mubr.msk.f32.gmra.mxu0 %vm164_vm2, %v100_v12  ;;  %v131_v43 = vld [vmem:[%s8550_s0 + $0x140] sm:$0xff]  ;;  %v132_v44 = vld [vmem:[%s8550_s0 + $0x148] sm:$0xff] }
  0x17   :  { %56 = vst.msk [vmem:[#allocation5 + $0xe0] sm:$0xff] %vm27_vm3, %v5829_v1  ;;  %57 = vst.msk [vmem:[#allocation5 + $0xe8] sm:$0xff] %vm27_vm3, %v5829_v1  ;;  %5570 = vmatprep.mubr.msk.f32.mxu0 %vm164_vm2, %v101_v13  ;;  %v133_v45 = vld [vmem:[%s8550_s0 + $0x150] sm:$0xff]  ;;  %v134_v46 = vld [vmem:[%s8550_s0 + $0x158] sm:$0xff] }
  0x18   :  { %58 = vst.msk [vmem:[#allocation5 + $0xf0] sm:$0xff] %vm27_vm3, %v5829_v1  ;;  %59 = vst.msk [vmem:[#allocation5 + $0xf8] sm:$0xff] %vm27_vm3, %v5829_v1  ;;  %v135_v47 = vld [vmem:[%s8550_s0 + $0x160] sm:$0xff]  ;;  %v136_v48 = vld [vmem:[%s8550_s0 + $0x168] sm:$0xff] }
  0x19   :  { %60 = vst.msk [vmem:[#allocation5 + $0x100] sm:$0xff] %vm27_vm3, %v5829_v1  ;;  %61 = vst.msk [vmem:[#allocation5 + $0x108] sm:$0xff] %vm27_vm3, %v5829_v1  ;;  %v137_v49 = vld [vmem:[%s8550_s0 + $0x170] sm:$0xff]  ;;  %v138_v50 = vld [vmem:[%s8550_s0 + $0x178] sm:$0xff] }
  0x1a   :  { %62 = vst.msk [vmem:[#allocation5 + $0x110] sm:$0xff] %vm27_vm3, %v5829_v1  ;;  %63 = vst.msk [vmem:[#allocation5 + $0x118] sm:$0xff] %vm27_vm3, %v5829_v1  ;;  %5571 = vmatmul.mubr.msk.f32.gmra.mxu0 %vm164_vm2, %v102_v14  ;;  %v139_v51 = vld [vmem:[%s8550_s0 + $0x180] sm:$0xff]  ;;  %v140_v52 = vld [vmem:[%s8550_s0 + $0x188] sm:$0xff] }
  0x1b   :  { %64 = vst.msk [vmem:[#allocation5 + $0x120] sm:$0xff] %vm27_vm3, %v5829_v1  ;;  %65 = vst.msk [vmem:[#allocation5 + $0x128] sm:$0xff] %vm27_vm3, %v5829_v1  ;;  %5573 = vmatprep.mubr.msk.f32.mxu0 %vm164_vm2, %v103_v15  ;;  %v141_v53 = vld [vmem:[%s8550_s0 + $0x190] sm:$0xff]  ;;  %v142_v54 = vld [vmem:[%s8550_s0 + $0x198] sm:$0xff] }
  0x1c   :  { %66 = vst.msk [vmem:[#allocation5 + $0x130] sm:$0xff] %vm27_vm3, %v5829_v1  ;;  %67 = vst.msk [vmem:[#allocation5 + $0x138] sm:$0xff] %vm27_vm3, %v5829_v1  ;;  %v143_v55 = vld [vmem:[%s8550_s0 + $0x1a0] sm:$0xff]  ;;  %v144_v56 = vld [vmem:[%s8550_s0 + $0x1a8] sm:$0xff] }
  0x1d   :  { %68 = vst.msk [vmem:[#allocation5 + $0x140] sm:$0xff] %vm27_vm3, %v5829_v1  ;;  %69 = vst.msk [vmem:[#allocation5 + $0x148] sm:$0xff] %vm27_vm3, %v5829_v1  ;;  %v145_v57 = vld [vmem:[%s8550_s0 + $0x1b0] sm:$0xff]  ;;  %v146_v58 = vld [vmem:[%s8550_s0 + $0x1b8] sm:$0xff] }
  0x1e   :  { %70 = vst.msk [vmem:[#allocation5 + $0x150] sm:$0xff] %vm27_vm3, %v5829_v1  ;;  %71 = vst.msk [vmem:[#allocation5 + $0x158] sm:$0xff] %vm27_vm3, %v5829_v1  ;;  %5574 = vmatmul.mubr.msk.f32.gmra.mxu0 %vm164_vm2, %v104_v16  ;;  %v147_v59 = vld [vmem:[%s8550_s0 + $0x1c0] sm:$0xff]  ;;  %v148_v60 = vld [vmem:[%s8550_s0 + $0x1c8] sm:$0xff] }
  0x1f   :  { %72 = vst.msk [vmem:[#allocation5 + $0x160] sm:$0xff] %vm27_vm3, %v5829_v1  ;;  %73 = vst.msk [vmem:[#allocation5 + $0x168] sm:$0xff] %vm27_vm3, %v5829_v1  ;;  %5576 = vmatprep.mubr.msk.f32.mxu0 %vm164_vm2, %v105_v17  ;;  %v149_v61 = vld [vmem:[%s8550_s0 + $0x1d0] sm:$0xff]  ;;  %v150_v62 = vld [vmem:[%s8550_s0 + $0x1d8] sm:$0xff] }
  0x20   :  { %v151_v63 = vld [vmem:[%s8550_s0 + $0x1e0] sm:$0xff]  ;;  %v152_v0 = vld [vmem:[%s8550_s0 + $0x1e8] sm:$0xff]  ;;  %v153_v2 = vld [vmem:[%s8550_s0 + $0x1f0] sm:$0xff] }
  0x21   :  { %v154_v3 = vld [vmem:[%s8550_s0 + $0x1f8] sm:$0xff]  ;;  %v6263_v4 = vld [vmem:[%s8552_s2] ss:$0 sm:$0xff]  ;;  %s5821_s0 = smov 0  }
  0x22   :  { %5577 = vmatmul.mubr.msk.f32.gmra.mxu0 %vm164_vm2, %v106_v18 }
  0x23   :  { %5579 = vmatprep.mubr.msk.f32.mxu0 %vm164_vm2, %v107_v19 }
  0x26   :  { %5580 = vmatmul.mubr.msk.f32.gmra.mxu0 %vm164_vm2, %v108_v20 }
  0x27   :  { %5582 = vmatprep.mubr.msk.f32.mxu0 %vm164_vm2, %v109_v21 }
  0x2a   :  { %5583 = vmatmul.mubr.msk.f32.gmra.mxu0 %vm164_vm2, %v110_v22 }
  0x2b   :  { %5585 = vmatprep.mubr.msk.f32.mxu0 %vm164_vm2, %v111_v23 }
  0x2e   :  { %5586 = vmatmul.mubr.msk.f32.gmra.mxu0 %vm164_vm2, %v112_v24 }
  0x2f   :  { %5588 = vmatprep.mubr.msk.f32.mxu0 %vm164_vm2, %v113_v25 }
  0x32   :  { %5589 = vmatmul.mubr.msk.f32.gmra.mxu0 %vm164_vm2, %v114_v26 }
  0x33   :  { %5591 = vmatprep.mubr.msk.f32.mxu0 %vm164_vm2, %v115_v27 }
  0x36   :  { %5592 = vmatmul.mubr.msk.f32.gmra.mxu0 %vm164_vm2, %v116_v28 }
  0x37   :  { %5594 = vmatprep.mubr.msk.f32.mxu0 %vm164_vm2, %v117_v29 }
  0x3a   :  { %5595 = vmatmul.mubr.msk.f32.gmra.mxu0 %vm164_vm2, %v118_v30 }
  0x3b   :  { %5597 = vmatprep.mubr.msk.f32.mxu0 %vm164_vm2, %v119_v31 }
  0x3e   :  { %5598 = vmatmul.mubr.msk.f32.gmra.mxu0 %vm164_vm2, %v120_v32 }
  0x3f   :  { %5600 = vmatprep.mubr.msk.f32.mxu0 %vm164_vm2, %v121_v33 }
  0x42   :  { %5601 = vmatmul.mubr.msk.f32.gmra.mxu0 %vm164_vm2, %v122_v34 }
  0x43   :  { %5603 = vmatprep.mubr.msk.f32.mxu0 %vm164_vm2, %v123_v35 }
  0x46   :  { %5604 = vmatmul.mubr.msk.f32.gmra.mxu0 %vm164_vm2, %v124_v36 }
  0x47   :  { %5606 = vmatprep.mubr.msk.f32.mxu0 %vm164_vm2, %v125_v37 }
  0x4a   :  { %5607 = vmatmul.mubr.msk.f32.gmra.mxu0 %vm164_vm2, %v126_v38 }
  0x4b   :  { %5609 = vmatprep.mubr.msk.f32.mxu0 %vm164_vm2, %v127_v39 }
  0x4e   :  { %5610 = vmatmul.mubr.msk.f32.gmra.mxu0 %vm164_vm2, %v128_v40 }
  0x4f   :  { %5612 = vmatprep.mubr.msk.f32.mxu0 %vm164_vm2, %v129_v41 }
  0x52   :  { %5613 = vmatmul.mubr.msk.f32.gmra.mxu0 %vm164_vm2, %v130_v42 }
  0x53   :  { %5615 = vmatprep.mubr.msk.f32.mxu0 %vm164_vm2, %v131_v43 }
  0x56   :  { %5616 = vmatmul.mubr.msk.f32.gmra.mxu0 %vm164_vm2, %v132_v44 }
  0x57   :  { %5618 = vmatprep.mubr.msk.f32.mxu0 %vm164_vm2, %v133_v45 }
  0x5a   :  { %5619 = vmatmul.mubr.msk.f32.gmra.mxu0 %vm164_vm2, %v134_v46 }
  0x5b   :  { %5621 = vmatprep.mubr.msk.f32.mxu0 %vm164_vm2, %v135_v47 }
  0x5e   :  { %5622 = vmatmul.mubr.msk.f32.gmra.mxu0 %vm164_vm2, %v136_v48 }
  0x5f   :  { %5624 = vmatprep.mubr.msk.f32.mxu0 %vm164_vm2, %v137_v49 }
  0x62   :  { %5625 = vmatmul.mubr.msk.f32.gmra.mxu0 %vm164_vm2, %v138_v50 }
  0x63   :  { %5627 = vmatprep.mubr.msk.f32.mxu0 %vm164_vm2, %v139_v51 }
  0x66   :  { %5628 = vmatmul.mubr.msk.f32.gmra.mxu0 %vm164_vm2, %v140_v52 }
  0x67   :  { %5630 = vmatprep.mubr.msk.f32.mxu0 %vm164_vm2, %v141_v53 }
  0x6a   :  { %5631 = vmatmul.mubr.msk.f32.gmra.mxu0 %vm164_vm2, %v142_v54 }
  0x6b   :  { %5633 = vmatprep.mubr.msk.f32.mxu0 %vm164_vm2, %v143_v55 }
  0x6e   :  { %5634 = vmatmul.mubr.msk.f32.gmra.mxu0 %vm164_vm2, %v144_v56 }
  0x6f   :  { %5636 = vmatprep.mubr.msk.f32.mxu0 %vm164_vm2, %v145_v57 }
  0x72   :  { %5637 = vmatmul.mubr.msk.f32.gmra.mxu0 %vm164_vm2, %v146_v58 }
  0x73   :  { %5639 = vmatprep.mubr.msk.f32.mxu0 %vm164_vm2, %v147_v59 }
  0x76   :  { %5640 = vmatmul.mubr.msk.f32.gmra.mxu0 %vm164_vm2, %v148_v60 }
  0x77   :  { %5642 = vmatprep.mubr.msk.f32.mxu0 %vm164_vm2, %v149_v61 }
  0x7a   :  { %5643 = vmatmul.mubr.msk.f32.gmra.mxu0 %vm164_vm2, %v150_v62 }
  0x7b   :  { %5645 = vmatprep.mubr.msk.f32.mxu0 %vm164_vm2, %v151_v63 }
  0x7e   :  { %5646 = vmatmul.mubr.msk.f32.gmra.mxu0 %vm164_vm2, %v152_v0 }
  0x7f   :  { %5648 = vmatprep.mubr.msk.f32.mxu0 %vm164_vm2, %v153_v2 }
  0x82   :  { %5649 = vmatmul.mubr.msk.f32.gmra.mxu0 %vm164_vm2, %v154_v3 }
  0xc6   :  { %v5557_v5 = vpop.f32.mrf.mxu0 }
  0xc7   :  { %v433_v6 = vadd.f32 %v5557_v5, %v6263_v4 }
  0xc8   :  { %v427_v7 = vpop.f32.mrf.mxu0 }
  0xc9   :  { %v747_v8 = vmax.f32 %v433_v6, 0.0  ;;  %v428_v9 = vadd.f32 %v6263_v4, %v427_v7 }
  0xca   :  { %v5560_v10 = vpop.f32.mrf.mxu0 }
  0xcb   :  { %811 = vst.msk [vmem:[#allocation2 + $0x8] sm:$0xff] %vm27_vm3, %v747_v8  ;;  %v746_v11 = vmax.f32 %v428_v9, 0.0  ;;  %v443_v12 = vadd.f32 %v5560_v10, %v6263_v4 }
  0xcc   :  { %v437_v13 = vpop.f32.mrf.mxu0 }
  0xcd   :  { %810 = vst.msk [vmem:[#allocation2] sm:$0xff] %vm27_vm3, %v746_v11  ;;  %v749_v14 = vmax.f32 %v443_v12, 0.0  ;;  %v438_v15 = vadd.f32 %v6263_v4, %v437_v13 }
  0xce   :  { %v5563_v16 = vpop.f32.mrf.mxu0 }
  0xcf   :  { %813 = vst.msk [vmem:[#allocation2 + $0x18] sm:$0xff] %vm27_vm3, %v749_v14  ;;  %v748_v17 = vmax.f32 %v438_v15, 0.0  ;;  %v453_v18 = vadd.f32 %v5563_v16, %v6263_v4 }
  0xd0   :  { %v447_v19 = vpop.f32.mrf.mxu0 }
  0xd1   :  { %812 = vst.msk [vmem:[#allocation2 + $0x10] sm:$0xff] %vm27_vm3, %v748_v17  ;;  %v751_v20 = vmax.f32 %v453_v18, 0.0  ;;  %v448_v21 = vadd.f32 %v6263_v4, %v447_v19 }
  0xd2   :  { %v5566_v22 = vpop.f32.mrf.mxu0 }
  0xd3   :  { %815 = vst.msk [vmem:[#allocation2 + $0x28] sm:$0xff] %vm27_vm3, %v751_v20  ;;  %v750_v23 = vmax.f32 %v448_v21, 0.0  ;;  %v463_v24 = vadd.f32 %v5566_v22, %v6263_v4 }
  0xd4   :  { %v874_v25 = vld [vmem:[#allocation2] ss:$2 sm:$0xff]  ;;  %v938_v26 = vld [vmem:[#allocation2 + $0x1] ss:$2 sm:$0xff]  ;;  %v457_v27 = vpop.f32.mrf.mxu0 }
  0xd5   :  { %v1001_v28 = vmax.f32 %v874_v25, %v938_v26  ;;  %814 = vst.msk [vmem:[#allocation2 + $0x20] sm:$0xff] %vm27_vm3, %v750_v23  ;;  %v753_v29 = vmax.f32 %v463_v24, 0.0  ;;  %v458_v30 = vadd.f32 %v6263_v4, %v457_v27 }
  0xd6   :  { %v5569_v31 = vpop.f32.mrf.mxu0 }
  0xd7   :  { %1033 = vst.msk [vmem:[#allocation3] sm:$0xff] %vm27_vm3, %v1001_v28  ;;  %817 = vst.msk [vmem:[#allocation2 + $0x38] sm:$0xff] %vm27_vm3, %v753_v29  ;;  %v752_v32 = vmax.f32 %v458_v30, 0.0  ;;  %v473_v33 = vadd.f32 %v5569_v31, %v6263_v4 }
  0xd8   :  { %v876_v34 = vld [vmem:[#allocation2 + $0x10] ss:$2 sm:$0xff]  ;;  %v940_v35 = vld [vmem:[#allocation2 + $0x11] ss:$2 sm:$0xff]  ;;  %v467_v36 = vpop.f32.mrf.mxu0 }
  0xd9   :  { %v1002_v37 = vmax.f32 %v876_v34, %v940_v35  ;;  %816 = vst.msk [vmem:[#allocation2 + $0x30] sm:$0xff] %vm27_vm3, %v752_v32  ;;  %v755_v38 = vmax.f32 %v473_v33, 0.0  ;;  %v468_v39 = vadd.f32 %v6263_v4, %v467_v36 }
  0xda   :  { %v5572_v40 = vpop.f32.mrf.mxu0 }
  0xdb   :  { %1034 = vst.msk [vmem:[#allocation3 + $0x8] sm:$0xff] %vm27_vm3, %v1002_v37  ;;  %819 = vst.msk [vmem:[#allocation2 + $0x48] sm:$0xff] %vm27_vm3, %v755_v38  ;;  %v754_v41 = vmax.f32 %v468_v39, 0.0  ;;  %v483_v42 = vadd.f32 %v5572_v40, %v6263_v4 }
  0xdc   :  { %v878_v43 = vld [vmem:[#allocation2 + $0x20] ss:$2 sm:$0xff]  ;;  %v942_v44 = vld [vmem:[#allocation2 + $0x21] ss:$2 sm:$0xff]  ;;  %v477_v45 = vpop.f32.mrf.mxu0 }
  0xdd   :  { %v1003_v46 = vmax.f32 %v878_v43, %v942_v44  ;;  %818 = vst.msk [vmem:[#allocation2 + $0x40] sm:$0xff] %vm27_vm3, %v754_v41  ;;  %v757_v47 = vmax.f32 %v483_v42, 0.0  ;;  %v478_v48 = vadd.f32 %v6263_v4, %v477_v45 }
  0xde   :  { %v5575_v49 = vpop.f32.mrf.mxu0  ;;  %v1065_v58 = vld [vmem:[#allocation3] sm:$0xff] }
  0xdf   :  { %1035 = vst.msk [vmem:[#allocation3 + $0x10] sm:$0xff] %vm27_vm3, %v1003_v46  ;;  %821 = vst.msk [vmem:[#allocation2 + $0x58] sm:$0xff] %vm27_vm3, %v757_v47  ;;  %v756_v50 = vmax.f32 %v478_v48, 0.0  ;;  %v493_v51 = vadd.f32 %v5575_v49, %v6263_v4 }
  0xe0   :  { %v880_v52 = vld [vmem:[#allocation2 + $0x30] ss:$2 sm:$0xff]  ;;  %v944_v53 = vld [vmem:[#allocation2 + $0x31] ss:$2 sm:$0xff]  ;;  %v487_v54 = vpop.f32.mrf.mxu0 }
  0xe1   :  { %v1004_v55 = vmax.f32 %v880_v52, %v944_v53  ;;  %820 = vst.msk [vmem:[#allocation2 + $0x50] sm:$0xff] %vm27_vm3, %v756_v50  ;;  %v759_v56 = vmax.f32 %v493_v51, 0.0  ;;  %v488_v57 = vadd.f32 %v6263_v4, %v487_v54 }
  0xe2   :  { %v1066_v59 = vld [vmem:[#allocation3 + $0x8] sm:$0xff]  ;;  %v5578_v60 = vpop.f32.mrf.mxu0 }
  0xe3   :  { %v1098_v61 = vmax.f32 %v1065_v58, %v1066_v59  ;;  %1036 = vst.msk [vmem:[#allocation3 + $0x18] sm:$0xff] %vm27_vm3, %v1004_v55  ;;  %823 = vst.msk [vmem:[#allocation2 + $0x68] sm:$0xff] %vm27_vm3, %v759_v56  ;;  %v758_v62 = vmax.f32 %v488_v57, 0.0  ;;  %v503_v63 = vadd.f32 %v5578_v60, %v6263_v4 }
  0xe4   :  { %v882_v0 = vld [vmem:[#allocation2 + $0x40] ss:$2 sm:$0xff]  ;;  %v946_v2 = vld [vmem:[#allocation2 + $0x41] ss:$2 sm:$0xff]  ;;  %v497_v3 = vpop.f32.mrf.mxu0 }
  0xe5   :  { %1130 = vst.msk [vmem:[#allocation4] sm:$0xff] %vm27_vm3, %v1098_v61  ;;  %v1005_v5 = vmax.f32 %v882_v0, %v946_v2  ;;  %822 = vst.msk [vmem:[#allocation2 + $0x60] sm:$0xff] %vm27_vm3, %v758_v62  ;;  %v761_v6 = vmax.f32 %v503_v63, 0.0  ;;  %v498_v7 = vadd.f32 %v6263_v4, %v497_v3 }
  0xe6   :  { %v1067_v8 = vld [vmem:[#allocation3 + $0x10] sm:$0xff]  ;;  %v5581_v9 = vpop.f32.mrf.mxu0 }
  0xe7   :  { %v1099_v10 = vmax.f32 %v1066_v59, %v1067_v8  ;;  %1037 = vst.msk [vmem:[#allocation3 + $0x20] sm:$0xff] %vm27_vm3, %v1005_v5  ;;  %825 = vst.msk [vmem:[#allocation2 + $0x78] sm:$0xff] %vm27_vm3, %v761_v6  ;;  %v760_v11 = vmax.f32 %v498_v7, 0.0  ;;  %v513_v12 = vadd.f32 %v5581_v9, %v6263_v4 }
  0xe8   :  { %v884_v13 = vld [vmem:[#allocation2 + $0x50] ss:$2 sm:$0xff]  ;;  %v948_v14 = vld [vmem:[#allocation2 + $0x51] ss:$2 sm:$0xff]  ;;  %v507_v15 = vpop.f32.mrf.mxu0 }
  0xe9   :  { %1131 = vst.msk [vmem:[#allocation4 + $0x8] sm:$0xff] %vm27_vm3, %v1099_v10  ;;  %v1006_v16 = vmax.f32 %v884_v13, %v948_v14  ;;  %824 = vst.msk [vmem:[#allocation2 + $0x70] sm:$0xff] %vm27_vm3, %v760_v11  ;;  %v763_v17 = vmax.f32 %v513_v12, 0.0  ;;  %v508_v18 = vadd.f32 %v6263_v4, %v507_v15 }
  0xea   :  { %v1068_v19 = vld [vmem:[#allocation3 + $0x18] sm:$0xff]  ;;  %v5584_v20 = vpop.f32.mrf.mxu0 }
  0xeb   :  { %v1100_v21 = vmax.f32 %v1067_v8, %v1068_v19  ;;  %1038 = vst.msk [vmem:[#allocation3 + $0x28] sm:$0xff] %vm27_vm3, %v1006_v16  ;;  %827 = vst.msk [vmem:[#allocation2 + $0x88] sm:$0xff] %vm27_vm3, %v763_v17  ;;  %v762_v22 = vmax.f32 %v508_v18, 0.0  ;;  %v523_v23 = vadd.f32 %v5584_v20, %v6263_v4 }
  0xec   :  { %v886_v24 = vld [vmem:[#allocation2 + $0x60] ss:$2 sm:$0xff]  ;;  %v950_v25 = vld [vmem:[#allocation2 + $0x61] ss:$2 sm:$0xff]  ;;  %v517_v26 = vpop.f32.mrf.mxu0 }
  0xed   :  { %1132 = vst.msk [vmem:[#allocation4 + $0x10] sm:$0xff] %vm27_vm3, %v1100_v21  ;;  %v1007_v27 = vmax.f32 %v886_v24, %v950_v25  ;;  %826 = vst.msk [vmem:[#allocation2 + $0x80] sm:$0xff] %vm27_vm3, %v762_v22  ;;  %v765_v28 = vmax.f32 %v523_v23, 0.0  ;;  %v518_v29 = vadd.f32 %v6263_v4, %v517_v26 }
  0xee   :  { %v1069_v30 = vld [vmem:[#allocation3 + $0x20] sm:$0xff]  ;;  %v5587_v31 = vpop.f32.mrf.mxu0 }
  0xef   :  { %v1101_v32 = vmax.f32 %v1068_v19, %v1069_v30  ;;  %1039 = vst.msk [vmem:[#allocation3 + $0x30] sm:$0xff] %vm27_vm3, %v1007_v27  ;;  %829 = vst.msk [vmem:[#allocation2 + $0x98] sm:$0xff] %vm27_vm3, %v765_v28  ;;  %v764_v33 = vmax.f32 %v518_v29, 0.0  ;;  %v533_v34 = vadd.f32 %v5587_v31, %v6263_v4 }
  0xf0   :  { %v888_v35 = vld [vmem:[#allocation2 + $0x70] ss:$2 sm:$0xff]  ;;  %v952_v36 = vld [vmem:[#allocation2 + $0x71] ss:$2 sm:$0xff]  ;;  %v527_v37 = vpop.f32.mrf.mxu0 }
  0xf1   :  { %1133 = vst.msk [vmem:[#allocation4 + $0x18] sm:$0xff] %vm27_vm3, %v1101_v32  ;;  %v1008_v38 = vmax.f32 %v888_v35, %v952_v36  ;;  %828 = vst.msk [vmem:[#allocation2 + $0x90] sm:$0xff] %vm27_vm3, %v764_v33  ;;  %v767_v39 = vmax.f32 %v533_v34, 0.0  ;;  %v528_v40 = vadd.f32 %v6263_v4, %v527_v37 }
  0xf2   :  { %v1070_v41 = vld [vmem:[#allocation3 + $0x28] sm:$0xff]  ;;  %v5590_v42 = vpop.f32.mrf.mxu0 }
  0xf3   :  { %v1102_v43 = vmax.f32 %v1069_v30, %v1070_v41  ;;  %1040 = vst.msk [vmem:[#allocation3 + $0x38] sm:$0xff] %vm27_vm3, %v1008_v38  ;;  %831 = vst.msk [vmem:[#allocation2 + $0xa8] sm:$0xff] %vm27_vm3, %v767_v39  ;;  %v766_v44 = vmax.f32 %v528_v40, 0.0  ;;  %v543_v45 = vadd.f32 %v5590_v42, %v6263_v4 }
  0xf4   :  { %v890_v46 = vld [vmem:[#allocation2 + $0x80] ss:$2 sm:$0xff]  ;;  %v954_v47 = vld [vmem:[#allocation2 + $0x81] ss:$2 sm:$0xff]  ;;  %v537_v48 = vpop.f32.mrf.mxu0 }
  0xf5   :  { %1134 = vst.msk [vmem:[#allocation4 + $0x20] sm:$0xff] %vm27_vm3, %v1102_v43  ;;  %v1009_v49 = vmax.f32 %v890_v46, %v954_v47  ;;  %830 = vst.msk [vmem:[#allocation2 + $0xa0] sm:$0xff] %vm27_vm3, %v766_v44  ;;  %v769_v50 = vmax.f32 %v543_v45, 0.0  ;;  %v538_v51 = vadd.f32 %v6263_v4, %v537_v48 }
  0xf6   :  { %v1071_v52 = vld [vmem:[#allocation3 + $0x30] sm:$0xff]  ;;  %v5593_v53 = vpop.f32.mrf.mxu0 }
  0xf7   :  { %v1103_v54 = vmax.f32 %v1070_v41, %v1071_v52  ;;  %1041 = vst.msk [vmem:[#allocation3 + $0x40] sm:$0xff] %vm27_vm3, %v1009_v49  ;;  %833 = vst.msk [vmem:[#allocation2 + $0xb8] sm:$0xff] %vm27_vm3, %v769_v50  ;;  %v768_v55 = vmax.f32 %v538_v51, 0.0  ;;  %v553_v56 = vadd.f32 %v5593_v53, %v6263_v4 }
  0xf8   :  { %v892_v57 = vld [vmem:[#allocation2 + $0x90] ss:$2 sm:$0xff]  ;;  %v956_v58 = vld [vmem:[#allocation2 + $0x91] ss:$2 sm:$0xff]  ;;  %v547_v59 = vpop.f32.mrf.mxu0 }
  0xf9   :  { %1135 = vst.msk [vmem:[#allocation4 + $0x28] sm:$0xff] %vm27_vm3, %v1103_v54  ;;  %v1010_v60 = vmax.f32 %v892_v57, %v956_v58  ;;  %832 = vst.msk [vmem:[#allocation2 + $0xb0] sm:$0xff] %vm27_vm3, %v768_v55  ;;  %v771_v61 = vmax.f32 %v553_v56, 0.0  ;;  %v548_v62 = vadd.f32 %v6263_v4, %v547_v59 }
  0xfa   :  { %v1072_v63 = vld [vmem:[#allocation3 + $0x38] sm:$0xff]  ;;  %v5596_v0 = vpop.f32.mrf.mxu0 }
  0xfb   :  { %v1104_v2 = vmax.f32 %v1071_v52, %v1072_v63  ;;  %1042 = vst.msk [vmem:[#allocation3 + $0x48] sm:$0xff] %vm27_vm3, %v1010_v60  ;;  %835 = vst.msk [vmem:[#allocation2 + $0xc8] sm:$0xff] %vm27_vm3, %v771_v61  ;;  %v770_v3 = vmax.f32 %v548_v62, 0.0  ;;  %v563_v5 = vadd.f32 %v5596_v0, %v6263_v4 }
  0xfc   :  { %v894_v6 = vld [vmem:[#allocation2 + $0xa0] ss:$2 sm:$0xff]  ;;  %v958_v7 = vld [vmem:[#allocation2 + $0xa1] ss:$2 sm:$0xff]  ;;  %v557_v8 = vpop.f32.mrf.mxu0 }
  0xfd   :  { %1136 = vst.msk [vmem:[#allocation4 + $0x30] sm:$0xff] %vm27_vm3, %v1104_v2  ;;  %v1011_v9 = vmax.f32 %v894_v6, %v958_v7  ;;  %834 = vst.msk [vmem:[#allocation2 + $0xc0] sm:$0xff] %vm27_vm3, %v770_v3  ;;  %v773_v10 = vmax.f32 %v563_v5, 0.0  ;;  %v558_v11 = vadd.f32 %v6263_v4, %v557_v8 }
  0xfe   :  { %v1073_v12 = vld [vmem:[#allocation3 + $0x40] sm:$0xff]  ;;  %v5599_v13 = vpop.f32.mrf.mxu0 }
  0xff   :  { %v1105_v14 = vmax.f32 %v1072_v63, %v1073_v12  ;;  %1043 = vst.msk [vmem:[#allocation3 + $0x50] sm:$0xff] %vm27_vm3, %v1011_v9  ;;  %837 = vst.msk [vmem:[#allocation2 + $0xd8] sm:$0xff] %vm27_vm3, %v773_v10  ;;  %v772_v15 = vmax.f32 %v558_v11, 0.0  ;;  %v573_v16 = vadd.f32 %v5599_v13, %v6263_v4 }
 0x100   :  { %v896_v17 = vld [vmem:[#allocation2 + $0xb0] ss:$2 sm:$0xff]  ;;  %v960_v18 = vld [vmem:[#allocation2 + $0xb1] ss:$2 sm:$0xff]  ;;  %v567_v19 = vpop.f32.mrf.mxu0 }
 0x101   :  { %1137 = vst.msk [vmem:[#allocation4 + $0x38] sm:$0xff] %vm27_vm3, %v1105_v14  ;;  %v1012_v20 = vmax.f32 %v896_v17, %v960_v18  ;;  %836 = vst.msk [vmem:[#allocation2 + $0xd0] sm:$0xff] %vm27_vm3, %v772_v15  ;;  %v775_v21 = vmax.f32 %v573_v16, 0.0  ;;  %v568_v22 = vadd.f32 %v6263_v4, %v567_v19 }
 0x102   :  { %v1074_v23 = vld [vmem:[#allocation3 + $0x48] sm:$0xff]  ;;  %v5602_v24 = vpop.f32.mrf.mxu0 }
 0x103   :  { %v1106_v25 = vmax.f32 %v1073_v12, %v1074_v23  ;;  %1044 = vst.msk [vmem:[#allocation3 + $0x58] sm:$0xff] %vm27_vm3, %v1012_v20  ;;  %839 = vst.msk [vmem:[#allocation2 + $0xe8] sm:$0xff] %vm27_vm3, %v775_v21  ;;  %v774_v26 = vmax.f32 %v568_v22, 0.0  ;;  %v583_v27 = vadd.f32 %v5602_v24, %v6263_v4 }
 0x104   :  { %v898_v28 = vld [vmem:[#allocation2 + $0xc0] ss:$2 sm:$0xff]  ;;  %v962_v29 = vld [vmem:[#allocation2 + $0xc1] ss:$2 sm:$0xff]  ;;  %v577_v30 = vpop.f32.mrf.mxu0 }
 0x105   :  { %1138 = vst.msk [vmem:[#allocation4 + $0x40] sm:$0xff] %vm27_vm3, %v1106_v25  ;;  %v1013_v31 = vmax.f32 %v898_v28, %v962_v29  ;;  %838 = vst.msk [vmem:[#allocation2 + $0xe0] sm:$0xff] %vm27_vm3, %v774_v26  ;;  %v777_v32 = vmax.f32 %v583_v27, 0.0  ;;  %v578_v33 = vadd.f32 %v6263_v4, %v577_v30 }
 0x106   :  { %v1075_v34 = vld [vmem:[#allocation3 + $0x50] sm:$0xff]  ;;  %v5605_v35 = vpop.f32.mrf.mxu0 }
 0x107   :  { %v1107_v36 = vmax.f32 %v1074_v23, %v1075_v34  ;;  %1045 = vst.msk [vmem:[#allocation3 + $0x60] sm:$0xff] %vm27_vm3, %v1013_v31  ;;  %841 = vst.msk [vmem:[#allocation2 + $0xf8] sm:$0xff] %vm27_vm3, %v777_v32  ;;  %v776_v37 = vmax.f32 %v578_v33, 0.0  ;;  %v593_v38 = vadd.f32 %v5605_v35, %v6263_v4 }
 0x108   :  { %v900_v39 = vld [vmem:[#allocation2 + $0xd0] ss:$2 sm:$0xff]  ;;  %v964_v40 = vld [vmem:[#allocation2 + $0xd1] ss:$2 sm:$0xff]  ;;  %v587_v41 = vpop.f32.mrf.mxu0 }
 0x109   :  { %1139 = vst.msk [vmem:[#allocation4 + $0x48] sm:$0xff] %vm27_vm3, %v1107_v36  ;;  %v1014_v42 = vmax.f32 %v900_v39, %v964_v40  ;;  %840 = vst.msk [vmem:[#allocation2 + $0xf0] sm:$0xff] %vm27_vm3, %v776_v37  ;;  %v779_v43 = vmax.f32 %v593_v38, 0.0  ;;  %v588_v44 = vadd.f32 %v6263_v4, %v587_v41 }
 0x10a   :  { %v1076_v45 = vld [vmem:[#allocation3 + $0x58] sm:$0xff]  ;;  %v5608_v46 = vpop.f32.mrf.mxu0 }
 0x10b   :  { %v1108_v47 = vmax.f32 %v1075_v34, %v1076_v45  ;;  %1046 = vst.msk [vmem:[#allocation3 + $0x68] sm:$0xff] %vm27_vm3, %v1014_v42  ;;  %843 = vst.msk [vmem:[#allocation2 + $0x108] sm:$0xff] %vm27_vm3, %v779_v43  ;;  %v778_v48 = vmax.f32 %v588_v44, 0.0  ;;  %v603_v49 = vadd.f32 %v5608_v46, %v6263_v4 }
 0x10c   :  { %v902_v50 = vld [vmem:[#allocation2 + $0xe0] ss:$2 sm:$0xff]  ;;  %v966_v51 = vld [vmem:[#allocation2 + $0xe1] ss:$2 sm:$0xff]  ;;  %v597_v52 = vpop.f32.mrf.mxu0 }
 0x10d   :  { %1140 = vst.msk [vmem:[#allocation4 + $0x50] sm:$0xff] %vm27_vm3, %v1108_v47  ;;  %v1015_v53 = vmax.f32 %v902_v50, %v966_v51  ;;  %842 = vst.msk [vmem:[#allocation2 + $0x100] sm:$0xff] %vm27_vm3, %v778_v48  ;;  %v781_v54 = vmax.f32 %v603_v49, 0.0  ;;  %v598_v55 = vadd.f32 %v6263_v4, %v597_v52 }
 0x10e   :  { %v1077_v56 = vld [vmem:[#allocation3 + $0x60] sm:$0xff]  ;;  %v5611_v57 = vpop.f32.mrf.mxu0 }
 0x10f   :  { %v1109_v58 = vmax.f32 %v1076_v45, %v1077_v56  ;;  %1047 = vst.msk [vmem:[#allocation3 + $0x70] sm:$0xff] %vm27_vm3, %v1015_v53  ;;  %845 = vst.msk [vmem:[#allocation2 + $0x118] sm:$0xff] %vm27_vm3, %v781_v54  ;;  %v780_v59 = vmax.f32 %v598_v55, 0.0  ;;  %v613_v60 = vadd.f32 %v5611_v57, %v6263_v4 }
 0x110   :  { %v904_v61 = vld [vmem:[#allocation2 + $0xf0] ss:$2 sm:$0xff]  ;;  %v968_v62 = vld [vmem:[#allocation2 + $0xf1] ss:$2 sm:$0xff]  ;;  %v607_v63 = vpop.f32.mrf.mxu0 }
 0x111   :  { %1141 = vst.msk [vmem:[#allocation4 + $0x58] sm:$0xff] %vm27_vm3, %v1109_v58  ;;  %v1016_v0 = vmax.f32 %v904_v61, %v968_v62  ;;  %844 = vst.msk [vmem:[#allocation2 + $0x110] sm:$0xff] %vm27_vm3, %v780_v59  ;;  %v783_v2 = vmax.f32 %v613_v60, 0.0  ;;  %v608_v3 = vadd.f32 %v6263_v4, %v607_v63 }
 0x112   :  { %v1078_v5 = vld [vmem:[#allocation3 + $0x68] sm:$0xff]  ;;  %v5614_v6 = vpop.f32.mrf.mxu0 }
 0x113   :  { %v1110_v7 = vmax.f32 %v1077_v56, %v1078_v5  ;;  %1048 = vst.msk [vmem:[#allocation3 + $0x78] sm:$0xff] %vm27_vm3, %v1016_v0  ;;  %847 = vst.msk [vmem:[#allocation2 + $0x128] sm:$0xff] %vm27_vm3, %v783_v2  ;;  %v782_v8 = vmax.f32 %v608_v3, 0.0  ;;  %v623_v9 = vadd.f32 %v5614_v6, %v6263_v4 }
 0x114   :  { %v906_v10 = vld [vmem:[#allocation2 + $0x100] ss:$2 sm:$0xff]  ;;  %v970_v11 = vld [vmem:[#allocation2 + $0x101] ss:$2 sm:$0xff]  ;;  %v617_v12 = vpop.f32.mrf.mxu0 }
 0x115   :  { %1142 = vst.msk [vmem:[#allocation4 + $0x60] sm:$0xff] %vm27_vm3, %v1110_v7  ;;  %v1017_v13 = vmax.f32 %v906_v10, %v970_v11  ;;  %846 = vst.msk [vmem:[#allocation2 + $0x120] sm:$0xff] %vm27_vm3, %v782_v8  ;;  %v785_v14 = vmax.f32 %v623_v9, 0.0  ;;  %v618_v15 = vadd.f32 %v6263_v4, %v617_v12 }
 0x116   :  { %v1079_v16 = vld [vmem:[#allocation3 + $0x70] sm:$0xff]  ;;  %v5617_v17 = vpop.f32.mrf.mxu0 }
 0x117   :  { %v1111_v18 = vmax.f32 %v1078_v5, %v1079_v16  ;;  %1049 = vst.msk [vmem:[#allocation3 + $0x80] sm:$0xff] %vm27_vm3, %v1017_v13  ;;  %849 = vst.msk [vmem:[#allocation2 + $0x138] sm:$0xff] %vm27_vm3, %v785_v14  ;;  %v784_v19 = vmax.f32 %v618_v15, 0.0  ;;  %v633_v20 = vadd.f32 %v5617_v17, %v6263_v4 }
 0x118   :  { %v908_v21 = vld [vmem:[#allocation2 + $0x110] ss:$2 sm:$0xff]  ;;  %v972_v22 = vld [vmem:[#allocation2 + $0x111] ss:$2 sm:$0xff]  ;;  %v627_v23 = vpop.f32.mrf.mxu0 }
 0x119   :  { %1143 = vst.msk [vmem:[#allocation4 + $0x68] sm:$0xff] %vm27_vm3, %v1111_v18  ;;  %v1018_v24 = vmax.f32 %v908_v21, %v972_v22  ;;  %848 = vst.msk [vmem:[#allocation2 + $0x130] sm:$0xff] %vm27_vm3, %v784_v19  ;;  %v787_v25 = vmax.f32 %v633_v20, 0.0  ;;  %v628_v26 = vadd.f32 %v6263_v4, %v627_v23 }
 0x11a   :  { %v1080_v27 = vld [vmem:[#allocation3 + $0x78] sm:$0xff]  ;;  %v5620_v28 = vpop.f32.mrf.mxu0 }
 0x11b   :  { %v1112_v29 = vmax.f32 %v1079_v16, %v1080_v27  ;;  %1050 = vst.msk [vmem:[#allocation3 + $0x88] sm:$0xff] %vm27_vm3, %v1018_v24  ;;  %851 = vst.msk [vmem:[#allocation2 + $0x148] sm:$0xff] %vm27_vm3, %v787_v25  ;;  %v786_v30 = vmax.f32 %v628_v26, 0.0  ;;  %v643_v31 = vadd.f32 %v5620_v28, %v6263_v4 }
 0x11c   :  { %v910_v32 = vld [vmem:[#allocation2 + $0x120] ss:$2 sm:$0xff]  ;;  %v974_v33 = vld [vmem:[#allocation2 + $0x121] ss:$2 sm:$0xff]  ;;  %v637_v34 = vpop.f32.mrf.mxu0 }
 0x11d   :  { %1144 = vst.msk [vmem:[#allocation4 + $0x70] sm:$0xff] %vm27_vm3, %v1112_v29  ;;  %v1019_v35 = vmax.f32 %v910_v32, %v974_v33  ;;  %850 = vst.msk [vmem:[#allocation2 + $0x140] sm:$0xff] %vm27_vm3, %v786_v30  ;;  %v789_v36 = vmax.f32 %v643_v31, 0.0  ;;  %v638_v37 = vadd.f32 %v6263_v4, %v637_v34 }
 0x11e   :  { %v1081_v38 = vld [vmem:[#allocation3 + $0x80] sm:$0xff]  ;;  %v5623_v39 = vpop.f32.mrf.mxu0 }
 0x11f   :  { %v1113_v40 = vmax.f32 %v1080_v27, %v1081_v38  ;;  %1051 = vst.msk [vmem:[#allocation3 + $0x90] sm:$0xff] %vm27_vm3, %v1019_v35  ;;  %853 = vst.msk [vmem:[#allocation2 + $0x158] sm:$0xff] %vm27_vm3, %v789_v36  ;;  %v788_v41 = vmax.f32 %v638_v37, 0.0  ;;  %v653_v42 = vadd.f32 %v5623_v39, %v6263_v4 }
 0x120   :  { %v912_v43 = vld [vmem:[#allocation2 + $0x130] ss:$2 sm:$0xff]  ;;  %v976_v44 = vld [vmem:[#allocation2 + $0x131] ss:$2 sm:$0xff]  ;;  %v647_v45 = vpop.f32.mrf.mxu0 }
 0x121   :  { %1145 = vst.msk [vmem:[#allocation4 + $0x78] sm:$0xff] %vm27_vm3, %v1113_v40  ;;  %v1020_v46 = vmax.f32 %v912_v43, %v976_v44  ;;  %852 = vst.msk [vmem:[#allocation2 + $0x150] sm:$0xff] %vm27_vm3, %v788_v41  ;;  %v791_v47 = vmax.f32 %v653_v42, 0.0  ;;  %v648_v48 = vadd.f32 %v6263_v4, %v647_v45 }
 0x122   :  { %v1082_v49 = vld [vmem:[#allocation3 + $0x88] sm:$0xff]  ;;  %v5626_v50 = vpop.f32.mrf.mxu0 }
 0x123   :  { %v1114_v51 = vmax.f32 %v1081_v38, %v1082_v49  ;;  %1052 = vst.msk [vmem:[#allocation3 + $0x98] sm:$0xff] %vm27_vm3, %v1020_v46  ;;  %855 = vst.msk [vmem:[#allocation2 + $0x168] sm:$0xff] %vm27_vm3, %v791_v47  ;;  %v790_v52 = vmax.f32 %v648_v48, 0.0  ;;  %v663_v53 = vadd.f32 %v5626_v50, %v6263_v4 }
 0x124   :  { %v914_v54 = vld [vmem:[#allocation2 + $0x140] ss:$2 sm:$0xff]  ;;  %v978_v55 = vld [vmem:[#allocation2 + $0x141] ss:$2 sm:$0xff]  ;;  %v657_v56 = vpop.f32.mrf.mxu0 }
 0x125   :  { %1146 = vst.msk [vmem:[#allocation4 + $0x80] sm:$0xff] %vm27_vm3, %v1114_v51  ;;  %v1021_v57 = vmax.f32 %v914_v54, %v978_v55  ;;  %854 = vst.msk [vmem:[#allocation2 + $0x160] sm:$0xff] %vm27_vm3, %v790_v52  ;;  %v793_v58 = vmax.f32 %v663_v53, 0.0  ;;  %v658_v59 = vadd.f32 %v6263_v4, %v657_v56 }
 0x126   :  { %v1083_v60 = vld [vmem:[#allocation3 + $0x90] sm:$0xff]  ;;  %v5629_v61 = vpop.f32.mrf.mxu0 }
 0x127   :  { %v1115_v62 = vmax.f32 %v1082_v49, %v1083_v60  ;;  %1053 = vst.msk [vmem:[#allocation3 + $0xa0] sm:$0xff] %vm27_vm3, %v1021_v57  ;;  %857 = vst.msk [vmem:[#allocation2 + $0x178] sm:$0xff] %vm27_vm3, %v793_v58  ;;  %v792_v63 = vmax.f32 %v658_v59, 0.0  ;;  %v673_v0 = vadd.f32 %v5629_v61, %v6263_v4 }
 0x128   :  { %v916_v2 = vld [vmem:[#allocation2 + $0x150] ss:$2 sm:$0xff]  ;;  %v980_v3 = vld [vmem:[#allocation2 + $0x151] ss:$2 sm:$0xff]  ;;  %v667_v5 = vpop.f32.mrf.mxu0 }
 0x129   :  { %1147 = vst.msk [vmem:[#allocation4 + $0x88] sm:$0xff] %vm27_vm3, %v1115_v62  ;;  %v1022_v6 = vmax.f32 %v916_v2, %v980_v3  ;;  %856 = vst.msk [vmem:[#allocation2 + $0x170] sm:$0xff] %vm27_vm3, %v792_v63  ;;  %v795_v7 = vmax.f32 %v673_v0, 0.0  ;;  %v668_v8 = vadd.f32 %v6263_v4, %v667_v5 }
 0x12a   :  { %v1084_v9 = vld [vmem:[#allocation3 + $0x98] sm:$0xff]  ;;  %v5632_v10 = vpop.f32.mrf.mxu0 }
 0x12b   :  { %v1116_v11 = vmax.f32 %v1083_v60, %v1084_v9  ;;  %1054 = vst.msk [vmem:[#allocation3 + $0xa8] sm:$0xff] %vm27_vm3, %v1022_v6  ;;  %859 = vst.msk [vmem:[#allocation2 + $0x188] sm:$0xff] %vm27_vm3, %v795_v7  ;;  %v794_v12 = vmax.f32 %v668_v8, 0.0  ;;  %v683_v13 = vadd.f32 %v5632_v10, %v6263_v4 }
 0x12c   :  { %v918_v14 = vld [vmem:[#allocation2 + $0x160] ss:$2 sm:$0xff]  ;;  %v982_v15 = vld [vmem:[#allocation2 + $0x161] ss:$2 sm:$0xff]  ;;  %v677_v16 = vpop.f32.mrf.mxu0 }
 0x12d   :  { %1148 = vst.msk [vmem:[#allocation4 + $0x90] sm:$0xff] %vm27_vm3, %v1116_v11  ;;  %v1023_v17 = vmax.f32 %v918_v14, %v982_v15  ;;  %858 = vst.msk [vmem:[#allocation2 + $0x180] sm:$0xff] %vm27_vm3, %v794_v12  ;;  %v797_v18 = vmax.f32 %v683_v13, 0.0  ;;  %v678_v19 = vadd.f32 %v6263_v4, %v677_v16 }
 0x12e   :  { %v1085_v20 = vld [vmem:[#allocation3 + $0xa0] sm:$0xff]  ;;  %v5635_v21 = vpop.f32.mrf.mxu0 }
 0x12f   :  { %v1117_v22 = vmax.f32 %v1084_v9, %v1085_v20  ;;  %1055 = vst.msk [vmem:[#allocation3 + $0xb0] sm:$0xff] %vm27_vm3, %v1023_v17  ;;  %861 = vst.msk [vmem:[#allocation2 + $0x198] sm:$0xff] %vm27_vm3, %v797_v18  ;;  %v796_v23 = vmax.f32 %v678_v19, 0.0  ;;  %v693_v24 = vadd.f32 %v5635_v21, %v6263_v4 }
 0x130   :  { %v920_v25 = vld [vmem:[#allocation2 + $0x170] ss:$2 sm:$0xff]  ;;  %v984_v26 = vld [vmem:[#allocation2 + $0x171] ss:$2 sm:$0xff]  ;;  %v687_v27 = vpop.f32.mrf.mxu0 }
 0x131   :  { %1149 = vst.msk [vmem:[#allocation4 + $0x98] sm:$0xff] %vm27_vm3, %v1117_v22  ;;  %v1024_v28 = vmax.f32 %v920_v25, %v984_v26  ;;  %860 = vst.msk [vmem:[#allocation2 + $0x190] sm:$0xff] %vm27_vm3, %v796_v23  ;;  %v799_v29 = vmax.f32 %v693_v24, 0.0  ;;  %v688_v30 = vadd.f32 %v6263_v4, %v687_v27 }
 0x132   :  { %v1086_v31 = vld [vmem:[#allocation3 + $0xa8] sm:$0xff]  ;;  %v5638_v32 = vpop.f32.mrf.mxu0 }
 0x133   :  { %v1118_v33 = vmax.f32 %v1085_v20, %v1086_v31  ;;  %1056 = vst.msk [vmem:[#allocation3 + $0xb8] sm:$0xff] %vm27_vm3, %v1024_v28  ;;  %863 = vst.msk [vmem:[#allocation2 + $0x1a8] sm:$0xff] %vm27_vm3, %v799_v29  ;;  %v798_v34 = vmax.f32 %v688_v30, 0.0  ;;  %v703_v35 = vadd.f32 %v5638_v32, %v6263_v4 }
 0x134   :  { %v922_v36 = vld [vmem:[#allocation2 + $0x180] ss:$2 sm:$0xff]  ;;  %v986_v37 = vld [vmem:[#allocation2 + $0x181] ss:$2 sm:$0xff]  ;;  %v697_v38 = vpop.f32.mrf.mxu0 }
 0x135   :  { %1150 = vst.msk [vmem:[#allocation4 + $0xa0] sm:$0xff] %vm27_vm3, %v1118_v33  ;;  %v1025_v39 = vmax.f32 %v922_v36, %v986_v37  ;;  %862 = vst.msk [vmem:[#allocation2 + $0x1a0] sm:$0xff] %vm27_vm3, %v798_v34  ;;  %v801_v40 = vmax.f32 %v703_v35, 0.0  ;;  %v698_v41 = vadd.f32 %v6263_v4, %v697_v38 }
 0x136   :  { %v1087_v42 = vld [vmem:[#allocation3 + $0xb0] sm:$0xff]  ;;  %v5641_v43 = vpop.f32.mrf.mxu0 }
 0x137   :  { %v1119_v44 = vmax.f32 %v1086_v31, %v1087_v42  ;;  %1057 = vst.msk [vmem:[#allocation3 + $0xc0] sm:$0xff] %vm27_vm3, %v1025_v39  ;;  %865 = vst.msk [vmem:[#allocation2 + $0x1b8] sm:$0xff] %vm27_vm3, %v801_v40  ;;  %v800_v45 = vmax.f32 %v698_v41, 0.0  ;;  %v713_v46 = vadd.f32 %v5641_v43, %v6263_v4  ;;  %v1097_v43 = vld [vmem:[#allocation3 + $0x100] sm:$0xff] }
 0x138   :  { %v924_v47 = vld [vmem:[#allocation2 + $0x190] ss:$2 sm:$0xff]  ;;  %v988_v48 = vld [vmem:[#allocation2 + $0x191] ss:$2 sm:$0xff]  ;;  %v707_v49 = vpop.f32.mrf.mxu0 }
 0x139   :  { %1151 = vst.msk [vmem:[#allocation4 + $0xa8] sm:$0xff] %vm27_vm3, %v1119_v44  ;;  %v1026_v50 = vmax.f32 %v924_v47, %v988_v48  ;;  %864 = vst.msk [vmem:[#allocation2 + $0x1b0] sm:$0xff] %vm27_vm3, %v800_v45  ;;  %v803_v51 = vmax.f32 %v713_v46, 0.0  ;;  %v708_v52 = vadd.f32 %v6263_v4, %v707_v49 }
 0x13a   :  { %v1088_v53 = vld [vmem:[#allocation3 + $0xb8] sm:$0xff]  ;;  %v5644_v54 = vpop.f32.mrf.mxu0 }
 0x13b   :  { %v1120_v55 = vmax.f32 %v1087_v42, %v1088_v53  ;;  %1058 = vst.msk [vmem:[#allocation3 + $0xc8] sm:$0xff] %vm27_vm3, %v1026_v50  ;;  %867 = vst.msk [vmem:[#allocation2 + $0x1c8] sm:$0xff] %vm27_vm3, %v803_v51  ;;  %v802_v56 = vmax.f32 %v708_v52, 0.0  ;;  %v723_v57 = vadd.f32 %v5644_v54, %v6263_v4 }
 0x13c   :  { %v926_v58 = vld [vmem:[#allocation2 + $0x1a0] ss:$2 sm:$0xff]  ;;  %v990_v59 = vld [vmem:[#allocation2 + $0x1a1] ss:$2 sm:$0xff]  ;;  %v717_v60 = vpop.f32.mrf.mxu0 }
 0x13d   :  { %1152 = vst.msk [vmem:[#allocation4 + $0xb0] sm:$0xff] %vm27_vm3, %v1120_v55  ;;  %v1027_v61 = vmax.f32 %v926_v58, %v990_v59  ;;  %866 = vst.msk [vmem:[#allocation2 + $0x1c0] sm:$0xff] %vm27_vm3, %v802_v56  ;;  %v805_v62 = vmax.f32 %v723_v57, 0.0  ;;  %v718_v63 = vadd.f32 %v6263_v4, %v717_v60 }
 0x13e   :  { %v1089_v0 = vld [vmem:[#allocation3 + $0xc0] sm:$0xff]  ;;  %v5647_v2 = vpop.f32.mrf.mxu0 }
 0x13f   :  { %v1121_v3 = vmax.f32 %v1088_v53, %v1089_v0  ;;  %1059 = vst.msk [vmem:[#allocation3 + $0xd0] sm:$0xff] %vm27_vm3, %v1027_v61  ;;  %869 = vst.msk [vmem:[#allocation2 + $0x1d8] sm:$0xff] %vm27_vm3, %v805_v62  ;;  %v804_v5 = vmax.f32 %v718_v63, 0.0  ;;  %v733_v6 = vadd.f32 %v5647_v2, %v6263_v4 }
 0x140   :  { %v928_v7 = vld [vmem:[#allocation2 + $0x1b0] ss:$2 sm:$0xff]  ;;  %v992_v8 = vld [vmem:[#allocation2 + $0x1b1] ss:$2 sm:$0xff]  ;;  %v727_v9 = vpop.f32.mrf.mxu0 }
 0x141   :  { %1153 = vst.msk [vmem:[#allocation4 + $0xb8] sm:$0xff] %vm27_vm3, %v1121_v3  ;;  %v1028_v10 = vmax.f32 %v928_v7, %v992_v8  ;;  %868 = vst.msk [vmem:[#allocation2 + $0x1d0] sm:$0xff] %vm27_vm3, %v804_v5  ;;  %v807_v11 = vmax.f32 %v733_v6, 0.0  ;;  %v728_v12 = vadd.f32 %v6263_v4, %v727_v9 }
 0x142   :  { %v1090_v13 = vld [vmem:[#allocation3 + $0xc8] sm:$0xff]  ;;  %v5650_v14 = vpop.f32.mrf.mxu0 }
 0x143   :  { %v1122_v15 = vmax.f32 %v1089_v0, %v1090_v13  ;;  %1060 = vst.msk [vmem:[#allocation3 + $0xd8] sm:$0xff] %vm27_vm3, %v1028_v10  ;;  %871 = vst.msk [vmem:[#allocation2 + $0x1e8] sm:$0xff] %vm27_vm3, %v807_v11  ;;  %v806_v16 = vmax.f32 %v728_v12, 0.0  ;;  %v743_v17 = vadd.f32 %v5650_v14, %v6263_v4 }
 0x144   :  { %v930_v18 = vld [vmem:[#allocation2 + $0x1c0] ss:$2 sm:$0xff]  ;;  %v994_v19 = vld [vmem:[#allocation2 + $0x1c1] ss:$2 sm:$0xff]  ;;  %v737_v20 = vpop.f32.mrf.mxu0 }
 0x145   :  { %1154 = vst.msk [vmem:[#allocation4 + $0xc0] sm:$0xff] %vm27_vm3, %v1122_v15  ;;  %v1029_v21 = vmax.f32 %v930_v18, %v994_v19  ;;  %870 = vst.msk [vmem:[#allocation2 + $0x1e0] sm:$0xff] %vm27_vm3, %v806_v16  ;;  %v809_v22 = vmax.f32 %v743_v17, 0.0  ;;  %v738_v23 = vadd.f32 %v6263_v4, %v737_v20 }
 0x146   :  { %v1091_v24 = vld [vmem:[#allocation3 + $0xd0] sm:$0xff] }
 0x147   :  { %v1123_v25 = vmax.f32 %v1090_v13, %v1091_v24  ;;  %1061 = vst.msk [vmem:[#allocation3 + $0xe0] sm:$0xff] %vm27_vm3, %v1029_v21  ;;  %873 = vst.msk [vmem:[#allocation2 + $0x1f8] sm:$0xff] %vm27_vm3, %v809_v22  ;;  %v808_v26 = vmax.f32 %v738_v23, 0.0 }
 0x148   :  { %v932_v27 = vld [vmem:[#allocation2 + $0x1d0] ss:$2 sm:$0xff]  ;;  %v996_v28 = vld [vmem:[#allocation2 + $0x1d1] ss:$2 sm:$0xff] }
 0x149   :  { %1155 = vst.msk [vmem:[#allocation4 + $0xc8] sm:$0xff] %vm27_vm3, %v1123_v25  ;;  %v1030_v29 = vmax.f32 %v932_v27, %v996_v28  ;;  %872 = vst.msk [vmem:[#allocation2 + $0x1f0] sm:$0xff] %vm27_vm3, %v808_v26 }
 0x14a   :  { %v1092_v30 = vld [vmem:[#allocation3 + $0xd8] sm:$0xff] }
 0x14b   :  { %v1124_v31 = vmax.f32 %v1091_v24, %v1092_v30  ;;  %1062 = vst.msk [vmem:[#allocation3 + $0xe8] sm:$0xff] %vm27_vm3, %v1030_v29 }
 0x14c   :  { %v934_v32 = vld [vmem:[#allocation2 + $0x1e0] ss:$2 sm:$0xff]  ;;  %v998_v4 = vld [vmem:[#allocation2 + $0x1e1] ss:$2 sm:$0xff] }
 0x14d   :  { %1156 = vst.msk [vmem:[#allocation4 + $0xd0] sm:$0xff] %vm27_vm3, %v1124_v31  ;;  %v1031_v33 = vmax.f32 %v934_v32, %v998_v4 }
 0x14e   :  { %v1093_v34 = vld [vmem:[#allocation3 + $0xe0] sm:$0xff] }
 0x14f   :  { %v1125_v35 = vmax.f32 %v1092_v30, %v1093_v34  ;;  %1063 = vst.msk [vmem:[#allocation3 + $0xf0] sm:$0xff] %vm27_vm3, %v1031_v33 }
 0x150   :  { %v936_v36 = vld [vmem:[#allocation2 + $0x1f0] ss:$2 sm:$0xff]  ;;  %v1000_v37 = vld [vmem:[#allocation2 + $0x1f1] ss:$2 sm:$0xff] }
 0x151   :  { %1157 = vst.msk [vmem:[#allocation4 + $0xd8] sm:$0xff] %vm27_vm3, %v1125_v35  ;;  %v1032_v38 = vmax.f32 %v936_v36, %v1000_v37 }
 0x152   :  { %v1094_v39 = vld [vmem:[#allocation3 + $0xe8] sm:$0xff] }
 0x153   :  { %v1126_v40 = vmax.f32 %v1093_v34, %v1094_v39  ;;  %1064 = vst.msk [vmem:[#allocation3 + $0xf8] sm:$0xff] %vm27_vm3, %v1032_v38 }
 0x155   :  { %1158 = vst.msk [vmem:[#allocation4 + $0xe0] sm:$0xff] %vm27_vm3, %v1126_v40 }
 0x156   :  { %v1095_v41 = vld [vmem:[#allocation3 + $0xf0] sm:$0xff] }
 0x157   :  { %v1127_v42 = vmax.f32 %v1094_v39, %v1095_v41 }
 0x159   :  { %1159 = vst.msk [vmem:[#allocation4 + $0xe8] sm:$0xff] %vm27_vm3, %v1127_v42 }
 0x15a   :  { %v1096_v44 = vld [vmem:[#allocation3 + $0xf8] sm:$0xff] }
 0x15b   :  { %v1128_v45 = vmax.f32 %v1095_v41, %v1096_v44  ;;  %v1129_v46 = vmax.f32 %v1096_v44, %v1097_v43 }
 0x15d   :  { %1160 = vst.msk [vmem:[#allocation4 + $0xf0] sm:$0xff] %vm27_vm3, %v1128_v45  ;;  %1161 = vst.msk [vmem:[#allocation4 + $0xf8] sm:$0xff] %vm27_vm3, %v1129_v46 }
 0x15e LB: > { %s5200_s2 = sshll.u32 %s5823_s0, 7  ;;  %s5055_s14 = smul.u32 160, %s5823_s0  ;;  %s5823_s0 = sphi %s5821_s0, %s1167_s0  }
 0x15f   : > { %s1171_s15 = scalar_lea.vmem [#allocation4], %s5200_s2  ;;  %s1167_s0 = sadd.s32 1, %s5823_s0  }
 0x160   : > { %s5056_s16 = scalar_lea.vmem [#allocation5], %s5055_s14  ;;  %p1164_p0 = scmp.ge.s32.totalorder %s1167_s0, 2  }
 0x161   :  { %3183 = vmatprep.subr.mxu1 (%p1164_p0), %v5829_v1  ;;  %s5830_s17 = smov (%p1164_p0), 32   ;;  %v3035_v16 = vld [vmem:[%s8553_s3 + $0x78] sm:$0xff] (%p1164_p0)  ;;  %v3034_v18 = vld [vmem:[%s8553_s3 + $0x70] sm:$0xff] (%p1164_p0)  ;;  %v3033_v24 = vld [vmem:[%s8553_s3 + $0x68] sm:$0xff] (%p1164_p0)  ;;  %s5831_s19 = smov (%p1164_p0), 64   ;;  %vm1497_vm4 = vcmask (%p1164_p0), 523520  }
 0x162   :  { %3184 = vmatpush1.msra.mxu1 (%p1164_p0), %v3035_v16  ;;  %v3032_v30 = vld [vmem:[%s8553_s3 + $0x60] sm:$0xff] (%p1164_p0)  ;;  %v3031_v4 = vld [vmem:[%s8553_s3 + $0x58] sm:$0xff] (%p1164_p0)  ;;  %v3030_v39 = vld [vmem:[%s8553_s3 + $0x50] sm:$0xff] (%p1164_p0)  ;;  %s5832_s26 = smov (%p1164_p0), 96   ;;  %vm1738_vm5 = vcmask (%p1164_p0), 785920   ;;  %vm1979_vm6 = vcmask (%p1164_p0), 1048320  }
 0x163   :  { %3185 = vmatprep.subr.mxu1 (%p1164_p0), %v5829_v1  ;;  %v3029_v42 = vld [vmem:[%s8553_s3 + $0x48] sm:$0xff] (%p1164_p0)  ;;  %v3028_v44 = vld [vmem:[%s8553_s3 + $0x40] sm:$0xff] (%p1164_p0) }
 0x164   : > { %v1172_v47 = vld [vmem:[%s1171_s15] sm:$0xff]  ;;  %v5203_v48 = vld [vmem:[%s1171_s15 + $0x10] sm:$0xff]  ;;  %1166 = sbr.rel (!%p1164_p0) target bundleno = 350 (0x15e), region = 204  ;;  %3186 = vmatpush1.msra.mxu1 (%p1164_p0), %v3034_v18 }
 0x165   : > { %v5206_v49 = vld [vmem:[%s1171_s15 + $0x20] sm:$0xff]  ;;  %5201 = vst.msk [vmem:[%s5056_s16 + $0x28] sm:$0xff] %vm27_vm3, %v1172_v47  ;;  %5204 = vst.msk [vmem:[%s5056_s16 + $0x38] sm:$0xff] %vm27_vm3, %v5203_v48  ;;  %v5209_v50 = vld [vmem:[%s1171_s15 + $0x30] sm:$0xff]  ;;  %3187 = vmatprep.subr.mxu1 (%p1164_p0), %v5829_v1 }
 0x166   : > { %5207 = vst.msk [vmem:[%s5056_s16 + $0x48] sm:$0xff] %vm27_vm3, %v5206_v49  ;;  %v5212_v51 = vld [vmem:[%s1171_s15 + $0x40] sm:$0xff]  ;;  %v5215_v52 = vld [vmem:[%s1171_s15 + $0x50] sm:$0xff]  ;;  %5210 = vst.msk [vmem:[%s5056_s16 + $0x58] sm:$0xff] %vm27_vm3, %v5209_v50  ;;  %3188 = vmatpush1.msra.mxu1 (%p1164_p0), %v3033_v24 }
 0x167   : > { %5213 = vst.msk [vmem:[%s5056_s16 + $0x68] sm:$0xff] %vm27_vm3, %v5212_v51  ;;  %5216 = vst.msk [vmem:[%s5056_s16 + $0x78] sm:$0xff] %vm27_vm3, %v5215_v52  ;;  %v5218_v53 = vld [vmem:[%s1171_s15 + $0x60] sm:$0xff]  ;;  %v5221_v54 = vld [vmem:[%s1171_s15 + $0x70] sm:$0xff]  ;;  %3189 = vmatprep.subr.mxu1 (%p1164_p0), %v5829_v1 }
 0x168   : > { %5219 = vst.msk [vmem:[%s5056_s16 + $0x88] sm:$0xff] %vm27_vm3, %v5218_v53  ;;  %5222 = vst.msk [vmem:[%s5056_s16 + $0x98] sm:$0xff] %vm27_vm3, %v5221_v54  ;;  %3190 = vmatpush1.msra.mxu1 (%p1164_p0), %v3032_v30  ;;  %v3055_v47 = vld [vmem:[%s8553_s3 + $0x118] sm:$0xff] (%p1164_p0)  ;;  %v3054_v49 = vld [vmem:[%s8553_s3 + $0x110] sm:$0xff] (%p1164_p0) }
 0x169   :  { %3191 = vmatprep.subr.mxu1 %v5829_v1  ;;  %v3027_v48 = vld [vmem:[%s8553_s3 + $0x38] sm:$0xff]  ;;  %5651 = vmatprep.subr.mxu0 %v3055_v47  ;;  %v3026_v51 = vld [vmem:[%s8553_s3 + $0x30] sm:$0xff]  ;;  %v3053_v52 = vld [vmem:[%s8553_s3 + $0x108] sm:$0xff] }
 0x16a   :  { %3192 = vmatpush1.msra.mxu1 %v3031_v4  ;;  %5652 = vmatpush3.msra.mxu0 %v3055_v47  ;;  %v3025_v53 = vld [vmem:[%s8553_s3 + $0x28] sm:$0xff]  ;;  %v3052_v54 = vld [vmem:[%s8553_s3 + $0x100] sm:$0xff] }
 0x16b   :  { %3193 = vmatprep.subr.mxu1 %v5829_v1  ;;  %5653 = vmatprep.subr.mxu0 %v3054_v49  ;;  %v3020_v4 = vld [vmem:[%s8553_s3] sm:$0xff]  ;;  %v3049_v47 = vld [vmem:[%s8553_s3 + $0xe8] sm:$0xff] }
 0x16c   :  { %3194 = vmatpush1.msra.mxu1 %v3030_v39  ;;  %5654 = vmatpush3.msra.mxu0 %v3054_v49  ;;  %v3051_v39 = vld [vmem:[%s8553_s3 + $0xf8] sm:$0xff] }
 0x16d   :  { %3195 = vmatprep.subr.mxu1 %v5829_v1  ;;  %5655 = vmatprep.subr.mxu0 %v3053_v52 }
 0x16e   :  { %3196 = vmatpush1.msra.mxu1 %v3029_v42  ;;  %5656 = vmatpush3.msra.mxu0 %v3053_v52  ;;  %v3047_v52 = vld [vmem:[%s8553_s3 + $0xd8] sm:$0xff] }
 0x16f   :  { %v1297_v55 = vld [vmem:[#allocation5 + $0x8] sm:$0xff]  ;;  %v1299_v56 = vld [vmem:[#allocation5 + $0x18] sm:$0xff]  ;;  %v1298_v57 = vld [vmem:[#allocation5 + $0x10] sm:$0xff]  ;;  %3197 = vmatprep.subr.mxu1 %v5829_v1  ;;  %5657 = vmatprep.subr.mxu0 %v3052_v54 }
 0x170   :  { %1377 = vrot.lane.b32.xlu0 %v1297_v55, %s5830_s17  ;;  %1381 = vrot.lane.b32.xlu1 %v1299_v56, %s5830_s17  ;;  %v1300_v58 = vld [vmem:[#allocation5 + $0x20] sm:$0xff]  ;;  %v6468_v59 = vld [vmem:[#allocation5 + $0x28] sm:$0xff]  ;;  %v6470_v60 = vld [vmem:[#allocation5 + $0x30] sm:$0xff]  ;;  %2060 = vst.msk [vmem:[#allocation6 + $0x8] sm:$0xff] %vm27_vm3, %v1299_v56 }
 0x171   :  { %v6473_v61 = vld [vmem:[#allocation5 + $0x38] sm:$0xff]  ;;  %v6475_v62 = vld [vmem:[#allocation5 + $0x40] sm:$0xff]  ;;  %v6477_v63 = vld [vmem:[#allocation5 + $0x48] sm:$0xff]  ;;  %2061 = vst.msk [vmem:[#allocation6 + $0x20] sm:$0xff] %vm27_vm3, %v1300_v58  ;;  %3198 = vmatpush1.msra.mxu1 %v3028_v44  ;;  %5658 = vmatpush3.msra.mxu0 %v3052_v54 }
 0x172   :  { %2062 = vst.msk [vmem:[#allocation6 + $0x38] sm:$0xff] %vm27_vm3, %v6468_v59  ;;  %2063 = vst.msk [vmem:[#allocation6 + $0x50] sm:$0xff] %vm27_vm3, %v6470_v60  ;;  %v6492_v0 = vld [vmem:[#allocation5 + $0x27] sm:$0xff]  ;;  %v6494_v2 = vld [vmem:[#allocation5 + $0x17] sm:$0xff]  ;;  %3199 = vmatprep.subr.mxu1 %v5829_v1 }
 0x173   :  { %2064 = vst.msk [vmem:[#allocation6 + $0x68] sm:$0xff] %vm27_vm3, %v6473_v61  ;;  %2065 = vst.msk [vmem:[#allocation6 + $0x80] sm:$0xff] %vm27_vm3, %v6475_v62  ;;  %v6496_v3 = vld [vmem:[#allocation5 + $0x2f] sm:$0xff]  ;;  %v6500_v5 = vld [vmem:[#allocation5 + $0x1f] sm:$0xff]  ;;  %3200 = vmatpush1.msra.mxu1 %v3027_v48 }
 0x174   :  { %2066 = vst.msk [vmem:[#allocation6 + $0x98] sm:$0xff] %vm27_vm3, %v6477_v63  ;;  %1379 = vrot.lane.b32.xlu0 %v1298_v57, %s5830_s17  ;;  %1383 = vrot.lane.b32.xlu1 %v1300_v58, %s5830_s17  ;;  %1261 = vst.msk [vmem:[#allocation6 + $0x60] sm:$0xff] %vm27_vm3, %v6492_v0  ;;  %v6502_v6 = vld [vmem:[#allocation5 + $0x29] sm:$0xff]  ;;  %v6512_v7 = vld [vmem:[#allocation5 + $0x37] sm:$0xff] }
 0x175   :  { %1259 = vst.msk [vmem:[#allocation6 + $0x30] sm:$0xff] %vm27_vm3, %v6494_v2  ;;  %1262 = vst.msk [vmem:[#allocation6 + $0x78] sm:$0xff] %vm27_vm3, %v6496_v3  ;;  %v6514_v8 = vld [vmem:[#allocation5 + $0x31] sm:$0xff]  ;;  %v6516_v9 = vld [vmem:[#allocation5 + $0x3f] sm:$0xff]  ;;  %3201 = vmatprep.subr.mxu1 %v5829_v1 }
 0x176   :  { %1260 = vst.msk [vmem:[#allocation6 + $0x48] sm:$0xff] %vm27_vm3, %v6500_v5  ;;  %2860 = vst.msk [vmem:[#allocation6 + $0x10] sm:$0xff] %vm27_vm3, %v6502_v6  ;;  %v6522_v10 = vld [vmem:[#allocation5 + $0x39] sm:$0xff]  ;;  %v6524_v11 = vld [vmem:[#allocation5 + $0x47] sm:$0xff]  ;;  %3202 = vmatpush1.msra.mxu1 %v3026_v51 }
 0x177   :  { %v6526_v12 = vld [vmem:[#allocation5 + $0x41] sm:$0xff]  ;;  %1263 = vst.msk [vmem:[#allocation6 + $0x90] sm:$0xff] %vm27_vm3, %v6512_v7  ;;  %1264 = vst.msk [vmem:[#allocation6 + $0xa8] sm:$0xff] %vm27_vm3, %v6516_v9  ;;  %v6534_v13 = vld [vmem:[#allocation5 + $0x4f] sm:$0xff]  ;;  %3203 = vmatprep.subr.mxu1 %v5829_v1 }
 0x178   :  { %1385 = vrot.lane.b32.xlu0 %v6468_v59, %s5830_s17  ;;  %1387 = vrot.lane.b32.xlu1 %v6470_v60, %s5830_s17  ;;  %2861 = vst.msk [vmem:[#allocation6 + $0x28] sm:$0xff] %vm27_vm3, %v6514_v8  ;;  %v6536_v14 = vld [vmem:[#allocation5 + $0x49] sm:$0xff]  ;;  %v6538_v15 = vld [vmem:[#allocation5 + $0x57] sm:$0xff]  ;;  %1265 = vst.msk [vmem:[#allocation6 + $0xc0] sm:$0xff] %vm27_vm3, %v6524_v11 }
 0x179   :  { %2862 = vst.msk [vmem:[#allocation6 + $0x40] sm:$0xff] %vm27_vm3, %v6522_v10  ;;  %2863 = vst.msk [vmem:[#allocation6 + $0x58] sm:$0xff] %vm27_vm3, %v6526_v12  ;;  %v6549_v17 = vld [vmem:[#allocation5 + $0x51] sm:$0xff]  ;;  %v6564_v19 = vld [vmem:[#allocation5 + $0x5f] sm:$0xff]  ;;  %3204 = vmatpush1.msra.mxu1 %v3025_v53 }
 0x17a   :  { %1266 = vst.msk [vmem:[#allocation6 + $0xd8] sm:$0xff] %vm27_vm3, %v6534_v13  ;;  %1267 = vst.msk [vmem:[#allocation6 + $0xf0] sm:$0xff] %vm27_vm3, %v6538_v15  ;;  %v6568_v20 = vld [vmem:[#allocation5 + $0x50] sm:$0xff]  ;;  %v1217_v21 = vld [vmem:[#allocation5 + $0x7] sm:$0xff]  ;;  %3205 = vmatprep.subr.mxu1 %v5829_v1 }
 0x17b   :  { %2864 = vst.msk [vmem:[#allocation6 + $0x70] sm:$0xff] %vm27_vm3, %v6536_v14  ;;  %2865 = vst.msk [vmem:[#allocation6 + $0x88] sm:$0xff] %vm27_vm3, %v6549_v17  ;;  %v6574_v22 = vld [vmem:[#allocation5 + $0x59] sm:$0xff]  ;;  %v6576_v23 = vld [vmem:[#allocation5 + $0x67] sm:$0xff] }
 0x17c   :  { %1389 = vrot.lane.b32.xlu0 %v6473_v61, %s5830_s17  ;;  %1391 = vrot.lane.b32.xlu1 %v6475_v62, %s5830_s17  ;;  %1268 = vst.msk [vmem:[#allocation6 + $0x108] sm:$0xff] %vm27_vm3, %v6564_v19  ;;  %1257 = vst.msk [vmem:[#allocation6] sm:$0xff] %vm27_vm3, %v1217_v21  ;;  %v1218_v25 = vld [vmem:[#allocation5 + $0xf] sm:$0xff]  ;;  %v6590_v26 = vld [vmem:[#allocation5 + $0x61] sm:$0xff] }
 0x17d   :  { %1269 = vst.msk [vmem:[#allocation6 + $0x120] sm:$0xff] %vm27_vm3, %v6576_v23  ;;  %2866 = vst.msk [vmem:[#allocation6 + $0xa0] sm:$0xff] %vm27_vm3, %v6574_v22  ;;  %v6592_v27 = vld [vmem:[#allocation5 + $0x58] sm:$0xff]  ;;  %v6594_v28 = vld [vmem:[#allocation5 + $0x60] sm:$0xff] }
 0x17e   :  { %1258 = vst.msk [vmem:[#allocation6 + $0x18] sm:$0xff] %vm27_vm3, %v1218_v25  ;;  %v6597_v29 = vld [vmem:[#allocation5 + $0x6f] sm:$0xff]  ;;  %2867 = vst.msk [vmem:[#allocation6 + $0xb8] sm:$0xff] %vm27_vm3, %v6590_v26  ;;  %v6609_v32 = vld [vmem:[#allocation5 + $0x77] sm:$0xff] }
 0x17f   :  { %1270 = vst.msk [vmem:[#allocation6 + $0x138] sm:$0xff] %vm27_vm3, %v6597_v29  ;;  %v6607_v31 = vld [vmem:[#allocation5 + $0x69] sm:$0xff]  ;;  %1271 = vst.msk [vmem:[#allocation6 + $0x150] sm:$0xff] %vm27_vm3, %v6609_v32  ;;  %v6620_v33 = vld [vmem:[#allocation5 + $0x7f] sm:$0xff] }
 0x180   :  { %1393 = vrot.lane.b32.xlu0 %v6477_v63, %s5830_s17  ;;  %1395 = vrot.lane.b32.xlu1 %v6568_v20, %s5830_s17  ;;  %2868 = vst.msk [vmem:[#allocation6 + $0xd0] sm:$0xff] %vm27_vm3, %v6607_v31  ;;  %v6624_v34 = vld [vmem:[#allocation5 + $0x68] sm:$0xff]  ;;  %v6626_v35 = vld [vmem:[#allocation5 + $0x70] sm:$0xff]  ;;  %1272 = vst.msk [vmem:[#allocation6 + $0x168] sm:$0xff] %vm27_vm3, %v6620_v33 }
 0x181   :  { %v6630_v36 = vld [vmem:[#allocation5 + $0x71] sm:$0xff]  ;;  %v6633_v37 = vld [vmem:[#allocation5 + $0x87] sm:$0xff]  ;;  %v6659_v43 = vld [vmem:[#allocation5 + $0x79] sm:$0xff] }
 0x182   :  { %v6635_v38 = vld [vmem:[#allocation5 + $0x8f] sm:$0xff]  ;;  %2869 = vst.msk [vmem:[#allocation6 + $0xe8] sm:$0xff] %vm27_vm3, %v6630_v36  ;;  %1273 = vst.msk [vmem:[#allocation6 + $0x180] sm:$0xff] %vm27_vm3, %v6633_v37  ;;  %v6650_v40 = vld [vmem:[#allocation5 + $0x78] sm:$0xff] }
 0x183   :  { %1274 = vst.msk [vmem:[#allocation6 + $0x198] sm:$0xff] %vm27_vm3, %v6635_v38  ;;  %v6652_v41 = vld [vmem:[#allocation5 + $0x80] sm:$0xff]  ;;  %2870 = vst.msk [vmem:[#allocation6 + $0x100] sm:$0xff] %vm27_vm3, %v6659_v43  ;;  %v6670_v45 = vld [vmem:[#allocation5 + $0x88] sm:$0xff] }
 0x184   :  { %1397 = vrot.lane.b32.xlu0 %v6592_v27, %s5830_s17  ;;  %1399 = vrot.lane.b32.xlu1 %v6594_v28, %s5830_s17  ;;  %v6672_v46 = vld [vmem:[#allocation5 + $0x90] sm:$0xff]  ;;  %v6688_v50 = vld [vmem:[#allocation5 + $0x19] sm:$0xff]  ;;  %v6708_v55 = vld [vmem:[#allocation5 + $0x81] sm:$0xff] }
 0x185   :  { %v1538_v56 = vld [vmem:[#allocation5 + $0x9] sm:$0xff]  ;;  %2871 = vst.msk [vmem:[#allocation6 + $0x118] sm:$0xff] %vm27_vm3, %v6708_v55  ;;  %v3024_v57 = vld [vmem:[%s8553_s3 + $0x20] sm:$0xff]  ;;  %v2902_v58 = vld [vmem:[#allocation6 + $0x10] sm:$0xff] }
 0x186   :  { %v2905_v16 = vld [vmem:[#allocation6 + $0x28] sm:$0xff]  ;;  %v6719_v18 = vld [vmem:[#allocation5 + $0x21] sm:$0xff]  ;;  %3206 = vmatpush1.msra.mxu1 %v3024_v57  ;;  %v3023_v21 = vld [vmem:[%s8553_s3 + $0x18] sm:$0xff]  ;;  %5659 = vmatprep.mubr.msk.f32.mxu0 %vm27_vm3, %v2902_v58 }
 0x187   :  { %3207 = vmatprep.subr.mxu1 %v5829_v1  ;;  %5660 = vmatmul.mubr.msk.f32.vlgmr.msra.gmra.mxu0 %vm27_vm3, %v2905_v16  ;;  %v1539_v24 = vld [vmem:[#allocation5 + $0x11] sm:$0xff]  ;;  %v3021_v25 = vld [vmem:[%s8553_s3 + $0x8] sm:$0xff]  ;;  %v6739_v30 = vld [vmem:[#allocation5 + $0x89] sm:$0xff] }
 0x188   :  { %1401 = vrot.lane.b32.xlu0 %v6624_v34, %s5830_s17  ;;  %1403 = vrot.lane.b32.xlu1 %v6626_v35, %s5830_s17  ;;  %2872 = vst.msk [vmem:[#allocation6 + $0x130] sm:$0xff] %vm27_vm3, %v6739_v30  ;;  %v6762_v42 = vld [vmem:[#allocation5 + $0x98] sm:$0xff]  ;;  %v2908_v44 = vld [vmem:[#allocation6 + $0x40] sm:$0xff]  ;;  %v2911_v48 = vld [vmem:[#allocation6 + $0x58] sm:$0xff] }
 0x189   :  { %3208 = vmatpush1.msra.mxu1 %v3023_v21  ;;  %2076 = vst.msk [vmem:[#allocation6 + $0x188] sm:$0xff] %vm27_vm3, %v6762_v42  ;;  %5662 = vmatprep.mubr.msk.f32.mxu0 %vm27_vm3, %v2908_v44  ;;  %v6785_v49 = vld [vmem:[#allocation5 + $0x9f] sm:$0xff]  ;;  %v6822_v54 = vld [vmem:[#allocation5 + $0xa7] sm:$0xff]  ;;  %v3043_v58 = vld [vmem:[%s8553_s3 + $0xb8] sm:$0xff] }
 0x18a   :  { %3209 = vmatprep.subr.mxu1 %v5829_v1  ;;  %v3048_v51 = vld [vmem:[%s8553_s3 + $0xe0] sm:$0xff]  ;;  %1276 = vst.msk [vmem:[#allocation6 + $0x1c8] sm:$0xff] %vm27_vm3, %v6785_v49  ;;  %v6800_v53 = vld [vmem:[#allocation5 + $0xa0] sm:$0xff]  ;;  %1277 = vst.msk [vmem:[#allocation6 + $0x1e0] sm:$0xff] %vm27_vm3, %v6822_v54 }
 0x18b   :  { %5663 = vmatmul.mubr.msk.f32.gmra.mxu0 %vm27_vm3, %v2911_v48  ;;  %2077 = vst.msk [vmem:[#allocation6 + $0x1a0] sm:$0xff] %vm27_vm3, %v6800_v53  ;;  %v6836_v57 = vld [vmem:[#allocation5 + $0xa8] sm:$0xff]  ;;  %v2914_v16 = vld [vmem:[#allocation6 + $0x70] sm:$0xff]  ;;  %v6916_v44 = vld [vmem:[#allocation5 + $0xb8] sm:$0xff] }
 0x18c   :  { %1405 = vrot.lane.b32.xlu0 %v6650_v40, %s5830_s17  ;;  %1407 = vrot.lane.b32.xlu1 %v6652_v41, %s5830_s17  ;;  %2078 = vst.msk [vmem:[#allocation6 + $0x1b8] sm:$0xff] %vm27_vm3, %v6836_v57  ;;  %v3041_v21 = vld [vmem:[%s8553_s3 + $0xa8] sm:$0xff]  ;;  %2080 = vst.msk [vmem:[#allocation6 + $0x1e8] sm:$0xff] %vm27_vm3, %v6916_v44 }
 0x18d   :  { %5665 = vmatprep.mubr.msk.f32.mxu0 %vm27_vm3, %v2914_v16  ;;  %v6939_v48 = vld [vmem:[#allocation5 + $0xc0] sm:$0xff] }
 0x18e   :  { %2081 = vst.msk [vmem:[#allocation6 + $0x200] sm:$0xff] %vm27_vm3, %v6939_v48 }
 0x190   :  { %1409 = vrot.lane.b32.xlu0 %v6670_v45, %s5830_s17  ;;  %1411 = vrot.lane.b32.xlu1 %v6672_v46, %s5830_s17 }
 0x194   :  { %2180 = vrot.lane.b32.xlu0 %v6688_v50, %s5830_s17  ;;  %2420 = vrot.lane.b32.xlu1 %v6492_v0, %s5831_s19 }
 0x198   :  { %1618 = vrot.lane.b32.xlu0 %v1538_v56, %s5831_s19  ;;  %2660 = vrot.lane.b32.xlu1 %v6468_v59, %s5832_s26  ;;  %v3022_v59 = vld [vmem:[%s8553_s3 + $0x10] sm:$0xff]  ;;  %v3044_v56 = vld [vmem:[%s8553_s3 + $0xc0] sm:$0xff] }
 0x199   :  { %3210 = vmatpush1.msra.mxu1 %v3022_v59  ;;  %v6862_v59 = vld [vmem:[#allocation5 + $0xaf] sm:$0xff] }
 0x19a   :  { %3211 = vmatprep.subr.mxu1 %v5829_v1  ;;  %1278 = vst.msk [vmem:[#allocation6 + $0x1f8] sm:$0xff] %vm27_vm3, %v6862_v59 }
 0x19b   :  { %3212 = vmatpush1.msra.mxu1 %v3021_v25  ;;  %v6875_v25 = vld [vmem:[#allocation5 + $0xb0] sm:$0xff] }
 0x19c   :  { %1859 = vrot.lane.b32.xlu0 %v6494_v2, %s5832_s26  ;;  %2182 = vrot.lane.b32.xlu1 %v6719_v18, %s5830_s17  ;;  %v6744_v2 = vld [vmem:[#allocation5 + $0x97] sm:$0xff]  ;;  %2079 = vst.msk [vmem:[#allocation6 + $0x1d0] sm:$0xff] %vm27_vm3, %v6875_v25 }
 0x19d   :  { %1275 = vst.msk [vmem:[#allocation6 + $0x1b0] sm:$0xff] %vm27_vm3, %v6744_v2  ;;  %3213 = vmatprep.subr.mxu1 %v5829_v1 }
 0x19e   :  { %3214 = vmatpush1.msra.mxu1 %v3020_v4  ;;  %v6890_v4 = vld [vmem:[#allocation5 + $0xa9] sm:$0xff] }
 0x19f   :  { %3215 = vmatprep.subr.mxu1 %v5829_v1  ;;  %2876 = vst.msk [vmem:[#allocation6 + $0x190] sm:$0xff] %vm27_vm3, %v6890_v4 }
 0x1a0   :  { %2422 = vrot.lane.b32.xlu0 %v6496_v3, %s5831_s19  ;;  %1620 = vrot.lane.b32.xlu1 %v1539_v24, %s5831_s19  ;;  %v3040_v24 = vld [vmem:[%s8553_s3 + $0xa0] sm:$0xff] }
 0x1a1   :  { %3216 = vmatpush2.msra.mxu1 %v3051_v39  ;;  %v2027_v39 = vld [vmem:[#allocation5 + $0x50] sm:$0xff] }
 0x1a2   :  { %3217 = vmatprep.subr.mxu1 %v5829_v1  ;;  %2067 = vst.msk [vmem:[#allocation6 + $0xb0] sm:$0xff] %vm27_vm3, %v2027_v39  ;;  %v2032_v39 = vld [vmem:[#allocation5 + $0x78] sm:$0xff] }
 0x1a3   :  { %2072 = vst.msk [vmem:[#allocation6 + $0x128] sm:$0xff] %vm27_vm3, %v2032_v39  ;;  %v7108_v39 = vld [vmem:[#allocation5 + $0xf0] sm:$0xff] }
 0x1a4   :  { %2662 = vrot.lane.b32.xlu0 %v6470_v60, %s5832_s26  ;;  %1861 = vrot.lane.b32.xlu1 %v6500_v5, %s5832_s26  ;;  %v3050_v60 = vld [vmem:[%s8553_s3 + $0xf0] sm:$0xff]  ;;  %v6774_v5 = vld [vmem:[#allocation5 + $0x91] sm:$0xff]  ;;  %2087 = vst.msk [vmem:[#allocation6 + $0x290] sm:$0xff] %vm27_vm3, %v7108_v39 }
 0x1a5   :  { %2873 = vst.msk [vmem:[#allocation6 + $0x148] sm:$0xff] %vm27_vm3, %v6774_v5  ;;  %3218 = vmatpush2.msra.mxu1 %v3050_v60  ;;  %v6904_v60 = vld [vmem:[#allocation5 + $0xb7] sm:$0xff] }
 0x1a6   :  { %3219 = vmatprep.subr.mxu1 %v5829_v1  ;;  %1279 = vst.msk [vmem:[#allocation6 + $0x210] sm:$0xff] %vm27_vm3, %v6904_v60 }
 0x1a7   :  { %3220 = vmatpush2.msra.mxu1 %v3049_v47  ;;  %v6926_v47 = vld [vmem:[#allocation5 + $0xb1] sm:$0xff] }
 0x1a8   :  { %2184 = vrot.lane.b32.xlu0 %v6502_v6, %s5830_s17  ;;  %2424 = vrot.lane.b32.xlu1 %v6512_v7, %s5831_s19  ;;  %2877 = vst.msk [vmem:[#allocation6 + $0x1a8] sm:$0xff] %vm27_vm3, %v6926_v47 }
 0x1a9   :  { %3221 = vmatprep.subr.mxu1 %v5829_v1 }
 0x1aa   :  { %3222 = vmatpush2.msra.mxu1 %v3048_v51 }
 0x1ab   :  { %3223 = vmatprep.subr.mxu1 %v5829_v1 }
 0x1ac   :  { %1622 = vrot.lane.b32.xlu0 %v6688_v50, %s5831_s19  ;;  %2664 = vrot.lane.b32.xlu1 %v6473_v61, %s5832_s26  ;;  %v3046_v61 = vld [vmem:[%s8553_s3 + $0xd0] sm:$0xff]  ;;  %v6813_v50 = vld [vmem:[#allocation5 + $0x99] sm:$0xff] }
 0x1ad   :  { %3224 = vmatpush2.msra.mxu1 %v3047_v52  ;;  %2874 = vst.msk [vmem:[#allocation6 + $0x160] sm:$0xff] %vm27_vm3, %v6813_v50 }
 0x1ae   :  { %3225 = vmatprep.subr.mxu1 %v5829_v1 }
 0x1af   :  { %3226 = vmatpush2.msra.mxu1 %v3046_v61  ;;  %v6966_v61 = vld [vmem:[#allocation5 + $0xc8] sm:$0xff] }
 0x1b0   :  { %1863 = vrot.lane.b32.xlu0 %v6492_v0, %s5832_s26  ;;  %2186 = vrot.lane.b32.xlu1 %v6514_v8, %s5830_s17  ;;  %v3045_v0 = vld [vmem:[%s8553_s3 + $0xc8] sm:$0xff]  ;;  %2082 = vst.msk [vmem:[#allocation6 + $0x218] sm:$0xff] %vm27_vm3, %v6966_v61 }
 0x1b1   :  { %3227 = vmatprep.subr.mxu1 %v5829_v1 }
 0x1b2   :  { %3228 = vmatpush2.msra.mxu1 %v3045_v0  ;;  %v2030_v0 = vld [vmem:[#allocation5 + $0x68] sm:$0xff] }
 0x1b3   :  { %3229 = vmatprep.subr.mxu1 %v5829_v1  ;;  %2070 = vst.msk [vmem:[#allocation6 + $0xf8] sm:$0xff] %vm27_vm3, %v2030_v0  ;;  %v2034_v0 = vld [vmem:[#allocation5 + $0x88] sm:$0xff] }
 0x1b4   :  { %2426 = vrot.lane.b32.xlu0 %v6516_v9, %s5831_s19  ;;  %1624 = vrot.lane.b32.xlu1 %v6719_v18, %s5831_s19  ;;  %v2917_v18 = vld [vmem:[#allocation6 + $0x88] sm:$0xff]  ;;  %2074 = vst.msk [vmem:[#allocation6 + $0x158] sm:$0xff] %vm27_vm3, %v2034_v0 }
 0x1b5   :  { %3230 = vmatpush2.msra.mxu1 %v3044_v56  ;;  %5666 = vmatmul.mubr.msk.f32.gmra.mxu0 %vm27_vm3, %v2917_v18  ;;  %v2031_v18 = vld [vmem:[#allocation5 + $0x70] sm:$0xff] }
 0x1b6   :  { %3231 = vmatprep.subr.mxu1 %v5829_v1  ;;  %2071 = vst.msk [vmem:[#allocation6 + $0x110] sm:$0xff] %vm27_vm3, %v2031_v18  ;;  %v2035_v18 = vld [vmem:[#allocation5 + $0x90] sm:$0xff] }
 0x1b7   :  { %3232 = vmatpush2.msra.mxu1 %v3043_v58  ;;  %2075 = vst.msk [vmem:[#allocation6 + $0x170] sm:$0xff] %vm27_vm3, %v2035_v18 }
 0x1b8   :  { %2666 = vrot.lane.b32.xlu0 %v6475_v62, %s5832_s26  ;;  %1865 = vrot.lane.b32.xlu1 %v6496_v3, %s5832_s26  ;;  %v3042_v62 = vld [vmem:[%s8553_s3 + $0xb0] sm:$0xff] }
 0x1b9   :  { %v6852_v3 = vld [vmem:[#allocation5 + $0xa1] sm:$0xff]  ;;  %3233 = vmatprep.subr.mxu1 %v5829_v1 }
 0x1ba   :  { %2875 = vst.msk [vmem:[#allocation6 + $0x178] sm:$0xff] %vm27_vm3, %v6852_v3  ;;  %3234 = vmatpush2.msra.mxu1 %v3042_v62  ;;  %v6977_v62 = vld [vmem:[#allocation5 + $0xc1] sm:$0xff] }
 0x1bb   :  { %3235 = vmatprep.subr.mxu1 %v5829_v1  ;;  %2879 = vst.msk [vmem:[#allocation6 + $0x1d8] sm:$0xff] %vm27_vm3, %v6977_v62 }
 0x1bc   :  { %2188 = vrot.lane.b32.xlu0 %v6522_v10, %s5830_s17  ;;  %2428 = vrot.lane.b32.xlu1 %v6524_v11, %s5831_s19 }
 0x1bd   :  { %3236 = vmatpush2.msra.mxu1 %v3041_v21  ;;  %v6994_v21 = vld [vmem:[#allocation5 + $0xd0] sm:$0xff] }
 0x1be   :  { %3237 = vmatprep.subr.mxu1 %v5829_v1  ;;  %2083 = vst.msk [vmem:[#allocation6 + $0x230] sm:$0xff] %vm27_vm3, %v6994_v21 }
 0x1bf   :  { %3238 = vmatpush2.msra.mxu1 %v3040_v24 }
 0x1c0   :  { %1626 = vrot.lane.b32.xlu0 %v6502_v6, %s5831_s19  ;;  %2668 = vrot.lane.b32.xlu1 %v6477_v63, %s5832_s26  ;;  %v3039_v63 = vld [vmem:[%s8553_s3 + $0x98] sm:$0xff]  ;;  %v3038_v6 = vld [vmem:[%s8553_s3 + $0x90] sm:$0xff] }
 0x1c1   :  { %3239 = vmatprep.subr.mxu1 %v5829_v1 }
 0x1c2   :  { %3240 = vmatpush2.msra.mxu1 %v3039_v63  ;;  %v7004_v63 = vld [vmem:[#allocation5 + $0xc9] sm:$0xff] }
 0x1c3   :  { %3241 = vmatprep.subr.mxu1 %v5829_v1  ;;  %2880 = vst.msk [vmem:[#allocation6 + $0x1f0] sm:$0xff] %vm27_vm3, %v7004_v63 }
 0x1c4   :  { %1867 = vrot.lane.b32.xlu0 %v6512_v7, %s5832_s26  ;;  %2190 = vrot.lane.b32.xlu1 %v6526_v12, %s5830_s17  ;;  %v3037_v7 = vld [vmem:[%s8553_s3 + $0x88] sm:$0xff] }
 0x1c5   :  { %3242 = vmatpush2.msra.mxu1 %v3038_v6 }
 0x1c6   :  { %3243 = vmatprep.subr.mxu1 %v5829_v1 }
 0x1c7   :  { %3244 = vmatpush2.msra.mxu1 %v3037_v7  ;;  %v2935_v7 = vld [vmem:[#allocation6 + $0x118] sm:$0xff] }
 0x1c8   :  { %2430 = vrot.lane.b32.xlu0 %v6534_v13, %s5831_s19  ;;  %1628 = vrot.lane.b32.xlu1 %v6514_v8, %s5831_s19  ;;  %v3036_v8 = vld [vmem:[%s8553_s3 + $0x80] sm:$0xff] }
 0x1c9   :  { %3245 = vmatprep.subr.mxu1 %v5829_v1  ;;  %v2028_v1 = vld [vmem:[#allocation5 + $0x58] sm:$0xff] }
 0x1ca   :  { %3246 = vmatpush2.msra.mxu1 %v3036_v8  ;;  %2068 = vst.msk [vmem:[#allocation6 + $0xc8] sm:$0xff] %vm27_vm3, %v2028_v1  ;;  %v7033_v1 = vld [vmem:[#allocation5 + $0xd1] sm:$0xff] }
 0x1cb   :  { %2881 = vst.msk [vmem:[#allocation6 + $0x208] sm:$0xff] %vm27_vm3, %v7033_v1 }
 0x1cc   :  { %2670 = vrot.lane.b32.xlu0 %v6568_v20, %s5832_s26  ;;  %1869 = vrot.lane.b32.xlu1 %v6516_v9, %s5832_s26  ;;  %v2920_v9 = vld [vmem:[#allocation6 + $0xa0] sm:$0xff]  ;;  %v2923_v20 = vld [vmem:[#allocation6 + $0xb8] sm:$0xff] }
 0x1cd   :  { %5668 = vmatprep.mubr.msk.f32.mxu0 %vm27_vm3, %v2920_v9 }
 0x1ce   :  { %5669 = vmatmul.mubr.msk.f32.gmra.mxu0 %vm27_vm3, %v2923_v20  ;;  %v7023_v20 = vld [vmem:[#allocation5 + $0xd8] sm:$0xff] }
 0x1cf   :  { %2084 = vst.msk [vmem:[#allocation6 + $0x248] sm:$0xff] %vm27_vm3, %v7023_v20 }
 0x1d0   :  { %2192 = vrot.lane.b32.xlu0 %v6536_v14, %s5830_s17  ;;  %2432 = vrot.lane.b32.xlu1 %v6538_v15, %s5831_s19 }
 0x1d4   :  { %1630 = vrot.lane.b32.xlu0 %v6522_v10, %s5831_s19  ;;  %2672 = vrot.lane.b32.xlu1 %v6592_v27, %s5832_s26  ;;  %v2029_v10 = vld [vmem:[#allocation5 + $0x60] sm:$0xff] }
 0x1d5   :  { %2069 = vst.msk [vmem:[#allocation6 + $0xe0] sm:$0xff] %vm27_vm3, %v2029_v10  ;;  %v6948_v27 = vld [vmem:[#allocation5 + $0xb9] sm:$0xff] }
 0x1d6   :  { %2878 = vst.msk [vmem:[#allocation6 + $0x1c0] sm:$0xff] %vm27_vm3, %v6948_v27 }
 0x1d8   :  { %1871 = vrot.lane.b32.xlu0 %v6524_v11, %s5832_s26  ;;  %2194 = vrot.lane.b32.xlu1 %v6549_v17, %s5830_s17 }
 0x1dc   :  { %2434 = vrot.lane.b32.xlu0 %v6564_v19, %s5831_s19  ;;  %1632 = vrot.lane.b32.xlu1 %v6526_v12, %s5831_s19 }
 0x1e0   :  { %2674 = vrot.lane.b32.xlu0 %v6594_v28, %s5832_s26  ;;  %1873 = vrot.lane.b32.xlu1 %v6534_v13, %s5832_s26  ;;  %v2926_v28 = vld [vmem:[#allocation6 + $0xd0] sm:$0xff]  ;;  %v2929_v13 = vld [vmem:[#allocation6 + $0xe8] sm:$0xff] }
 0x1e1   :  { %5671 = vmatprep.mubr.msk.f32.mxu0 %vm27_vm3, %v2926_v28  ;;  %v7050_v28 = vld [vmem:[#allocation5 + $0xe0] sm:$0xff] }
 0x1e2   :  { %v1378_v11 = vpop.permute.xlu0 %1377  ;;  %v1382_v12 = vpop.permute.xlu1 %1381  ;;  %5672 = vmatmul.mubr.msk.f32.gmra.mxu0 %vm27_vm3, %v2929_v13  ;;  %2085 = vst.msk [vmem:[#allocation6 + $0x260] sm:$0xff] %vm27_vm3, %v7050_v28  ;;  %v7062_v13 = vld [vmem:[#allocation5 + $0xd9] sm:$0xff] }
 0x1e3   :  { %1498 = vst.msk [vmem:[#allocation6] sm:$0xff] %vm1497_vm4, %v1378_v11  ;;  %1500 = vst.msk [vmem:[#allocation6 + $0x30] sm:$0xff] %vm1497_vm4, %v1382_v12  ;;  %v2033_v11 = vld [vmem:[#allocation5 + $0x80] sm:$0xff] }
 0x1e4   :  { %2196 = vrot.lane.b32.xlu0 %v6574_v22, %s5830_s17  ;;  %2436 = vrot.lane.b32.xlu1 %v6576_v23, %s5831_s19  ;;  %2073 = vst.msk [vmem:[#allocation6 + $0x140] sm:$0xff] %vm27_vm3, %v2033_v11  ;;  %2882 = vst.msk [vmem:[#allocation6 + $0x220] sm:$0xff] %vm27_vm3, %v7062_v13 }
 0x1e6   :  { %v1380_v51 = vpop.permute.xlu0 %1379  ;;  %v1384_v52 = vpop.permute.xlu1 %1383 }
 0x1e7   :  { %1499 = vst.msk [vmem:[#allocation6 + $0x18] sm:$0xff] %vm1497_vm4, %v1380_v51  ;;  %1501 = vst.msk [vmem:[#allocation6 + $0x48] sm:$0xff] %vm1497_vm4, %v1384_v52  ;;  %v2941_v52 = vld [vmem:[#allocation6 + $0x148] sm:$0xff] }
 0x1e8   :  { %1634 = vrot.lane.b32.xlu0 %v6536_v14, %s5831_s19  ;;  %2676 = vrot.lane.b32.xlu1 %v6624_v34, %s5832_s26 }
 0x1ea   :  { %v1386_v56 = vpop.permute.xlu0 %1385  ;;  %v1388_v58 = vpop.permute.xlu1 %1387 }
 0x1eb   :  { %1502 = vst.msk [vmem:[#allocation6 + $0x60] sm:$0xff] %vm1497_vm4, %v1386_v56  ;;  %1503 = vst.msk [vmem:[#allocation6 + $0x78] sm:$0xff] %vm1497_vm4, %v1388_v58 }
 0x1ec   :  { %1875 = vrot.lane.b32.xlu0 %v6538_v15, %s5832_s26  ;;  %2198 = vrot.lane.b32.xlu1 %v6590_v26, %s5830_s17 }
 0x1ee   :  { %v1390_v14 = vpop.permute.xlu0 %1389  ;;  %v1392_v34 = vpop.permute.xlu1 %1391 }
 0x1ef   :  { %1504 = vst.msk [vmem:[#allocation6 + $0x90] sm:$0xff] %vm1497_vm4, %v1390_v14  ;;  %1505 = vst.msk [vmem:[#allocation6 + $0xa8] sm:$0xff] %vm1497_vm4, %v1392_v34 }
 0x1f0   :  { %2438 = vrot.lane.b32.xlu0 %v6597_v29, %s5831_s19  ;;  %1636 = vrot.lane.b32.xlu1 %v6549_v17, %s5831_s19 }
 0x1f2   :  { %v1394_v16 = vpop.permute.xlu0 %1393  ;;  %v1396_v15 = vpop.permute.xlu1 %1395 }
 0x1f3   :  { %1506 = vst.msk [vmem:[#allocation6 + $0xc0] sm:$0xff] %vm1497_vm4, %v1394_v16  ;;  %1507 = vst.msk [vmem:[#allocation6 + $0xd8] sm:$0xff] %vm1497_vm4, %v1396_v15  ;;  %v7079_v16 = vld [vmem:[#allocation5 + $0xe8] sm:$0xff] }
 0x1f4   :  { %2678 = vrot.lane.b32.xlu0 %v6626_v35, %s5832_s26  ;;  %1877 = vrot.lane.b32.xlu1 %v6564_v19, %s5832_s26  ;;  %v2932_v19 = vld [vmem:[#allocation6 + $0x100] sm:$0xff]  ;;  %2086 = vst.msk [vmem:[#allocation6 + $0x278] sm:$0xff] %vm27_vm3, %v7079_v16 }
 0x1f5   :  { %5674 = vmatprep.mubr.msk.f32.mxu0 %vm27_vm3, %v2932_v19 }
 0x1f6   :  { %v1398_v17 = vpop.permute.xlu0 %1397  ;;  %v1400_v24 = vpop.permute.xlu1 %1399  ;;  %5675 = vmatmul.mubr.msk.f32.gmra.mxu0 %vm27_vm3, %v2935_v7  ;;  %v2947_v7 = vld [vmem:[#allocation6 + $0x178] sm:$0xff] }
 0x1f7   :  { %1508 = vst.msk [vmem:[#allocation6 + $0xf0] sm:$0xff] %vm1497_vm4, %v1398_v17  ;;  %1509 = vst.msk [vmem:[#allocation6 + $0x108] sm:$0xff] %vm1497_vm4, %v1400_v24  ;;  %v7089_v17 = vld [vmem:[#allocation5 + $0xe1] sm:$0xff] }
 0x1f8   :  { %2200 = vrot.lane.b32.xlu0 %v6607_v31, %s5830_s17  ;;  %2440 = vrot.lane.b32.xlu1 %v6609_v32, %s5831_s19  ;;  %2883 = vst.msk [vmem:[#allocation6 + $0x238] sm:$0xff] %vm27_vm3, %v7089_v17 }
 0x1fa   :  { %v1402_v35 = vpop.permute.xlu0 %1401  ;;  %v1404_v6 = vpop.permute.xlu1 %1403 }
 0x1fb   :  { %1510 = vst.msk [vmem:[#allocation6 + $0x120] sm:$0xff] %vm1497_vm4, %v1402_v35  ;;  %1511 = vst.msk [vmem:[#allocation6 + $0x138] sm:$0xff] %vm1497_vm4, %v1404_v6 }
 0x1fc   :  { %1638 = vrot.lane.b32.xlu0 %v6574_v22, %s5831_s19  ;;  %2680 = vrot.lane.b32.xlu1 %v6650_v40, %s5832_s26 }
 0x1fe   :  { %v1406_v8 = vpop.permute.xlu0 %1405  ;;  %v1408_v9 = vpop.permute.xlu1 %1407 }
 0x1ff   :  { %1512 = vst.msk [vmem:[#allocation6 + $0x150] sm:$0xff] %vm1497_vm4, %v1406_v8  ;;  %1513 = vst.msk [vmem:[#allocation6 + $0x168] sm:$0xff] %vm1497_vm4, %v1408_v9 }
 0x200   :  { %1879 = vrot.lane.b32.xlu0 %v6576_v23, %s5832_s26  ;;  %2202 = vrot.lane.b32.xlu1 %v6630_v36, %s5830_s17 }
 0x202   :  { %v1410_v22 = vpop.permute.xlu0 %1409  ;;  %v1412_v40 = vpop.permute.xlu1 %1411 }
 0x203   :  { %1514 = vst.msk [vmem:[#allocation6 + $0x180] sm:$0xff] %vm1497_vm4, %v1410_v22  ;;  %1515 = vst.msk [vmem:[#allocation6 + $0x198] sm:$0xff] %vm1497_vm4, %v1412_v40  ;;  %v7118_v40 = vld [vmem:[#allocation5 + $0xe9] sm:$0xff] }
 0x204   :  { %2442 = vrot.lane.b32.xlu0 %v6620_v33, %s5831_s19  ;;  %1640 = vrot.lane.b32.xlu1 %v6590_v26, %s5831_s19  ;;  %2884 = vst.msk [vmem:[#allocation6 + $0x250] sm:$0xff] %vm27_vm3, %v7118_v40 }
 0x206   :  { %v2181_v23 = vpop.permute.xlu0 %2180  ;;  %v2421_v10 = vpop.permute.xlu1 %2420 }
 0x207   :  { %2300 = vst.msk [vmem:[#allocation6 + $0x8] sm:$0xff] %vm1497_vm4, %v2181_v23 }
 0x208   :  { %2540 = vst.msk [vmem:[#allocation6 + $0x8] sm:$0xff] %vm1738_vm5, %v2421_v10  ;;  %2682 = vrot.lane.b32.xlu0 %v6652_v41, %s5832_s26  ;;  %1881 = vrot.lane.b32.xlu1 %v6597_v29, %s5832_s26  ;;  %v2938_v41 = vld [vmem:[#allocation6 + $0x130] sm:$0xff] }
 0x209   :  { %5677 = vmatprep.mubr.msk.f32.mxu0 %vm27_vm3, %v2938_v41 }
 0x20a   :  { %v1619_v26 = vpop.permute.xlu0 %1618  ;;  %v2661_v12 = vpop.permute.xlu1 %2660  ;;  %5678 = vmatmul.mubr.msk.f32.gmra.mxu0 %vm27_vm3, %v2941_v52 }
 0x20b   :  { %1739 = vst.msk [vmem:[#allocation6] sm:$0xff] %vm1738_vm5, %v1619_v26  ;;  %v7133_v26 = vld [vmem:[#allocation5 + $0xf8] sm:$0xff] }
 0x20c   :  { %2780 = vst.msk [vmem:[#allocation6 + $0x8] sm:$0xff] %vm1979_vm6, %v2661_v12  ;;  %2204 = vrot.lane.b32.xlu0 %v6659_v43, %s5830_s17  ;;  %2444 = vrot.lane.b32.xlu1 %v6633_v37, %s5831_s19 }
 0x20d   :  { %2088 = vst.msk [vmem:[#allocation6 + $0x2a8] sm:$0xff] %vm27_vm3, %v7133_v26 }
 0x20e   :  { %v1860_v29 = vpop.permute.xlu0 %1859  ;;  %v2183_v51 = vpop.permute.xlu1 %2182 }
 0x20f   :  { %1980 = vst.msk [vmem:[#allocation6] sm:$0xff] %vm1979_vm6, %v1860_v29 }
 0x210   :  { %2301 = vst.msk [vmem:[#allocation6 + $0x20] sm:$0xff] %vm1497_vm4, %v2183_v51  ;;  %1642 = vrot.lane.b32.xlu0 %v6607_v31, %s5831_s19  ;;  %2684 = vrot.lane.b32.xlu1 %v6670_v45, %s5832_s26  ;;  %v7144_v51 = vld [vmem:[#allocation5 + $0xf1] sm:$0xff] }
 0x211   :  { %2885 = vst.msk [vmem:[#allocation6 + $0x268] sm:$0xff] %vm27_vm3, %v7144_v51 }
 0x212   :  { %v2423_v56 = vpop.permute.xlu0 %2422  ;;  %v1621_v58 = vpop.permute.xlu1 %1620 }
 0x213   :  { %v2901_v14 = vld [vmem:[#allocation6 + $0x8] sm:$0xff]  ;;  %2541 = vst.msk [vmem:[#allocation6 + $0x20] sm:$0xff] %vm1738_vm5, %v2423_v56  ;;  %1740 = vst.msk [vmem:[#allocation6 + $0x18] sm:$0xff] %vm1738_vm5, %v1621_v58 }
 0x214   :  { %3247 = vmatprep.mubr.f32.mxu1 %v2901_v14  ;;  %1883 = vrot.lane.b32.xlu0 %v6609_v32, %s5832_s26  ;;  %v2953_v56 = vld [vmem:[#allocation6 + $0x1a8] sm:$0xff] }
 0x215   :  { %2206 = vrot.lane.b32.xlu1 %v6708_v55, %s5830_s17 }
 0x216   :  { %v2663_v31 = vpop.permute.xlu0 %2662  ;;  %v1862_v45 = vpop.permute.xlu1 %1861  ;;  %v2900_v34 = vld [vmem:[#allocation6] sm:$0xff] }
 0x217   :  { %2781 = vst.msk [vmem:[#allocation6 + $0x20] sm:$0xff] %vm1979_vm6, %v2663_v31  ;;  %1981 = vst.msk [vmem:[#allocation6 + $0x18] sm:$0xff] %vm1979_vm6, %v1862_v45  ;;  %3248 = vmatmul.mubr.f32.vlgmr.msra.gmra.mxu1 %v2900_v34  ;;  %v7162_v45 = vld [vmem:[#allocation5 + $0x100] sm:$0xff] }
 0x218   :  { %2446 = vrot.lane.b32.xlu0 %v6635_v38, %s5831_s19  ;;  %2089 = vst.msk [vmem:[#allocation6 + $0x2c0] sm:$0xff] %vm27_vm3, %v7162_v45 }
 0x219   :  { %1644 = vrot.lane.b32.xlu1 %v6630_v36, %s5831_s19 }
 0x21a   :  { %v2185_v32 = vpop.permute.xlu0 %2184  ;;  %v2425_v15 = vpop.permute.xlu1 %2424 }
 0x21b   :  { %2302 = vst.msk [vmem:[#allocation6 + $0x38] sm:$0xff] %vm1497_vm4, %v2185_v32 }
 0x21c   :  { %2542 = vst.msk [vmem:[#allocation6 + $0x38] sm:$0xff] %vm1738_vm5, %v2425_v15  ;;  %2686 = vrot.lane.b32.xlu0 %v6672_v46, %s5832_s26  ;;  %v7172_v15 = vld [vmem:[#allocation5 + $0xf9] sm:$0xff] }
 0x21d   :  { %1885 = vrot.lane.b32.xlu1 %v6620_v33, %s5832_s26  ;;  %v2944_v33 = vld [vmem:[#allocation6 + $0x160] sm:$0xff]  ;;  %2886 = vst.msk [vmem:[#allocation6 + $0x280] sm:$0xff] %vm27_vm3, %v7172_v15 }
 0x21e   :  { %v1623_v36 = vpop.permute.xlu0 %1622  ;;  %v2665_v24 = vpop.permute.xlu1 %2664  ;;  %v2904_v19 = vld [vmem:[#allocation6 + $0x20] sm:$0xff]  ;;  %v2903_v35 = vld [vmem:[#allocation6 + $0x18] sm:$0xff]  ;;  %5680 = vmatprep.mubr.msk.f32.mxu0 %vm27_vm3, %v2944_v33 }
 0x21f   :  { %1741 = vst.msk [vmem:[#allocation6 + $0x30] sm:$0xff] %vm1738_vm5, %v1623_v36  ;;  %3252 = vmatprep.mubr.f32.mxu1 %v2904_v19  ;;  %5681 = vmatmul.mubr.msk.f32.gmra.mxu0 %vm27_vm3, %v2947_v7 }
 0x220   :  { %2782 = vst.msk [vmem:[#allocation6 + $0x38] sm:$0xff] %vm1979_vm6, %v2665_v24  ;;  %2208 = vrot.lane.b32.xlu0 %v6739_v30, %s5830_s17  ;;  %3253 = vmatmul.mubr.f32.gmra.mxu1 %v2903_v35 }
 0x221   :  { %2448 = vrot.lane.b32.xlu1 %v6744_v2, %s5831_s19 }
 0x222   :  { %v1864_v46 = vpop.permute.xlu0 %1863  ;;  %v2187_v6 = vpop.permute.xlu1 %2186 }
 0x223   :  { %1982 = vst.msk [vmem:[#allocation6 + $0x30] sm:$0xff] %vm1979_vm6, %v1864_v46  ;;  %v2956_v46 = vld [vmem:[#allocation6 + $0x1c0] sm:$0xff] }
 0x224   :  { %2303 = vst.msk [vmem:[#allocation6 + $0x50] sm:$0xff] %vm1497_vm4, %v2187_v6  ;;  %1646 = vrot.lane.b32.xlu0 %v6659_v43, %s5831_s19  ;;  %v7195_v6 = vld [vmem:[#allocation5 + $0x101] sm:$0xff] }
 0x225   :  { %2688 = vrot.lane.b32.xlu1 %v6762_v42, %s5832_s26  ;;  %2887 = vst.msk [vmem:[#allocation6 + $0x298] sm:$0xff] %vm27_vm3, %v7195_v6 }
 0x226   :  { %v2427_v8 = vpop.permute.xlu0 %2426  ;;  %v1625_v9 = vpop.permute.xlu1 %1624 }
 0x227   :  { %v2907_v22 = vld [vmem:[#allocation6 + $0x38] sm:$0xff]  ;;  %2543 = vst.msk [vmem:[#allocation6 + $0x50] sm:$0xff] %vm1738_vm5, %v2427_v8  ;;  %1742 = vst.msk [vmem:[#allocation6 + $0x48] sm:$0xff] %vm1738_vm5, %v1625_v9 }
 0x228   :  { %3257 = vmatprep.mubr.f32.mxu1 %v2907_v22  ;;  %1887 = vrot.lane.b32.xlu0 %v6633_v37, %s5832_s26 }
 0x229   :  { %2210 = vrot.lane.b32.xlu1 %v6774_v5, %s5830_s17 }
 0x22a   :  { %v2667_v43 = vpop.permute.xlu0 %2666  ;;  %v1866_v23 = vpop.permute.xlu1 %1865  ;;  %v2906_v10 = vld [vmem:[#allocation6 + $0x30] sm:$0xff] }
 0x22b   :  { %2783 = vst.msk [vmem:[#allocation6 + $0x50] sm:$0xff] %vm1979_vm6, %v2667_v43  ;;  %1983 = vst.msk [vmem:[#allocation6 + $0x48] sm:$0xff] %vm1979_vm6, %v1866_v23  ;;  %3258 = vmatmul.mubr.f32.gmra.mxu1 %v2906_v10 }
 0x22c   :  { %2450 = vrot.lane.b32.xlu0 %v6785_v49, %s5831_s19 }
 0x22d   :  { %1648 = vrot.lane.b32.xlu1 %v6708_v55, %s5831_s19 }
 0x22e   :  { %v2189_v37 = vpop.permute.xlu0 %2188  ;;  %v2429_v11 = vpop.permute.xlu1 %2428 }
 0x22f   :  { %2304 = vst.msk [vmem:[#allocation6 + $0x68] sm:$0xff] %vm1497_vm4, %v2189_v37  ;;  %v7223_v37 = vld [vmem:[#allocation5 + $0x109] sm:$0xff] }
 0x230   :  { %2544 = vst.msk [vmem:[#allocation6 + $0x68] sm:$0xff] %vm1738_vm5, %v2429_v11  ;;  %2690 = vrot.lane.b32.xlu0 %v6800_v53, %s5832_s26 }
 0x231   :  { %1889 = vrot.lane.b32.xlu1 %v6635_v38, %s5832_s26  ;;  %v2950_v38 = vld [vmem:[#allocation6 + $0x190] sm:$0xff]  ;;  %2888 = vst.msk [vmem:[#allocation6 + $0x2b0] sm:$0xff] %vm27_vm3, %v7223_v37 }
 0x232   :  { %v1627_v12 = vpop.permute.xlu0 %1626  ;;  %v2669_v41 = vpop.permute.xlu1 %2668  ;;  %v2910_v55 = vld [vmem:[#allocation6 + $0x50] sm:$0xff]  ;;  %v2909_v29 = vld [vmem:[#allocation6 + $0x48] sm:$0xff]  ;;  %5683 = vmatprep.mubr.msk.f32.mxu0 %vm27_vm3, %v2950_v38 }
 0x233   :  { %1743 = vst.msk [vmem:[#allocation6 + $0x60] sm:$0xff] %vm1738_vm5, %v1627_v12  ;;  %3262 = vmatprep.mubr.f32.mxu1 %v2910_v55  ;;  %5684 = vmatmul.mubr.msk.f32.gmra.mxu0 %vm27_vm3, %v2953_v56  ;;  %v7248_v38 = vld [vmem:[#allocation5 + $0xc7] sm:$0xff] }
 0x234   :  { %2784 = vst.msk [vmem:[#allocation6 + $0x68] sm:$0xff] %vm1979_vm6, %v2669_v41  ;;  %2212 = vrot.lane.b32.xlu0 %v6813_v50, %s5830_s17  ;;  %3263 = vmatmul.mubr.f32.gmra.mxu1 %v2909_v29  ;;  %v2962_v56 = vld [vmem:[#allocation6 + $0x1f0] sm:$0xff] }
 0x235   :  { %2452 = vrot.lane.b32.xlu1 %v6822_v54, %s5831_s19  ;;  %5686 = vmatprep.mubr.msk.f32.mxu0 %vm27_vm3, %v2956_v46 }
 0x236   :  { %v1868_v52 = vpop.permute.xlu0 %1867  ;;  %v2191_v0 = vpop.permute.xlu1 %2190 }
 0x237   :  { %1984 = vst.msk [vmem:[#allocation6 + $0x60] sm:$0xff] %vm1979_vm6, %v1868_v52 }
 0x238   :  { %2305 = vst.msk [vmem:[#allocation6 + $0x80] sm:$0xff] %vm1497_vm4, %v2191_v0  ;;  %1650 = vrot.lane.b32.xlu0 %v6739_v30, %s5831_s19 }
 0x239   :  { %2692 = vrot.lane.b32.xlu1 %v6836_v57, %s5832_s26 }
 0x23a   :  { %v2431_v58 = vpop.permute.xlu0 %2430  ;;  %v1629_v14 = vpop.permute.xlu1 %1628 }
 0x23b   :  { %v2913_v31 = vld [vmem:[#allocation6 + $0x68] sm:$0xff]  ;;  %2545 = vst.msk [vmem:[#allocation6 + $0x80] sm:$0xff] %vm1738_vm5, %v2431_v58  ;;  %1744 = vst.msk [vmem:[#allocation6 + $0x78] sm:$0xff] %vm1738_vm5, %v1629_v14 }
 0x23c   :  { %3267 = vmatprep.mubr.f32.mxu1 %v2913_v31  ;;  %1891 = vrot.lane.b32.xlu0 %v6744_v2, %s5832_s26  ;;  %v2965_v58 = vld [vmem:[#allocation6 + $0x208] sm:$0xff] }
 0x23d   :  { %2214 = vrot.lane.b32.xlu1 %v6852_v3, %s5830_s17  ;;  %v7253_v14 = vld [vmem:[#allocation5 + $0x111] sm:$0xff] }
 0x23e   :  { %v2671_v30 = vpop.permute.xlu0 %2670  ;;  %v1870_v34 = vpop.permute.xlu1 %1869  ;;  %v2912_v32 = vld [vmem:[#allocation6 + $0x60] sm:$0xff]  ;;  %2889 = vst.msk [vmem:[#allocation6 + $0x2c8] sm:$0xff] %vm27_vm3, %v7253_v14 }
 0x23f   :  { %2785 = vst.msk [vmem:[#allocation6 + $0x80] sm:$0xff] %vm1979_vm6, %v2671_v30  ;;  %1985 = vst.msk [vmem:[#allocation6 + $0x78] sm:$0xff] %vm1979_vm6, %v1870_v34  ;;  %3268 = vmatmul.mubr.f32.gmra.mxu1 %v2912_v32 }
 0x240   :  { %2454 = vrot.lane.b32.xlu0 %v6862_v59, %s5831_s19 }
 0x241   :  { %1652 = vrot.lane.b32.xlu1 %v6774_v5, %s5831_s19 }
 0x242   :  { %v2193_v2 = vpop.permute.xlu0 %2192  ;;  %v2433_v18 = vpop.permute.xlu1 %2432 }
 0x243   :  { %2306 = vst.msk [vmem:[#allocation6 + $0x98] sm:$0xff] %vm1497_vm4, %v2193_v2  ;;  %v7269_v2 = vld [vmem:[#allocation5 + $0x120] sm:$0xff] }
 0x244   :  { %2546 = vst.msk [vmem:[#allocation6 + $0x98] sm:$0xff] %vm1738_vm5, %v2433_v18  ;;  %2694 = vrot.lane.b32.xlu0 %v6875_v25, %s5832_s26 }
 0x245   :  { %1893 = vrot.lane.b32.xlu1 %v6785_v49, %s5832_s26  ;;  %v2959_v49 = vld [vmem:[#allocation6 + $0x1d8] sm:$0xff]  ;;  %2093 = vst.msk [vmem:[#allocation6 + $0x320] sm:$0xff] %vm27_vm3, %v7269_v2 }
 0x246   :  { %v1631_v36 = vpop.permute.xlu0 %1630  ;;  %v2673_v24 = vpop.permute.xlu1 %2672  ;;  %v2916_v19 = vld [vmem:[#allocation6 + $0x80] sm:$0xff]  ;;  %v2915_v35 = vld [vmem:[#allocation6 + $0x78] sm:$0xff]  ;;  %5687 = vmatmul.mubr.msk.f32.gmra.mxu0 %vm27_vm3, %v2959_v49  ;;  %v1240_v49 = vld [vmem:[#allocation5 + $0xbf] sm:$0xff] }
 0x247   :  { %1745 = vst.msk [vmem:[#allocation6 + $0x90] sm:$0xff] %vm1738_vm5, %v1631_v36  ;;  %3272 = vmatprep.mubr.f32.mxu1 %v2916_v19  ;;  %5689 = vmatprep.mubr.msk.f32.mxu0 %vm27_vm3, %v2962_v56  ;;  %v7282_v19 = vld [vmem:[#allocation5 + $0x119] sm:$0xff] }
 0x248   :  { %2786 = vst.msk [vmem:[#allocation6 + $0x98] sm:$0xff] %vm1979_vm6, %v2673_v24  ;;  %2216 = vrot.lane.b32.xlu0 %v6890_v4, %s5830_s17  ;;  %3273 = vmatmul.mubr.f32.gmra.mxu1 %v2915_v35 }
 0x249   :  { %1413 = vrot.lane.b32.xlu1 %v6762_v42, %s5830_s17  ;;  %2890 = vst.msk [vmem:[#allocation6 + $0x2e0] sm:$0xff] %vm27_vm3, %v7282_v19  ;;  %1280 = vst.msk [vmem:[#allocation6 + $0x228] sm:$0xff] %vm27_vm3, %v1240_v49 }
 0x24a   :  { %v1872_v5 = vpop.permute.xlu0 %1871  ;;  %v2195_v33 = vpop.permute.xlu1 %2194  ;;  %5690 = vmatmul.mubr.msk.f32.gmra.mxu0 %vm27_vm3, %v2965_v58 }
 0x24b   :  { %1986 = vst.msk [vmem:[#allocation6 + $0x90] sm:$0xff] %vm1979_vm6, %v1872_v5 }
 0x24c   :  { %2307 = vst.msk [vmem:[#allocation6 + $0xb0] sm:$0xff] %vm1497_vm4, %v2195_v33  ;;  %2456 = vrot.lane.b32.xlu0 %v6904_v60, %s5831_s19 }
 0x24d   :  { %1654 = vrot.lane.b32.xlu1 %v6813_v50, %s5831_s19  ;;  %v7212_v50 = vld [vmem:[#allocation5 + $0x110] sm:$0xff] }
 0x24e   :  { %v2435_v42 = vpop.permute.xlu0 %2434  ;;  %v1633_v7 = vpop.permute.xlu1 %1632  ;;  %2091 = vst.msk [vmem:[#allocation6 + $0x2f0] sm:$0xff] %vm27_vm3, %v7212_v50 }
 0x24f   :  { %v2919_v8 = vld [vmem:[#allocation6 + $0x98] sm:$0xff]  ;;  %2547 = vst.msk [vmem:[#allocation6 + $0xb0] sm:$0xff] %vm1738_vm5, %v2435_v42  ;;  %1746 = vst.msk [vmem:[#allocation6 + $0xa8] sm:$0xff] %vm1738_vm5, %v1633_v7  ;;  %v7307_v42 = vld [vmem:[#allocation5 + $0xd7] sm:$0xff] }
 0x250   :  { %3277 = vmatprep.mubr.f32.mxu1 %v2919_v8  ;;  %2696 = vrot.lane.b32.xlu0 %v6916_v44, %s5832_s26 }
 0x251   :  { %1895 = vrot.lane.b32.xlu1 %v6822_v54, %s5832_s26  ;;  %v7220_v54 = vld [vmem:[#allocation5 + $0xbf] sm:$0xff] }
 0x252   :  { %v2675_v9 = vpop.permute.xlu0 %2674  ;;  %v1874_v22 = vpop.permute.xlu1 %1873  ;;  %v2918_v43 = vld [vmem:[#allocation6 + $0x90] sm:$0xff] }
 0x253   :  { %2787 = vst.msk [vmem:[#allocation6 + $0xb0] sm:$0xff] %vm1979_vm6, %v2675_v9  ;;  %1987 = vst.msk [vmem:[#allocation6 + $0xa8] sm:$0xff] %vm1979_vm6, %v1874_v22  ;;  %3278 = vmatmul.mubr.f32.gmra.mxu1 %v2918_v43  ;;  %v2968_v22 = vld [vmem:[#allocation6 + $0x220] sm:$0xff]  ;;  %v2971_v43 = vld [vmem:[#allocation6 + $0x238] sm:$0xff] }
 0x254   :  { %2218 = vrot.lane.b32.xlu0 %v6926_v47, %s5830_s17  ;;  %5692 = vmatprep.mubr.msk.f32.mxu0 %vm27_vm3, %v2968_v22 }
 0x255   :  { %1415 = vrot.lane.b32.xlu1 %v6800_v53, %s5830_s17  ;;  %5693 = vmatmul.mubr.msk.f32.gmra.mxu0 %vm27_vm3, %v2971_v43 }
 0x256   :  { %v2197_v23 = vpop.permute.xlu0 %2196  ;;  %v2437_v10 = vpop.permute.xlu1 %2436 }
 0x257   :  { %2308 = vst.msk [vmem:[#allocation6 + $0xc8] sm:$0xff] %vm1497_vm4, %v2197_v23 }
 0x258   :  { %2548 = vst.msk [vmem:[#allocation6 + $0xc8] sm:$0xff] %vm1738_vm5, %v2437_v10  ;;  %2458 = vrot.lane.b32.xlu0 %v7220_v54, %s5831_s19 }
 0x259   :  { %1656 = vrot.lane.b32.xlu1 %v6852_v3, %s5831_s19  ;;  %v7240_v3 = vld [vmem:[#allocation5 + $0x118] sm:$0xff] }
 0x25a   :  { %v1635_v53 = vpop.permute.xlu0 %1634  ;;  %v2677_v11 = vpop.permute.xlu1 %2676  ;;  %v2922_v12 = vld [vmem:[#allocation6 + $0xb0] sm:$0xff]  ;;  %v2921_v41 = vld [vmem:[#allocation6 + $0xa8] sm:$0xff]  ;;  %2092 = vst.msk [vmem:[#allocation6 + $0x308] sm:$0xff] %vm27_vm3, %v7240_v3 }
 0x25b   :  { %1747 = vst.msk [vmem:[#allocation6 + $0xc0] sm:$0xff] %vm1738_vm5, %v1635_v53  ;;  %3282 = vmatprep.mubr.f32.mxu1 %v2922_v12 }
 0x25c   :  { %2788 = vst.msk [vmem:[#allocation6 + $0xc8] sm:$0xff] %vm1979_vm6, %v2677_v11  ;;  %2698 = vrot.lane.b32.xlu0 %v6939_v48, %s5832_s26  ;;  %3283 = vmatmul.mubr.f32.gmra.mxu1 %v2921_v41  ;;  %v1241_v41 = vld [vmem:[#allocation5 + $0xc7] sm:$0xff] }
 0x25d   :  { %1897 = vrot.lane.b32.xlu1 %v6862_v59, %s5832_s26  ;;  %1281 = vst.msk [vmem:[#allocation6 + $0x240] sm:$0xff] %vm27_vm3, %v1241_v41 }
 0x25e   :  { %v1876_v55 = vpop.permute.xlu0 %1875  ;;  %v2199_v29 = vpop.permute.xlu1 %2198 }
 0x25f   :  { %1988 = vst.msk [vmem:[#allocation6 + $0xc0] sm:$0xff] %vm1979_vm6, %v1876_v55  ;;  %v7338_v55 = vld [vmem:[#allocation5 + $0xdf] sm:$0xff] }
 0x260   :  { %2309 = vst.msk [vmem:[#allocation6 + $0xe0] sm:$0xff] %vm1497_vm4, %v2199_v29  ;;  %2220 = vrot.lane.b32.xlu0 %v6948_v27, %s5830_s17 }
 0x261   :  { %1417 = vrot.lane.b32.xlu1 %v6836_v57, %s5830_s17 }
 0x262   :  { %v2439_v59 = vpop.permute.xlu0 %2438  ;;  %v1637_v52 = vpop.permute.xlu1 %1636 }
 0x263   :  { %v2925_v0 = vld [vmem:[#allocation6 + $0xc8] sm:$0xff]  ;;  %2549 = vst.msk [vmem:[#allocation6 + $0xe0] sm:$0xff] %vm1738_vm5, %v2439_v59  ;;  %1748 = vst.msk [vmem:[#allocation6 + $0xd8] sm:$0xff] %vm1738_vm5, %v1637_v52  ;;  %v7342_v59 = vld [vmem:[#allocation5 + $0x129] sm:$0xff] }
 0x264   :  { %3287 = vmatprep.mubr.f32.mxu1 %v2925_v0  ;;  %2460 = vrot.lane.b32.xlu0 %v7248_v38, %s5831_s19  ;;  %2892 = vst.msk [vmem:[#allocation6 + $0x310] sm:$0xff] %vm27_vm3, %v7342_v59 }
 0x265   :  { %1658 = vrot.lane.b32.xlu1 %v6890_v4, %s5831_s19  ;;  %v7278_v4 = vld [vmem:[#allocation5 + $0xcf] sm:$0xff] }
 0x266   :  { %v2679_v57 = vpop.permute.xlu0 %2678  ;;  %v1878_v31 = vpop.permute.xlu1 %1877  ;;  %v2924_v30 = vld [vmem:[#allocation6 + $0xc0] sm:$0xff] }
 0x267   :  { %2789 = vst.msk [vmem:[#allocation6 + $0xe0] sm:$0xff] %vm1979_vm6, %v2679_v57  ;;  %1989 = vst.msk [vmem:[#allocation6 + $0xd8] sm:$0xff] %vm1979_vm6, %v1878_v31  ;;  %3288 = vmatmul.mubr.f32.gmra.mxu1 %v2924_v30  ;;  %v1242_v31 = vld [vmem:[#allocation5 + $0xcf] sm:$0xff]  ;;  %v7367_v30 = vld [vmem:[#allocation5 + $0xe7] sm:$0xff] }
 0x268   :  { %2700 = vrot.lane.b32.xlu0 %v6966_v61, %s5832_s26  ;;  %1282 = vst.msk [vmem:[#allocation6 + $0x258] sm:$0xff] %vm27_vm3, %v1242_v31 }
 0x269   :  { %1899 = vrot.lane.b32.xlu1 %v6904_v60, %s5832_s26 }
 0x26a   :  { %v2201_v34 = vpop.permute.xlu0 %2200  ;;  %v2441_v32 = vpop.permute.xlu1 %2440 }
 0x26b   :  { %2310 = vst.msk [vmem:[#allocation6 + $0xf8] sm:$0xff] %vm1497_vm4, %v2201_v34 }
 0x26c   :  { %2550 = vst.msk [vmem:[#allocation6 + $0xf8] sm:$0xff] %vm1738_vm5, %v2441_v32  ;;  %2222 = vrot.lane.b32.xlu0 %v6977_v62, %s5830_s17  ;;  %v2974_v32 = vld [vmem:[#allocation6 + $0x250] sm:$0xff] }
 0x26d   :  { %1419 = vrot.lane.b32.xlu1 %v6875_v25, %s5830_s17  ;;  %5695 = vmatprep.mubr.msk.f32.mxu0 %vm27_vm3, %v2974_v32  ;;  %v7461_v32 = vld [vmem:[#allocation5 + $0x149] sm:$0xff] }
 0x26e   :  { %v1639_v60 = vpop.permute.xlu0 %1638  ;;  %v2681_v18 = vpop.permute.xlu1 %2680  ;;  %v2928_v36 = vld [vmem:[#allocation6 + $0xe0] sm:$0xff]  ;;  %v2927_v24 = vld [vmem:[#allocation6 + $0xd8] sm:$0xff]  ;;  %2896 = vst.msk [vmem:[#allocation6 + $0x370] sm:$0xff] %vm27_vm3, %v7461_v32 }
 0x26f   :  { %1749 = vst.msk [vmem:[#allocation6 + $0xf0] sm:$0xff] %vm1738_vm5, %v1639_v60  ;;  %3292 = vmatprep.mubr.f32.mxu1 %v2928_v36  ;;  %v2977_v60 = vld [vmem:[#allocation6 + $0x268] sm:$0xff] }
 0x270   :  { %2790 = vst.msk [vmem:[#allocation6 + $0xf8] sm:$0xff] %vm1979_vm6, %v2681_v18  ;;  %2462 = vrot.lane.b32.xlu0 %v7278_v4, %s5831_s19  ;;  %3293 = vmatmul.mubr.f32.gmra.mxu1 %v2927_v24  ;;  %v7371_v18 = vld [vmem:[#allocation5 + $0x131] sm:$0xff] }
 0x271   :  { %1660 = vrot.lane.b32.xlu1 %v6926_v47, %s5831_s19  ;;  %v7299_v47 = vld [vmem:[#allocation5 + $0x128] sm:$0xff]  ;;  %5696 = vmatmul.mubr.msk.f32.gmra.mxu0 %vm27_vm3, %v2977_v60  ;;  %2893 = vst.msk [vmem:[#allocation6 + $0x328] sm:$0xff] %vm27_vm3, %v7371_v18 }
 0x272   :  { %v1880_v25 = vpop.permute.xlu0 %1879  ;;  %v2203_v35 = vpop.permute.xlu1 %2202  ;;  %2094 = vst.msk [vmem:[#allocation6 + $0x338] sm:$0xff] %vm27_vm3, %v7299_v47 }
 0x273   :  { %1990 = vst.msk [vmem:[#allocation6 + $0xf0] sm:$0xff] %vm1979_vm6, %v1880_v25 }
 0x274   :  { %2311 = vst.msk [vmem:[#allocation6 + $0x110] sm:$0xff] %vm1497_vm4, %v2203_v35  ;;  %2702 = vrot.lane.b32.xlu0 %v6994_v21, %s5832_s26 }
 0x275   :  { %1901 = vrot.lane.b32.xlu1 %v7220_v54, %s5832_s26  ;;  %v7312_v54 = vld [vmem:[#allocation5 + $0x121] sm:$0xff] }
 0x276   :  { %v2443_v5 = vpop.permute.xlu0 %2442  ;;  %v1641_v33 = vpop.permute.xlu1 %1640  ;;  %2891 = vst.msk [vmem:[#allocation6 + $0x2f8] sm:$0xff] %vm27_vm3, %v7312_v54 }
 0x277   :  { %v2931_v46 = vld [vmem:[#allocation6 + $0xf8] sm:$0xff]  ;;  %2551 = vst.msk [vmem:[#allocation6 + $0x110] sm:$0xff] %vm1738_vm5, %v2443_v5  ;;  %1750 = vst.msk [vmem:[#allocation6 + $0x108] sm:$0xff] %vm1738_vm5, %v1641_v33  ;;  %v1243_v5 = vld [vmem:[#allocation5 + $0xd7] sm:$0xff] }
 0x278   :  { %3297 = vmatprep.mubr.f32.mxu1 %v2931_v46  ;;  %2224 = vrot.lane.b32.xlu0 %v7004_v63, %s5830_s17  ;;  %1283 = vst.msk [vmem:[#allocation6 + $0x270] sm:$0xff] %vm27_vm3, %v1243_v5  ;;  %v7389_v33 = vld [vmem:[#allocation5 + $0x140] sm:$0xff]  ;;  %v7398_v46 = vld [vmem:[#allocation5 + $0xef] sm:$0xff] }
 0x279   :  { %1421 = vrot.lane.b32.xlu1 %v6916_v44, %s5830_s17  ;;  %2097 = vst.msk [vmem:[#allocation6 + $0x380] sm:$0xff] %vm27_vm3, %v7389_v33  ;;  %v2986_v5 = vld [vmem:[#allocation6 + $0x2b0] sm:$0xff] }
 0x27a   :  { %v2683_v7 = vpop.permute.xlu0 %2682  ;;  %v1882_v8 = vpop.permute.xlu1 %1881  ;;  %v2930_v9 = vld [vmem:[#allocation6 + $0xf0] sm:$0xff] }
 0x27b   :  { %2791 = vst.msk [vmem:[#allocation6 + $0x110] sm:$0xff] %vm1979_vm6, %v2683_v7  ;;  %1991 = vst.msk [vmem:[#allocation6 + $0x108] sm:$0xff] %vm1979_vm6, %v1882_v8  ;;  %3298 = vmatmul.mubr.f32.gmra.mxu1 %v2930_v9  ;;  %v7401_v8 = vld [vmem:[#allocation5 + $0x139] sm:$0xff] }
 0x27c   :  { %2464 = vrot.lane.b32.xlu0 %v7307_v42, %s5831_s19  ;;  %2894 = vst.msk [vmem:[#allocation6 + $0x340] sm:$0xff] %vm27_vm3, %v7401_v8 }
 0x27d   :  { %1662 = vrot.lane.b32.xlu1 %v6948_v27, %s5831_s19  ;;  %v7330_v27 = vld [vmem:[#allocation5 + $0x130] sm:$0xff] }
 0x27e   :  { %v2205_v44 = vpop.permute.xlu0 %2204  ;;  %v2445_v23 = vpop.permute.xlu1 %2444  ;;  %2095 = vst.msk [vmem:[#allocation6 + $0x350] sm:$0xff] %vm27_vm3, %v7330_v27 }
 0x27f   :  { %2312 = vst.msk [vmem:[#allocation6 + $0x128] sm:$0xff] %vm1497_vm4, %v2205_v44  ;;  %v1244_v44 = vld [vmem:[#allocation5 + $0xdf] sm:$0xff] }
 0x280   :  { %2552 = vst.msk [vmem:[#allocation6 + $0x128] sm:$0xff] %vm1738_vm5, %v2445_v23  ;;  %2704 = vrot.lane.b32.xlu0 %v7023_v20, %s5832_s26 }
 0x281   :  { %1903 = vrot.lane.b32.xlu1 %v7248_v38, %s5832_s26  ;;  %1284 = vst.msk [vmem:[#allocation6 + $0x288] sm:$0xff] %vm27_vm3, %v1244_v44 }
 0x282   :  { %v1643_v10 = vpop.permute.xlu0 %1642  ;;  %v2685_v53 = vpop.permute.xlu1 %2684  ;;  %v2934_v11 = vld [vmem:[#allocation6 + $0x110] sm:$0xff]  ;;  %v2933_v12 = vld [vmem:[#allocation6 + $0x108] sm:$0xff] }
 0x283   :  { %1751 = vst.msk [vmem:[#allocation6 + $0x120] sm:$0xff] %vm1738_vm5, %v1643_v10  ;;  %3302 = vmatprep.mubr.f32.mxu1 %v2934_v11  ;;  %v7427_v10 = vld [vmem:[#allocation5 + $0xf7] sm:$0xff] }
 0x284   :  { %2792 = vst.msk [vmem:[#allocation6 + $0x128] sm:$0xff] %vm1979_vm6, %v2685_v53  ;;  %2226 = vrot.lane.b32.xlu0 %v7033_v1, %s5830_s17  ;;  %3303 = vmatmul.mubr.f32.gmra.mxu1 %v2933_v12  ;;  %v2980_v12 = vld [vmem:[#allocation6 + $0x280] sm:$0xff] }
 0x285   :  { %1423 = vrot.lane.b32.xlu1 %v6939_v48, %s5830_s17  ;;  %5698 = vmatprep.mubr.msk.f32.mxu0 %vm27_vm3, %v2980_v12  ;;  %v5661_v12 = vpop.f32.mrf.mxu0 }
 0x286   :  { %v1884_v29 = vpop.permute.xlu0 %1883 }
 0x287   :  { %v2207_v38 = vpop.permute.xlu1 %2206  ;;  %1992 = vst.msk [vmem:[#allocation6 + $0x120] sm:$0xff] %vm1979_vm6, %v1884_v29  ;;  %v2983_v29 = vld [vmem:[#allocation6 + $0x298] sm:$0xff] }
 0x288   :  { %2313 = vst.msk [vmem:[#allocation6 + $0x140] sm:$0xff] %vm1497_vm4, %v2207_v38  ;;  %2466 = vrot.lane.b32.xlu0 %v7338_v55, %s5831_s19  ;;  %v7431_v38 = vld [vmem:[#allocation5 + $0x141] sm:$0xff]  ;;  %5699 = vmatmul.mubr.msk.f32.gmra.mxu0 %vm27_vm3, %v2983_v29  ;;  %v3514_v29 = vpop.f32.mrf.mxu0 }
 0x289   :  { %1664 = vrot.lane.b32.xlu1 %v6977_v62, %s5831_s19  ;;  %v7359_v62 = vld [vmem:[#allocation5 + $0x138] sm:$0xff]  ;;  %2895 = vst.msk [vmem:[#allocation6 + $0x358] sm:$0xff] %vm27_vm3, %v7431_v38  ;;  %5701 = vmatprep.mubr.msk.f32.mxu0 %vm27_vm3, %v2986_v5  ;;  %v1249_v5 = vld [vmem:[#allocation5 + $0x107] sm:$0xff] }
 0x28a   :  { %v2447_v48 = vpop.permute.xlu0 %2446  ;;  %2096 = vst.msk [vmem:[#allocation6 + $0x368] sm:$0xff] %vm27_vm3, %v7359_v62  ;;  %1289 = vst.msk [vmem:[#allocation6 + $0x300] sm:$0xff] %vm27_vm3, %v1249_v5 }
 0x28b   :  { %v1645_v52 = vpop.permute.xlu1 %1644  ;;  %v2937_v0 = vld [vmem:[#allocation6 + $0x128] sm:$0xff]  ;;  %2553 = vst.msk [vmem:[#allocation6 + $0x140] sm:$0xff] %vm1738_vm5, %v2447_v48 }
 0x28c   :  { %1752 = vst.msk [vmem:[#allocation6 + $0x138] sm:$0xff] %vm1738_vm5, %v1645_v52  ;;  %3307 = vmatprep.mubr.f32.mxu1 %v2937_v0  ;;  %2706 = vrot.lane.b32.xlu0 %v7050_v28, %s5832_s26  ;;  %v1245_v0 = vld [vmem:[#allocation5 + $0xe7] sm:$0xff] }
 0x28d   :  { %1905 = vrot.lane.b32.xlu1 %v7278_v4, %s5832_s26  ;;  %1285 = vst.msk [vmem:[#allocation6 + $0x2a0] sm:$0xff] %vm27_vm3, %v1245_v0 }
 0x28e   :  { %v2687_v56 = vpop.permute.xlu0 %2686  ;;  %v2936_v57 = vld [vmem:[#allocation6 + $0x120] sm:$0xff] }
 0x28f   :  { %v1886_v58 = vpop.permute.xlu1 %1885  ;;  %2793 = vst.msk [vmem:[#allocation6 + $0x140] sm:$0xff] %vm1979_vm6, %v2687_v56  ;;  %3308 = vmatmul.mubr.f32.gmra.mxu1 %v2936_v57  ;;  %v7458_v57 = vld [vmem:[#allocation5 + $0xff] sm:$0xff] }
 0x290   :  { %1993 = vst.msk [vmem:[#allocation6 + $0x138] sm:$0xff] %vm1979_vm6, %v1886_v58  ;;  %2228 = vrot.lane.b32.xlu0 %v7062_v13, %s5830_s17  ;;  %v7449_v58 = vld [vmem:[#allocation5 + $0x150] sm:$0xff] }
 0x291   :  { %1425 = vrot.lane.b32.xlu1 %v6966_v61, %s5830_s17  ;;  %2099 = vst.msk [vmem:[#allocation6 + $0x3b0] sm:$0xff] %vm27_vm3, %v7449_v58 }
 0x292   :  { %v2209_v34 = vpop.permute.xlu0 %2208 }
 0x293   :  { %2314 = vst.msk [vmem:[#allocation6 + $0x158] sm:$0xff] %vm1497_vm4, %v2209_v34  ;;  %v2449_v4 = vpop.permute.xlu1 %2448 }
 0x294   :  { %2554 = vst.msk [vmem:[#allocation6 + $0x158] sm:$0xff] %vm1738_vm5, %v2449_v4  ;;  %2468 = vrot.lane.b32.xlu0 %v7367_v30, %s5831_s19 }
 0x295   :  { %1666 = vrot.lane.b32.xlu1 %v7004_v63, %s5831_s19 }
 0x296   :  { %v1647_v61 = vpop.permute.xlu0 %1646  ;;  %v2940_v36 = vld [vmem:[#allocation6 + $0x140] sm:$0xff] }
 0x297   :  { %v2939_v24 = vld [vmem:[#allocation6 + $0x138] sm:$0xff]  ;;  %1753 = vst.msk [vmem:[#allocation6 + $0x150] sm:$0xff] %vm1738_vm5, %v1647_v61  ;;  %v2689_v25 = vpop.permute.xlu1 %2688  ;;  %3312 = vmatprep.mubr.f32.mxu1 %v2940_v36 }
 0x298   :  { %2794 = vst.msk [vmem:[#allocation6 + $0x158] sm:$0xff] %vm1979_vm6, %v2689_v25  ;;  %2708 = vrot.lane.b32.xlu0 %v7079_v16, %s5832_s26  ;;  %3313 = vmatmul.mubr.f32.gmra.mxu1 %v2939_v24  ;;  %v1246_v36 = vld [vmem:[#allocation5 + $0xef] sm:$0xff]  ;;  %v7483_v25 = vld [vmem:[#allocation5 + $0x107] sm:$0xff] }
 0x299   :  { %1907 = vrot.lane.b32.xlu1 %v7307_v42, %s5832_s26  ;;  %1286 = vst.msk [vmem:[#allocation6 + $0x2b8] sm:$0xff] %vm27_vm3, %v1246_v36 }
 0x29a   :  { %v1888_v35 = vpop.permute.xlu0 %1887 }
 0x29b   :  { %1994 = vst.msk [vmem:[#allocation6 + $0x150] sm:$0xff] %vm1979_vm6, %v1888_v35  ;;  %v2211_v63 = vpop.permute.xlu1 %2210 }
 0x29c   :  { %2315 = vst.msk [vmem:[#allocation6 + $0x170] sm:$0xff] %vm1497_vm4, %v2211_v63  ;;  %2230 = vrot.lane.b32.xlu0 %v7089_v17, %s5830_s17 }
 0x29d   :  { %1427 = vrot.lane.b32.xlu1 %v6994_v21, %s5830_s17 }
 0x29e   :  { %v2451_v49 = vpop.permute.xlu0 %2450 }
 0x29f   :  { %2555 = vst.msk [vmem:[#allocation6 + $0x170] sm:$0xff] %vm1738_vm5, %v2451_v49  ;;  %v1649_v42 = vpop.permute.xlu1 %1648  ;;  %v2943_v7 = vld [vmem:[#allocation6 + $0x158] sm:$0xff]  ;;  %v7487_v49 = vld [vmem:[#allocation5 + $0x151] sm:$0xff] }
 0x2a0   :  { %1754 = vst.msk [vmem:[#allocation6 + $0x168] sm:$0xff] %vm1738_vm5, %v1649_v42  ;;  %2470 = vrot.lane.b32.xlu0 %v7398_v46, %s5831_s19  ;;  %3317 = vmatprep.mubr.f32.mxu1 %v2943_v7 }
 0x2a1   :  { %1668 = vrot.lane.b32.xlu1 %v7033_v1, %s5831_s19  ;;  %v7418_v1 = vld [vmem:[#allocation5 + $0x148] sm:$0xff]  ;;  %2897 = vst.msk [vmem:[#allocation6 + $0x388] sm:$0xff] %vm27_vm3, %v7487_v49 }
 0x2a2   :  { %v2691_v21 = vpop.permute.xlu0 %2690  ;;  %v2942_v9 = vld [vmem:[#allocation6 + $0x150] sm:$0xff]  ;;  %2098 = vst.msk [vmem:[#allocation6 + $0x398] sm:$0xff] %vm27_vm3, %v7418_v1 }
 0x2a3   :  { %2795 = vst.msk [vmem:[#allocation6 + $0x170] sm:$0xff] %vm1979_vm6, %v2691_v21  ;;  %v1890_v22 = vpop.permute.xlu1 %1889  ;;  %3318 = vmatmul.mubr.f32.gmra.mxu1 %v2942_v9  ;;  %v2050_v21 = vld [vmem:[#allocation5 + $0x108] sm:$0xff] }
 0x2a4   :  { %1995 = vst.msk [vmem:[#allocation6 + $0x168] sm:$0xff] %vm1979_vm6, %v1890_v22  ;;  %2710 = vrot.lane.b32.xlu0 %v7108_v39, %s5832_s26 }
 0x2a5   :  { %1909 = vrot.lane.b32.xlu1 %v7338_v55, %s5832_s26  ;;  %2090 = vst.msk [vmem:[#allocation6 + $0x2d8] sm:$0xff] %vm27_vm3, %v2050_v21 }
 0x2a6   :  { %v2213_v43 = vpop.permute.xlu0 %2212 }
 0x2a7   :  { %2316 = vst.msk [vmem:[#allocation6 + $0x188] sm:$0xff] %vm1497_vm4, %v2213_v43  ;;  %v2453_v23 = vpop.permute.xlu1 %2452 }
 0x2a8   :  { %2556 = vst.msk [vmem:[#allocation6 + $0x188] sm:$0xff] %vm1738_vm5, %v2453_v23  ;;  %2232 = vrot.lane.b32.xlu0 %v7118_v40, %s5830_s17  ;;  %v7513_v23 = vld [vmem:[#allocation5 + $0x10f] sm:$0xff] }
 0x2a9   :  { %1429 = vrot.lane.b32.xlu1 %v7023_v20, %s5830_s17 }
 0x2aa   :  { %v1651_v53 = vpop.permute.xlu0 %1650  ;;  %v2946_v11 = vld [vmem:[#allocation6 + $0x170] sm:$0xff] }
 0x2ab   :  { %1755 = vst.msk [vmem:[#allocation6 + $0x180] sm:$0xff] %vm1738_vm5, %v1651_v53  ;;  %v2693_v41 = vpop.permute.xlu1 %2692  ;;  %3322 = vmatprep.mubr.f32.mxu1 %v2946_v11  ;;  %v2945_v55 = vld [vmem:[#allocation6 + $0x168] sm:$0xff] }
 0x2ac   :  { %2796 = vst.msk [vmem:[#allocation6 + $0x188] sm:$0xff] %vm1979_vm6, %v2693_v41  ;;  %2472 = vrot.lane.b32.xlu0 %v7427_v10, %s5831_s19  ;;  %3323 = vmatmul.mubr.f32.gmra.mxu1 %v2945_v55 }
 0x2ad   :  { %1670 = vrot.lane.b32.xlu1 %v7062_v13, %s5831_s19 }
 0x2ae   :  { %v1892_v20 = vpop.permute.xlu0 %1891 }
 0x2af   :  { %1996 = vst.msk [vmem:[#allocation6 + $0x180] sm:$0xff] %vm1979_vm6, %v1892_v20  ;;  %v2215_v48 = vpop.permute.xlu1 %2214  ;;  %v1248_v20 = vld [vmem:[#allocation5 + $0xff] sm:$0xff] }
 0x2b0   :  { %2317 = vst.msk [vmem:[#allocation6 + $0x1a0] sm:$0xff] %vm1497_vm4, %v2215_v48  ;;  %2712 = vrot.lane.b32.xlu0 %v7133_v26, %s5832_s26 }
 0x2b1   :  { %1911 = vrot.lane.b32.xlu1 %v7367_v30, %s5832_s26  ;;  %1288 = vst.msk [vmem:[#allocation6 + $0x2e8] sm:$0xff] %vm27_vm3, %v1248_v20 }
 0x2b2   :  { %v2455_v52 = vpop.permute.xlu0 %2454 }
 0x2b3   :  { %2557 = vst.msk [vmem:[#allocation6 + $0x1a0] sm:$0xff] %vm1738_vm5, %v2455_v52  ;;  %v1653_v56 = vpop.permute.xlu1 %1652  ;;  %v2949_v13 = vld [vmem:[#allocation6 + $0x188] sm:$0xff] }
 0x2b4   :  { %1756 = vst.msk [vmem:[#allocation6 + $0x198] sm:$0xff] %vm1738_vm5, %v1653_v56  ;;  %2234 = vrot.lane.b32.xlu0 %v7144_v51, %s5830_s17  ;;  %3327 = vmatprep.mubr.f32.mxu1 %v2949_v13 }
 0x2b5   :  { %1431 = vrot.lane.b32.xlu1 %v7050_v28, %s5830_s17 }
 0x2b6   :  { %v2695_v31 = vpop.permute.xlu0 %2694  ;;  %v2948_v30 = vld [vmem:[#allocation6 + $0x180] sm:$0xff] }
 0x2b7   :  { %2797 = vst.msk [vmem:[#allocation6 + $0x1a0] sm:$0xff] %vm1979_vm6, %v2695_v31  ;;  %v1894_v34 = vpop.permute.xlu1 %1893  ;;  %3328 = vmatmul.mubr.f32.gmra.mxu1 %v2948_v30 }
 0x2b8   :  { %1997 = vst.msk [vmem:[#allocation6 + $0x198] sm:$0xff] %vm1979_vm6, %v1894_v34  ;;  %2474 = vrot.lane.b32.xlu0 %v7458_v57, %s5831_s19  ;;  %v2992_v34 = vld [vmem:[#allocation6 + $0x2e0] sm:$0xff] }
 0x2b9   :  { %1672 = vrot.lane.b32.xlu1 %v7089_v17, %s5831_s19 }
 0x2ba   :  { %v2217_v28 = vpop.permute.xlu0 %2216 }
 0x2bb   :  { %2318 = vst.msk [vmem:[#allocation6 + $0x1b8] sm:$0xff] %vm1497_vm4, %v2217_v28  ;;  %v1414_v4 = vpop.permute.xlu1 %1413 }
 0x2bc   :  { %1516 = vst.msk [vmem:[#allocation6 + $0x1b0] sm:$0xff] %vm1497_vm4, %v1414_v4  ;;  %2714 = vrot.lane.b32.xlu0 %v7162_v45, %s5832_s26  ;;  %v2995_v4 = vld [vmem:[#allocation6 + $0x2f8] sm:$0xff] }
 0x2bd   :  { %1913 = vrot.lane.b32.xlu1 %v7398_v46, %s5832_s26  ;;  %v2989_v46 = vld [vmem:[#allocation6 + $0x2c8] sm:$0xff] }
 0x2be   :  { %v2457_v60 = vpop.permute.xlu0 %2456  ;;  %v2952_v61 = vld [vmem:[#allocation6 + $0x1a0] sm:$0xff]  ;;  %5702 = vmatmul.mubr.msk.f32.gmra.mxu0 %vm27_vm3, %v2989_v46 }
 0x2bf   :  { %2558 = vst.msk [vmem:[#allocation6 + $0x1b8] sm:$0xff] %vm1738_vm5, %v2457_v60  ;;  %v1655_v24 = vpop.permute.xlu1 %1654  ;;  %3332 = vmatprep.mubr.f32.mxu1 %v2952_v61  ;;  %v2951_v17 = vld [vmem:[#allocation6 + $0x198] sm:$0xff]  ;;  %5704 = vmatprep.mubr.msk.f32.mxu0 %vm27_vm3, %v2992_v34 }
 0x2c0   :  { %1757 = vst.msk [vmem:[#allocation6 + $0x1b0] sm:$0xff] %vm1738_vm5, %v1655_v24  ;;  %2236 = vrot.lane.b32.xlu0 %v7172_v15, %s5830_s17  ;;  %3333 = vmatmul.mubr.f32.gmra.mxu1 %v2951_v17 }
 0x2c1   :  { %1433 = vrot.lane.b32.xlu1 %v7079_v16, %s5830_s17  ;;  %v7497_v16 = vld [vmem:[#allocation5 + $0x108] sm:$0xff] }
 0x2c2   :  { %v2697_v35 = vpop.permute.xlu0 %2696  ;;  %5705 = vmatmul.mubr.msk.f32.gmra.mxu0 %vm27_vm3, %v2995_v4 }
 0x2c3   :  { %2798 = vst.msk [vmem:[#allocation6 + $0x1b8] sm:$0xff] %vm1979_vm6, %v2697_v35  ;;  %v1896_v63 = vpop.permute.xlu1 %1895 }
 0x2c4   :  { %1998 = vst.msk [vmem:[#allocation6 + $0x1b0] sm:$0xff] %vm1979_vm6, %v1896_v63  ;;  %2476 = vrot.lane.b32.xlu0 %v7483_v25, %s5831_s19 }
 0x2c5   :  { %1674 = vrot.lane.b32.xlu1 %v7118_v40, %s5831_s19  ;;  %v1247_v40 = vld [vmem:[#allocation5 + $0xf7] sm:$0xff] }
 0x2c6   :  { %v2219_v42 = vpop.permute.xlu0 %2218  ;;  %1287 = vst.msk [vmem:[#allocation6 + $0x2d0] sm:$0xff] %vm27_vm3, %v1247_v40 }
 0x2c7   :  { %2319 = vst.msk [vmem:[#allocation6 + $0x1d0] sm:$0xff] %vm1497_vm4, %v2219_v42  ;;  %v1416_v7 = vpop.permute.xlu1 %1415 }
 0x2c8   :  { %1517 = vst.msk [vmem:[#allocation6 + $0x1c8] sm:$0xff] %vm1497_vm4, %v1416_v7  ;;  %2716 = vrot.lane.b32.xlu0 %v7497_v16, %s5832_s26 }
 0x2c9   :  { %1915 = vrot.lane.b32.xlu1 %v7427_v10, %s5832_s26 }
 0x2ca   :  { %v2459_v9 = vpop.permute.xlu0 %2458  ;;  %v2955_v22 = vld [vmem:[#allocation6 + $0x1b8] sm:$0xff] }
 0x2cb   :  { %2559 = vst.msk [vmem:[#allocation6 + $0x1d0] sm:$0xff] %vm1738_vm5, %v2459_v9  ;;  %v1657_v43 = vpop.permute.xlu1 %1656  ;;  %3337 = vmatprep.mubr.f32.mxu1 %v2955_v22  ;;  %v2954_v44 = vld [vmem:[#allocation6 + $0x1b0] sm:$0xff]  ;;  %v5664_v9 = vpop.f32.mrf.mxu0 }
 0x2cc   :  { %1758 = vst.msk [vmem:[#allocation6 + $0x1c8] sm:$0xff] %vm1738_vm5, %v1657_v43  ;;  %2238 = vrot.lane.b32.xlu0 %v7195_v6, %s5830_s17  ;;  %3338 = vmatmul.mubr.f32.gmra.mxu1 %v2954_v44 }
 0x2cd   :  { %1435 = vrot.lane.b32.xlu1 %v7108_v39, %s5830_s17  ;;  %v7530_v39 = vld [vmem:[%s8554_s4] ss:$0 sm:$0xff]  ;;  %v3524_v43 = vpop.f32.mrf.mxu0 }
 0x2ce   :  { %v2699_v10 = vpop.permute.xlu0 %2698 }
 0x2cf   :  { %2799 = vst.msk [vmem:[#allocation6 + $0x1d0] sm:$0xff] %vm1979_vm6, %v2699_v10  ;;  %v1898_v53 = vpop.permute.xlu1 %1897 }
 0x2d0   :  { %1999 = vst.msk [vmem:[#allocation6 + $0x1c8] sm:$0xff] %vm1979_vm6, %v1898_v53  ;;  %2478 = vrot.lane.b32.xlu0 %v7513_v23, %s5831_s19 }
 0x2d1   :  { %1676 = vrot.lane.b32.xlu1 %v7144_v51, %s5831_s19 }
 0x2d2   :  { %v2221_v11 = vpop.permute.xlu0 %2220 }
 0x2d3   :  { %2320 = vst.msk [vmem:[#allocation6 + $0x1e8] sm:$0xff] %vm1497_vm4, %v2221_v11  ;;  %v1418_v41 = vpop.permute.xlu1 %1417 }
 0x2d4   :  { %1518 = vst.msk [vmem:[#allocation6 + $0x1e0] sm:$0xff] %vm1497_vm4, %v1418_v41  ;;  %2718 = vrot.lane.b32.xlu0 %v7212_v50, %s5832_s26 }
 0x2d5   :  { %1917 = vrot.lane.b32.xlu1 %v7458_v57, %s5832_s26  ;;  %v7540_v57 = vld [vmem:[#allocation5 + $0x117] sm:$0xff] }
 0x2d6   :  { %v2461_v55 = vpop.permute.xlu0 %2460  ;;  %v2958_v51 = vld [vmem:[#allocation6 + $0x1d0] sm:$0xff] }
 0x2d7   :  { %2560 = vst.msk [vmem:[#allocation6 + $0x1e8] sm:$0xff] %vm1738_vm5, %v2461_v55  ;;  %v1659_v48 = vpop.permute.xlu1 %1658  ;;  %v3249_v52 = vpop.f32.mrf.mxu1  ;;  %3342 = vmatprep.mubr.f32.mxu1 %v2958_v51  ;;  %v2957_v0 = vld [vmem:[#allocation6 + $0x1c8] sm:$0xff] }
 0x2d8   :  { %1759 = vst.msk [vmem:[#allocation6 + $0x1e0] sm:$0xff] %vm1738_vm5, %v1659_v48  ;;  %v3250_v56 = vadd.f32 %v7530_v39, %v3249_v52  ;;  %2240 = vrot.lane.b32.xlu0 %v7223_v37, %s5830_s17  ;;  %3343 = vmatmul.mubr.f32.gmra.mxu1 %v2957_v0  ;;  %v1250_v48 = vld [vmem:[#allocation5 + $0x10f] sm:$0xff] }
 0x2d9   :  { %1437 = vrot.lane.b32.xlu1 %v7133_v26, %s5830_s17  ;;  %v3251_v13 = vpop.f32.mrf.mxu1  ;;  %1290 = vst.msk [vmem:[#allocation6 + $0x318] sm:$0xff] %vm27_vm3, %v1250_v48  ;;  %v3007_v48 = vld [vmem:[#allocation6 + $0x358] sm:$0xff] }
 0x2da   :  { %v3515_v31 = vadd.f32 %v3514_v29, %v3250_v56  ;;  %v2701_v30 = vpop.permute.xlu0 %2700  ;;  %v2998_v56 = vld [vmem:[#allocation6 + $0x310] sm:$0xff] }
 0x2db   :  { %2800 = vst.msk [vmem:[#allocation6 + $0x1e8] sm:$0xff] %vm1979_vm6, %v2701_v30  ;;  %v1900_v28 = vpop.permute.xlu1 %1899  ;;  %5707 = vmatprep.mubr.msk.f32.mxu0 %vm27_vm3, %v2998_v56 }
 0x2dc   :  { %v3713_v60 = vmax.f32 %v3515_v31, 0.0  ;;  %2000 = vst.msk [vmem:[#allocation6 + $0x1e0] sm:$0xff] %vm1979_vm6, %v1900_v28  ;;  %2480 = vrot.lane.b32.xlu0 %v7540_v57, %s5831_s19  ;;  %v3001_v31 = vld [vmem:[#allocation6 + $0x328] sm:$0xff] }
 0x2dd   :  { %1678 = vrot.lane.b32.xlu1 %v7172_v15, %s5831_s19  ;;  %5708 = vmatmul.mubr.msk.f32.gmra.mxu0 %vm27_vm3, %v3001_v31 }
 0x2de   :  { %3753 = vst.msk [vmem:[#allocation7] sm:$0xff] %vm74_vm0, %v3713_v60  ;;  %v2223_v26 = vpop.permute.xlu0 %2222 }
 0x2df   :  { %2321 = vst.msk [vmem:[#allocation6 + $0x200] sm:$0xff] %vm1497_vm4, %v2223_v26  ;;  %v1420_v61 = vpop.permute.xlu1 %1419 }
 0x2e0   :  { %1519 = vst.msk [vmem:[#allocation6 + $0x1f8] sm:$0xff] %vm1497_vm4, %v1420_v61  ;;  %2720 = vrot.lane.b32.xlu0 %v7240_v3, %s5832_s26  ;;  %v3254_v36 = vpop.f32.mrf.mxu1 }
 0x2e1   :  { %v3255_v24 = vadd.f32 %v7530_v39, %v3254_v36  ;;  %1919 = vrot.lane.b32.xlu1 %v7483_v25, %s5832_s26  ;;  %v7565_v25 = vld [vmem:[#allocation5 + $0x11f] sm:$0xff] }
 0x2e2   :  { %v2463_v17 = vpop.permute.xlu0 %2462  ;;  %v3256_v35 = vpop.f32.mrf.mxu1  ;;  %v2961_v15 = vld [vmem:[#allocation6 + $0x1e8] sm:$0xff] }
 0x2e3   :  { %v3520_v63 = vadd.f32 %v5661_v12, %v3255_v24  ;;  %2561 = vst.msk [vmem:[#allocation6 + $0x200] sm:$0xff] %vm1738_vm5, %v2463_v17  ;;  %v1661_v46 = vpop.permute.xlu1 %1660  ;;  %3347 = vmatprep.mubr.f32.mxu1 %v2961_v15  ;;  %v2960_v42 = vld [vmem:[#allocation6 + $0x1e0] sm:$0xff]  ;;  %v5667_v24 = vpop.f32.mrf.mxu0 }
 0x2e4   :  { %1760 = vst.msk [vmem:[#allocation6 + $0x1f8] sm:$0xff] %vm1738_vm5, %v1661_v46  ;;  %2242 = vrot.lane.b32.xlu0 %v7253_v14, %s5830_s17  ;;  %3348 = vmatmul.mubr.f32.gmra.mxu1 %v2960_v42  ;;  %v1251_v17 = vld [vmem:[#allocation5 + $0x117] sm:$0xff] }
 0x2e5   :  { %v3714_v7 = vmax.f32 %v3520_v63, 0.0  ;;  %1439 = vrot.lane.b32.xlu1 %v7162_v45, %s5830_s17  ;;  %1291 = vst.msk [vmem:[#allocation6 + $0x330] sm:$0xff] %vm27_vm3, %v1251_v17  ;;  %v3534_v5 = vpop.f32.mrf.mxu0 }
 0x2e6   :  { %v2703_v21 = vpop.permute.xlu0 %2702 }
 0x2e7   :  { %3754 = vst.msk [vmem:[#allocation7 + $0x8] sm:$0xff] %vm74_vm0, %v3714_v7  ;;  %v1902_v22 = vpop.permute.xlu1 %1901  ;;  %v5670_v31 = vpop.f32.mrf.mxu0 }
 0x2e8   :  { %2801 = vst.msk [vmem:[#allocation6 + $0x200] sm:$0xff] %vm1979_vm6, %v2703_v21  ;;  %2001 = vst.msk [vmem:[#allocation6 + $0x1f8] sm:$0xff] %vm1979_vm6, %v1902_v22  ;;  %2482 = vrot.lane.b32.xlu0 %v7565_v25, %s5831_s19 }
 0x2e9   :  { %1680 = vrot.lane.b32.xlu1 %v7195_v6, %s5831_s19 }
 0x2ea   :  { %v2225_v40 = vpop.permute.xlu0 %2224 }
 0x2eb   :  { %2322 = vst.msk [vmem:[#allocation6 + $0x218] sm:$0xff] %vm1497_vm4, %v2225_v40  ;;  %v1422_v45 = vpop.permute.xlu1 %1421  ;;  %v3259_v44 = vpop.f32.mrf.mxu1 }
 0x2ec   :  { %1520 = vst.msk [vmem:[#allocation6 + $0x210] sm:$0xff] %vm1497_vm4, %v1422_v45  ;;  %v3260_v10 = vadd.f32 %v7530_v39, %v3259_v44  ;;  %2722 = vrot.lane.b32.xlu0 %v7269_v2, %s5832_s26 }
 0x2ed   :  { %1921 = vrot.lane.b32.xlu1 %v7513_v23, %s5832_s26  ;;  %v3261_v53 = vpop.f32.mrf.mxu1  ;;  %v7589_v23 = vld [vmem:[#allocation5 + $0x127] sm:$0xff] }
 0x2ee   :  { %v3793_v11 = vld [vmem:[#allocation7] ss:$2 sm:$0xff]  ;;  %v3833_v12 = vld [vmem:[#allocation7 + $0x1] ss:$2 sm:$0xff]  ;;  %v3525_v6 = vadd.f32 %v3524_v43, %v3260_v10  ;;  %v2465_v41 = vpop.permute.xlu0 %2464 }
 0x2ef   :  { %v2964_v55 = vld [vmem:[#allocation6 + $0x200] sm:$0xff]  ;;  %v3872_v51 = vmax.f32 %v3793_v11, %v3833_v12  ;;  %2562 = vst.msk [vmem:[#allocation6 + $0x218] sm:$0xff] %vm1738_vm5, %v2465_v41  ;;  %v1663_v29 = vpop.permute.xlu1 %1662  ;;  %v2963_v20 = vld [vmem:[#allocation6 + $0x1f8] sm:$0xff]  ;;  %v1252_v10 = vld [vmem:[#allocation5 + $0x11f] sm:$0xff] }
 0x2f0   :  { %3352 = vmatprep.mubr.f32.mxu1 %v2964_v55  ;;  %v3715_v52 = vmax.f32 %v3525_v6, 0.0  ;;  %1761 = vst.msk [vmem:[#allocation6 + $0x210] sm:$0xff] %vm1738_vm5, %v1663_v29  ;;  %2244 = vrot.lane.b32.xlu0 %v7282_v19, %s5830_s17  ;;  %v7640_v6 = vld [vmem:[#allocation5 + $0x137] sm:$0xff] }
 0x2f1   :  { %3353 = vmatmul.mubr.f32.gmra.mxu1 %v2963_v20  ;;  %3892 = vst.msk [vmem:[#allocation8] sm:$0xff] %vm74_vm0, %v3872_v51  ;;  %1441 = vrot.lane.b32.xlu1 %v7497_v16, %s5830_s17  ;;  %v3004_v51 = vld [vmem:[#allocation6 + $0x340] sm:$0xff] }
 0x2f2   :  { %3755 = vst.msk [vmem:[#allocation7 + $0x10] sm:$0xff] %vm74_vm0, %v3715_v52  ;;  %v2705_v0 = vpop.permute.xlu0 %2704  ;;  %5710 = vmatprep.mubr.msk.f32.mxu0 %vm27_vm3, %v3004_v51 }
 0x2f3   :  { %2802 = vst.msk [vmem:[#allocation6 + $0x218] sm:$0xff] %vm1979_vm6, %v2705_v0  ;;  %v1904_v13 = vpop.permute.xlu1 %1903  ;;  %5711 = vmatmul.mubr.msk.f32.gmra.mxu0 %vm27_vm3, %v3007_v48 }
 0x2f4   :  { %2002 = vst.msk [vmem:[#allocation6 + $0x210] sm:$0xff] %vm1979_vm6, %v1904_v13  ;;  %2484 = vrot.lane.b32.xlu0 %v7589_v23, %s5831_s19  ;;  %v3264_v30 = vpop.f32.mrf.mxu1 }
 0x2f5   :  { %v3265_v16 = vadd.f32 %v7530_v39, %v3264_v30  ;;  %1682 = vrot.lane.b32.xlu1 %v7223_v37, %s5831_s19  ;;  %1292 = vst.msk [vmem:[#allocation6 + $0x348] sm:$0xff] %vm27_vm3, %v1252_v10 }
 0x2f6   :  { %v2227_v34 = vpop.permute.xlu0 %2226  ;;  %v3266_v28 = vpop.f32.mrf.mxu1 }
 0x2f7   :  { %v3530_v4 = vadd.f32 %v5664_v9, %v3265_v16  ;;  %2323 = vst.msk [vmem:[#allocation6 + $0x230] sm:$0xff] %vm1497_vm4, %v2227_v34  ;;  %v1424_v60 = vpop.permute.xlu1 %1423  ;;  %v1253_v28 = vld [vmem:[#allocation5 + $0x127] sm:$0xff] }
 0x2f8   :  { %1521 = vst.msk [vmem:[#allocation6 + $0x228] sm:$0xff] %vm1497_vm4, %v1424_v60  ;;  %2724 = vrot.lane.b32.xlu0 %v7299_v47, %s5832_s26  ;;  %v3912_v52 = vld [vmem:[#allocation8] sm:$0xff] }
 0x2f9   :  { %v3716_v26 = vmax.f32 %v3530_v4, 0.0  ;;  %1923 = vrot.lane.b32.xlu1 %v7540_v57, %s5832_s26  ;;  %v7615_v57 = vld [vmem:[#allocation5 + $0x12f] sm:$0xff]  ;;  %1293 = vst.msk [vmem:[#allocation6 + $0x360] sm:$0xff] %vm27_vm3, %v1253_v28 }
 0x2fa   :  { %v2467_v61 = vpop.permute.xlu0 %2466  ;;  %v2967_v36 = vld [vmem:[#allocation6 + $0x218] sm:$0xff] }
 0x2fb   :  { %3756 = vst.msk [vmem:[#allocation7 + $0x18] sm:$0xff] %vm74_vm0, %v3716_v26  ;;  %v1665_v37 = vpop.permute.xlu1 %1664  ;;  %3357 = vmatprep.mubr.f32.mxu1 %v2967_v36  ;;  %v2966_v35 = vld [vmem:[#allocation6 + $0x210] sm:$0xff] }
 0x2fc   :  { %2563 = vst.msk [vmem:[#allocation6 + $0x230] sm:$0xff] %vm1738_vm5, %v2467_v61  ;;  %1762 = vst.msk [vmem:[#allocation6 + $0x228] sm:$0xff] %vm1738_vm5, %v1665_v37  ;;  %2246 = vrot.lane.b32.xlu0 %v7312_v54, %s5830_s17  ;;  %3358 = vmatmul.mubr.f32.gmra.mxu1 %v2966_v35  ;;  %v7669_v36 = vld [vmem:[#allocation5 + $0x13f] sm:$0xff] }
 0x2fd   :  { %1443 = vrot.lane.b32.xlu1 %v7212_v50, %s5830_s17 }
 0x2fe   :  { %v2707_v15 = vpop.permute.xlu0 %2706 }
 0x2ff   :  { %2803 = vst.msk [vmem:[#allocation6 + $0x230] sm:$0xff] %vm1979_vm6, %v2707_v15  ;;  %v1906_v63 = vpop.permute.xlu1 %1905  ;;  %v3269_v46 = vpop.f32.mrf.mxu1 }
 0x300   :  { %2003 = vst.msk [vmem:[#allocation6 + $0x228] sm:$0xff] %vm1979_vm6, %v1906_v63  ;;  %v3270_v42 = vadd.f32 %v7530_v39, %v3269_v46  ;;  %2486 = vrot.lane.b32.xlu0 %v7615_v57, %s5831_s19 }
 0x301   :  { %1684 = vrot.lane.b32.xlu1 %v7253_v14, %s5831_s19  ;;  %v3271_v7 = vpop.f32.mrf.mxu1 }
 0x302   :  { %v3795_v50 = vld [vmem:[#allocation7 + $0x10] ss:$2 sm:$0xff]  ;;  %v3835_v21 = vld [vmem:[#allocation7 + $0x11] ss:$2 sm:$0xff]  ;;  %v3535_v9 = vadd.f32 %v3534_v5, %v3270_v42  ;;  %v2229_v22 = vpop.permute.xlu0 %2228 }
 0x303   :  { %v3873_v40 = vmax.f32 %v3795_v50, %v3835_v21  ;;  %2324 = vst.msk [vmem:[#allocation6 + $0x248] sm:$0xff] %vm1497_vm4, %v2229_v22  ;;  %v1426_v43 = vpop.permute.xlu1 %1425 }
 0x304   :  { %v3717_v45 = vmax.f32 %v3535_v9, 0.0  ;;  %1522 = vst.msk [vmem:[#allocation6 + $0x240] sm:$0xff] %vm1497_vm4, %v1426_v43  ;;  %2726 = vrot.lane.b32.xlu0 %v7330_v27, %s5832_s26  ;;  %v1254_v9 = vld [vmem:[#allocation5 + $0x12f] sm:$0xff] }
 0x305   :  { %3893 = vst.msk [vmem:[#allocation8 + $0x8] sm:$0xff] %vm74_vm0, %v3873_v40  ;;  %1925 = vrot.lane.b32.xlu1 %v7565_v25, %s5832_s26 }
 0x306   :  { %3757 = vst.msk [vmem:[#allocation7 + $0x20] sm:$0xff] %vm74_vm0, %v3717_v45  ;;  %v2469_v14 = vpop.permute.xlu0 %2468  ;;  %v2970_v44 = vld [vmem:[#allocation6 + $0x230] sm:$0xff] }
 0x307   :  { %2564 = vst.msk [vmem:[#allocation6 + $0x248] sm:$0xff] %vm1738_vm5, %v2469_v14  ;;  %v1667_v53 = vpop.permute.xlu1 %1666  ;;  %3362 = vmatprep.mubr.f32.mxu1 %v2970_v44  ;;  %v2969_v11 = vld [vmem:[#allocation6 + $0x228] sm:$0xff]  ;;  %v7697_v44 = vld [vmem:[#allocation5 + $0x147] sm:$0xff] }
 0x308   :  { %1763 = vst.msk [vmem:[#allocation6 + $0x240] sm:$0xff] %vm1738_vm5, %v1667_v53  ;;  %2248 = vrot.lane.b32.xlu0 %v7342_v59, %s5830_s17  ;;  %v3274_v12 = vpop.f32.mrf.mxu1  ;;  %3363 = vmatmul.mubr.f32.gmra.mxu1 %v2969_v11  ;;  %v3010_v11 = vld [vmem:[#allocation6 + $0x370] sm:$0xff] }
 0x309   :  { %v3275_v25 = vadd.f32 %v7530_v39, %v3274_v12  ;;  %1445 = vrot.lane.b32.xlu1 %v7240_v3, %s5830_s17  ;;  %1294 = vst.msk [vmem:[#allocation6 + $0x378] sm:$0xff] %vm27_vm3, %v1254_v9  ;;  %5713 = vmatprep.mubr.msk.f32.mxu0 %vm27_vm3, %v3010_v11 }
 0x30a   :  { %v2709_v41 = vpop.permute.xlu0 %2708  ;;  %v3276_v55 = vpop.f32.mrf.mxu1 }
 0x30b   :  { %v3540_v29 = vadd.f32 %v5667_v24, %v3275_v25  ;;  %2804 = vst.msk [vmem:[#allocation6 + $0x248] sm:$0xff] %vm1979_vm6, %v2709_v41  ;;  %v1908_v20 = vpop.permute.xlu1 %1907  ;;  %v3013_v25 = vld [vmem:[#allocation6 + $0x388] sm:$0xff] }
 0x30c   :  { %v7644_v0 = vld [vmem:[#allocation8 + $0x8] sm:$0xff]  ;;  %2004 = vst.msk [vmem:[#allocation6 + $0x240] sm:$0xff] %vm1979_vm6, %v1908_v20  ;;  %2488 = vrot.lane.b32.xlu0 %v7640_v6, %s5831_s19  ;;  %5714 = vmatmul.mubr.msk.f32.gmra.mxu0 %vm27_vm3, %v3013_v25 }
 0x30d   :  { %v3933_v3 = vmax.f32 %v3912_v52, %v7644_v0  ;;  %v3718_v56 = vmax.f32 %v3540_v29, 0.0  ;;  %1686 = vrot.lane.b32.xlu1 %v7282_v19, %s5831_s19  ;;  %v3544_v19 = vpop.f32.mrf.mxu0 }
 0x30e   :  { %v2231_v13 = vpop.permute.xlu0 %2230 }
 0x30f   :  { %3953 = vst.msk [vmem:[#allocation9] sm:$0xff] %vm74_vm0, %v3933_v3  ;;  %3758 = vst.msk [vmem:[#allocation7 + $0x28] sm:$0xff] %vm74_vm0, %v3718_v56  ;;  %v1428_v30 = vpop.permute.xlu1 %1427  ;;  %v5673_v53 = vpop.f32.mrf.mxu0 }
 0x310   :  { %2325 = vst.msk [vmem:[#allocation6 + $0x260] sm:$0xff] %vm1497_vm4, %v2231_v13  ;;  %1523 = vst.msk [vmem:[#allocation6 + $0x258] sm:$0xff] %vm1497_vm4, %v1428_v30  ;;  %2728 = vrot.lane.b32.xlu0 %v7359_v62, %s5832_s26  ;;  %v1255_v30 = vld [vmem:[#allocation5 + $0x137] sm:$0xff] }
 0x311   :  { %1927 = vrot.lane.b32.xlu1 %v7589_v23, %s5832_s26  ;;  %v3554_v41 = vpop.f32.mrf.mxu0  ;;  %1295 = vst.msk [vmem:[#allocation6 + $0x390] sm:$0xff] %vm27_vm3, %v1255_v30 }
 0x312   :  { %v2471_v16 = vpop.permute.xlu0 %2470  ;;  %v2973_v34 = vld [vmem:[#allocation6 + $0x248] sm:$0xff] }
 0x313   :  { %2565 = vst.msk [vmem:[#allocation6 + $0x260] sm:$0xff] %vm1738_vm5, %v2471_v16  ;;  %v1669_v4 = vpop.permute.xlu1 %1668  ;;  %v3279_v60 = vpop.f32.mrf.mxu1  ;;  %3367 = vmatprep.mubr.f32.mxu1 %v2973_v34  ;;  %v2972_v26 = vld [vmem:[#allocation6 + $0x240] sm:$0xff] }
 0x314   :  { %1764 = vst.msk [vmem:[#allocation6 + $0x258] sm:$0xff] %vm1738_vm5, %v1669_v4  ;;  %v3280_v61 = vadd.f32 %v7530_v39, %v3279_v60  ;;  %2250 = vrot.lane.b32.xlu0 %v7371_v18, %s5830_s17  ;;  %3368 = vmatmul.mubr.f32.gmra.mxu1 %v2972_v26  ;;  %v2858_v60 = vld [vmem:[#allocation5 + $0x159] sm:$0xff] }
 0x315   :  { %1447 = vrot.lane.b32.xlu1 %v7269_v2, %s5830_s17  ;;  %v3281_v23 = vpop.f32.mrf.mxu1  ;;  %2898 = vst.msk [vmem:[#allocation6 + $0x3a0] sm:$0xff] %vm27_vm3, %v2858_v60 }
 0x316   :  { %v3797_v24 = vld [vmem:[#allocation7 + $0x20] ss:$2 sm:$0xff]  ;;  %v3837_v17 = vld [vmem:[#allocation7 + $0x21] ss:$2 sm:$0xff]  ;;  %v3545_v37 = vadd.f32 %v3544_v19, %v3280_v61  ;;  %v2711_v35 = vpop.permute.xlu0 %2710  ;;  %v2859_v23 = vld [vmem:[#allocation5 + $0x161] sm:$0xff] }
 0x317   :  { %v3874_v15 = vmax.f32 %v3797_v24, %v3837_v17  ;;  %2805 = vst.msk [vmem:[#allocation6 + $0x260] sm:$0xff] %vm1979_vm6, %v2711_v35  ;;  %v1910_v5 = vpop.permute.xlu1 %1909 }
 0x318   :  { %v3719_v63 = vmax.f32 %v3545_v37, 0.0  ;;  %2005 = vst.msk [vmem:[#allocation6 + $0x258] sm:$0xff] %vm1979_vm6, %v1910_v5  ;;  %2490 = vrot.lane.b32.xlu0 %v7669_v36, %s5831_s19  ;;  %v1256_v5 = vld [vmem:[#allocation5 + $0x13f] sm:$0xff] }
 0x319   :  { %3894 = vst.msk [vmem:[#allocation8 + $0x10] sm:$0xff] %vm74_vm0, %v3874_v15  ;;  %1688 = vrot.lane.b32.xlu1 %v7312_v54, %s5831_s19  ;;  %v5676_v15 = vpop.f32.mrf.mxu0 }
 0x31a   :  { %3759 = vst.msk [vmem:[#allocation7 + $0x30] sm:$0xff] %vm74_vm0, %v3719_v63  ;;  %v2233_v2 = vpop.permute.xlu0 %2232 }
 0x31b   :  { %2326 = vst.msk [vmem:[#allocation6 + $0x278] sm:$0xff] %vm1497_vm4, %v2233_v2  ;;  %v1430_v46 = vpop.permute.xlu1 %1429 }
 0x31c   :  { %1524 = vst.msk [vmem:[#allocation6 + $0x270] sm:$0xff] %vm1497_vm4, %v1430_v46  ;;  %2730 = vrot.lane.b32.xlu0 %v7389_v33, %s5832_s26  ;;  %v3284_v42 = vpop.f32.mrf.mxu1  ;;  %v3564_v46 = vpop.f32.mrf.mxu0 }
 0x31d   :  { %v3285_v7 = vadd.f32 %v7530_v39, %v3284_v42  ;;  %1929 = vrot.lane.b32.xlu1 %v7615_v57, %s5832_s26  ;;  %2899 = vst.msk [vmem:[#allocation6 + $0x3b8] sm:$0xff] %vm27_vm3, %v2859_v23  ;;  %1296 = vst.msk [vmem:[#allocation6 + $0x3a8] sm:$0xff] %vm27_vm3, %v1256_v5  ;;  %v3016_v42 = vld [vmem:[#allocation6 + $0x3a0] sm:$0xff] }
 0x31e   :  { %v2473_v50 = vpop.permute.xlu0 %2472  ;;  %v3286_v21 = vpop.f32.mrf.mxu1  ;;  %v2976_v54 = vld [vmem:[#allocation6 + $0x260] sm:$0xff]  ;;  %5716 = vmatprep.mubr.msk.f32.mxu0 %vm27_vm3, %v3016_v42 }
 0x31f   :  { %v3550_v22 = vadd.f32 %v5670_v31, %v3285_v7  ;;  %2566 = vst.msk [vmem:[#allocation6 + $0x278] sm:$0xff] %vm1738_vm5, %v2473_v50  ;;  %v1671_v40 = vpop.permute.xlu1 %1670  ;;  %3372 = vmatprep.mubr.f32.mxu1 %v2976_v54  ;;  %v2975_v43 = vld [vmem:[#allocation6 + $0x258] sm:$0xff] }
 0x320   :  { %v7688_v45 = vld [vmem:[#allocation8 + $0x10] sm:$0xff]  ;;  %1765 = vst.msk [vmem:[#allocation6 + $0x270] sm:$0xff] %vm1738_vm5, %v1671_v40  ;;  %2252 = vrot.lane.b32.xlu0 %v7401_v8, %s5830_s17  ;;  %3373 = vmatmul.mubr.f32.gmra.mxu1 %v2975_v43 }
 0x321   :  { %v3934_v57 = vmax.f32 %v7644_v0, %v7688_v45  ;;  %v3720_v14 = vmax.f32 %v3550_v22, 0.0  ;;  %1449 = vrot.lane.b32.xlu1 %v7299_v47, %s5830_s17 }
 0x322   :  { %v2713_v10 = vpop.permute.xlu0 %2712 }
 0x323   :  { %3954 = vst.msk [vmem:[#allocation9 + $0x8] sm:$0xff] %vm74_vm0, %v3934_v57  ;;  %3760 = vst.msk [vmem:[#allocation7 + $0x38] sm:$0xff] %vm74_vm0, %v3720_v14  ;;  %v1912_v12 = vpop.permute.xlu1 %1911 }
 0x324   :  { %2806 = vst.msk [vmem:[#allocation6 + $0x278] sm:$0xff] %vm1979_vm6, %v2713_v10  ;;  %2006 = vst.msk [vmem:[#allocation6 + $0x270] sm:$0xff] %vm1979_vm6, %v1912_v12  ;;  %2492 = vrot.lane.b32.xlu0 %v7697_v44, %s5831_s19  ;;  %v3019_v21 = vld [vmem:[#allocation6 + $0x3b8] sm:$0xff] }
 0x325   :  { %1690 = vrot.lane.b32.xlu1 %v7342_v59, %s5831_s19  ;;  %5717 = vmatmul.mubr.msk.f32.gmra.mxu0 %vm27_vm3, %v3019_v21 }
 0x326   :  { %v2235_v47 = vpop.permute.xlu0 %2234 }
 0x327   :  { %2327 = vst.msk [vmem:[#allocation6 + $0x290] sm:$0xff] %vm1497_vm4, %v2235_v47  ;;  %v1432_v55 = vpop.permute.xlu1 %1431  ;;  %v3289_v51 = vpop.f32.mrf.mxu1 }
 0x328   :  { %1525 = vst.msk [vmem:[#allocation6 + $0x288] sm:$0xff] %vm1497_vm4, %v1432_v55  ;;  %v3290_v29 = vadd.f32 %v7530_v39, %v3289_v51  ;;  %2732 = vrot.lane.b32.xlu0 %v7418_v1, %s5832_s26  ;;  %v7724_v1 = vld [vmem:[#allocation5 + $0x14f] sm:$0xff] }
 0x329   :  { %1931 = vrot.lane.b32.xlu1 %v7640_v6, %s5832_s26  ;;  %v3291_v20 = vpop.f32.mrf.mxu1 }
 0x32a   :  { %v3799_v48 = vld [vmem:[#allocation7 + $0x30] ss:$2 sm:$0xff]  ;;  %v3839_v52 = vld [vmem:[#allocation7 + $0x31] ss:$2 sm:$0xff]  ;;  %v3555_v59 = vadd.f32 %v3554_v41, %v3290_v29  ;;  %v2475_v0 = vpop.permute.xlu0 %2474 }
 0x32b   :  { %v2979_v3 = vld [vmem:[#allocation6 + $0x278] sm:$0xff]  ;;  %v3875_v56 = vmax.f32 %v3799_v48, %v3839_v52  ;;  %2567 = vst.msk [vmem:[#allocation6 + $0x290] sm:$0xff] %vm1738_vm5, %v2475_v0  ;;  %v1673_v13 = vpop.permute.xlu1 %1672  ;;  %v2978_v31 = vld [vmem:[#allocation6 + $0x270] sm:$0xff]  ;;  %v5679_v52 = vpop.f32.mrf.mxu0 }
 0x32c   :  { %3377 = vmatprep.mubr.f32.mxu1 %v2979_v3  ;;  %v3721_v16 = vmax.f32 %v3555_v59, 0.0  ;;  %1766 = vst.msk [vmem:[#allocation6 + $0x288] sm:$0xff] %vm1738_vm5, %v1673_v13  ;;  %2254 = vrot.lane.b32.xlu0 %v7431_v38, %s5830_s17  ;;  %v2619_v48 = vld [vmem:[#allocation5 + $0x160] sm:$0xff] }
 0x32d   :  { %3378 = vmatmul.mubr.f32.gmra.mxu1 %v2978_v31  ;;  %3895 = vst.msk [vmem:[#allocation8 + $0x18] sm:$0xff] %vm74_vm0, %v3875_v56  ;;  %1451 = vrot.lane.b32.xlu1 %v7330_v27, %s5830_s17 }
 0x32e   :  { %3761 = vst.msk [vmem:[#allocation7 + $0x40] sm:$0xff] %vm74_vm0, %v3721_v16  ;;  %v2715_v6 = vpop.permute.xlu0 %2714 }
 0x32f   :  { %2807 = vst.msk [vmem:[#allocation6 + $0x290] sm:$0xff] %vm1979_vm6, %v2715_v6  ;;  %v1914_v34 = vpop.permute.xlu1 %1913 }
 0x330   :  { %2007 = vst.msk [vmem:[#allocation6 + $0x288] sm:$0xff] %vm1979_vm6, %v1914_v34  ;;  %2494 = vrot.lane.b32.xlu0 %v7724_v1, %s5831_s19  ;;  %v3294_v19 = vpop.f32.mrf.mxu1 }
 0x331   :  { %v3295_v28 = vadd.f32 %v7530_v39, %v3294_v19  ;;  %1692 = vrot.lane.b32.xlu1 %v7371_v18, %s5831_s19 }
 0x332   :  { %v2237_v27 = vpop.permute.xlu0 %2236  ;;  %v3296_v4 = vpop.f32.mrf.mxu1 }
 0x333   :  { %v3560_v26 = vadd.f32 %v5673_v53, %v3295_v28  ;;  %2328 = vst.msk [vmem:[#allocation6 + $0x2a8] sm:$0xff] %vm1497_vm4, %v2237_v27  ;;  %v1434_v61 = vpop.permute.xlu1 %1433 }
 0x334   :  { %v7736_v24 = vld [vmem:[#allocation8 + $0x18] sm:$0xff]  ;;  %1526 = vst.msk [vmem:[#allocation6 + $0x2a0] sm:$0xff] %vm1497_vm4, %v1434_v61  ;;  %2734 = vrot.lane.b32.xlu0 %v7449_v58, %s5832_s26 }
 0x335   :  { %v3935_v18 = vmax.f32 %v7688_v45, %v7736_v24  ;;  %v3722_v17 = vmax.f32 %v3560_v26, 0.0  ;;  %1933 = vrot.lane.b32.xlu1 %v7669_v36, %s5832_s26  ;;  %v2378_v36 = vld [vmem:[#allocation5 + $0x157] sm:$0xff] }
 0x336   :  { %v2477_v37 = vpop.permute.xlu0 %2476  ;;  %v2982_v35 = vld [vmem:[#allocation6 + $0x290] sm:$0xff] }
 0x337   :  { %3955 = vst.msk [vmem:[#allocation9 + $0x10] sm:$0xff] %vm74_vm0, %v3935_v18  ;;  %3762 = vst.msk [vmem:[#allocation7 + $0x48] sm:$0xff] %vm74_vm0, %v3722_v17  ;;  %v1675_v58 = vpop.permute.xlu1 %1674  ;;  %3382 = vmatprep.mubr.f32.mxu1 %v2982_v35  ;;  %v2981_v63 = vld [vmem:[#allocation6 + $0x288] sm:$0xff] }
 0x338   :  { %2568 = vst.msk [vmem:[#allocation6 + $0x2a8] sm:$0xff] %vm1738_vm5, %v2477_v37  ;;  %1767 = vst.msk [vmem:[#allocation6 + $0x2a0] sm:$0xff] %vm1738_vm5, %v1675_v58  ;;  %2256 = vrot.lane.b32.xlu0 %v7461_v32, %s5830_s17  ;;  %3383 = vmatmul.mubr.f32.gmra.mxu1 %v2981_v63  ;;  %v2618_v32 = vld [vmem:[#allocation5 + $0x158] sm:$0xff] }
 0x339   :  { %1453 = vrot.lane.b32.xlu1 %v7359_v62, %s5830_s17 }
 0x33a   :  { %v2717_v2 = vpop.permute.xlu0 %2716 }
 0x33b   :  { %2808 = vst.msk [vmem:[#allocation6 + $0x2a8] sm:$0xff] %vm1979_vm6, %v2717_v2  ;;  %v1916_v7 = vpop.permute.xlu1 %1915  ;;  %v3299_v50 = vpop.f32.mrf.mxu1 }
 0x33c   :  { %2008 = vst.msk [vmem:[#allocation6 + $0x2a0] sm:$0xff] %vm1979_vm6, %v1916_v7  ;;  %v3300_v54 = vadd.f32 %v7530_v39, %v3299_v50  ;;  %2496 = vrot.lane.b32.xlu0 %v2378_v36, %s5831_s19 }
 0x33d   :  { %1694 = vrot.lane.b32.xlu1 %v7401_v8, %s5831_s19  ;;  %v3301_v62 = vpop.f32.mrf.mxu1 }
 0x33e   :  { %v3801_v9 = vld [vmem:[#allocation7 + $0x40] ss:$2 sm:$0xff]  ;;  %v3841_v22 = vld [vmem:[#allocation7 + $0x41] ss:$2 sm:$0xff]  ;;  %v3565_v40 = vadd.f32 %v3564_v46, %v3300_v54  ;;  %v2239_v43 = vpop.permute.xlu0 %2238 }
 0x33f   :  { %v3876_v45 = vmax.f32 %v3801_v9, %v3841_v22  ;;  %2329 = vst.msk [vmem:[#allocation6 + $0x2c0] sm:$0xff] %vm1497_vm4, %v2239_v43  ;;  %v1436_v57 = vpop.permute.xlu1 %1435 }
 0x340   :  { %v3723_v14 = vmax.f32 %v3565_v40, 0.0  ;;  %1527 = vst.msk [vmem:[#allocation6 + $0x2b8] sm:$0xff] %vm1497_vm4, %v1436_v57  ;;  %2736 = vrot.lane.b32.xlu0 %v2618_v32, %s5832_s26 }
 0x341   :  { %3896 = vst.msk [vmem:[#allocation8 + $0x20] sm:$0xff] %vm74_vm0, %v3876_v45  ;;  %1935 = vrot.lane.b32.xlu1 %v7697_v44, %s5832_s26  ;;  %v2379_v44 = vld [vmem:[#allocation5 + $0x15f] sm:$0xff] }
 0x342   :  { %3763 = vst.msk [vmem:[#allocation7 + $0x50] sm:$0xff] %vm74_vm0, %v3723_v14  ;;  %v2479_v8 = vpop.permute.xlu0 %2478  ;;  %v2985_v10 = vld [vmem:[#allocation6 + $0x2a8] sm:$0xff] }
 0x343   :  { %2569 = vst.msk [vmem:[#allocation6 + $0x2c0] sm:$0xff] %vm1738_vm5, %v2479_v8  ;;  %v1677_v53 = vpop.permute.xlu1 %1676  ;;  %3387 = vmatprep.mubr.f32.mxu1 %v2985_v10  ;;  %v2984_v11 = vld [vmem:[#allocation6 + $0x2a0] sm:$0xff] }
 0x344   :  { %1768 = vst.msk [vmem:[#allocation6 + $0x2b8] sm:$0xff] %vm1738_vm5, %v1677_v53  ;;  %2258 = vrot.lane.b32.xlu0 %v7487_v49, %s5830_s17  ;;  %v3304_v12 = vpop.f32.mrf.mxu1  ;;  %3388 = vmatmul.mubr.f32.gmra.mxu1 %v2984_v11 }
 0x345   :  { %v3305_v25 = vadd.f32 %v7530_v39, %v3304_v12  ;;  %1455 = vrot.lane.b32.xlu1 %v7389_v33, %s5830_s17 }
 0x346   :  { %v2719_v47 = vpop.permute.xlu0 %2718  ;;  %v3306_v41 = vpop.f32.mrf.mxu1 }
 0x347   :  { %v3570_v55 = vadd.f32 %v5676_v15, %v3305_v25  ;;  %2809 = vst.msk [vmem:[#allocation6 + $0x2c0] sm:$0xff] %vm1979_vm6, %v2719_v47  ;;  %v1918_v51 = vpop.permute.xlu1 %1917 }
 0x348   :  { %v3916_v29 = vld [vmem:[#allocation8 + $0x20] sm:$0xff]  ;;  %2009 = vst.msk [vmem:[#allocation6 + $0x2b8] sm:$0xff] %vm1979_vm6, %v1918_v51  ;;  %2498 = vrot.lane.b32.xlu0 %v2379_v44, %s5831_s19 }
 0x349   :  { %v3936_v49 = vmax.f32 %v7736_v24, %v3916_v29  ;;  %v3724_v20 = vmax.f32 %v3570_v55, 0.0  ;;  %1696 = vrot.lane.b32.xlu1 %v7431_v38, %s5831_s19  ;;  %v3574_v38 = vpop.f32.mrf.mxu0 }
 0x34a   :  { %v2241_v33 = vpop.permute.xlu0 %2240 }
 0x34b   :  { %3956 = vst.msk [vmem:[#allocation9 + $0x18] sm:$0xff] %vm74_vm0, %v3936_v49  ;;  %3764 = vst.msk [vmem:[#allocation7 + $0x58] sm:$0xff] %vm74_vm0, %v3724_v20  ;;  %v1438_v59 = vpop.permute.xlu1 %1437  ;;  %v5682_v2 = vpop.f32.mrf.mxu0 }
 0x34c   :  { %2330 = vst.msk [vmem:[#allocation6 + $0x2d8] sm:$0xff] %vm1497_vm4, %v2241_v33  ;;  %1528 = vst.msk [vmem:[#allocation6 + $0x2d0] sm:$0xff] %vm1497_vm4, %v1438_v59  ;;  %2738 = vrot.lane.b32.xlu0 %v2619_v48, %s5832_s26 }
 0x34d   :  { %1937 = vrot.lane.b32.xlu1 %v7724_v1, %s5832_s26  ;;  %v3584_v7 = vpop.f32.mrf.mxu0 }
 0x34e   :  { %v2481_v0 = vpop.permute.xlu0 %2480  ;;  %v2988_v3 = vld [vmem:[#allocation6 + $0x2c0] sm:$0xff] }
 0x34f   :  { %2570 = vst.msk [vmem:[#allocation6 + $0x2d8] sm:$0xff] %vm1738_vm5, %v2481_v0  ;;  %v1679_v56 = vpop.permute.xlu1 %1678  ;;  %v3309_v13 = vpop.f32.mrf.mxu1  ;;  %3392 = vmatprep.mubr.f32.mxu1 %v2988_v3  ;;  %v2987_v31 = vld [vmem:[#allocation6 + $0x2b8] sm:$0xff] }
 0x350   :  { %1769 = vst.msk [vmem:[#allocation6 + $0x2d0] sm:$0xff] %vm1738_vm5, %v1679_v56  ;;  %v3310_v30 = vadd.f32 %v7530_v39, %v3309_v13  ;;  %3393 = vmatmul.mubr.f32.gmra.mxu1 %v2987_v31  ;;  %v5685_v48 = vpop.f32.mrf.mxu0 }
 0x351   :  { %v3311_v16 = vpop.f32.mrf.mxu1 }
 0x352   :  { %v3803_v6 = vld [vmem:[#allocation7 + $0x50] ss:$2 sm:$0xff]  ;;  %v3843_v34 = vld [vmem:[#allocation7 + $0x51] ss:$2 sm:$0xff]  ;;  %v3575_v19 = vadd.f32 %v3574_v38, %v3310_v30  ;;  %v2721_v28 = vpop.permute.xlu0 %2720  ;;  %v3594_v0 = vpop.f32.mrf.mxu0 }
 0x353   :  { %v3877_v1 = vmax.f32 %v3803_v6, %v3843_v34  ;;  %2810 = vst.msk [vmem:[#allocation6 + $0x2d8] sm:$0xff] %vm1979_vm6, %v2721_v28  ;;  %v1920_v27 = vpop.permute.xlu1 %1919 }
 0x354   :  { %v3725_v4 = vmax.f32 %v3575_v19, 0.0  ;;  %2010 = vst.msk [vmem:[#allocation6 + $0x2d0] sm:$0xff] %vm1979_vm6, %v1920_v27 }
 0x355   :  { %3897 = vst.msk [vmem:[#allocation8 + $0x28] sm:$0xff] %vm74_vm0, %v3877_v1 }
 0x356   :  { %3765 = vst.msk [vmem:[#allocation7 + $0x60] sm:$0xff] %vm74_vm0, %v3725_v4  ;;  %v2243_v60 = vpop.permute.xlu0 %2242 }
 0x357   :  { %2331 = vst.msk [vmem:[#allocation6 + $0x2f0] sm:$0xff] %vm1497_vm4, %v2243_v60  ;;  %v1440_v26 = vpop.permute.xlu1 %1439 }
 0x358   :  { %1529 = vst.msk [vmem:[#allocation6 + $0x2e8] sm:$0xff] %vm1497_vm4, %v1440_v26  ;;  %v3314_v61 = vpop.f32.mrf.mxu1  ;;  %v7834_v26 = vld [vmem:[%s8554_s4] ss:$0 sm:$0xff]  ;;  %s5825_s4 = smov 0  }
 0x359   :  { %v3315_v23 = vadd.f32 %v7530_v39, %v3314_v61 }
 0x35a   :  { %v2483_v24 = vpop.permute.xlu0 %2482  ;;  %v3316_v18 = vpop.f32.mrf.mxu1  ;;  %v2991_v17 = vld [vmem:[#allocation6 + $0x2d8] sm:$0xff] }
 0x35b   :  { %v3580_v37 = vadd.f32 %v5679_v52, %v3315_v23  ;;  %2571 = vst.msk [vmem:[#allocation6 + $0x2f0] sm:$0xff] %vm1738_vm5, %v2483_v24  ;;  %v1681_v35 = vpop.permute.xlu1 %1680  ;;  %3397 = vmatprep.mubr.f32.mxu1 %v2991_v17  ;;  %v2990_v15 = vld [vmem:[#allocation6 + $0x2d0] sm:$0xff] }
 0x35c   :  { %v3917_v5 = vld [vmem:[#allocation8 + $0x28] sm:$0xff]  ;;  %1770 = vst.msk [vmem:[#allocation6 + $0x2e8] sm:$0xff] %vm1738_vm5, %v1681_v35  ;;  %3398 = vmatmul.mubr.f32.gmra.mxu1 %v2990_v15 }
 0x35d   :  { %v3937_v58 = vmax.f32 %v3916_v29, %v3917_v5  ;;  %v3726_v63 = vmax.f32 %v3580_v37, 0.0 }
 0x35e   :  { %v2723_v36 = vpop.permute.xlu0 %2722 }
 0x35f   :  { %3957 = vst.msk [vmem:[#allocation9 + $0x20] sm:$0xff] %vm74_vm0, %v3937_v58  ;;  %3766 = vst.msk [vmem:[#allocation7 + $0x68] sm:$0xff] %vm74_vm0, %v3726_v63  ;;  %v1922_v46 = vpop.permute.xlu1 %1921  ;;  %v5688_v63 = vpop.f32.mrf.mxu0 }
 0x360   :  { %2811 = vst.msk [vmem:[#allocation6 + $0x2f0] sm:$0xff] %vm1979_vm6, %v2723_v36  ;;  %2011 = vst.msk [vmem:[#allocation6 + $0x2e8] sm:$0xff] %vm1979_vm6, %v1922_v46 }
 0x362   :  { %v2245_v42 = vpop.permute.xlu0 %2244 }
 0x363   :  { %2332 = vst.msk [vmem:[#allocation6 + $0x308] sm:$0xff] %vm1497_vm4, %v2245_v42  ;;  %v1442_v50 = vpop.permute.xlu1 %1441  ;;  %v3319_v21 = vpop.f32.mrf.mxu1 }
 0x364   :  { %1530 = vst.msk [vmem:[#allocation6 + $0x300] sm:$0xff] %vm1497_vm4, %v1442_v50  ;;  %v3320_v54 = vadd.f32 %v7530_v39, %v3319_v21  ;;  %v3604_v50 = vpop.f32.mrf.mxu0 }
 0x365   :  { %v3321_v62 = vpop.f32.mrf.mxu1 }
 0x366   :  { %v3805_v32 = vld [vmem:[#allocation7 + $0x60] ss:$2 sm:$0xff]  ;;  %v3845_v9 = vld [vmem:[#allocation7 + $0x61] ss:$2 sm:$0xff]  ;;  %v3585_v22 = vadd.f32 %v3584_v7, %v3320_v54  ;;  %v2485_v40 = vpop.permute.xlu0 %2484 }
 0x367   :  { %v2994_v43 = vld [vmem:[#allocation6 + $0x2f0] sm:$0xff]  ;;  %v3878_v45 = vmax.f32 %v3805_v32, %v3845_v9  ;;  %2572 = vst.msk [vmem:[#allocation6 + $0x308] sm:$0xff] %vm1738_vm5, %v2485_v40  ;;  %v1683_v57 = vpop.permute.xlu1 %1682  ;;  %v2993_v14 = vld [vmem:[#allocation6 + $0x2e8] sm:$0xff] }
 0x368   :  { %3402 = vmatprep.mubr.f32.mxu1 %v2994_v43  ;;  %v3727_v8 = vmax.f32 %v3585_v22, 0.0  ;;  %1771 = vst.msk [vmem:[#allocation6 + $0x300] sm:$0xff] %vm1738_vm5, %v1683_v57 }
 0x369   :  { %3403 = vmatmul.mubr.f32.gmra.mxu1 %v2993_v14  ;;  %3898 = vst.msk [vmem:[#allocation8 + $0x30] sm:$0xff] %vm74_vm0, %v3878_v45 }
 0x36a   :  { %3767 = vst.msk [vmem:[#allocation7 + $0x70] sm:$0xff] %vm74_vm0, %v3727_v8  ;;  %v2725_v10 = vpop.permute.xlu0 %2724 }
 0x36b   :  { %2812 = vst.msk [vmem:[#allocation6 + $0x308] sm:$0xff] %vm1979_vm6, %v2725_v10  ;;  %v1924_v53 = vpop.permute.xlu1 %1923 }
 0x36c   :  { %2012 = vst.msk [vmem:[#allocation6 + $0x300] sm:$0xff] %vm1979_vm6, %v1924_v53  ;;  %v3324_v11 = vpop.f32.mrf.mxu1 }
 0x36d   :  { %v3325_v12 = vadd.f32 %v7530_v39, %v3324_v11 }
 0x36e   :  { %v2247_v25 = vpop.permute.xlu0 %2246  ;;  %v3326_v44 = vpop.f32.mrf.mxu1 }
 0x36f   :  { %v3590_v47 = vadd.f32 %v5682_v2, %v3325_v12  ;;  %2333 = vst.msk [vmem:[#allocation6 + $0x320] sm:$0xff] %vm1497_vm4, %v2247_v25  ;;  %v1444_v41 = vpop.permute.xlu1 %1443 }
 0x370   :  { %v3918_v55 = vld [vmem:[#allocation8 + $0x30] sm:$0xff]  ;;  %1531 = vst.msk [vmem:[#allocation6 + $0x318] sm:$0xff] %vm1497_vm4, %v1444_v41 }
 0x371   :  { %v3938_v51 = vmax.f32 %v3917_v5, %v3918_v55  ;;  %v3728_v29 = vmax.f32 %v3590_v47, 0.0 }
 0x372   :  { %v2487_v49 = vpop.permute.xlu0 %2486  ;;  %v2997_v20 = vld [vmem:[#allocation6 + $0x308] sm:$0xff] }
 0x373   :  { %3958 = vst.msk [vmem:[#allocation9 + $0x28] sm:$0xff] %vm74_vm0, %v3938_v51  ;;  %3768 = vst.msk [vmem:[#allocation7 + $0x78] sm:$0xff] %vm74_vm0, %v3728_v29  ;;  %v1685_v33 = vpop.permute.xlu1 %1684  ;;  %3407 = vmatprep.mubr.f32.mxu1 %v2997_v20  ;;  %v2996_v52 = vld [vmem:[#allocation6 + $0x300] sm:$0xff] }
 0x374   :  { %2573 = vst.msk [vmem:[#allocation6 + $0x320] sm:$0xff] %vm1738_vm5, %v2487_v49  ;;  %1772 = vst.msk [vmem:[#allocation6 + $0x318] sm:$0xff] %vm1738_vm5, %v1685_v33  ;;  %3408 = vmatmul.mubr.f32.gmra.mxu1 %v2996_v52  ;;  %v5691_v33 = vpop.f32.mrf.mxu0 }
 0x376   :  { %v2727_v59 = vpop.permute.xlu0 %2726 }
 0x377   :  { %2813 = vst.msk [vmem:[#allocation6 + $0x320] sm:$0xff] %vm1979_vm6, %v2727_v59  ;;  %v1926_v3 = vpop.permute.xlu1 %1925  ;;  %v3329_v38 = vpop.f32.mrf.mxu1 }
 0x378   :  { %2013 = vst.msk [vmem:[#allocation6 + $0x318] sm:$0xff] %vm1979_vm6, %v1926_v3  ;;  %v3330_v56 = vadd.f32 %v7530_v39, %v3329_v38 }
 0x379   :  { %v3331_v13 = vpop.f32.mrf.mxu1 }
 0x37a   :  { %v3807_v31 = vld [vmem:[#allocation7 + $0x70] ss:$2 sm:$0xff]  ;;  %v3847_v30 = vld [vmem:[#allocation7 + $0x71] ss:$2 sm:$0xff]  ;;  %v3595_v16 = vadd.f32 %v3594_v0, %v3330_v56  ;;  %v2249_v6 = vpop.permute.xlu0 %2248  ;;  %v3614_v56 = vpop.f32.mrf.mxu0 }
 0x37b   :  { %v3879_v34 = vmax.f32 %v3807_v31, %v3847_v30  ;;  %2334 = vst.msk [vmem:[#allocation6 + $0x338] sm:$0xff] %vm1497_vm4, %v2249_v6  ;;  %v1446_v19 = vpop.permute.xlu1 %1445 }
 0x37c   :  { %v3729_v28 = vmax.f32 %v3595_v16, 0.0  ;;  %1532 = vst.msk [vmem:[#allocation6 + $0x330] sm:$0xff] %vm1497_vm4, %v1446_v19 }
 0x37d   :  { %3899 = vst.msk [vmem:[#allocation8 + $0x38] sm:$0xff] %vm74_vm0, %v3879_v34 }
 0x37e   :  { %3769 = vst.msk [vmem:[#allocation7 + $0x80] sm:$0xff] %vm74_vm0, %v3729_v28  ;;  %v2489_v1 = vpop.permute.xlu0 %2488  ;;  %v3000_v27 = vld [vmem:[#allocation6 + $0x320] sm:$0xff] }
 0x37f   :  { %2574 = vst.msk [vmem:[#allocation6 + $0x338] sm:$0xff] %vm1738_vm5, %v2489_v1  ;;  %v1687_v39 = vpop.permute.xlu1 %1686  ;;  %3412 = vmatprep.mubr.f32.mxu1 %v3000_v27  ;;  %v2999_v4 = vld [vmem:[#allocation6 + $0x318] sm:$0xff] }
 0x380   :  { %1773 = vst.msk [vmem:[#allocation6 + $0x330] sm:$0xff] %vm1738_vm5, %v1687_v39  ;;  %v3334_v60 = vpop.f32.mrf.mxu1  ;;  %3413 = vmatmul.mubr.f32.gmra.mxu1 %v2999_v4 }
 0x381   :  { %v3335_v61 = vadd.f32 %v7834_v26, %v3334_v60 }
 0x382   :  { %v2729_v23 = vpop.permute.xlu0 %2728  ;;  %v3336_v24 = vpop.f32.mrf.mxu1 }
 0x383   :  { %v3600_v18 = vadd.f32 %v5685_v48, %v3335_v61  ;;  %2814 = vst.msk [vmem:[#allocation6 + $0x338] sm:$0xff] %vm1979_vm6, %v2729_v23  ;;  %v1928_v17 = vpop.permute.xlu1 %1927 }
 0x384   :  { %v3919_v37 = vld [vmem:[#allocation8 + $0x38] sm:$0xff]  ;;  %2014 = vst.msk [vmem:[#allocation6 + $0x330] sm:$0xff] %vm1979_vm6, %v1928_v17 }
 0x385   :  { %v3939_v35 = vmax.f32 %v3918_v55, %v3919_v37  ;;  %v3730_v15 = vmax.f32 %v3600_v18, 0.0 }
 0x386   :  { %v2251_v5 = vpop.permute.xlu0 %2250 }
 0x387   :  { %3959 = vst.msk [vmem:[#allocation9 + $0x30] sm:$0xff] %vm74_vm0, %v3939_v35  ;;  %3770 = vst.msk [vmem:[#allocation7 + $0x88] sm:$0xff] %vm74_vm0, %v3730_v15  ;;  %v1448_v58 = vpop.permute.xlu1 %1447 }
 0x388   :  { %2335 = vst.msk [vmem:[#allocation6 + $0x350] sm:$0xff] %vm1497_vm4, %v2251_v5  ;;  %1533 = vst.msk [vmem:[#allocation6 + $0x348] sm:$0xff] %vm1497_vm4, %v1448_v58 }
 0x38a   :  { %v2491_v36 = vpop.permute.xlu0 %2490  ;;  %v3003_v2 = vld [vmem:[#allocation6 + $0x338] sm:$0xff] }
 0x38b   :  { %2575 = vst.msk [vmem:[#allocation6 + $0x350] sm:$0xff] %vm1738_vm5, %v2491_v36  ;;  %v1689_v46 = vpop.permute.xlu1 %1688  ;;  %3417 = vmatprep.mubr.f32.mxu1 %v3003_v2  ;;  %v3002_v42 = vld [vmem:[#allocation6 + $0x330] sm:$0xff] }
 0x38c   :  { %1774 = vst.msk [vmem:[#allocation6 + $0x348] sm:$0xff] %vm1738_vm5, %v1689_v46  ;;  %v3339_v7 = vpop.f32.mrf.mxu1  ;;  %3418 = vmatmul.mubr.f32.gmra.mxu1 %v3002_v42  ;;  %v5694_v46 = vpop.f32.mrf.mxu0 }
 0x38d   :  { %v3340_v21 = vadd.f32 %v7834_v26, %v3339_v7 }
 0x38e   :  { %v3809_v54 = vld [vmem:[#allocation7 + $0x80] ss:$2 sm:$0xff]  ;;  %v3849_v62 = vld [vmem:[#allocation7 + $0x81] ss:$2 sm:$0xff]  ;;  %v2731_v32 = vpop.permute.xlu0 %2730  ;;  %v3341_v9 = vpop.f32.mrf.mxu1 }
 0x38f   :  { %v3880_v22 = vmax.f32 %v3809_v54, %v3849_v62  ;;  %v3605_v40 = vadd.f32 %v3604_v50, %v3340_v21  ;;  %2815 = vst.msk [vmem:[#allocation6 + $0x350] sm:$0xff] %vm1979_vm6, %v2731_v32  ;;  %v1930_v43 = vpop.permute.xlu1 %1929  ;;  %v3624_v62 = vpop.f32.mrf.mxu0 }
 0x390   :  { %2015 = vst.msk [vmem:[#allocation6 + $0x348] sm:$0xff] %vm1979_vm6, %v1930_v43 }
 0x391   :  { %3900 = vst.msk [vmem:[#allocation8 + $0x40] sm:$0xff] %vm74_vm0, %v3880_v22  ;;  %v3731_v45 = vmax.f32 %v3605_v40, 0.0 }
 0x392   :  { %v2253_v57 = vpop.permute.xlu0 %2252 }
 0x393   :  { %3771 = vst.msk [vmem:[#allocation7 + $0x90] sm:$0xff] %vm74_vm0, %v3731_v45  ;;  %v1450_v14 = vpop.permute.xlu1 %1449 }
 0x394   :  { %2336 = vst.msk [vmem:[#allocation6 + $0x368] sm:$0xff] %vm1497_vm4, %v2253_v57  ;;  %1534 = vst.msk [vmem:[#allocation6 + $0x360] sm:$0xff] %vm1497_vm4, %v1450_v14 }
 0x396   :  { %v2493_v8 = vpop.permute.xlu0 %2492  ;;  %v3006_v10 = vld [vmem:[#allocation6 + $0x350] sm:$0xff] }
 0x397   :  { %2576 = vst.msk [vmem:[#allocation6 + $0x368] sm:$0xff] %vm1738_vm5, %v2493_v8  ;;  %v1691_v53 = vpop.permute.xlu1 %1690  ;;  %3422 = vmatprep.mubr.f32.mxu1 %v3006_v10  ;;  %v3005_v11 = vld [vmem:[#allocation6 + $0x348] sm:$0xff] }
 0x398   :  { %v3920_v12 = vld [vmem:[#allocation8 + $0x40] sm:$0xff]  ;;  %1775 = vst.msk [vmem:[#allocation6 + $0x360] sm:$0xff] %vm1738_vm5, %v1691_v53  ;;  %v3344_v25 = vpop.f32.mrf.mxu1  ;;  %3423 = vmatmul.mubr.f32.gmra.mxu1 %v3005_v11 }
 0x399   :  { %v3940_v44 = vmax.f32 %v3919_v37, %v3920_v12  ;;  %v3345_v47 = vadd.f32 %v7834_v26, %v3344_v25 }
 0x39a   :  { %v2733_v41 = vpop.permute.xlu0 %2732  ;;  %v3346_v55 = vpop.f32.mrf.mxu1 }
 0x39b   :  { %3960 = vst.msk [vmem:[#allocation9 + $0x38] sm:$0xff] %vm74_vm0, %v3940_v44  ;;  %v3610_v51 = vadd.f32 %v5688_v63, %v3345_v47  ;;  %v1932_v29 = vpop.permute.xlu1 %1931 }
 0x39c   :  { %2816 = vst.msk [vmem:[#allocation6 + $0x368] sm:$0xff] %vm1979_vm6, %v2733_v41  ;;  %2016 = vst.msk [vmem:[#allocation6 + $0x360] sm:$0xff] %vm1979_vm6, %v1932_v29 }
 0x39d   :  { %v3732_v49 = vmax.f32 %v3610_v51, 0.0  ;;  %v5697_v51 = vpop.f32.mrf.mxu0 }
 0x39e   :  { %v2255_v20 = vpop.permute.xlu0 %2254 }
 0x39f   :  { %3772 = vst.msk [vmem:[#allocation7 + $0x98] sm:$0xff] %vm74_vm0, %v3732_v49  ;;  %v1452_v48 = vpop.permute.xlu1 %1451  ;;  %v3634_v49 = vpop.f32.mrf.mxu0 }
 0x3a0   :  { %2337 = vst.msk [vmem:[#allocation6 + $0x380] sm:$0xff] %vm1497_vm4, %v2255_v20  ;;  %1535 = vst.msk [vmem:[#allocation6 + $0x378] sm:$0xff] %vm1497_vm4, %v1452_v48 }
 0x3a2   :  { %v2495_v52 = vpop.permute.xlu0 %2494 }
 0x3a3   :  { %v3009_v59 = vld [vmem:[#allocation6 + $0x368] sm:$0xff]  ;;  %2577 = vst.msk [vmem:[#allocation6 + $0x380] sm:$0xff] %vm1738_vm5, %v2495_v52  ;;  %v1693_v0 = vpop.permute.xlu1 %1692  ;;  %v3008_v3 = vld [vmem:[#allocation6 + $0x360] sm:$0xff] }
 0x3a4   :  { %3427 = vmatprep.mubr.f32.mxu1 %v3009_v59  ;;  %1776 = vst.msk [vmem:[#allocation6 + $0x378] sm:$0xff] %vm1738_vm5, %v1693_v0  ;;  %v3349_v38 = vpop.f32.mrf.mxu1 }
 0x3a5   :  { %3428 = vmatmul.mubr.f32.gmra.mxu1 %v3008_v3  ;;  %v3350_v13 = vadd.f32 %v7834_v26, %v3349_v38 }
 0x3a6   :  { %v3811_v31 = vld [vmem:[#allocation7 + $0x90] ss:$2 sm:$0xff]  ;;  %v3851_v30 = vld [vmem:[#allocation7 + $0x91] ss:$2 sm:$0xff]  ;;  %v2735_v16 = vpop.permute.xlu0 %2734  ;;  %v3351_v6 = vpop.f32.mrf.mxu1 }
 0x3a7   :  { %v3881_v34 = vmax.f32 %v3811_v31, %v3851_v30  ;;  %v3615_v19 = vadd.f32 %v3614_v56, %v3350_v13  ;;  %2817 = vst.msk [vmem:[#allocation6 + $0x380] sm:$0xff] %vm1979_vm6, %v2735_v16  ;;  %v1934_v28 = vpop.permute.xlu1 %1933 }
 0x3a8   :  { %2017 = vst.msk [vmem:[#allocation6 + $0x378] sm:$0xff] %vm1979_vm6, %v1934_v28 }
 0x3a9   :  { %3901 = vst.msk [vmem:[#allocation8 + $0x48] sm:$0xff] %vm74_vm0, %v3881_v34  ;;  %v3733_v1 = vmax.f32 %v3615_v19, 0.0  ;;  %v5700_v34 = vpop.f32.mrf.mxu0 }
 0x3aa   :  { %v2257_v27 = vpop.permute.xlu0 %2256 }
 0x3ab   :  { %3773 = vst.msk [vmem:[#allocation7 + $0xa0] sm:$0xff] %vm74_vm0, %v3733_v1  ;;  %v1454_v39 = vpop.permute.xlu1 %1453  ;;  %v3644_v28 = vpop.f32.mrf.mxu0 }
 0x3ac   :  { %2338 = vst.msk [vmem:[#allocation6 + $0x398] sm:$0xff] %vm1497_vm4, %v2257_v27  ;;  %1536 = vst.msk [vmem:[#allocation6 + $0x390] sm:$0xff] %vm1497_vm4, %v1454_v39 }
 0x3ae   :  { %v2497_v4 = vpop.permute.xlu0 %2496  ;;  %v3012_v60 = vld [vmem:[#allocation6 + $0x380] sm:$0xff] }
 0x3af   :  { %2578 = vst.msk [vmem:[#allocation6 + $0x398] sm:$0xff] %vm1738_vm5, %v2497_v4  ;;  %v1695_v61 = vpop.permute.xlu1 %1694  ;;  %3432 = vmatprep.mubr.f32.mxu1 %v3012_v60  ;;  %v3011_v23 = vld [vmem:[#allocation6 + $0x378] sm:$0xff] }
 0x3b0   :  { %v3921_v24 = vld [vmem:[#allocation8 + $0x48] sm:$0xff]  ;;  %1777 = vst.msk [vmem:[#allocation6 + $0x390] sm:$0xff] %vm1738_vm5, %v1695_v61  ;;  %3433 = vmatmul.mubr.f32.gmra.mxu1 %v3011_v23 }
 0x3b1   :  { %v3354_v18 = vpop.f32.mrf.mxu1  ;;  %v3941_v17 = vmax.f32 %v3920_v12, %v3921_v24 }
 0x3b2   :  { %v3355_v37 = vadd.f32 %v7834_v26, %v3354_v18  ;;  %v2737_v35 = vpop.permute.xlu0 %2736 }
 0x3b3   :  { %v3356_v15 = vpop.f32.mrf.mxu1  ;;  %3961 = vst.msk [vmem:[#allocation9 + $0x40] sm:$0xff] %vm74_vm0, %v3941_v17  ;;  %v1936_v58 = vpop.permute.xlu1 %1935 }
 0x3b4   :  { %v3620_v5 = vadd.f32 %v5691_v33, %v3355_v37  ;;  %2818 = vst.msk [vmem:[#allocation6 + $0x398] sm:$0xff] %vm1979_vm6, %v2737_v35  ;;  %2018 = vst.msk [vmem:[#allocation6 + $0x390] sm:$0xff] %vm1979_vm6, %v1936_v58  ;;  %v5703_v58 = vpop.f32.mrf.mxu0 }
 0x3b6   :  { %v3734_v63 = vmax.f32 %v3620_v5, 0.0  ;;  %v2259_v36 = vpop.permute.xlu0 %2258 }
 0x3b7   :  { %2339 = vst.msk [vmem:[#allocation6 + $0x3b0] sm:$0xff] %vm1497_vm4, %v2259_v36  ;;  %v1456_v2 = vpop.permute.xlu1 %1455  ;;  %v3654_v36 = vpop.f32.mrf.mxu0 }
 0x3b8   :  { %3774 = vst.msk [vmem:[#allocation7 + $0xa8] sm:$0xff] %vm74_vm0, %v3734_v63 }
 0x3b9   :  { %1537 = vst.msk [vmem:[#allocation6 + $0x3a8] sm:$0xff] %vm1497_vm4, %v1456_v2 }
 0x3ba   :  { %v2499_v42 = vpop.permute.xlu0 %2498 }
 0x3bb   :  { %v3015_v7 = vld [vmem:[#allocation6 + $0x398] sm:$0xff]  ;;  %2579 = vst.msk [vmem:[#allocation6 + $0x3b0] sm:$0xff] %vm1738_vm5, %v2499_v42  ;;  %v1697_v50 = vpop.permute.xlu1 %1696  ;;  %v3014_v21 = vld [vmem:[#allocation6 + $0x390] sm:$0xff] }
 0x3bc   :  { %3437 = vmatprep.mubr.f32.mxu1 %v3015_v7  ;;  %1778 = vst.msk [vmem:[#allocation6 + $0x3a8] sm:$0xff] %vm1738_vm5, %v1697_v50  ;;  %v3359_v54 = vpop.f32.mrf.mxu1 }
 0x3bd   :  { %3438 = vmatmul.mubr.f32.gmra.mxu1 %v3014_v21  ;;  %v3360_v32 = vadd.f32 %v7834_v26, %v3359_v54 }
 0x3be   :  { %v2739_v40 = vpop.permute.xlu0 %2738  ;;  %v3361_v43 = vpop.f32.mrf.mxu1 }
 0x3bf   :  { %v3813_v9 = vld [vmem:[#allocation7 + $0xa0] ss:$2 sm:$0xff]  ;;  %v3853_v22 = vld [vmem:[#allocation7 + $0xa1] ss:$2 sm:$0xff]  ;;  %v3625_v57 = vadd.f32 %v3624_v62, %v3360_v32  ;;  %2819 = vst.msk [vmem:[#allocation6 + $0x3b0] sm:$0xff] %vm1979_vm6, %v2739_v40  ;;  %v1938_v14 = vpop.permute.xlu1 %1937 }
 0x3c0   :  { %v3882_v45 = vmax.f32 %v3813_v9, %v3853_v22  ;;  %2019 = vst.msk [vmem:[#allocation6 + $0x3a8] sm:$0xff] %vm1979_vm6, %v1938_v14 }
 0x3c1   :  { %v3735_v8 = vmax.f32 %v3625_v57, 0.0  ;;  %v5706_v57 = vpop.f32.mrf.mxu0 }
 0x3c2   :  { %3902 = vst.msk [vmem:[#allocation8 + $0x50] sm:$0xff] %vm74_vm0, %v3882_v45 }
 0x3c3   :  { %3775 = vst.msk [vmem:[#allocation7 + $0xb0] sm:$0xff] %vm74_vm0, %v3735_v8  ;;  %v3664_v8 = vpop.f32.mrf.mxu0 }
 0x3c6   :  { %v3018_v10 = vld [vmem:[#allocation6 + $0x3b0] sm:$0xff] }
 0x3c7   :  { %3442 = vmatprep.mubr.f32.mxu1 %v3018_v10  ;;  %v3017_v53 = vld [vmem:[#allocation6 + $0x3a8] sm:$0xff] }
 0x3c8   :  { %v3364_v12 = vpop.f32.mrf.mxu1  ;;  %3443 = vmatmul.mubr.f32.gmra.mxu1 %v3017_v53 }
 0x3c9   :  { %v3922_v11 = vld [vmem:[#allocation8 + $0x50] sm:$0xff]  ;;  %v3365_v44 = vadd.f32 %v7834_v26, %v3364_v12 }
 0x3ca   :  { %v3942_v25 = vmax.f32 %v3921_v24, %v3922_v11  ;;  %v3366_v47 = vpop.f32.mrf.mxu1 }
 0x3cb   :  { %v3630_v41 = vadd.f32 %v5694_v46, %v3365_v44 }
 0x3cc   :  { %3962 = vst.msk [vmem:[#allocation9 + $0x48] sm:$0xff] %vm74_vm0, %v3942_v25 }
 0x3cd   :  { %v3736_v55 = vmax.f32 %v3630_v41, 0.0 }
 0x3cf   :  { %3776 = vst.msk [vmem:[#allocation7 + $0xb8] sm:$0xff] %vm74_vm0, %v3736_v55 }
 0x3d4   :  { %v3369_v29 = vpop.f32.mrf.mxu1 }
 0x3d5   :  { %v3370_v20 = vadd.f32 %v7834_v26, %v3369_v29 }
 0x3d6   :  { %v3815_v48 = vld [vmem:[#allocation7 + $0xb0] ss:$2 sm:$0xff]  ;;  %v3855_v33 = vld [vmem:[#allocation7 + $0xb1] ss:$2 sm:$0xff]  ;;  %v3371_v52 = vpop.f32.mrf.mxu1 }
 0x3d7   :  { %v3883_v59 = vmax.f32 %v3815_v48, %v3855_v33  ;;  %v3635_v0 = vadd.f32 %v3634_v49, %v3370_v20  ;;  %v5709_v33 = vpop.f32.mrf.mxu0 }
 0x3d9   :  { %3903 = vst.msk [vmem:[#allocation8 + $0x58] sm:$0xff] %vm74_vm0, %v3883_v59  ;;  %v3737_v3 = vmax.f32 %v3635_v0, 0.0  ;;  %v3674_v59 = vpop.f32.mrf.mxu0 }
 0x3db   :  { %3777 = vst.msk [vmem:[#allocation7 + $0xc0] sm:$0xff] %vm74_vm0, %v3737_v3 }
 0x3e0   :  { %v3923_v38 = vld [vmem:[#allocation8 + $0x58] sm:$0xff]  ;;  %v3374_v56 = vpop.f32.mrf.mxu1 }
 0x3e1   :  { %v3943_v13 = vmax.f32 %v3922_v11, %v3923_v38  ;;  %v3375_v31 = vadd.f32 %v7834_v26, %v3374_v56 }
 0x3e2   :  { %v3376_v30 = vpop.f32.mrf.mxu1 }
 0x3e3   :  { %3963 = vst.msk [vmem:[#allocation9 + $0x50] sm:$0xff] %vm74_vm0, %v3943_v13  ;;  %v3640_v16 = vadd.f32 %v5697_v51, %v3375_v31 }
 0x3e5   :  { %v3738_v6 = vmax.f32 %v3640_v16, 0.0 }
 0x3e7   :  { %3778 = vst.msk [vmem:[#allocation7 + $0xc8] sm:$0xff] %vm74_vm0, %v3738_v6 }
 0x3ed   :  { %v3379_v19 = vpop.f32.mrf.mxu1 }
 0x3ee   :  { %v3380_v1 = vadd.f32 %v7834_v26, %v3379_v19  ;;  %v3817_v27 = vld [vmem:[#allocation7 + $0xc0] ss:$2 sm:$0xff]  ;;  %v3857_v39 = vld [vmem:[#allocation7 + $0xc1] ss:$2 sm:$0xff] }
 0x3ef   :  { %v3381_v4 = vpop.f32.mrf.mxu1  ;;  %v3884_v60 = vmax.f32 %v3817_v27, %v3857_v39  ;;  %v5712_v39 = vpop.f32.mrf.mxu0 }
 0x3f0   :  { %v3645_v61 = vadd.f32 %v3644_v28, %v3380_v1 }
 0x3f1   :  { %3904 = vst.msk [vmem:[#allocation8 + $0x60] sm:$0xff] %vm74_vm0, %v3884_v60  ;;  %v3684_v60 = vpop.f32.mrf.mxu0 }
 0x3f2   :  { %v3739_v23 = vmax.f32 %v3645_v61, 0.0 }
 0x3f4   :  { %3779 = vst.msk [vmem:[#allocation7 + $0xd0] sm:$0xff] %vm74_vm0, %v3739_v23 }
 0x3f8   :  { %v3924_v24 = vld [vmem:[#allocation8 + $0x60] sm:$0xff]  ;;  %v3384_v18 = vpop.f32.mrf.mxu1 }
 0x3f9   :  { %v3944_v17 = vmax.f32 %v3923_v38, %v3924_v24  ;;  %v3385_v37 = vadd.f32 %v7834_v26, %v3384_v18 }
 0x3fa   :  { %v3386_v35 = vpop.f32.mrf.mxu1 }
 0x3fb   :  { %3964 = vst.msk [vmem:[#allocation9 + $0x58] sm:$0xff] %vm74_vm0, %v3944_v17  ;;  %v3650_v15 = vadd.f32 %v5700_v34, %v3385_v37 }
 0x3fd   :  { %v3740_v5 = vmax.f32 %v3650_v15, 0.0 }
 0x3ff   :  { %3780 = vst.msk [vmem:[#allocation7 + $0xd8] sm:$0xff] %vm74_vm0, %v3740_v5 }
 0x404   :  { %v3389_v63 = vpop.f32.mrf.mxu1 }
 0x405   :  { %v3390_v2 = vadd.f32 %v7834_v26, %v3389_v63 }
 0x406   :  { %v3819_v46 = vld [vmem:[#allocation7 + $0xd0] ss:$2 sm:$0xff]  ;;  %v3859_v42 = vld [vmem:[#allocation7 + $0xd1] ss:$2 sm:$0xff]  ;;  %v3391_v7 = vpop.f32.mrf.mxu1 }
 0x407   :  { %v3885_v50 = vmax.f32 %v3819_v46, %v3859_v42  ;;  %v3655_v21 = vadd.f32 %v3654_v36, %v3390_v2  ;;  %v5715_v42 = vpop.f32.mrf.mxu0 }
 0x409   :  { %3905 = vst.msk [vmem:[#allocation8 + $0x68] sm:$0xff] %vm74_vm0, %v3885_v50  ;;  %v3741_v54 = vmax.f32 %v3655_v21, 0.0  ;;  %v3694_v50 = vpop.f32.mrf.mxu0 }
 0x40b   :  { %3781 = vst.msk [vmem:[#allocation7 + $0xe0] sm:$0xff] %vm74_vm0, %v3741_v54 }
 0x410   :  { %v3925_v62 = vld [vmem:[#allocation8 + $0x68] sm:$0xff]  ;;  %v3394_v32 = vpop.f32.mrf.mxu1 }
 0x411   :  { %v3945_v9 = vmax.f32 %v3924_v24, %v3925_v62  ;;  %v3395_v22 = vadd.f32 %v7834_v26, %v3394_v32 }
 0x412   :  { %v3396_v40 = vpop.f32.mrf.mxu1 }
 0x413   :  { %3965 = vst.msk [vmem:[#allocation9 + $0x60] sm:$0xff] %vm74_vm0, %v3945_v9  ;;  %v3660_v43 = vadd.f32 %v5703_v58, %v3395_v22 }
 0x415   :  { %v3742_v45 = vmax.f32 %v3660_v43, 0.0 }
 0x417   :  { %3782 = vst.msk [vmem:[#allocation7 + $0xe8] sm:$0xff] %vm74_vm0, %v3742_v45 }
 0x41c   :  { %v3399_v14 = vpop.f32.mrf.mxu1 }
 0x41d   :  { %v3400_v10 = vadd.f32 %v7834_v26, %v3399_v14 }
 0x41e   :  { %v3821_v53 = vld [vmem:[#allocation7 + $0xe0] ss:$2 sm:$0xff]  ;;  %v3861_v11 = vld [vmem:[#allocation7 + $0xe1] ss:$2 sm:$0xff]  ;;  %v3401_v12 = vpop.f32.mrf.mxu1 }
 0x41f   :  { %v3886_v25 = vmax.f32 %v3821_v53, %v3861_v11  ;;  %v3665_v44 = vadd.f32 %v3664_v8, %v3400_v10  ;;  %v5718_v11 = vpop.f32.mrf.mxu0 }
 0x421   :  { %3906 = vst.msk [vmem:[#allocation8 + $0x70] sm:$0xff] %vm74_vm0, %v3886_v25  ;;  %v3743_v47 = vmax.f32 %v3665_v44, 0.0  ;;  %v3704_v25 = vpop.f32.mrf.mxu0 }
 0x423   :  { %3783 = vst.msk [vmem:[#allocation7 + $0xf0] sm:$0xff] %vm74_vm0, %v3743_v47 }
 0x428   :  { %v3926_v41 = vld [vmem:[#allocation8 + $0x70] sm:$0xff] }
 0x429   :  { %v3404_v55 = vpop.f32.mrf.mxu1  ;;  %v3946_v51 = vmax.f32 %v3925_v62, %v3926_v41 }
 0x42a   :  { %v3405_v29 = vadd.f32 %v7834_v26, %v3404_v55 }
 0x42b   :  { %v3406_v49 = vpop.f32.mrf.mxu1  ;;  %3966 = vst.msk [vmem:[#allocation9 + $0x68] sm:$0xff] %vm74_vm0, %v3946_v51 }
 0x42c   :  { %v3670_v20 = vadd.f32 %v5706_v57, %v3405_v29 }
 0x42e   :  { %v3744_v48 = vmax.f32 %v3670_v20, 0.0 }
 0x430   :  { %3784 = vst.msk [vmem:[#allocation7 + $0xf8] sm:$0xff] %vm74_vm0, %v3744_v48 }
 0x434   :  { %v3409_v52 = vpop.f32.mrf.mxu1 }
 0x435   :  { %v3410_v0 = vadd.f32 %v7834_v26, %v3409_v52 }
 0x436   :  { %v3411_v56 = vpop.f32.mrf.mxu1 }
 0x437   :  { %v3823_v3 = vld [vmem:[#allocation7 + $0xf0] ss:$2 sm:$0xff]  ;;  %v3863_v38 = vld [vmem:[#allocation7 + $0xf1] ss:$2 sm:$0xff]  ;;  %v3675_v31 = vadd.f32 %v3674_v59, %v3410_v0 }
 0x438   :  { %v3887_v13 = vmax.f32 %v3823_v3, %v3863_v38 }
 0x439   :  { %v3745_v30 = vmax.f32 %v3675_v31, 0.0  ;;  %v3932_v31 = vld [vmem:[#allocation8 + $0xa0] sm:$0xff] }
 0x43a   :  { %3907 = vst.msk [vmem:[#allocation8 + $0x78] sm:$0xff] %vm74_vm0, %v3887_v13 }
 0x43b   :  { %3785 = vst.msk [vmem:[#allocation7 + $0x100] sm:$0xff] %vm74_vm0, %v3745_v30 }
 0x440   :  { %v3414_v6 = vpop.f32.mrf.mxu1 }
 0x441   :  { %v3927_v16 = vld [vmem:[#allocation8 + $0x78] sm:$0xff]  ;;  %v3415_v19 = vadd.f32 %v7834_v26, %v3414_v6 }
 0x442   :  { %v3947_v34 = vmax.f32 %v3926_v41, %v3927_v16  ;;  %v3416_v28 = vpop.f32.mrf.mxu1 }
 0x443   :  { %v3680_v1 = vadd.f32 %v5709_v33, %v3415_v19 }
 0x444   :  { %3967 = vst.msk [vmem:[#allocation9 + $0x70] sm:$0xff] %vm74_vm0, %v3947_v34 }
 0x445   :  { %v3746_v27 = vmax.f32 %v3680_v1, 0.0 }
 0x447   :  { %3786 = vst.msk [vmem:[#allocation7 + $0x108] sm:$0xff] %vm74_vm0, %v3746_v27 }
 0x44c   :  { %v3419_v4 = vpop.f32.mrf.mxu1 }
 0x44d   :  { %v3420_v61 = vadd.f32 %v7834_v26, %v3419_v4 }
 0x44e   :  { %v3825_v23 = vld [vmem:[#allocation7 + $0x100] ss:$2 sm:$0xff]  ;;  %v3865_v24 = vld [vmem:[#allocation7 + $0x101] ss:$2 sm:$0xff]  ;;  %v3421_v18 = vpop.f32.mrf.mxu1 }
 0x44f   :  { %v3888_v17 = vmax.f32 %v3825_v23, %v3865_v24  ;;  %v3685_v37 = vadd.f32 %v3684_v60, %v3420_v61 }
 0x451   :  { %3908 = vst.msk [vmem:[#allocation8 + $0x80] sm:$0xff] %vm74_vm0, %v3888_v17  ;;  %v3747_v35 = vmax.f32 %v3685_v37, 0.0 }
 0x453   :  { %3787 = vst.msk [vmem:[#allocation7 + $0x110] sm:$0xff] %vm74_vm0, %v3747_v35 }
 0x458   :  { %v3928_v15 = vld [vmem:[#allocation8 + $0x80] sm:$0xff]  ;;  %v3424_v5 = vpop.f32.mrf.mxu1 }
 0x459   :  { %v3948_v58 = vmax.f32 %v3927_v16, %v3928_v15  ;;  %v3425_v63 = vadd.f32 %v7834_v26, %v3424_v5 }
 0x45a   :  { %v3426_v36 = vpop.f32.mrf.mxu1 }
 0x45b   :  { %3968 = vst.msk [vmem:[#allocation9 + $0x78] sm:$0xff] %vm74_vm0, %v3948_v58  ;;  %v3690_v2 = vadd.f32 %v5712_v39, %v3425_v63 }
 0x45d   :  { %v3748_v46 = vmax.f32 %v3690_v2, 0.0 }
 0x45f   :  { %3788 = vst.msk [vmem:[#allocation7 + $0x118] sm:$0xff] %vm74_vm0, %v3748_v46 }
 0x465   :  { %v3429_v7 = vpop.f32.mrf.mxu1 }
 0x466   :  { %v3430_v21 = vadd.f32 %v7834_v26, %v3429_v7  ;;  %v3827_v54 = vld [vmem:[#allocation7 + $0x110] ss:$2 sm:$0xff]  ;;  %v3867_v62 = vld [vmem:[#allocation7 + $0x111] ss:$2 sm:$0xff] }
 0x467   :  { %v3431_v32 = vpop.f32.mrf.mxu1  ;;  %v3889_v9 = vmax.f32 %v3827_v54, %v3867_v62 }
 0x468   :  { %v3695_v22 = vadd.f32 %v3694_v50, %v3430_v21 }
 0x469   :  { %3909 = vst.msk [vmem:[#allocation8 + $0x88] sm:$0xff] %vm74_vm0, %v3889_v9 }
 0x46a   :  { %v3749_v40 = vmax.f32 %v3695_v22, 0.0 }
 0x46c   :  { %3789 = vst.msk [vmem:[#allocation7 + $0x120] sm:$0xff] %vm74_vm0, %v3749_v40 }
 0x470   :  { %v3929_v43 = vld [vmem:[#allocation8 + $0x88] sm:$0xff]  ;;  %v3434_v45 = vpop.f32.mrf.mxu1 }
 0x471   :  { %v3949_v57 = vmax.f32 %v3928_v15, %v3929_v43  ;;  %v3435_v14 = vadd.f32 %v7834_v26, %v3434_v45 }
 0x472   :  { %v3436_v8 = vpop.f32.mrf.mxu1 }
 0x473   :  { %3969 = vst.msk [vmem:[#allocation9 + $0x80] sm:$0xff] %vm74_vm0, %v3949_v57  ;;  %v3700_v10 = vadd.f32 %v5715_v42, %v3435_v14 }
 0x475   :  { %v3750_v53 = vmax.f32 %v3700_v10, 0.0 }
 0x477   :  { %3790 = vst.msk [vmem:[#allocation7 + $0x128] sm:$0xff] %vm74_vm0, %v3750_v53 }
 0x47d   :  { %v3439_v12 = vpop.f32.mrf.mxu1 }
 0x47e   :  { %v3440_v44 = vadd.f32 %v7834_v26, %v3439_v12  ;;  %v3829_v47 = vld [vmem:[#allocation7 + $0x120] ss:$2 sm:$0xff]  ;;  %v3869_v41 = vld [vmem:[#allocation7 + $0x121] ss:$2 sm:$0xff] }
 0x47f   :  { %v3441_v55 = vpop.f32.mrf.mxu1  ;;  %v3890_v51 = vmax.f32 %v3829_v47, %v3869_v41 }
 0x480   :  { %v3705_v29 = vadd.f32 %v3704_v25, %v3440_v44 }
 0x481   :  { %3910 = vst.msk [vmem:[#allocation8 + $0x90] sm:$0xff] %vm74_vm0, %v3890_v51 }
 0x482   :  { %v3751_v49 = vmax.f32 %v3705_v29, 0.0 }
 0x484   :  { %3791 = vst.msk [vmem:[#allocation7 + $0x130] sm:$0xff] %vm74_vm0, %v3751_v49 }
 0x488   :  { %v3930_v20 = vld [vmem:[#allocation8 + $0x90] sm:$0xff]  ;;  %v3444_v48 = vpop.f32.mrf.mxu1 }
 0x489   :  { %v3950_v33 = vmax.f32 %v3929_v43, %v3930_v20  ;;  %v3445_v52 = vadd.f32 %v7834_v26, %v3444_v48 }
 0x48a   :  { %v3446_v59 = vpop.f32.mrf.mxu1 }
 0x48b   :  { %3970 = vst.msk [vmem:[#allocation9 + $0x88] sm:$0xff] %vm74_vm0, %v3950_v33  ;;  %v3710_v0 = vadd.f32 %v5718_v11, %v3445_v52 }
 0x48d   :  { %v3752_v3 = vmax.f32 %v3710_v0, 0.0 }
 0x48f   :  { %3792 = vst.msk [vmem:[#allocation7 + $0x138] sm:$0xff] %vm74_vm0, %v3752_v3 }
 0x496   :  { %v3831_v38 = vld [vmem:[#allocation7 + $0x130] ss:$2 sm:$0xff]  ;;  %v3871_v56 = vld [vmem:[#allocation7 + $0x131] ss:$2 sm:$0xff] }
 0x497   :  { %v3891_v13 = vmax.f32 %v3831_v38, %v3871_v56 }
 0x499   :  { %3911 = vst.msk [vmem:[#allocation8 + $0x98] sm:$0xff] %vm74_vm0, %v3891_v13 }
 0x4a0   :  { %v3931_v30 = vld [vmem:[#allocation8 + $0x98] sm:$0xff] }
 0x4a1   :  { %v3951_v16 = vmax.f32 %v3930_v20, %v3931_v30  ;;  %v3952_v6 = vmax.f32 %v3931_v30, %v3932_v31 }
 0x4a3   :  { %3971 = vst.msk [vmem:[#allocation9 + $0x90] sm:$0xff] %vm74_vm0, %v3951_v16  ;;  %3972 = vst.msk [vmem:[#allocation9 + $0x98] sm:$0xff] %vm74_vm0, %v3952_v6 }
 0x4a4 LB: > { %s5100_s21 = smul.u32 80, %s5827_s4  ;;  %vm3986_vm7 = vcmask 519168   ;;  %s5827_s4 = sphi %s5825_s4, %s3978_s4  }
 0x4a5   : > { %s5103_s22 = smul.u32 48, %s5827_s4  ;;  %s3978_s4 = sadd.s32 1, %s5827_s4  }
 0x4a6   : > { %s5101_s23 = scalar_lea.vmem [#allocation9], %s5100_s21  ;;  %p3975_p1 = scmp.ge.s32.totalorder %s3978_s4, 2  }
 0x4a7   : > { %s5104_s24 = scalar_lea.vmem [#allocation10], %s5103_s22  ;;  %v4506_v12 = vld [vmem:[%s8555_s5 + $0xf8] sm:$0xff] (%p3975_p1)  ;;  %v4505_v44 = vld [vmem:[%s8555_s5 + $0xf0] sm:$0xff] (%p3975_p1)  ;;  %v4504_v55 = vld [vmem:[%s8555_s5 + $0xe8] sm:$0xff] (%p3975_p1)  ;;  %vm4090_vm8 = vcmask (%p3975_p1), 1048064  }
 0x4a8   :  { %v4490_v25 = vld [vmem:[%s8555_s5 + $0x78] sm:$0xff] (%p3975_p1)  ;;  %5395 = vmatprep.subr.mxu0 (%p3975_p1), %v4506_v12  ;;  %v4489_v41 = vld [vmem:[%s8555_s5 + $0x70] sm:$0xff] (%p3975_p1)  ;;  %v4488_v51 = vld [vmem:[%s8555_s5 + $0x68] sm:$0xff] (%p3975_p1) }
 0x4a9   :  { %3977 = sbr.rel (!%p3975_p1) target bundleno = 1188 (0x4a4), region = 215  ;;  %5396 = vmatpush3.msra.mxu0 (%p3975_p1), %v4490_v25  ;;  %v4503_v49 = vld [vmem:[%s8555_s5 + $0xe0] sm:$0xff] (%p3975_p1)  ;;  %v4502_v48 = vld [vmem:[%s8555_s5 + $0xd8] sm:$0xff] (%p3975_p1)  ;;  %v4537_v0 = vld [vmem:[%s8555_s5 + $0x1f0] sm:$0xff] (%p3975_p1) }
 0x4aa   : > { %v5264_v26 = vld [vmem:[%s5101_s23 + $0x8] sm:$0xf]  ;;  %v5266_v34 = vld [vmem:[%s5101_s23 + $0x18] sm:$0xf]  ;;  %5397 = vmatprep.subr.mxu0 (%p3975_p1), %v4505_v44  ;;  %v4487_v20 = vld [vmem:[%s8555_s5 + $0x60] sm:$0xff] (%p3975_p1) }
 0x4ab   : > { %5265 = vst.msk [vmem:[%s5104_s24 + $0x18] sm:$0xf] %vm3986_vm7, %v5264_v26  ;;  %5267 = vst.msk [vmem:[%s5104_s24 + $0x20] sm:$0xf] %vm3986_vm7, %v5266_v34  ;;  %v5268_v19 = vld [vmem:[%s5101_s23 + $0x28] sm:$0xf]  ;;  %5398 = vmatpush3.msra.mxu0 (%p3975_p1), %v4489_v41 }
 0x4ac   : > { %v5270_v28 = vld [vmem:[%s5101_s23 + $0x38] sm:$0xf]  ;;  %5269 = vst.msk [vmem:[%s5104_s24 + $0x28] sm:$0xf] %vm3986_vm7, %v5268_v19  ;;  %5399 = vmatprep.subr.mxu0 (%p3975_p1), %v4504_v55  ;;  %v4501_v3 = vld [vmem:[%s8555_s5 + $0xd0] sm:$0xff] (%p3975_p1)  ;;  %v4536_v13 = vld [vmem:[%s8555_s5 + $0x1e8] sm:$0xff] (%p3975_p1) }
 0x4ad   : > { %5271 = vst.msk [vmem:[%s5104_s24 + $0x30] sm:$0xf] %vm3986_vm7, %v5270_v28  ;;  %5400 = vmatpush3.msra.mxu0 (%p3975_p1), %v4488_v51  ;;  %v4538_v33 = vld [vmem:[%s8555_s5 + $0x1f8] sm:$0xff] (%p3975_p1)  ;;  %v4521_v38 = vld [vmem:[%s8555_s5 + $0x170] sm:$0xff] (%p3975_p1)  ;;  %v4500_v31 = vld [vmem:[%s8555_s5 + $0xc8] sm:$0xff] (%p3975_p1) }
 0x4ae   :  { %5401 = vmatprep.subr.mxu0 %v4503_v49  ;;  %v4486_v52 = vld [vmem:[%s8555_s5 + $0x58] sm:$0xff]  ;;  %5463 = vmatprep.subr.mxu1 %v4538_v33  ;;  %v4485_v56 = vld [vmem:[%s8555_s5 + $0x50] sm:$0xff]  ;;  %v4520_v30 = vld [vmem:[%s8555_s5 + $0x168] sm:$0xff] }
 0x4af   :  { %5402 = vmatpush3.msra.mxu0 %v4487_v20  ;;  %v4522_v59 = vld [vmem:[%s8555_s5 + $0x178] sm:$0xff]  ;;  %v4484_v16 = vld [vmem:[%s8555_s5 + $0x48] sm:$0xff]  ;;  %v4535_v6 = vld [vmem:[%s8555_s5 + $0x1e0] sm:$0xff] }
 0x4b0   :  { %5403 = vmatprep.subr.mxu0 %v4502_v48  ;;  %5464 = vmatpush3.msra.mxu1 %v4522_v59  ;;  %v4499_v26 = vld [vmem:[%s8555_s5 + $0xc0] sm:$0xff]  ;;  %v4534_v28 = vld [vmem:[%s8555_s5 + $0x1d8] sm:$0xff]  ;;  %v4529_v41 = vld [vmem:[%s8555_s5 + $0x1b0] sm:$0xff] }
 0x4b1   :  { %5404 = vmatpush3.msra.mxu0 %v4486_v52  ;;  %5465 = vmatprep.subr.mxu1 %v4537_v0  ;;  %v4519_v34 = vld [vmem:[%s8555_s5 + $0x160] sm:$0xff]  ;;  %v4530_v25 = vld [vmem:[%s8555_s5 + $0x1b8] sm:$0xff]  ;;  %v4493_v55 = vld [vmem:[%s8555_s5 + $0x90] sm:$0xff] }
 0x4b2   :  { %5405 = vmatprep.subr.mxu0 %v4501_v3  ;;  %5466 = vmatpush3.msra.mxu1 %v4521_v38  ;;  %v4483_v19 = vld [vmem:[%s8555_s5 + $0x40] sm:$0xff]  ;;  %v4494_v44 = vld [vmem:[%s8555_s5 + $0x98] sm:$0xff]  ;;  %v4513_v51 = vld [vmem:[%s8555_s5 + $0x130] sm:$0xff] }
 0x4b3   :  { %5406 = vmatpush3.msra.mxu0 %v4485_v56  ;;  %5467 = vmatprep.subr.mxu1 %v4536_v13  ;;  %v4479_v12 = vld [vmem:[%s8555_s5 + $0x20] sm:$0xff]  ;;  %v4512_v49 = vld [vmem:[%s8555_s5 + $0x128] sm:$0xff]  ;;  %v4526_v59 = vld [vmem:[%s8555_s5 + $0x198] sm:$0xff] }
 0x4b4   :  { %v4127_v1 = vld [vmem:[#allocation10 + $0xf] sm:$0xff]  ;;  %v4128_v27 = vld [vmem:[#allocation10 + $0x17] sm:$0xff]  ;;  %v4129_v60 = vld [vmem:[#allocation10 + $0x1f] sm:$0xff]  ;;  %5407 = vmatprep.subr.mxu0 %v4500_v31  ;;  %5468 = vmatpush3.msra.mxu1 %v4520_v30 }
 0x4b5   :  { %v4030_v39 = vld [vmem:[#allocation10 + $0x8] sm:$0xff]  ;;  %4151 = vrot.lane.b32.xlu0 %v4127_v1, %s5831_s19  ;;  %4153 = vrot.lane.b32.xlu1 %v4128_v27, %s5831_s19  ;;  %v4031_v4 = vld [vmem:[#allocation10 + $0x10] sm:$0xff]  ;;  %v7942_v61 = vld [vmem:[#allocation10 + $0x18] sm:$0xff]  ;;  %4019 = vst.msk [vmem:[#allocation11 + $0x28] sm:$0xff] %vm74_vm0, %v4127_v1 }
 0x4b6   :  { %4020 = vst.msk [vmem:[#allocation11 + $0x50] sm:$0xff] %vm74_vm0, %v4128_v27  ;;  %4307 = vst.msk [vmem:[#allocation11 + $0x18] sm:$0xff] %vm74_vm0, %v4128_v27  ;;  %v7947_v23 = vld [vmem:[#allocation10 + $0x27] sm:$0xff]  ;;  %v7951_v18 = vld [vmem:[#allocation10 + $0x2f] sm:$0xff]  ;;  %5408 = vmatpush3.msra.mxu0 %v4484_v16  ;;  %5469 = vmatprep.subr.mxu1 %v4535_v6 }
 0x4b7   :  { %v7949_v24 = vld [vmem:[#allocation10 + $0x20] sm:$0xff]  ;;  %4021 = vst.msk [vmem:[#allocation11 + $0x78] sm:$0xff] %vm74_vm0, %v4129_v60  ;;  %4211 = vst.msk [vmem:[#allocation11 + $0x10] sm:$0xff] %vm74_vm0, %v4031_v4  ;;  %v7958_v17 = vld [vmem:[#allocation10 + $0x28] sm:$0xff]  ;;  %5409 = vmatprep.subr.mxu0 %v4499_v26  ;;  %5470 = vmatpush3.msra.mxu1 %v4519_v34 }
 0x4b8   :  { %4308 = vst.msk [vmem:[#allocation11 + $0x40] sm:$0xff] %vm74_vm0, %v4129_v60  ;;  %4212 = vst.msk [vmem:[#allocation11 + $0x38] sm:$0xff] %vm74_vm0, %v7942_v61  ;;  %v7960_v37 = vld [vmem:[#allocation10 + $0x37] sm:$0xff]  ;;  %v7974_v15 = vld [vmem:[#allocation10 + $0x3f] sm:$0xff]  ;;  %5410 = vmatpush3.msra.mxu0 %v4483_v19  ;;  %5471 = vmatprep.subr.mxu1 %v4534_v28 }
 0x4b9   :  { %v7962_v35 = vld [vmem:[#allocation10 + $0x30] sm:$0xff]  ;;  %4022 = vst.msk [vmem:[#allocation11 + $0xa0] sm:$0xff] %vm74_vm0, %v7947_v23  ;;  %4023 = vst.msk [vmem:[#allocation11 + $0xc8] sm:$0xff] %vm74_vm0, %v7951_v18  ;;  %v7976_v5 = vld [vmem:[#allocation10 + $0x38] sm:$0xff]  ;;  %4054 = vrot.lane.b32.xlu0 %v4030_v39, %s5831_s19  ;;  %4056 = vrot.lane.b32.xlu1 %v4031_v4, %s5831_s19 }
 0x4ba   :  { %4309 = vst.msk [vmem:[#allocation11 + $0x68] sm:$0xff] %vm74_vm0, %v7947_v23  ;;  %4213 = vst.msk [vmem:[#allocation11 + $0x60] sm:$0xff] %vm74_vm0, %v7949_v24  ;;  %v7978_v58 = vld [vmem:[#allocation10 + $0x11] sm:$0xff]  ;;  %v7990_v63 = vld [vmem:[#allocation10 + $0x47] sm:$0xff] }
 0x4bb   :  { %4310 = vst.msk [vmem:[#allocation11 + $0x90] sm:$0xff] %vm74_vm0, %v7951_v18  ;;  %4024 = vst.msk [vmem:[#allocation11 + $0xf0] sm:$0xff] %vm74_vm0, %v7960_v37  ;;  %v7992_v36 = vld [vmem:[#allocation10 + $0x40] sm:$0xff]  ;;  %v8004_v46 = vld [vmem:[#allocation10 + $0x4f] sm:$0xff] }
 0x4bc   :  { %4214 = vst.msk [vmem:[#allocation11 + $0x88] sm:$0xff] %vm74_vm0, %v7958_v17  ;;  %4311 = vst.msk [vmem:[#allocation11 + $0xb8] sm:$0xff] %vm74_vm0, %v7960_v37  ;;  %v7994_v2 = vld [vmem:[#allocation10 + $0x19] sm:$0xff]  ;;  %v8006_v42 = vld [vmem:[#allocation10 + $0x48] sm:$0xff] }
 0x4bd   :  { %4215 = vst.msk [vmem:[#allocation11 + $0xb0] sm:$0xff] %vm74_vm0, %v7962_v35  ;;  %4116 = vst.msk [vmem:[#allocation11 + $0x30] sm:$0xff] %vm74_vm0, %v7978_v58  ;;  %v8008_v7 = vld [vmem:[#allocation10 + $0x21] sm:$0xff]  ;;  %v8020_v50 = vld [vmem:[#allocation10 + $0x57] sm:$0xff]  ;;  %4155 = vrot.lane.b32.xlu0 %v4129_v60, %s5831_s19  ;;  %4058 = vrot.lane.b32.xlu1 %v7942_v61, %s5831_s19 }
 0x4be   :  { %4025 = vst.msk [vmem:[#allocation11 + $0x118] sm:$0xff] %vm74_vm0, %v7974_v15  ;;  %4312 = vst.msk [vmem:[#allocation11 + $0xe0] sm:$0xff] %vm74_vm0, %v7974_v15  ;;  %v8022_v21 = vld [vmem:[#allocation10 + $0x50] sm:$0xff]  ;;  %v8036_v62 = vld [vmem:[#allocation10 + $0x5f] sm:$0xff] }
 0x4bf   :  { %4216 = vst.msk [vmem:[#allocation11 + $0xd8] sm:$0xff] %vm74_vm0, %v7976_v5  ;;  %4117 = vst.msk [vmem:[#allocation11 + $0x58] sm:$0xff] %vm74_vm0, %v7994_v2  ;;  %v8024_v54 = vld [vmem:[#allocation10 + $0x29] sm:$0xff]  ;;  %v8038_v32 = vld [vmem:[#allocation10 + $0x58] sm:$0xff] }
 0x4c0   :  { %4026 = vst.msk [vmem:[#allocation11 + $0x140] sm:$0xff] %vm74_vm0, %v7990_v63  ;;  %4313 = vst.msk [vmem:[#allocation11 + $0x108] sm:$0xff] %vm74_vm0, %v7990_v63  ;;  %v8040_v9 = vld [vmem:[#allocation10 + $0x31] sm:$0xff]  ;;  %v8055_v22 = vld [vmem:[#allocation10 + $0x67] sm:$0xff] }
 0x4c1   :  { %4217 = vst.msk [vmem:[#allocation11 + $0x100] sm:$0xff] %vm74_vm0, %v7992_v36  ;;  %4403 = vst.msk [vmem:[#allocation11 + $0x20] sm:$0xff] %vm74_vm0, %v7994_v2  ;;  %v8057_v40 = vld [vmem:[#allocation10 + $0x60] sm:$0xff]  ;;  %v8073_v57 = vld [vmem:[#allocation10 + $0x49] sm:$0xff]  ;;  %4157 = vrot.lane.b32.xlu0 %v7947_v23, %s5831_s19  ;;  %4060 = vrot.lane.b32.xlu1 %v7949_v24, %s5831_s19 }
 0x4c2   :  { %4118 = vst.msk [vmem:[#allocation11 + $0x80] sm:$0xff] %vm74_vm0, %v8008_v7  ;;  %4027 = vst.msk [vmem:[#allocation11 + $0x168] sm:$0xff] %vm74_vm0, %v8004_v46  ;;  %v8059_v43 = vld [vmem:[#allocation10 + $0x39] sm:$0xff]  ;;  %v8071_v45 = vld [vmem:[#allocation10 + $0x41] sm:$0xff] }
 0x4c3   :  { %4314 = vst.msk [vmem:[#allocation11 + $0x130] sm:$0xff] %vm74_vm0, %v8004_v46  ;;  %4218 = vst.msk [vmem:[#allocation11 + $0x128] sm:$0xff] %vm74_vm0, %v8006_v42  ;;  %v8075_v14 = vld [vmem:[#allocation10 + $0x51] sm:$0xff]  ;;  %v8085_v8 = vld [vmem:[#allocation10 + $0x59] sm:$0xff] }
 0x4c4   :  { %4404 = vst.msk [vmem:[#allocation11 + $0x48] sm:$0xff] %vm74_vm0, %v8008_v7  ;;  %4119 = vst.msk [vmem:[#allocation11 + $0xa8] sm:$0xff] %vm74_vm0, %v8024_v54  ;;  %v8087_v10 = vld [vmem:[#allocation10 + $0x68] sm:$0xff]  ;;  %v4498_v1 = vld [vmem:[%s8555_s5 + $0xb8] sm:$0xff] }
 0x4c5   :  { %4028 = vst.msk [vmem:[#allocation11 + $0x190] sm:$0xff] %vm74_vm0, %v8020_v50  ;;  %4315 = vst.msk [vmem:[#allocation11 + $0x158] sm:$0xff] %vm74_vm0, %v8020_v50  ;;  %v8089_v53 = vld [vmem:[#allocation10 + $0x61] sm:$0xff]  ;;  %v8103_v11 = vld [vmem:[#allocation10 + $0x69] sm:$0xff]  ;;  %4159 = vrot.lane.b32.xlu0 %v7951_v18, %s5831_s19  ;;  %4062 = vrot.lane.b32.xlu1 %v7958_v17, %s5831_s19 }
 0x4c6   :  { %4219 = vst.msk [vmem:[#allocation11 + $0x150] sm:$0xff] %vm74_vm0, %v8022_v21  ;;  %4405 = vst.msk [vmem:[#allocation11 + $0x70] sm:$0xff] %vm74_vm0, %v8024_v54  ;;  %v4103_v47 = vld [vmem:[#allocation10 + $0x9] sm:$0xff]  ;;  %v4518_v27 = vld [vmem:[%s8555_s5 + $0x158] sm:$0xff]  ;;  %5411 = vmatprep.subr.mxu0 %v4498_v1 }
 0x4c7   :  { %4120 = vst.msk [vmem:[#allocation11 + $0xd0] sm:$0xff] %vm74_vm0, %v8040_v9  ;;  %4029 = vst.msk [vmem:[#allocation11 + $0x1b8] sm:$0xff] %vm74_vm0, %v8036_v62  ;;  %v4006_v29 = vld [vmem:[#allocation10 + $0x7] sm:$0xff]  ;;  %v4482_v39 = vld [vmem:[%s8555_s5 + $0x38] sm:$0xff]  ;;  %5472 = vmatpush3.msra.mxu1 %v4518_v27 }
 0x4c8   :  { %4406 = vst.msk [vmem:[#allocation11 + $0x98] sm:$0xff] %vm74_vm0, %v8040_v9  ;;  %4316 = vst.msk [vmem:[#allocation11 + $0x180] sm:$0xff] %vm74_vm0, %v8036_v62  ;;  %v4533_v4 = vld [vmem:[%s8555_s5 + $0x1d0] sm:$0xff]  ;;  %5412 = vmatpush3.msra.mxu0 %v4482_v39  ;;  %v4532_v18 = vld [vmem:[%s8555_s5 + $0x1c8] sm:$0xff] }
 0x4c9   :  { %4220 = vst.msk [vmem:[#allocation11 + $0x178] sm:$0xff] %vm74_vm0, %v8038_v32  ;;  %4121 = vst.msk [vmem:[#allocation11 + $0xf8] sm:$0xff] %vm74_vm0, %v8059_v43  ;;  %4161 = vrot.lane.b32.xlu0 %v7960_v37, %s5831_s19  ;;  %4064 = vrot.lane.b32.xlu1 %v7962_v35, %s5831_s19  ;;  %v4497_v60 = vld [vmem:[%s8555_s5 + $0xb0] sm:$0xff]  ;;  %v4496_v37 = vld [vmem:[%s8555_s5 + $0xa8] sm:$0xff] }
 0x4ca   :  { %4407 = vst.msk [vmem:[#allocation11 + $0xc0] sm:$0xff] %vm74_vm0, %v8059_v43  ;;  %4317 = vst.msk [vmem:[#allocation11 + $0x1a8] sm:$0xff] %vm74_vm0, %v8055_v22  ;;  %v4481_v23 = vld [vmem:[%s8555_s5 + $0x30] sm:$0xff]  ;;  %5473 = vmatprep.subr.mxu1 %v4533_v4  ;;  %5413 = vmatprep.subr.mxu0 %v4497_v60  ;;  %v4476_v20 = vld [vmem:[%s8555_s5 + $0x8] sm:$0xff] }
 0x4cb   :  { %4221 = vst.msk [vmem:[#allocation11 + $0x1a0] sm:$0xff] %vm74_vm0, %v8057_v40  ;;  %4122 = vst.msk [vmem:[#allocation11 + $0x120] sm:$0xff] %vm74_vm0, %v8071_v45  ;;  %5414 = vmatpush3.msra.mxu0 %v4481_v23  ;;  %v4527_v48 = vld [vmem:[%s8555_s5 + $0x1a0] sm:$0xff]  ;;  %v4510_v0 = vld [vmem:[%s8555_s5 + $0x118] sm:$0xff] }
 0x4cc   :  { %4123 = vst.msk [vmem:[#allocation11 + $0x148] sm:$0xff] %vm74_vm0, %v8073_v57  ;;  %4124 = vst.msk [vmem:[#allocation11 + $0x170] sm:$0xff] %vm74_vm0, %v8075_v14  ;;  %5415 = vmatprep.subr.mxu0 %v4496_v37  ;;  %v4491_v33 = vld [vmem:[%s8555_s5 + $0x80] sm:$0xff]  ;;  %v8340_v3 = vld [vmem:[%s8555_s5 + $0x238] sm:$0xff] }
 0x4cd   :  { %4408 = vst.msk [vmem:[#allocation11 + $0xe8] sm:$0xff] %vm74_vm0, %v8071_v45  ;;  %4409 = vst.msk [vmem:[#allocation11 + $0x110] sm:$0xff] %vm74_vm0, %v8073_v57  ;;  %4163 = vrot.lane.b32.xlu0 %v7974_v15, %s5831_s19  ;;  %4066 = vrot.lane.b32.xlu1 %v7976_v5, %s5831_s19  ;;  %v4516_v15 = vld [vmem:[%s8555_s5 + $0x148] sm:$0xff]  ;;  %v4475_v52 = vld [vmem:[%s8555_s5] sm:$0xff] }
 0x4ce   :  { %4410 = vst.msk [vmem:[#allocation11 + $0x138] sm:$0xff] %vm74_vm0, %v8075_v14  ;;  %4125 = vst.msk [vmem:[#allocation11 + $0x198] sm:$0xff] %vm74_vm0, %v8085_v8  ;;  %v4524_v38 = vld [vmem:[%s8555_s5 + $0x188] sm:$0xff]  ;;  %v4523_v13 = vld [vmem:[%s8555_s5 + $0x180] sm:$0xff] }
 0x4cf   :  { %4126 = vst.msk [vmem:[#allocation11 + $0x1c0] sm:$0xff] %vm74_vm0, %v8089_v53  ;;  %4222 = vst.msk [vmem:[#allocation11 + $0x1c8] sm:$0xff] %vm74_vm0, %v8087_v10  ;;  %v4508_v56 = vld [vmem:[%s8555_s5 + $0x108] sm:$0xff]  ;;  %v8427_v26 = vld [vmem:[%s8555_s5 + $0x220] sm:$0xff] }
 0x4d0   :  { %4411 = vst.msk [vmem:[#allocation11 + $0x160] sm:$0xff] %vm74_vm0, %v8085_v8  ;;  %4412 = vst.msk [vmem:[#allocation11 + $0x188] sm:$0xff] %vm74_vm0, %v8089_v53  ;;  %v8436_v34 = vld [vmem:[%s8555_s5 + $0x218] sm:$0xff]  ;;  %v8443_v39 = vld [vmem:[%s8555_s5 + $0x210] sm:$0xff] }
 0x4d1   :  { %4413 = vst.msk [vmem:[#allocation11 + $0x1b0] sm:$0xff] %vm74_vm0, %v8103_v11  ;;  %4115 = vst.msk [vmem:[#allocation11 + $0x8] sm:$0xff] %vm74_vm0, %v4103_v47  ;;  %4343 = vrot.lane.b32.xlu0 %v7942_v61, %s5831_s19  ;;  %4247 = vrot.lane.b32.xlu1 %v7978_v58, %s5831_s19  ;;  %v4517_v61 = vld [vmem:[%s8555_s5 + $0x150] sm:$0xff]  ;;  %v4480_v58 = vld [vmem:[%s8555_s5 + $0x28] sm:$0xff] }
 0x4d2   :  { %4018 = vst.msk [vmem:[#allocation11] sm:$0xff] %vm74_vm0, %v4006_v29  ;;  %5474 = vmatpush3.msra.mxu1 %v4517_v61  ;;  %5416 = vmatpush3.msra.mxu0 %v4480_v58  ;;  %v4478_v47 = vld [vmem:[%s8555_s5 + $0x18] sm:$0xff]  ;;  %v4477_v29 = vld [vmem:[%s8555_s5 + $0x10] sm:$0xff]  ;;  %v8452_v4 = vld [vmem:[%s8555_s5 + $0x208] sm:$0xff] }
 0x4d3   :  { %5475 = vmatprep.subr.mxu1 %v4532_v18  ;;  %v8459_v37 = vld [vmem:[%s8555_s5 + $0x200] sm:$0xff] }
 0x4d4   :  { %5476 = vmatpush3.msra.mxu1 %v4516_v15 }
 0x4d5   :  { %4165 = vrot.lane.b32.xlu0 %v7990_v63, %s5831_s19  ;;  %4068 = vrot.lane.b32.xlu1 %v7992_v36, %s5831_s19  ;;  %v4495_v63 = vld [vmem:[%s8555_s5 + $0xa0] sm:$0xff] }
 0x4d6   :  { %5417 = vmatprep.subr.mxu0 %v4495_v63 }
 0x4d7   :  { %5418 = vmatpush3.msra.mxu0 %v4479_v12 }
 0x4d8   :  { %5419 = vmatprep.subr.mxu0 %v4494_v44 }
 0x4d9   :  { %4345 = vrot.lane.b32.xlu0 %v7949_v24, %s5831_s19  ;;  %4249 = vrot.lane.b32.xlu1 %v7994_v2, %s5831_s19  ;;  %v4531_v24 = vld [vmem:[%s8555_s5 + $0x1c0] sm:$0xff] }
 0x4da   :  { %v4515_v2 = vld [vmem:[%s8555_s5 + $0x140] sm:$0xff]  ;;  %5477 = vmatprep.subr.mxu1 %v4531_v24  ;;  %5420 = vmatpush3.msra.mxu0 %v4478_v47 }
 0x4db   :  { %5478 = vmatpush3.msra.mxu1 %v4515_v2  ;;  %5421 = vmatprep.subr.mxu0 %v4493_v55 }
 0x4dc   :  { %5479 = vmatprep.subr.mxu1 %v4530_v25  ;;  %5422 = vmatpush3.msra.mxu0 %v4477_v29 }
 0x4dd   :  { %4167 = vrot.lane.b32.xlu0 %v8004_v46, %s5831_s19  ;;  %4070 = vrot.lane.b32.xlu1 %v8006_v42, %s5831_s19  ;;  %v4514_v46 = vld [vmem:[%s8555_s5 + $0x138] sm:$0xff] }
 0x4de   :  { %5480 = vmatpush3.msra.mxu1 %v4514_v46 }
 0x4df   :  { %5481 = vmatprep.subr.mxu1 %v4529_v41 }
 0x4e0   :  { %5482 = vmatpush3.msra.mxu1 %v4513_v51 }
 0x4e1   :  { %4347 = vrot.lane.b32.xlu0 %v7958_v17, %s5831_s19  ;;  %4251 = vrot.lane.b32.xlu1 %v8008_v7, %s5831_s19  ;;  %v4528_v17 = vld [vmem:[%s8555_s5 + $0x1a8] sm:$0xff] }
 0x4e2   :  { %v4492_v7 = vld [vmem:[%s8555_s5 + $0x88] sm:$0xff]  ;;  %5483 = vmatprep.subr.mxu1 %v4528_v17 }
 0x4e3   :  { %5423 = vmatprep.subr.mxu0 %v4492_v7  ;;  %5484 = vmatpush3.msra.mxu1 %v4512_v49 }
 0x4e4   :  { %5424 = vmatpush3.msra.mxu0 %v4476_v20  ;;  %5485 = vmatprep.subr.mxu1 %v4527_v48 }
 0x4e5   :  { %4169 = vrot.lane.b32.xlu0 %v8020_v50, %s5831_s19  ;;  %4072 = vrot.lane.b32.xlu1 %v8022_v21, %s5831_s19  ;;  %v4511_v50 = vld [vmem:[%s8555_s5 + $0x120] sm:$0xff] }
 0x4e6   :  { %5425 = vmatprep.subr.mxu0 %v4491_v33  ;;  %5486 = vmatpush3.msra.mxu1 %v4511_v50 }
 0x4e7   :  { %5426 = vmatpush3.msra.mxu0 %v4475_v52  ;;  %5487 = vmatprep.subr.mxu1 %v4526_v59 }
 0x4e8   :  { %5488 = vmatpush3.msra.mxu1 %v4510_v0  ;;  %5719 = vmatprep.subr.mxu0 %v8340_v3 }
 0x4e9   :  { %4349 = vrot.lane.b32.xlu0 %v7962_v35, %s5831_s19  ;;  %4253 = vrot.lane.b32.xlu1 %v8024_v54, %s5831_s19  ;;  %v4525_v35 = vld [vmem:[%s8555_s5 + $0x190] sm:$0xff] }
 0x4ea   :  { %v4509_v54 = vld [vmem:[%s8555_s5 + $0x110] sm:$0xff]  ;;  %5489 = vmatprep.subr.mxu1 %v4525_v35 }
 0x4eb   :  { %5490 = vmatpush3.msra.mxu1 %v4509_v54 }
 0x4ec   :  { %5491 = vmatprep.subr.mxu1 %v4524_v38 }
 0x4ed   :  { %4171 = vrot.lane.b32.xlu0 %v8036_v62, %s5831_s19  ;;  %4074 = vrot.lane.b32.xlu1 %v8038_v32, %s5831_s19  ;;  %v4507_v62 = vld [vmem:[%s8555_s5 + $0x100] sm:$0xff] }
 0x4ee   :  { %5492 = vmatpush3.msra.mxu1 %v4508_v56 }
 0x4ef   :  { %5493 = vmatprep.subr.mxu1 %v4523_v13 }
 0x4f0   :  { %5494 = vmatpush3.msra.mxu1 %v4507_v62 }
 0x4f1   :  { %4351 = vrot.lane.b32.xlu0 %v7976_v5, %s5831_s19  ;;  %4255 = vrot.lane.b32.xlu1 %v8040_v9, %s5831_s19  ;;  %v4306_v5 = vld [vmem:[#allocation10 + $0x6f] sm:$0xff] }
 0x4f2   :  { %5753 = vmatprep.subr.mxu1 %v8340_v3  ;;  %4318 = vst.msk [vmem:[#allocation11 + $0x1d0] sm:$0xff] %vm74_vm0, %v4306_v5 }
 0x4f5   :  { %4173 = vrot.lane.b32.xlu0 %v8055_v22, %s5831_s19  ;;  %4076 = vrot.lane.b32.xlu1 %v8057_v40, %s5831_s19 }
 0x4f9   :  { %4353 = vrot.lane.b32.xlu0 %v7992_v36, %s5831_s19  ;;  %4257 = vrot.lane.b32.xlu1 %v8059_v43, %s5831_s19  ;;  %v4402_v36 = vld [vmem:[#allocation10 + $0x71] sm:$0xff] }
 0x4fa   :  { %4414 = vst.msk [vmem:[#allocation11 + $0x1d8] sm:$0xff] %vm74_vm0, %v4402_v36 }
 0x4fd   :  { %4355 = vrot.lane.b32.xlu0 %v8006_v42, %s5831_s19  ;;  %4259 = vrot.lane.b32.xlu1 %v8071_v45, %s5831_s19  ;;  %v4330_v42 = vld [vmem:[#allocation10 + $0x70] sm:$0xff] }
 0x501   :  { %4357 = vrot.lane.b32.xlu0 %v8022_v21, %s5831_s19  ;;  %4261 = vrot.lane.b32.xlu1 %v8073_v57, %s5831_s19 }
 0x505   :  { %4359 = vrot.lane.b32.xlu0 %v8038_v32, %s5831_s19  ;;  %4263 = vrot.lane.b32.xlu1 %v8075_v14, %s5831_s19 }
 0x509   :  { %4361 = vrot.lane.b32.xlu0 %v8057_v40, %s5831_s19  ;;  %4265 = vrot.lane.b32.xlu1 %v8085_v8, %s5831_s19 }
 0x50d   :  { %4363 = vrot.lane.b32.xlu0 %v8087_v10, %s5831_s19  ;;  %4267 = vrot.lane.b32.xlu1 %v8089_v53, %s5831_s19  ;;  %v8412_v10 = vld [vmem:[%s8555_s5 + $0x230] sm:$0xff] }
 0x511   :  { %4365 = vrot.lane.b32.xlu0 %v4330_v42, %s5831_s19  ;;  %4269 = vrot.lane.b32.xlu1 %v8103_v11, %s5831_s19  ;;  %v8420_v11 = vld [vmem:[%s8555_s5 + $0x228] sm:$0xff] }
 0x527   :  { %v4152_v21 = vpop.permute.xlu0 %4151  ;;  %v4154_v32 = vpop.permute.xlu1 %4153 }
 0x528   :  { %4187 = vst.msk [vmem:[#allocation11 + $0x8] sm:$0xff] %vm4090_vm8, %v4152_v21  ;;  %4188 = vst.msk [vmem:[#allocation11 + $0x30] sm:$0xff] %vm4090_vm8, %v4154_v32 }
 0x52b   :  { %v4055_v9 = vpop.permute.xlu0 %4054  ;;  %v4057_v22 = vpop.permute.xlu1 %4056 }
 0x52c   :  { %4091 = vst.msk [vmem:[#allocation11] sm:$0xff] %vm4090_vm8, %v4055_v9  ;;  %4092 = vst.msk [vmem:[#allocation11 + $0x28] sm:$0xff] %vm4090_vm8, %v4057_v22 }
 0x52f   :  { %v4156_v40 = vpop.permute.xlu0 %4155  ;;  %v4416_v43 = vld [vmem:[#allocation11 + $0x8] sm:$0xff]  ;;  %v4059_v45 = vpop.permute.xlu1 %4058  ;;  %v4421_v53 = vld [vmem:[#allocation11 + $0x30] sm:$0xff] }
 0x530   :  { %4189 = vst.msk [vmem:[#allocation11 + $0x58] sm:$0xff] %vm4090_vm8, %v4156_v40  ;;  %4654 = vmatprep.mubr.f32.mxu0 %v4416_v43  ;;  %4093 = vst.msk [vmem:[#allocation11 + $0x50] sm:$0xff] %vm4090_vm8, %v4059_v45 }
 0x533   :  { %v4158_v57 = vpop.permute.xlu0 %4157  ;;  %v4061_v14 = vpop.permute.xlu1 %4060  ;;  %v4415_v8 = vld [vmem:[#allocation11] sm:$0xff]  ;;  %v4420_v16 = vld [vmem:[#allocation11 + $0x28] sm:$0xff] }
 0x534   :  { %4190 = vst.msk [vmem:[#allocation11 + $0x80] sm:$0xff] %vm4090_vm8, %v4158_v57  ;;  %4094 = vst.msk [vmem:[#allocation11 + $0x78] sm:$0xff] %vm4090_vm8, %v4061_v14  ;;  %4655 = vmatmul.mubr.f32.vlgmr.msra.gmra.mxu0 %v4415_v8 }
 0x535   :  { %4659 = vmatprep.mubr.f32.mxu0 %v4421_v53  ;;  %5720 = vmatpush3.msra.mxu0 %v8340_v3 }
 0x536   :  { %5721 = vmatprep.subr.mxu0 %v8412_v10 }
 0x537   :  { %v4160_v31 = vpop.permute.xlu0 %4159  ;;  %v4063_v30 = vpop.permute.xlu1 %4062  ;;  %v4426_v6 = vld [vmem:[#allocation11 + $0x58] sm:$0xff]  ;;  %5722 = vmatpush3.msra.mxu0 %v8412_v10  ;;  %v4425_v1 = vld [vmem:[#allocation11 + $0x50] sm:$0xff] }
 0x538   :  { %4191 = vst.msk [vmem:[#allocation11 + $0xa8] sm:$0xff] %vm4090_vm8, %v4160_v31  ;;  %4095 = vst.msk [vmem:[#allocation11 + $0xa0] sm:$0xff] %vm4090_vm8, %v4063_v30  ;;  %4660 = vmatmul.mubr.f32.gmra.mxu0 %v4420_v16  ;;  %5723 = vmatprep.subr.mxu0 %v8420_v11  ;;  %v4419_v16 = vld [vmem:[#allocation11 + $0x20] sm:$0xff] }
 0x539   :  { %4664 = vmatprep.mubr.f32.mxu0 %v4426_v6  ;;  %5724 = vmatpush3.msra.mxu0 %v8420_v11  ;;  %v4424_v6 = vld [vmem:[#allocation11 + $0x48] sm:$0xff] }
 0x53a   :  { %5725 = vmatprep.subr.mxu0 %v8427_v26 }
 0x53b   :  { %v4162_v19 = vpop.permute.xlu0 %4161  ;;  %v4065_v28 = vpop.permute.xlu1 %4064  ;;  %v4431_v27 = vld [vmem:[#allocation11 + $0x80] sm:$0xff]  ;;  %5726 = vmatpush3.msra.mxu0 %v8427_v26  ;;  %v4430_v23 = vld [vmem:[#allocation11 + $0x78] sm:$0xff] }
 0x53c   :  { %4192 = vst.msk [vmem:[#allocation11 + $0xd0] sm:$0xff] %vm4090_vm8, %v4162_v19  ;;  %4096 = vst.msk [vmem:[#allocation11 + $0xc8] sm:$0xff] %vm4090_vm8, %v4065_v28  ;;  %4665 = vmatmul.mubr.f32.gmra.mxu0 %v4425_v1  ;;  %5727 = vmatprep.subr.mxu0 %v8436_v34  ;;  %v4429_v1 = vld [vmem:[#allocation11 + $0x70] sm:$0xff] }
 0x53d   :  { %4669 = vmatprep.mubr.f32.mxu0 %v4431_v27  ;;  %5728 = vmatpush3.msra.mxu0 %v8436_v34  ;;  %v4434_v27 = vld [vmem:[#allocation11 + $0x98] sm:$0xff] }
 0x53e   :  { %5729 = vmatprep.subr.mxu0 %v8443_v39 }
 0x53f   :  { %v4164_v60 = vpop.permute.xlu0 %4163  ;;  %v4067_v61 = vpop.permute.xlu1 %4066  ;;  %v4436_v18 = vld [vmem:[#allocation11 + $0xa8] sm:$0xff]  ;;  %5730 = vmatpush3.msra.mxu0 %v8443_v39  ;;  %v4435_v24 = vld [vmem:[#allocation11 + $0xa0] sm:$0xff] }
 0x540   :  { %4193 = vst.msk [vmem:[#allocation11 + $0xf8] sm:$0xff] %vm4090_vm8, %v4164_v60  ;;  %4097 = vst.msk [vmem:[#allocation11 + $0xf0] sm:$0xff] %vm4090_vm8, %v4067_v61  ;;  %4670 = vmatmul.mubr.f32.gmra.mxu0 %v4430_v23  ;;  %5731 = vmatprep.subr.mxu0 %v8452_v4  ;;  %v4439_v23 = vld [vmem:[#allocation11 + $0xc0] sm:$0xff] }
 0x541   :  { %4674 = vmatprep.mubr.f32.mxu0 %v4436_v18  ;;  %5732 = vmatpush3.msra.mxu0 %v8452_v4  ;;  %v4444_v18 = vld [vmem:[#allocation11 + $0xe8] sm:$0xff] }
 0x542   :  { %5733 = vmatprep.subr.mxu0 %v8459_v37 }
 0x543   :  { %v4344_v15 = vpop.permute.xlu0 %4343  ;;  %v4248_v58 = vpop.permute.xlu1 %4247  ;;  %v4441_v63 = vld [vmem:[#allocation11 + $0xd0] sm:$0xff]  ;;  %5734 = vmatpush3.msra.mxu0 %v8459_v37  ;;  %v4440_v25 = vld [vmem:[#allocation11 + $0xc8] sm:$0xff] }
 0x544   :  { %4379 = vst.msk [vmem:[#allocation11 + $0x18] sm:$0xff] %vm4090_vm8, %v4344_v15  ;;  %4283 = vst.msk [vmem:[#allocation11 + $0x10] sm:$0xff] %vm4090_vm8, %v4248_v58  ;;  %4675 = vmatmul.mubr.f32.gmra.mxu0 %v4435_v24 }
 0x545   :  { %4679 = vmatprep.mubr.f32.mxu0 %v4441_v63  ;;  %v4449_v63 = vld [vmem:[#allocation11 + $0x110] sm:$0xff] }
 0x547   :  { %v4166_v2 = vpop.permute.xlu0 %4165  ;;  %v4069_v12 = vpop.permute.xlu1 %4068  ;;  %v4446_v44 = vld [vmem:[#allocation11 + $0xf8] sm:$0xff]  ;;  %v4445_v41 = vld [vmem:[#allocation11 + $0xf0] sm:$0xff] }
 0x548   :  { %4194 = vst.msk [vmem:[#allocation11 + $0x120] sm:$0xff] %vm4090_vm8, %v4166_v2  ;;  %4098 = vst.msk [vmem:[#allocation11 + $0x118] sm:$0xff] %vm4090_vm8, %v4069_v12  ;;  %4680 = vmatmul.mubr.f32.gmra.mxu0 %v4440_v25  ;;  %v4454_v2 = vld [vmem:[#allocation11 + $0x138] sm:$0xff] }
 0x549   :  { %4684 = vmatprep.mubr.f32.mxu0 %v4446_v44 }
 0x54b   :  { %v4346_v46 = vpop.permute.xlu0 %4345  ;;  %v4250_v47 = vpop.permute.xlu1 %4249  ;;  %v4418_v55 = vld [vmem:[#allocation11 + $0x18] sm:$0xff]  ;;  %v4417_v51 = vld [vmem:[#allocation11 + $0x10] sm:$0xff] }
 0x54c   :  { %4380 = vst.msk [vmem:[#allocation11 + $0x40] sm:$0xff] %vm4090_vm8, %v4346_v46  ;;  %4284 = vst.msk [vmem:[#allocation11 + $0x38] sm:$0xff] %vm4090_vm8, %v4250_v47  ;;  %4685 = vmatmul.mubr.f32.gmra.mxu0 %v4445_v41  ;;  %4779 = vmatprep.mubr.f32.mxu1 %v4418_v55  ;;  %v4459_v47 = vld [vmem:[#allocation11 + $0x160] sm:$0xff]  ;;  %v4464_v41 = vld [vmem:[#allocation11 + $0x188] sm:$0xff] }
 0x54d   :  { %4780 = vmatmul.mubr.f32.vlgmr.msra.gmra.mxu1 %v4417_v51 }
 0x54e   :  { %5761 = vmatpush3.msra.mxu1 %v8340_v3 }
 0x54f   :  { %v4168_v29 = vpop.permute.xlu0 %4167  ;;  %v4071_v17 = vpop.permute.xlu1 %4070  ;;  %v4451_v7 = vld [vmem:[#allocation11 + $0x120] sm:$0xff]  ;;  %v4450_v49 = vld [vmem:[#allocation11 + $0x118] sm:$0xff]  ;;  %5754 = vmatprep.subr.mxu1 %v8412_v10 }
 0x550   :  { %4195 = vst.msk [vmem:[#allocation11 + $0x148] sm:$0xff] %vm4090_vm8, %v4168_v29  ;;  %4099 = vst.msk [vmem:[#allocation11 + $0x140] sm:$0xff] %vm4090_vm8, %v4071_v17  ;;  %4689 = vmatprep.mubr.f32.mxu0 %v4451_v7  ;;  %5762 = vmatpush3.msra.mxu1 %v8412_v10 }
 0x551   :  { %4690 = vmatmul.mubr.f32.gmra.mxu0 %v4450_v49  ;;  %5755 = vmatprep.subr.mxu1 %v8420_v11 }
 0x552   :  { %5763 = vmatpush3.msra.mxu1 %v8420_v11 }
 0x553   :  { %v4348_v20 = vpop.permute.xlu0 %4347  ;;  %v4252_v48 = vpop.permute.xlu1 %4251  ;;  %v4423_v33 = vld [vmem:[#allocation11 + $0x40] sm:$0xff]  ;;  %v4422_v50 = vld [vmem:[#allocation11 + $0x38] sm:$0xff]  ;;  %5756 = vmatprep.subr.mxu1 %v8427_v26 }
 0x554   :  { %4381 = vst.msk [vmem:[#allocation11 + $0x68] sm:$0xff] %vm4090_vm8, %v4348_v20  ;;  %4285 = vst.msk [vmem:[#allocation11 + $0x60] sm:$0xff] %vm4090_vm8, %v4252_v48  ;;  %4784 = vmatprep.mubr.f32.mxu1 %v4423_v33  ;;  %5764 = vmatpush3.msra.mxu1 %v8427_v26  ;;  %v4469_v33 = vld [vmem:[#allocation11 + $0x1b0] sm:$0xff] }
 0x555   :  { %4785 = vmatmul.mubr.f32.gmra.mxu1 %v4422_v50  ;;  %5757 = vmatprep.subr.mxu1 %v8436_v34  ;;  %v4474_v50 = vld [vmem:[#allocation11 + $0x1d8] sm:$0xff] }
 0x556   :  { %5765 = vmatpush3.msra.mxu1 %v8436_v34 }
 0x557   :  { %v4170_v52 = vpop.permute.xlu0 %4169  ;;  %v4073_v59 = vpop.permute.xlu1 %4072  ;;  %v4456_v0 = vld [vmem:[#allocation11 + $0x148] sm:$0xff]  ;;  %v4455_v3 = vld [vmem:[#allocation11 + $0x140] sm:$0xff]  ;;  %5758 = vmatprep.subr.mxu1 %v8443_v39 }
 0x558   :  { %4196 = vst.msk [vmem:[#allocation11 + $0x170] sm:$0xff] %vm4090_vm8, %v4170_v52  ;;  %4100 = vst.msk [vmem:[#allocation11 + $0x168] sm:$0xff] %vm4090_vm8, %v4073_v59  ;;  %4694 = vmatprep.mubr.f32.mxu0 %v4456_v0  ;;  %5766 = vmatpush3.msra.mxu1 %v8443_v39 }
 0x559   :  { %4695 = vmatmul.mubr.f32.gmra.mxu0 %v4455_v3  ;;  %5759 = vmatprep.subr.mxu1 %v8452_v4 }
 0x55a   :  { %5767 = vmatpush3.msra.mxu1 %v8452_v4 }
 0x55b   :  { %v4350_v35 = vpop.permute.xlu0 %4349  ;;  %v4254_v54 = vpop.permute.xlu1 %4253  ;;  %v4428_v38 = vld [vmem:[#allocation11 + $0x68] sm:$0xff]  ;;  %v4427_v56 = vld [vmem:[#allocation11 + $0x60] sm:$0xff]  ;;  %5760 = vmatprep.subr.mxu1 %v8459_v37 }
 0x55c   :  { %4382 = vst.msk [vmem:[#allocation11 + $0x90] sm:$0xff] %vm4090_vm8, %v4350_v35  ;;  %4286 = vst.msk [vmem:[#allocation11 + $0x88] sm:$0xff] %vm4090_vm8, %v4254_v54  ;;  %4789 = vmatprep.mubr.f32.mxu1 %v4428_v38  ;;  %5768 = vmatpush3.msra.mxu1 %v8459_v37 }
 0x55d   :  { %4790 = vmatmul.mubr.f32.gmra.mxu1 %v4427_v56 }
 0x55f   :  { %v4172_v13 = vpop.permute.xlu0 %4171  ;;  %v4075_v62 = vpop.permute.xlu1 %4074  ;;  %v4461_v5 = vld [vmem:[#allocation11 + $0x170] sm:$0xff]  ;;  %v4460_v36 = vld [vmem:[#allocation11 + $0x168] sm:$0xff] }
 0x560   :  { %4197 = vst.msk [vmem:[#allocation11 + $0x198] sm:$0xff] %vm4090_vm8, %v4172_v13  ;;  %4101 = vst.msk [vmem:[#allocation11 + $0x190] sm:$0xff] %vm4090_vm8, %v4075_v62  ;;  %4699 = vmatprep.mubr.f32.mxu0 %v4461_v5 }
 0x561   :  { %4700 = vmatmul.mubr.f32.gmra.mxu0 %v4460_v36 }
 0x563   :  { %v4352_v42 = vpop.permute.xlu0 %4351  ;;  %v4256_v21 = vpop.permute.xlu1 %4255  ;;  %v4433_v32 = vld [vmem:[#allocation11 + $0x90] sm:$0xff]  ;;  %v4432_v9 = vld [vmem:[#allocation11 + $0x88] sm:$0xff] }
 0x564   :  { %4383 = vst.msk [vmem:[#allocation11 + $0xb8] sm:$0xff] %vm4090_vm8, %v4352_v42  ;;  %4287 = vst.msk [vmem:[#allocation11 + $0xb0] sm:$0xff] %vm4090_vm8, %v4256_v21  ;;  %4794 = vmatprep.mubr.f32.mxu1 %v4433_v32 }
 0x565   :  { %4795 = vmatmul.mubr.f32.gmra.mxu1 %v4432_v9 }
 0x567   :  { %v4174_v22 = vpop.permute.xlu0 %4173  ;;  %v4077_v40 = vpop.permute.xlu1 %4076  ;;  %v4466_v43 = vld [vmem:[#allocation11 + $0x198] sm:$0xff]  ;;  %v4465_v45 = vld [vmem:[#allocation11 + $0x190] sm:$0xff] }
 0x568   :  { %4198 = vst.msk [vmem:[#allocation11 + $0x1c0] sm:$0xff] %vm4090_vm8, %v4174_v22  ;;  %4102 = vst.msk [vmem:[#allocation11 + $0x1b8] sm:$0xff] %vm4090_vm8, %v4077_v40  ;;  %4704 = vmatprep.mubr.f32.mxu0 %v4466_v43 }
 0x569   :  { %4705 = vmatmul.mubr.f32.gmra.mxu0 %v4465_v45 }
 0x56b   :  { %v4354_v57 = vpop.permute.xlu0 %4353  ;;  %v4258_v14 = vpop.permute.xlu1 %4257  ;;  %v4438_v8 = vld [vmem:[#allocation11 + $0xb8] sm:$0xff]  ;;  %v4437_v10 = vld [vmem:[#allocation11 + $0xb0] sm:$0xff] }
 0x56c   :  { %4384 = vst.msk [vmem:[#allocation11 + $0xe0] sm:$0xff] %vm4090_vm8, %v4354_v57  ;;  %4288 = vst.msk [vmem:[#allocation11 + $0xd8] sm:$0xff] %vm4090_vm8, %v4258_v14  ;;  %4799 = vmatprep.mubr.f32.mxu1 %v4438_v8 }
 0x56d   :  { %4800 = vmatmul.mubr.f32.gmra.mxu1 %v4437_v10 }
 0x56f   :  { %v4356_v53 = vpop.permute.xlu0 %4355  ;;  %v4260_v11 = vpop.permute.xlu1 %4259  ;;  %v4471_v31 = vld [vmem:[#allocation11 + $0x1c0] sm:$0xff]  ;;  %v4470_v30 = vld [vmem:[#allocation11 + $0x1b8] sm:$0xff] }
 0x570   :  { %4385 = vst.msk [vmem:[#allocation11 + $0x108] sm:$0xff] %vm4090_vm8, %v4356_v53  ;;  %4289 = vst.msk [vmem:[#allocation11 + $0x100] sm:$0xff] %vm4090_vm8, %v4260_v11  ;;  %4709 = vmatprep.mubr.f32.mxu0 %v4471_v31 }
 0x571   :  { %4710 = vmatmul.mubr.f32.gmra.mxu0 %v4470_v30 }
 0x572   :  { %5735 = vmatprep.mubr.msk.f32.mxu0 %vm74_vm0, %v4419_v16 }
 0x573   :  { %v4358_v26 = vpop.permute.xlu0 %4357  ;;  %v4262_v34 = vpop.permute.xlu1 %4261  ;;  %v4443_v19 = vld [vmem:[#allocation11 + $0xe0] sm:$0xff]  ;;  %v4442_v28 = vld [vmem:[#allocation11 + $0xd8] sm:$0xff] }
 0x574   :  { %4386 = vst.msk [vmem:[#allocation11 + $0x130] sm:$0xff] %vm4090_vm8, %v4358_v26  ;;  %4290 = vst.msk [vmem:[#allocation11 + $0x128] sm:$0xff] %vm4090_vm8, %v4262_v34  ;;  %4804 = vmatprep.mubr.f32.mxu1 %v4443_v19 }
 0x575   :  { %4805 = vmatmul.mubr.f32.gmra.mxu1 %v4442_v28  ;;  %5736 = vmatmul.mubr.msk.f32.vlgmr.msra.gmra.mxu0 %vm74_vm0, %v4424_v6  ;;  %v8535_v28 = vld [vmem:[%s8556_s6] ss:$0 sm:$0xff]  ;;  %s5833_s6 = smov [#allocation13]  }
 0x576   :  { %5738 = vmatprep.mubr.msk.f32.mxu0 %vm74_vm0, %v4429_v1  ;;  %s5045_s11 = sshll.u32 %s5833_s6, 4  ;;  %s5046_s11 = int_to_ptr.vmem [resolvable:$true] %s5045_s11 }
 0x577   :  { %v4360_v39 = vpop.permute.xlu0 %4359  ;;  %v4264_v4 = vpop.permute.xlu1 %4263  ;;  %v4448_v60 = vld [vmem:[#allocation11 + $0x108] sm:$0xff]  ;;  %v4447_v61 = vld [vmem:[#allocation11 + $0x100] sm:$0xff]  ;;  %s5791_s12 = scalar_lea.vmem %s5046_s11, 32  ;;  %p5796_p3 = scmp.lt.s32.totalorder %s5046_s11, %s5046_s11 }
 0x578   :  { %4387 = vst.msk [vmem:[#allocation11 + $0x158] sm:$0xff] %vm4090_vm8, %v4360_v39  ;;  %4291 = vst.msk [vmem:[#allocation11 + $0x150] sm:$0xff] %vm4090_vm8, %v4264_v4  ;;  %4809 = vmatprep.mubr.f32.mxu1 %v4448_v60  ;;  %p5792_p2 = scmp.ne.s32.totalorder %s5046_s11, %s5791_s12  ;;  %p5797_p4 = scmp.lt.s32.totalorder %s5791_s12, %s5791_s12 }
 0x579   :  { %4810 = vmatmul.mubr.f32.gmra.mxu1 %v4447_v61  ;;  %5739 = vmatmul.mubr.msk.f32.gmra.mxu0 %vm74_vm0, %v4434_v27 }
 0x57a   :  { %5741 = vmatprep.mubr.msk.f32.mxu0 %vm74_vm0, %v4439_v23  ;;  %p5798_p5 = por %p5797_p4, %p5796_p3 }
 0x57b   :  { %v4362_v37 = vpop.permute.xlu0 %4361  ;;  %v4266_v15 = vpop.permute.xlu1 %4265  ;;  %v4453_v58 = vld [vmem:[#allocation11 + $0x130] sm:$0xff]  ;;  %v4452_v24 = vld [vmem:[#allocation11 + $0x128] sm:$0xff] }
 0x57c   :  { %4388 = vst.msk [vmem:[#allocation11 + $0x180] sm:$0xff] %vm4090_vm8, %v4362_v37  ;;  %4292 = vst.msk [vmem:[#allocation11 + $0x178] sm:$0xff] %vm4090_vm8, %v4266_v15  ;;  %4814 = vmatprep.mubr.f32.mxu1 %v4453_v58  ;;  %p5799_p6 = pnand %p5798_p5, %p5792_p2 }
 0x57d   :  { %4815 = vmatmul.mubr.f32.gmra.mxu1 %v4452_v24  ;;  %5742 = vmatmul.mubr.msk.f32.gmra.mxu0 %vm74_vm0, %v4444_v18 }
 0x57e   :  { %5744 = vmatprep.mubr.msk.f32.mxu0 %vm74_vm0, %v4449_v63 }
 0x57f   :  { %v4364_v12 = vpop.permute.xlu0 %4363  ;;  %v4268_v25 = vpop.permute.xlu1 %4267  ;;  %v4458_v44 = vld [vmem:[#allocation11 + $0x158] sm:$0xff]  ;;  %v4457_v46 = vld [vmem:[#allocation11 + $0x150] sm:$0xff] }
 0x580   :  { %4389 = vst.msk [vmem:[#allocation11 + $0x1a8] sm:$0xff] %vm4090_vm8, %v4364_v12  ;;  %4293 = vst.msk [vmem:[#allocation11 + $0x1a0] sm:$0xff] %vm4090_vm8, %v4268_v25  ;;  %4819 = vmatprep.mubr.f32.mxu1 %v4458_v44 }
 0x581   :  { %4820 = vmatmul.mubr.f32.gmra.mxu1 %v4457_v46  ;;  %5745 = vmatmul.mubr.msk.f32.gmra.mxu0 %vm74_vm0, %v4454_v2 }
 0x582   :  { %5747 = vmatprep.mubr.msk.f32.mxu0 %vm74_vm0, %v4459_v47 }
 0x583   :  { %v4366_v55 = vpop.permute.xlu0 %4365  ;;  %v4270_v51 = vpop.permute.xlu1 %4269  ;;  %v4463_v29 = vld [vmem:[#allocation11 + $0x180] sm:$0xff]  ;;  %v4462_v17 = vld [vmem:[#allocation11 + $0x178] sm:$0xff] }
 0x584   :  { %4390 = vst.msk [vmem:[#allocation11 + $0x1d0] sm:$0xff] %vm4090_vm8, %v4366_v55  ;;  %4294 = vst.msk [vmem:[#allocation11 + $0x1c8] sm:$0xff] %vm4090_vm8, %v4270_v51  ;;  %4824 = vmatprep.mubr.f32.mxu1 %v4463_v29 }
 0x585   :  { %4825 = vmatmul.mubr.f32.gmra.mxu1 %v4462_v17  ;;  %5748 = vmatmul.mubr.msk.f32.gmra.mxu0 %vm74_vm0, %v4464_v41 }
 0x587   :  { %v4468_v7 = vld [vmem:[#allocation11 + $0x1a8] sm:$0xff]  ;;  %v4467_v49 = vld [vmem:[#allocation11 + $0x1a0] sm:$0xff] }
 0x588   :  { %4829 = vmatprep.mubr.f32.mxu1 %v4468_v7 }
 0x589   :  { %4830 = vmatmul.mubr.f32.gmra.mxu1 %v4467_v49 }
 0x58b   :  { %v4473_v20 = vld [vmem:[#allocation11 + $0x1d0] sm:$0xff]  ;;  %v4472_v48 = vld [vmem:[#allocation11 + $0x1c8] sm:$0xff] }
 0x58c   :  { %4834 = vmatprep.mubr.f32.mxu1 %v4473_v20 }
 0x58d   :  { %4835 = vmatmul.mubr.f32.gmra.mxu1 %v4472_v48 }
 0x58e   :  { %5750 = vmatprep.mubr.msk.f32.mxu1 %vm74_vm0, %v4469_v33 }
 0x591   :  { %5751 = vmatmul.mubr.msk.f32.vlgmr.msra.gmra.mxu1 %vm74_vm0, %v4474_v50 }
 0x5f4   :  { %v5427_v52 = vpop.f32.mrf.mxu0 }
 0x5f6   :  { %v5428_v59 = vpop.f32.mrf.mxu0 }
 0x5f8   :  { %v5430_v0 = vpop.f32.mrf.mxu0 }
 0x5fa   :  { %v5431_v3 = vpop.f32.mrf.mxu0 }
 0x5fb   :  { %v5432_v6 = vadd.f32 %v5431_v3, %v5430_v0 }
 0x5fc   :  { %v5433_v35 = vpop.f32.mrf.mxu0 }
 0x5fd   :  { %v4662_v27 = vadd.f32 %v5432_v6, %v8535_v28 }
 0x5fe   :  { %v5434_v54 = vpop.f32.mrf.mxu0 }
 0x5ff   :  { %v5435_v4 = vadd.f32 %v5434_v54, %v5433_v35 }
 0x600   :  { %v5436_v38 = vpop.f32.mrf.mxu0 }
 0x601   :  { %v4667_v2 = vadd.f32 %v5435_v4, %v8535_v28 }
 0x602   :  { %v5437_v56 = vpop.f32.mrf.mxu0 }
 0x603   :  { %v5438_v39 = vadd.f32 %v5437_v56, %v5436_v38 }
 0x604   :  { %v5439_v13 = vpop.f32.mrf.mxu0 }
 0x605   :  { %v4672_v58 = vadd.f32 %v5438_v39, %v8535_v28 }
 0x606   :  { %v5440_v62 = vpop.f32.mrf.mxu0 }
 0x607   :  { %v5441_v12 = vadd.f32 %v5440_v62, %v5439_v13 }
 0x608   :  { %v5442_v5 = vpop.f32.mrf.mxu0 }
 0x609   :  { %v4677_v7 = vadd.f32 %v5441_v12, %v8535_v28 }
 0x60a   :  { %v5443_v36 = vpop.f32.mrf.mxu0 }
 0x60c   :  { %v5445_v42 = vpop.f32.mrf.mxu0 }
 0x60d   :  { %v5495_v32 = vpop.f32.mrf.mxu1 }
 0x60e   :  { %v5446_v21 = vpop.f32.mrf.mxu0 }
 0x60f   :  { %v5496_v22 = vpop.f32.mrf.mxu1 }
 0x611   :  { %v5448_v9 = vpop.f32.mrf.mxu0 }
 0x613   :  { %v5449_v40 = vpop.f32.mrf.mxu0 }
 0x614   :  { %v5450_v48 = vadd.f32 %v5449_v40, %v5448_v9 }
 0x615   :  { %v5498_v43 = vpop.f32.mrf.mxu1 }
 0x616   :  { %v4692_v56 = vadd.f32 %v5450_v48, %v8535_v28 }
 0x617   :  { %v5499_v57 = vpop.f32.mrf.mxu1 }
 0x618   :  { %v5500_v19 = vadd.f32 %v5499_v57, %v5498_v43 }
 0x619   :  { %v5451_v45 = vpop.f32.mrf.mxu0 }
 0x61a   :  { %v4787_v18 = vadd.f32 %v5500_v19, %v4662_v27 }
 0x61b   :  { %v5452_v14 = vpop.f32.mrf.mxu0 }
 0x61c   :  { %v5453_v35 = vadd.f32 %v5452_v14, %v5451_v45 }
 0x61d   :  { %v5501_v8 = vpop.f32.mrf.mxu1 }
 0x61e   :  { %v4697_v32 = vadd.f32 %v5453_v35, %v8535_v28 }
 0x61f   :  { %v5502_v53 = vpop.f32.mrf.mxu1 }
 0x620   :  { %v5503_v24 = vadd.f32 %v5502_v53, %v5501_v8 }
 0x621   :  { %v5454_v10 = vpop.f32.mrf.mxu0 }
 0x622   :  { %v4792_v17 = vadd.f32 %v5503_v24, %v4667_v2 }
 0x623   :  { %v5455_v11 = vpop.f32.mrf.mxu0 }
 0x624   :  { %v5456_v40 = vadd.f32 %v5455_v11, %v5454_v10 }
 0x625   :  { %v5504_v31 = vpop.f32.mrf.mxu1 }
 0x626   :  { %v4702_v6 = vadd.f32 %v5456_v40, %v8535_v28 }
 0x627   :  { %v5505_v16 = vpop.f32.mrf.mxu1 }
 0x628   :  { %v5506_v23 = vadd.f32 %v5505_v16, %v5504_v31 }
 0x629   :  { %v8528_v30 = vpop.f32.mrf.mxu0 }
 0x62a   :  { %v4797_v47 = vadd.f32 %v5506_v23, %v4672_v58 }
 0x62b   :  { %v8530_v26 = vpop.f32.mrf.mxu0 }
 0x62c   :  { %v5459_v10 = vadd.f32 %v8530_v26, %v8528_v30 }
 0x62d   :  { %v5507_v34 = vpop.f32.mrf.mxu1 }
 0x62e   :  { %v4707_v58 = vadd.f32 %v5459_v10, %v8535_v28 }
 0x62f   :  { %v5508_v60 = vpop.f32.mrf.mxu1 }
 0x630   :  { %v5509_v51 = vadd.f32 %v5508_v60, %v5507_v34 }
 0x631   :  { %v5460_v1 = vpop.f32.mrf.mxu0 }
 0x632   :  { %v4802_v3 = vadd.f32 %v5509_v51, %v4677_v7 }
 0x633   :  { %v5461_v61 = vpop.f32.mrf.mxu0 }
 0x635   :  { %v5510_v37 = vpop.f32.mrf.mxu1  ;;  %v5737_v15 = vpop.f32.mrf.mxu0 }
 0x636   :  { %v4912_v63 = vadd.f32 %v5737_v15, %v4787_v18 }
 0x637   :  { %v5511_v25 = vpop.f32.mrf.mxu1  ;;  %v4906_v44 = vpop.f32.mrf.mxu0 }
 0x638   :  { %v4966_v46 = vmax.f32 %v4912_v63, 0.0 }
 0x639   :  { %v5513_v41 = vpop.f32.mrf.mxu1  ;;  %v5740_v55 = vpop.f32.mrf.mxu0 }
 0x63a   :  { %4978 = vst [vmem:[#allocation12 + $0x8] sm:$0xff] %v4966_v46  ;;  %v4922_v29 = vadd.f32 %v5740_v55, %v4797_v47 }
 0x63b   :  { %v5514_v49 = vpop.f32.mrf.mxu1  ;;  %v4916_v20 = vpop.f32.mrf.mxu0 }
 0x63c   :  { %v4968_v33 = vmax.f32 %v4922_v29, 0.0  ;;  %v4917_v50 = vadd.f32 %v4916_v20, %v4792_v17 }
 0x63d   :  { %v5516_v52 = vpop.f32.mrf.mxu1  ;;  %v5743_v59 = vpop.f32.mrf.mxu0 }
 0x63e   :  { %4980 = vst [vmem:[#allocation12 + $0x18] sm:$0xff] %v4968_v33  ;;  %v4967_v0 = vmax.f32 %v4917_v50, 0.0 }
 0x63f   :  { %v5517_v54 = vpop.f32.mrf.mxu1  ;;  %v4926_v38 = vpop.f32.mrf.mxu0 }
 0x640   :  { %4979 = vst [vmem:[#allocation12 + $0x10] sm:$0xff] %v4967_v0  ;;  %v5518_v13 = vadd.f32 %v5517_v54, %v5516_v52  ;;  %v4927_v62 = vadd.f32 %v4926_v38, %v4802_v3 }
 0x641   :  { %v5519_v5 = vpop.f32.mrf.mxu1  ;;  %v5746_v36 = vpop.f32.mrf.mxu0 }
 0x642   :  { %v4969_v42 = vmax.f32 %v4927_v62, 0.0  ;;  %v4817_v21 = vadd.f32 %v5518_v13, %v4692_v56 }
 0x643   :  { %v5520_v9 = vpop.f32.mrf.mxu1  ;;  %v4936_v22 = vpop.f32.mrf.mxu0 }
 0x644   :  { %4981 = vst [vmem:[#allocation12 + $0x20] sm:$0xff] %v4969_v42  ;;  %v4942_v43 = vadd.f32 %v5746_v36, %v4817_v21  ;;  %v5521_v57 = vadd.f32 %v5520_v9, %v5519_v5 }
 0x645   :  { %v5522_v45 = vpop.f32.mrf.mxu1  ;;  %v5749_v14 = vpop.f32.mrf.mxu0 }
 0x646   :  { %v4972_v8 = vmax.f32 %v4942_v43, 0.0  ;;  %v4822_v53 = vadd.f32 %v5521_v57, %v4697_v32 }
 0x647   :  { %v5523_v31 = vpop.f32.mrf.mxu1  ;;  %v4946_v16 = vpop.f32.mrf.mxu0 }
 0x648   :  { %4984 = vst [vmem:[#allocation12 + $0x38] sm:$0xff] %v4972_v8  ;;  %v5524_v34 = vadd.f32 %v5523_v31, %v5522_v45  ;;  %v4947_v19 = vadd.f32 %v4946_v16, %v4822_v53 }
 0x649   :  { %v5525_v1 = vpop.f32.mrf.mxu1 }
 0x64a   :  { %v4827_v27 = vadd.f32 %v5524_v34, %v4702_v6  ;;  %v4973_v39 = vmax.f32 %v4947_v19, 0.0 }
 0x64b   :  { %v5526_v4 = vpop.f32.mrf.mxu1 }
 0x64c   :  { %v4952_v11 = vadd.f32 %v5749_v14, %v4827_v27  ;;  %4985 = vst [vmem:[#allocation12 + $0x40] sm:$0xff] %v4973_v39  ;;  %v5527_v23 = vadd.f32 %v5526_v4, %v5525_v1 }
 0x64d   :  { %v5528_v60 = vpop.f32.mrf.mxu1 }
 0x64e   :  { %v4974_v61 = vmax.f32 %v4952_v11, 0.0  ;;  %v4832_v12 = vadd.f32 %v5527_v23, %v4707_v58 }
 0x64f   :  { %v5529_v18 = vpop.f32.mrf.mxu1  ;;  %v4990_v37 = vld [vmem:[#allocation12 + $0x8] ss:$48 sm:$0x3]  ;;  %v4993_v15 = vld [vmem:[#allocation12 + $0x9] ss:$48 sm:$0x3] }
 0x650   :  { %4986 = vst [vmem:[#allocation12 + $0x48] sm:$0xff] %v4974_v61  ;;  %v4994_v24 = vadd.f32 %v4993_v15, %v4990_v37  ;;  %v4996_v2 = vld [vmem:[#allocation12 + $0xa] ss:$48 sm:$0x3] }
 0x651   :  { %v5752_v63 = vpop.f32.mrf.mxu1  ;;  %v4999_v46 = vld [vmem:[#allocation12 + $0xb] ss:$48 sm:$0x3] }
 0x652   :  { %v4997_v25 = vadd.f32 %v4996_v2, %v4994_v24 }
 0x653   :  { %v4956_v44 = vpop.f32.mrf.mxu1  ;;  %v5002_v26 = vld [vmem:[#allocation12 + $0x10] ss:$48 sm:$0x3]  ;;  %v5005_v51 = vld [vmem:[#allocation12 + $0x11] ss:$48 sm:$0x3] }
 0x654   :  { %v4957_v47 = vadd.f32 %v4956_v44, %v4832_v12  ;;  %v5000_v30 = vadd.f32 %v4999_v46, %v4997_v25  ;;  %v5008_v17 = vld [vmem:[#allocation12 + $0x12] ss:$48 sm:$0x3]  ;;  %v5011_v49 = vld [vmem:[#allocation12 + $0x13] ss:$48 sm:$0x3] }
 0x656   :  { %v4975_v41 = vmax.f32 %v4957_v47, 0.0  ;;  %v5003_v55 = vadd.f32 %v5002_v26, %v5000_v30 }
 0x657   :  { %v5014_v20 = vld [vmem:[#allocation12 + $0x18] ss:$48 sm:$0x3]  ;;  %v5017_v33 = vld [vmem:[#allocation12 + $0x19] ss:$48 sm:$0x3] }
 0x658   :  { %4987 = vst [vmem:[#allocation12 + $0x50] sm:$0xff] %v4975_v41  ;;  %v5006_v29 = vadd.f32 %v5005_v51, %v5003_v55  ;;  %v5020_v52 = vld [vmem:[#allocation12 + $0x1a] ss:$48 sm:$0x3] }
 0x659   :  { %v5023_v0 = vld [vmem:[#allocation12 + $0x1b] ss:$48 sm:$0x3] }
 0x65a   :  { %v5009_v7 = vadd.f32 %v5008_v17, %v5006_v29 }
 0x65c   :  { %v5012_v28 = vadd.f32 %v5011_v49, %v5009_v7 }
 0x65e   :  { %v5015_v48 = vadd.f32 %v5014_v20, %v5012_v28 }
 0x65f   :  { %v5026_v35 = vld [vmem:[#allocation12 + $0x20] ss:$48 sm:$0x3]  ;;  %v5029_v38 = vld [vmem:[#allocation12 + $0x21] ss:$48 sm:$0x3] }
 0x660   :  { %v5018_v50 = vadd.f32 %v5017_v33, %v5015_v48  ;;  %v5032_v13 = vld [vmem:[#allocation12 + $0x22] ss:$48 sm:$0x3]  ;;  %v5035_v5 = vld [vmem:[#allocation12 + $0x23] ss:$48 sm:$0x3] }
 0x662   :  { %v5021_v59 = vadd.f32 %v5020_v52, %v5018_v50 }
 0x664   :  { %v5024_v3 = vadd.f32 %v5023_v0, %v5021_v59 }
 0x666   :  { %v5027_v54 = vadd.f32 %v5026_v35, %v5024_v3 }
 0x668   :  { %v5030_v56 = vadd.f32 %v5029_v38, %v5027_v54 }
 0x66a   :  { %v5033_v62 = vadd.f32 %v5032_v13, %v5030_v56 }
 0x66c   :  { %v5036_v36 = vadd.f32 %v5035_v5, %v5033_v62 }
 0x66e   :  { %v5037_v42 = vmul.f32 0.0625, %v5036_v36 }
 0x670   :  { %5038 = vst [vmem:[#allocation13] sm:$0x3] %v5037_v42 }
 0x671   :  { %5802 = shalt.err (!%p5799_p6)
}
 0x672   :  { %5048 = dma.vmem_to_hbm [thread:$0]  %s5046_s11, 32, %s8557_s7, [#allocation14]  }
 0x673   :  { %5819 = dma.done.wait [#allocation14], 32  }
 0x674   :  { %5820 = vsyncadd [#allocation14], 4294967264 }
 0x675   :  { %5052 = vsyncpa [#allocation14], 1 }

</bundles_post_ra>
